<compile_context>
chip_gen: v5e
topology: v5e:2x2
jax: 0.10.0
libtpu: 0.0.40
codegen_flags: <defaults>
</compile_context>

<pallas_src>
import math
import jax
import jax.numpy as jnp
from jax.experimental import pallas as pl
from jax.experimental.pallas import tpu as pltpu

# ---- small synthetic config (consistent with the module's forward) ----
B = 2
PREFIX_LEN = 8            # <= 10 -> clip_project is MLP((prefix_size, E*P//2, E*P)) with Tanh
PREFIX_SIZE = 64
TOK_LEN = 8
N_EMBD = 32               # gpt_embedding_size
N_HEAD = 4
N_LAYER = 2
VOCAB = 128
N_POS = 32
MLP_INNER = 4 * N_EMBD
SEQ = PREFIX_LEN + TOK_LEN
LN_EPS = 1e-5
D_HEAD = N_EMBD // N_HEAD

KPARAM_ORDER = ["mlp_w1", "mlp_b1", "mlp_w2", "mlp_b2",
                "ln1g", "ln1b", "wq", "bq", "wk", "bk", "wv", "bv", "wo", "bo",
                "ln2g", "ln2b", "wfc", "bfc", "wpr", "bpr",
                "lnf_g", "lnf_b", "wte", "wpe", "wteT"]


def _layer_norm(x, g, b):
    """Reference (PyTorch-style) LayerNorm."""
    mu = jnp.mean(x, axis=-1, keepdims=True)
    var = jnp.mean(jnp.square(x - mu), axis=-1, keepdims=True)
    return (x - mu) * jax.lax.rsqrt(var + LN_EPS) * g + b


def _ln_kernel(x, g, b):
    """Kernel LayerNorm: E[x^2] - mu^2 -> the two XLU reductions are independent."""
    mu = jnp.mean(x, axis=-1, keepdims=True)
    ms = jnp.mean(x * x, axis=-1, keepdims=True)
    var = ms - mu * mu
    return (x - mu) * jax.lax.rsqrt(var + LN_EPS) * g + b


# ----------------------------- fused Pallas kernel -----------------------------

def fused_forward_kernel(tokens_ref, prefix_ref,
                         mlp_w1_ref, mlp_b1_ref, mlp_w2_ref, mlp_b2_ref,
                         ln1g_ref, ln1b_ref, wq_ref, bq_ref, wk_ref, bk_ref,
                         wv_ref, bv_ref, wo_ref, bo_ref,
                         ln2g_ref, ln2b_ref, wfc_ref, bfc_ref, wpr_ref, bpr_ref,
                         lnfg_ref, lnfb_ref, wte_ref, wpe_ref, wteT_ref,
                         out_ref, x_scr):
    """Whole ClipCaptionModel forward in one kernel; weights fully VMEM-resident."""
    E, H, T, Dh = N_EMBD, N_HEAD, SEQ, D_HEAD
    BT = B * T
    f32 = jnp.float32

    # ---- clip_project: Linear -> Tanh -> per-prefix-slot Linear ----
    # per-slot dots keep every intermediate lane-aligned (no [B, P*E] lane splitting);
    # each embedding row is written exactly once (projection + wpe fused into the store).
    h1 = jnp.tanh(jnp.dot(prefix_ref[...], mlp_w1_ref[...],
                          preferred_element_type=f32) + mlp_b1_ref[...])            # [B, hid]
    for p in range(PREFIX_LEN):
        x_scr[:, p, :] = (jnp.dot(h1, mlp_w2_ref[p], preferred_element_type=f32)
                          + mlp_b2_ref[p] + wpe_ref[pl.ds(p, 1), :])                 # [B, E]

    # ---- token embeddings in-kernel: one-hot (B*Ttok, V) @ wte (MXU "gather", exact) ----
    iota_v = jax.lax.broadcasted_iota(jnp.int32, (B * TOK_LEN, VOCAB), 1)
    onehot = jnp.where(iota_v == tokens_ref[...], 1.0, 0.0)                           # [B*Ttok, V]
    emb = jnp.dot(onehot, wte_ref[...], preferred_element_type=f32)                   # [B*Ttok, E]
    for b in range(B):
        x_scr[b, PREFIX_LEN:, :] = (emb[b * TOK_LEN:(b + 1) * TOK_LEN, :]
                                    + wpe_ref[PREFIX_LEN:, :])

    # flattened activations [B*T, E] -> plain 2D MXU dots everywhere (no batched dot_general)
    x = x_scr[...].reshape(BT, E)

    # causal additive bias, hoisted out of the layer loop
    qi = jax.lax.broadcasted_iota(jnp.int32, (T, T), 0)
    ki = jax.lax.broadcasted_iota(jnp.int32, (T, T), 1)
    causal_bias = jnp.where(ki <= qi, 0.0, -1e9).astype(f32)                          # [T, T]

    # ---- GPT-2 blocks, fully unrolled (no grid), weights indexed statically ----
    for l in range(N_LAYER):
        # --- causal multi-head self-attention ---
        x1 = _ln_kernel(x, ln1g_ref[l], ln1b_ref[l])                                  # [BT, E]
        attn_rows = []
        for b in range(B):
            x1_b = x1[b * T:(b + 1) * T, :]                # [T, E] sublane-aligned row slice
            acc_b = jnp.zeros((T, E), f32)
            for hh in range(H):
                # per-head weights are ref-indexed (no lane slicing of live values);
                # 1/sqrt(Dh) is folded into wq/bq at prepare_params time.
                q_bh = jnp.dot(x1_b, wq_ref[l, hh], preferred_element_type=f32) + bq_ref[l, hh]
                k_bh = jnp.dot(x1_b, wk_ref[l, hh], preferred_element_type=f32) + bk_ref[l, hh]
                v_bh = jnp.dot(x1_b, wv_ref[l, hh], preferred_element_type=f32) + bv_ref[l, hh]
                # contract the Dh axes directly; at [T,Dh]=[16,8] the internal relayout is
                # cheaper/safer than an explicit sub-128-lane transpose of k.
                s = jnp.einsum("qd,kd->qk", q_bh, k_bh,
                               preferred_element_type=f32) + causal_bias
                s = s - jnp.max(s, axis=-1, keepdims=True)
                pw = jnp.exp(s)
                pw = pw * pl.reciprocal(jnp.sum(pw, axis=-1, keepdims=True), approx=True)
                o_bh = jnp.dot(pw, v_bh, preferred_element_type=f32)                  # [T, Dh]
                # per-head accumulation against a sublane-aligned row slice of wo (no concat)
                acc_b = acc_b + jnp.dot(o_bh, wo_ref[l, hh * Dh:(hh + 1) * Dh, :],
                                        preferred_element_type=f32)                   # [T, E]
            attn_rows.append(acc_b)
        x = x + jnp.concatenate(attn_rows, axis=0) + bo_ref[l]

        # --- feed-forward (GPT-2 "gelu_new" == tanh-approx gelu) ---
        x2 = _ln_kernel(x, ln2g_ref[l], ln2b_ref[l])
        ff = jnp.dot(x2, wfc_ref[l], preferred_element_type=f32) + bfc_ref[l]
        ff = jax.nn.gelu(ff, approximate=True)
        ff = jnp.dot(ff, wpr_ref[l], preferred_element_type=f32) + bpr_ref[l]
        x = x + ff

    # ---- final LN + tied LM head (wte pre-transposed -> lane-dense V=128 store) ----
    xf = _ln_kernel(x, lnfg_ref[...], lnfb_ref[...])
    out_ref[...] = jnp.dot(xf, wteT_ref[...],
                           preferred_element_type=f32).reshape(B, T, VOCAB)


# ----------------------------- wrapper & param prep -----------------------------

def prepare_params(params):
    """One-time (outside jit) re-layout of parameters into the kernel-friendly format."""
    E, H, L, P = N_EMBD, N_HEAD, N_LAYER, PREFIX_LEN
    Dh = E // H
    scale = 1.0 / math.sqrt(Dh)
    hid = params["mlp_w1"].shape[1]
    kp = dict(params)
    # second clip_project linear, split per prefix slot: [hid, P*E] -> [P, hid, E]
    kp["mlp_w2"] = params["mlp_w2"].reshape(hid, P, E).transpose(1, 0, 2)
    kp["mlp_b2"] = params["mlp_b2"].reshape(1, P, E).transpose(1, 0, 2)     # [P, 1, E]
    # split fused QKV into per-head weights; fold 1/sqrt(Dh) into q
    wqkv, bqkv = params["wqkv"], params["bqkv"]
    per_head_w = lambda w: w.reshape(L, E, H, Dh).transpose(0, 2, 1, 3)      # [L, H, E, Dh]
    per_head_b = lambda b: b.reshape(L, 1, H, Dh).transpose(0, 2, 1, 3)      # [L, H, 1, Dh]
    kp["wq"] = per_head_w(wqkv[:, :, :E] * scale)
    kp["wk"] = per_head_w(wqkv[:, :, E:2 * E])
    kp["wv"] = per_head_w(wqkv[:, :, 2 * E:])
    kp["bq"] = per_head_b(bqkv[:, :, :E] * scale)
    kp["bk"] = per_head_b(bqkv[:, :, E:2 * E])
    kp["bv"] = per_head_b(bqkv[:, :, 2 * E:])
    # tied LM head pre-transposed once; positional table pre-sliced to SEQ
    kp["wteT"] = params["wte"].T
    kp["wpe"] = params["wpe"][:SEQ]
    return kp


def clip_caption_forward(tokens, prefix, kparams):
    # tokens [B, TOK_LEN] -> [B*TOK_LEN, 1]: row-major reshape (metadata-only in XLA), so
    # the forward is effectively a single fused custom call; everything else is in-kernel.
    tokens2d = tokens.reshape(B * TOK_LEN, 1)
    return pl.pallas_call(
        fused_forward_kernel,
        out_shape=jax.ShapeDtypeStruct((B, SEQ, VOCAB), jnp.float32),
        scratch_shapes=[pltpu.VMEM((B, SEQ, N_EMBD), jnp.float32)],
    )(tokens2d, prefix, *[kparams[n] for n in KPARAM_ORDER])


# TODO(synk): labels path (loss over concatenated dummy+tokens) not implemented; forward
# matches the inference call (mask=None, labels=None) and returns logits only.

def reference_forward(tokens, prefix, params):
    """Pure-JAX reference with the original math/layout, for correctness checking."""
    emb_text = jnp.take(params["wte"], tokens, axis=0)
    h1 = jnp.tanh(prefix @ params["mlp_w1"] + params["mlp_b1"])
    proj = h1 @ params["mlp_w2"] + params["mlp_b2"]
    x = jnp.concatenate([proj.reshape(B, PREFIX_LEN, N_EMBD), emb_text], axis=1)
    x = x + params["wpe"][None, :SEQ, :]
    T, E, Dh = SEQ, N_EMBD, N_EMBD // N_HEAD
    qi = jax.lax.broadcasted_iota(jnp.int32, (T, T), 0)
    ki = jax.lax.broadcasted_iota(jnp.int32, (T, T), 1)
    causal = (ki <= qi)[None]
    for l in range(N_LAYER):
        x1 = _layer_norm(x, params["ln1g"][l], params["ln1b"][l])
        qkv = jnp.einsum("bte,ef->btf", x1, params["wqkv"][l]) + params["bqkv"][l]
        q, k, v = qkv[..., :E], qkv[..., E:2 * E], qkv[..., 2 * E:]
        outs = []
        for hh in range(N_HEAD):
            qh = q[..., hh * Dh:(hh + 1) * Dh]
            kh = k[..., hh * Dh:(hh + 1) * Dh]
            vh = v[..., hh * Dh:(hh + 1) * Dh]
            s = jnp.einsum("bqd,bkd->bqk", qh, kh) / math.sqrt(Dh)
            s = jnp.where(causal, s, -1e9)
            s = s - jnp.max(s, axis=-1, keepdims=True)
            p = jnp.exp(s)
            p = p / jnp.sum(p, axis=-1, keepdims=True)
            outs.append(jnp.einsum("bqk,bkd->bqd", p, vh))
        attn = jnp.concatenate(outs, axis=-1)
        attn = jnp.einsum("bte,ef->btf", attn, params["wo"][l]) + params["bo"][l]
        x = x + attn
        x2 = _layer_norm(x, params["ln2g"][l], params["ln2b"][l])
        ff = jnp.einsum("bte,ef->btf", x2, params["wfc"][l]) + params["bfc"][l]
        ff = jax.nn.gelu(ff, approximate=True)
        ff = jnp.einsum("btf,fe->bte", ff, params["wpr"][l]) + params["bpr"][l]
        x = x + ff
    x = _layer_norm(x, params["lnf_g"], params["lnf_b"])
    return jnp.einsum("bte,ve->btv", x, params["wte"])


def init_params(key):
    s = 0.02
    E, P, L = N_EMBD, PREFIX_LEN, N_LAYER
    hid = E * P // 2
    ks = iter(jax.random.split(key, 20))
    nrm = lambda shape, scale=s: scale * jax.random.normal(next(ks), shape, jnp.float32)
    p = {}
    # clip_project MLP:  prefix_size -> E*P//2 -> E*P  (Tanh in between)
    p["mlp_w1"] = nrm((PREFIX_SIZE, hid))
    p["mlp_b1"] = nrm((1, hid), 0.01)
    p["mlp_w2"] = nrm((hid, E * P))
    p["mlp_b2"] = nrm((1, E * P), 0.01)
    # GPT-2 (tiny synthetic)
    p["wte"] = nrm((VOCAB, E))
    p["wpe"] = nrm((N_POS, E), 0.01)
    p["ln1g"] = jnp.ones((L, 1, E), jnp.float32)
    p["ln1b"] = jnp.zeros((L, 1, E), jnp.float32)
    p["wqkv"] = nrm((L, E, 3 * E))
    p["bqkv"] = nrm((L, 1, 3 * E), 0.01)
    p["wo"] = nrm((L, E, E))
    p["bo"] = nrm((L, 1, E), 0.01)
    p["ln2g"] = jnp.ones((L, 1, E), jnp.float32)
    p["ln2b"] = jnp.zeros((L, 1, E), jnp.float32)
    p["wfc"] = nrm((L, E, MLP_INNER))
    p["bfc"] = nrm((L, 1, MLP_INNER), 0.01)
    p["wpr"] = nrm((L, MLP_INNER, E))
    p["bpr"] = nrm((L, 1, E), 0.01)
    p["lnf_g"] = jnp.ones((1, E), jnp.float32)
    p["lnf_b"] = jnp.zeros((1, E), jnp.float32)
    return p


if __name__ == "__main__":
    key = jax.random.PRNGKey(0)
    kparam, kt, kx = jax.random.split(key, 3)
    params = init_params(kparam)
    tokens = jax.random.randint(kt, (B, TOK_LEN), 0, VOCAB, dtype=jnp.int32)
    prefix = jax.random.normal(kx, (B, PREFIX_SIZE), dtype=jnp.float32)

    kernel_params = prepare_params(params)          # one-time re-layout, outside jit
    fwd = jax.jit(clip_caption_forward)
    logits = jax.block_until_ready(fwd(tokens, prefix, kernel_params))
    ref = reference_forward(tokens, prefix, params)

    assert logits.shape == (B, SEQ, VOCAB), logits.shape
    # slightly looser than f32-exact to allow the approx (EUP) softmax reciprocal
    assert float(jnp.max(jnp.abs(logits - ref))) < 2e-3
    print("KERNEL_OK")
</pallas_src>

<mosaic_0001>
module attributes {stable_mosaic.version = 11 : i64} {
  func.func @fused_forward_kernel(%arg0: memref<16x1xi32, #tpu.memory_space<vmem>>, %arg1: memref<2x64xf32, #tpu.memory_space<vmem>>, %arg2: memref<64x128xf32, #tpu.memory_space<vmem>>, %arg3: memref<1x128xf32, #tpu.memory_space<vmem>>, %arg4: memref<8x128x32xf32, #tpu.memory_space<vmem>>, %arg5: memref<8x1x32xf32, #tpu.memory_space<vmem>>, %arg6: memref<2x1x32xf32, #tpu.memory_space<vmem>>, %arg7: memref<2x1x32xf32, #tpu.memory_space<vmem>>, %arg8: memref<2x4x32x8xf32, #tpu.memory_space<vmem>>, %arg9: memref<2x4x1x8xf32, #tpu.memory_space<vmem>>, %arg10: memref<2x4x32x8xf32, #tpu.memory_space<vmem>>, %arg11: memref<2x4x1x8xf32, #tpu.memory_space<vmem>>, %arg12: memref<2x4x32x8xf32, #tpu.memory_space<vmem>>, %arg13: memref<2x4x1x8xf32, #tpu.memory_space<vmem>>, %arg14: memref<2x32x32xf32, #tpu.memory_space<vmem>>, %arg15: memref<2x1x32xf32, #tpu.memory_space<vmem>>, %arg16: memref<2x1x32xf32, #tpu.memory_space<vmem>>, %arg17: memref<2x1x32xf32, #tpu.memory_space<vmem>>, %arg18: memref<2x32x128xf32, #tpu.memory_space<vmem>>, %arg19: memref<2x1x128xf32, #tpu.memory_space<vmem>>, %arg20: memref<2x128x32xf32, #tpu.memory_space<vmem>>, %arg21: memref<2x1x32xf32, #tpu.memory_space<vmem>>, %arg22: memref<1x32xf32, #tpu.memory_space<vmem>>, %arg23: memref<1x32xf32, #tpu.memory_space<vmem>>, %arg24: memref<128x32xf32, #tpu.memory_space<vmem>>, %arg25: memref<16x32xf32, #tpu.memory_space<vmem>>, %arg26: memref<32x128xf32, #tpu.memory_space<vmem>>, %arg27: memref<2x16x128xf32, #tpu.memory_space<vmem>>, %arg28: memref<2x16x32xf32, #tpu.memory_space<vmem>>) attributes {dimension_semantics = [], scalar_prefetch = 0 : i64, scratch_operands = 1 : i64, tpu.core_type = #tpu.core_type<tc>} {
    %c0 = arith.constant 0 : index
    %c0_0 = arith.constant 0 : index
    %0 = vector.load %arg1[%c0, %c0_0] : memref<2x64xf32, #tpu.memory_space<vmem>>, vector<2x64xf32>
    %c0_1 = arith.constant 0 : index
    %c0_2 = arith.constant 0 : index
    %1 = vector.load %arg2[%c0_1, %c0_2] : memref<64x128xf32, #tpu.memory_space<vmem>>, vector<64x128xf32>
    %cst = arith.constant dense<0.000000e+00> : vector<2x128xf32>
    %2 = tpu.matmul %0, %1, %cst {dimension_numbers = #tpu.dot_dimension_numbers<[1], [0], [0], [1], [0, 0, 1, 1], [], []>} : vector<2x64xf32>, vector<64x128xf32>, vector<2x128xf32> -> vector<2x128xf32>
    %c0_3 = arith.constant 0 : index
    %c0_4 = arith.constant 0 : index
    %3 = vector.load %arg3[%c0_3, %c0_4] : memref<1x128xf32, #tpu.memory_space<vmem>>, vector<1x128xf32>
    %4 = vector.broadcast %3 : vector<1x128xf32> to vector<2x128xf32>
    %5 = arith.addf %2, %4 : vector<2x128xf32>
    %6 = math.tanh %5 : vector<2x128xf32>
    %c0_5 = arith.constant 0 : index
    %c0_6 = arith.constant 0 : index
    %c0_7 = arith.constant 0 : index
    %7 = vector.load %arg4[%c0_5, %c0_6, %c0_7] : memref<8x128x32xf32, #tpu.memory_space<vmem>>, vector<1x128x32xf32>
    %8 = vector.shape_cast %7 : vector<1x128x32xf32> to vector<128x32xf32>
    %cst_8 = arith.constant dense<0.000000e+00> : vector<2x32xf32>
    %9 = tpu.matmul %6, %8, %cst_8 {dimension_numbers = #tpu.dot_dimension_numbers<[1], [0], [0], [1], [0, 0, 1, 1], [], []>} : vector<2x128xf32>, vector<128x32xf32>, vector<2x32xf32> -> vector<2x32xf32>
    %c0_9 = arith.constant 0 : index
    %c0_10 = arith.constant 0 : index
    %c0_11 = arith.constant 0 : index
    %10 = vector.load %arg5[%c0_9, %c0_10, %c0_11] : memref<8x1x32xf32, #tpu.memory_space<vmem>>, vector<1x1x32xf32>
    %11 = vector.shape_cast %10 : vector<1x1x32xf32> to vector<1x32xf32>
    %12 = vector.broadcast %11 : vector<1x32xf32> to vector<2x32xf32>
    %13 = arith.addf %9, %12 : vector<2x32xf32>
    %c0_12 = arith.constant 0 : index
    %c0_13 = arith.constant 0 : index
    %14 = vector.load %arg25[%c0_12, %c0_13] : memref<16x32xf32, #tpu.memory_space<vmem>>, vector<1x32xf32>
    %15 = vector.broadcast %14 : vector<1x32xf32> to vector<2x32xf32>
    %16 = arith.addf %13, %15 : vector<2x32xf32>
    %c0_14 = arith.constant 0 : index
    %c0_15 = arith.constant 0 : index
    %c0_16 = arith.constant 0 : index
    %17 = vector.load %arg28[%c0_14, %c0_15, %c0_16] : memref<2x16x32xf32, #tpu.memory_space<vmem>>, vector<2x1x32xf32>
    %18 = vector.shape_cast %17 : vector<2x1x32xf32> to vector<2x32xf32>
    %19 = vector.shape_cast %16 : vector<2x32xf32> to vector<2x1x32xf32>
    tpu.vector_store %arg28[%c0_14, %c0_15, %c0_16], %19 {strides = array<i32>} : memref<2x16x32xf32, #tpu.memory_space<vmem>>, vector<2x1x32xf32>,
    %c1 = arith.constant 1 : index
    %c0_17 = arith.constant 0 : index
    %c0_18 = arith.constant 0 : index
    %20 = vector.load %arg4[%c1, %c0_17, %c0_18] : memref<8x128x32xf32, #tpu.memory_space<vmem>>, vector<1x128x32xf32>
    %21 = vector.shape_cast %20 : vector<1x128x32xf32> to vector<128x32xf32>
    %cst_19 = arith.constant dense<0.000000e+00> : vector<2x32xf32>
    %22 = tpu.matmul %6, %21, %cst_19 {dimension_numbers = #tpu.dot_dimension_numbers<[1], [0], [0], [1], [0, 0, 1, 1], [], []>} : vector<2x128xf32>, vector<128x32xf32>, vector<2x32xf32> -> vector<2x32xf32>
    %c1_20 = arith.constant 1 : index
    %c0_21 = arith.constant 0 : index
    %c0_22 = arith.constant 0 : index
    %23 = vector.load %arg5[%c1_20, %c0_21, %c0_22] : memref<8x1x32xf32, #tpu.memory_space<vmem>>, vector<1x1x32xf32>
    %24 = vector.shape_cast %23 : vector<1x1x32xf32> to vector<1x32xf32>
    %25 = vector.broadcast %24 : vector<1x32xf32> to vector<2x32xf32>
    %26 = arith.addf %22, %25 : vector<2x32xf32>
    %c1_23 = arith.constant 1 : index
    %c0_24 = arith.constant 0 : index
    %27 = vector.load %arg25[%c1_23, %c0_24] : memref<16x32xf32, #tpu.memory_space<vmem>>, vector<1x32xf32>
    %28 = vector.broadcast %27 : vector<1x32xf32> to vector<2x32xf32>
    %29 = arith.addf %26, %28 : vector<2x32xf32>
    %c0_25 = arith.constant 0 : index
    %c1_26 = arith.constant 1 : index
    %c0_27 = arith.constant 0 : index
    %30 = vector.load %arg28[%c0_25, %c1_26, %c0_27] : memref<2x16x32xf32, #tpu.memory_space<vmem>>, vector<2x1x32xf32>
    %31 = vector.shape_cast %30 : vector<2x1x32xf32> to vector<2x32xf32>
    %32 = vector.shape_cast %29 : vector<2x32xf32> to vector<2x1x32xf32>
    tpu.vector_store %arg28[%c0_25, %c1_26, %c0_27], %32 {strides = array<i32>} : memref<2x16x32xf32, #tpu.memory_space<vmem>>, vector<2x1x32xf32>,
    %c2 = arith.constant 2 : index
    %c0_28 = arith.constant 0 : index
    %c0_29 = arith.constant 0 : index
    %33 = vector.load %arg4[%c2, %c0_28, %c0_29] : memref<8x128x32xf32, #tpu.memory_space<vmem>>, vector<1x128x32xf32>
    %34 = vector.shape_cast %33 : vector<1x128x32xf32> to vector<128x32xf32>
    %cst_30 = arith.constant dense<0.000000e+00> : vector<2x32xf32>
    %35 = tpu.matmul %6, %34, %cst_30 {dimension_numbers = #tpu.dot_dimension_numbers<[1], [0], [0], [1], [0, 0, 1, 1], [], []>} : vector<2x128xf32>, vector<128x32xf32>, vector<2x32xf32> -> vector<2x32xf32>
    %c2_31 = arith.constant 2 : index
    %c0_32 = arith.constant 0 : index
    %c0_33 = arith.constant 0 : index
    %36 = vector.load %arg5[%c2_31, %c0_32, %c0_33] : memref<8x1x32xf32, #tpu.memory_space<vmem>>, vector<1x1x32xf32>
    %37 = vector.shape_cast %36 : vector<1x1x32xf32> to vector<1x32xf32>
    %38 = vector.broadcast %37 : vector<1x32xf32> to vector<2x32xf32>
    %39 = arith.addf %35, %38 : vector<2x32xf32>
    %c2_34 = arith.constant 2 : index
    %c0_35 = arith.constant 0 : index
    %40 = vector.load %arg25[%c2_34, %c0_35] : memref<16x32xf32, #tpu.memory_space<vmem>>, vector<1x32xf32>
    %41 = vector.broadcast %40 : vector<1x32xf32> to vector<2x32xf32>
    %42 = arith.addf %39, %41 : vector<2x32xf32>
    %c0_36 = arith.constant 0 : index
    %c2_37 = arith.constant 2 : index
    %c0_38 = arith.constant 0 : index
    %43 = vector.load %arg28[%c0_36, %c2_37, %c0_38] : memref<2x16x32xf32, #tpu.memory_space<vmem>>, vector<2x1x32xf32>
    %44 = vector.shape_cast %43 : vector<2x1x32xf32> to vector<2x32xf32>
    %45 = vector.shape_cast %42 : vector<2x32xf32> to vector<2x1x32xf32>
    tpu.vector_store %arg28[%c0_36, %c2_37, %c0_38], %45 {strides = array<i32>} : memref<2x16x32xf32, #tpu.memory_space<vmem>>, vector<2x1x32xf32>,
    %c3 = arith.constant 3 : index
    %c0_39 = arith.constant 0 : index
    %c0_40 = arith.constant 0 : index
    %46 = vector.load %arg4[%c3, %c0_39, %c0_40] : memref<8x128x32xf32, #tpu.memory_space<vmem>>, vector<1x128x32xf32>
    %47 = vector.shape_cast %46 : vector<1x128x32xf32> to vector<128x32xf32>
    %cst_41 = arith.constant dense<0.000000e+00> : vector<2x32xf32>
    %48 = tpu.matmul %6, %47, %cst_41 {dimension_numbers = #tpu.dot_dimension_numbers<[1], [0], [0], [1], [0, 0, 1, 1], [], []>} : vector<2x128xf32>, vector<128x32xf32>, vector<2x32xf32> -> vector<2x32xf32>
    %c3_42 = arith.constant 3 : index
    %c0_43 = arith.constant 0 : index
    %c0_44 = arith.constant 0 : index
    %49 = vector.load %arg5[%c3_42, %c0_43, %c0_44] : memref<8x1x32xf32, #tpu.memory_space<vmem>>, vector<1x1x32xf32>
    %50 = vector.shape_cast %49 : vector<1x1x32xf32> to vector<1x32xf32>
    %51 = vector.broadcast %50 : vector<1x32xf32> to vector<2x32xf32>
    %52 = arith.addf %48, %51 : vector<2x32xf32>
    %c3_45 = arith.constant 3 : index
    %c0_46 = arith.constant 0 : index
    %53 = vector.load %arg25[%c3_45, %c0_46] : memref<16x32xf32, #tpu.memory_space<vmem>>, vector<1x32xf32>
    %54 = vector.broadcast %53 : vector<1x32xf32> to vector<2x32xf32>
    %55 = arith.addf %52, %54 : vector<2x32xf32>
    %c0_47 = arith.constant 0 : index
    %c3_48 = arith.constant 3 : index
    %c0_49 = arith.constant 0 : index
    %56 = vector.load %arg28[%c0_47, %c3_48, %c0_49] : memref<2x16x32xf32, #tpu.memory_space<vmem>>, vector<2x1x32xf32>
    %57 = vector.shape_cast %56 : vector<2x1x32xf32> to vector<2x32xf32>
    %58 = vector.shape_cast %55 : vector<2x32xf32> to vector<2x1x32xf32>
    tpu.vector_store %arg28[%c0_47, %c3_48, %c0_49], %58 {strides = array<i32>} : memref<2x16x32xf32, #tpu.memory_space<vmem>>, vector<2x1x32xf32>,
    %c4 = arith.constant 4 : index
    %c0_50 = arith.constant 0 : index
    %c0_51 = arith.constant 0 : index
    %59 = vector.load %arg4[%c4, %c0_50, %c0_51] : memref<8x128x32xf32, #tpu.memory_space<vmem>>, vector<1x128x32xf32>
    %60 = vector.shape_cast %59 : vector<1x128x32xf32> to vector<128x32xf32>
    %cst_52 = arith.constant dense<0.000000e+00> : vector<2x32xf32>
    %61 = tpu.matmul %6, %60, %cst_52 {dimension_numbers = #tpu.dot_dimension_numbers<[1], [0], [0], [1], [0, 0, 1, 1], [], []>} : vector<2x128xf32>, vector<128x32xf32>, vector<2x32xf32> -> vector<2x32xf32>
    %c4_53 = arith.constant 4 : index
    %c0_54 = arith.constant 0 : index
    %c0_55 = arith.constant 0 : index
    %62 = vector.load %arg5[%c4_53, %c0_54, %c0_55] : memref<8x1x32xf32, #tpu.memory_space<vmem>>, vector<1x1x32xf32>
    %63 = vector.shape_cast %62 : vector<1x1x32xf32> to vector<1x32xf32>
    %64 = vector.broadcast %63 : vector<1x32xf32> to vector<2x32xf32>
    %65 = arith.addf %61, %64 : vector<2x32xf32>
    %c4_56 = arith.constant 4 : index
    %c0_57 = arith.constant 0 : index
    %66 = vector.load %arg25[%c4_56, %c0_57] : memref<16x32xf32, #tpu.memory_space<vmem>>, vector<1x32xf32>
    %67 = vector.broadcast %66 : vector<1x32xf32> to vector<2x32xf32>
    %68 = arith.addf %65, %67 : vector<2x32xf32>
    %c0_58 = arith.constant 0 : index
    %c4_59 = arith.constant 4 : index
    %c0_60 = arith.constant 0 : index
    %69 = vector.load %arg28[%c0_58, %c4_59, %c0_60] : memref<2x16x32xf32, #tpu.memory_space<vmem>>, vector<2x1x32xf32>
    %70 = vector.shape_cast %69 : vector<2x1x32xf32> to vector<2x32xf32>
    %71 = vector.shape_cast %68 : vector<2x32xf32> to vector<2x1x32xf32>
    tpu.vector_store %arg28[%c0_58, %c4_59, %c0_60], %71 {strides = array<i32>} : memref<2x16x32xf32, #tpu.memory_space<vmem>>, vector<2x1x32xf32>,
    %c5 = arith.constant 5 : index
    %c0_61 = arith.constant 0 : index
    %c0_62 = arith.constant 0 : index
    %72 = vector.load %arg4[%c5, %c0_61, %c0_62] : memref<8x128x32xf32, #tpu.memory_space<vmem>>, vector<1x128x32xf32>
    %73 = vector.shape_cast %72 : vector<1x128x32xf32> to vector<128x32xf32>
    %cst_63 = arith.constant dense<0.000000e+00> : vector<2x32xf32>
    %74 = tpu.matmul %6, %73, %cst_63 {dimension_numbers = #tpu.dot_dimension_numbers<[1], [0], [0], [1], [0, 0, 1, 1], [], []>} : vector<2x128xf32>, vector<128x32xf32>, vector<2x32xf32> -> vector<2x32xf32>
    %c5_64 = arith.constant 5 : index
    %c0_65 = arith.constant 0 : index
    %c0_66 = arith.constant 0 : index
    %75 = vector.load %arg5[%c5_64, %c0_65, %c0_66] : memref<8x1x32xf32, #tpu.memory_space<vmem>>, vector<1x1x32xf32>
    %76 = vector.shape_cast %75 : vector<1x1x32xf32> to vector<1x32xf32>
    %77 = vector.broadcast %76 : vector<1x32xf32> to vector<2x32xf32>
    %78 = arith.addf %74, %77 : vector<2x32xf32>
    %c5_67 = arith.constant 5 : index
    %c0_68 = arith.constant 0 : index
    %79 = vector.load %arg25[%c5_67, %c0_68] : memref<16x32xf32, #tpu.memory_space<vmem>>, vector<1x32xf32>
    %80 = vector.broadcast %79 : vector<1x32xf32> to vector<2x32xf32>
    %81 = arith.addf %78, %80 : vector<2x32xf32>
    %c0_69 = arith.constant 0 : index
    %c5_70 = arith.constant 5 : index
    %c0_71 = arith.constant 0 : index
    %82 = vector.load %arg28[%c0_69, %c5_70, %c0_71] : memref<2x16x32xf32, #tpu.memory_space<vmem>>, vector<2x1x32xf32>
    %83 = vector.shape_cast %82 : vector<2x1x32xf32> to vector<2x32xf32>
    %84 = vector.shape_cast %81 : vector<2x32xf32> to vector<2x1x32xf32>
    tpu.vector_store %arg28[%c0_69, %c5_70, %c0_71], %84 {strides = array<i32>} : memref<2x16x32xf32, #tpu.memory_space<vmem>>, vector<2x1x32xf32>,
    %c6 = arith.constant 6 : index
    %c0_72 = arith.constant 0 : index
    %c0_73 = arith.constant 0 : index
    %85 = vector.load %arg4[%c6, %c0_72, %c0_73] : memref<8x128x32xf32, #tpu.memory_space<vmem>>, vector<1x128x32xf32>
    %86 = vector.shape_cast %85 : vector<1x128x32xf32> to vector<128x32xf32>
    %cst_74 = arith.constant dense<0.000000e+00> : vector<2x32xf32>
    %87 = tpu.matmul %6, %86, %cst_74 {dimension_numbers = #tpu.dot_dimension_numbers<[1], [0], [0], [1], [0, 0, 1, 1], [], []>} : vector<2x128xf32>, vector<128x32xf32>, vector<2x32xf32> -> vector<2x32xf32>
    %c6_75 = arith.constant 6 : index
    %c0_76 = arith.constant 0 : index
    %c0_77 = arith.constant 0 : index
    %88 = vector.load %arg5[%c6_75, %c0_76, %c0_77] : memref<8x1x32xf32, #tpu.memory_space<vmem>>, vector<1x1x32xf32>
    %89 = vector.shape_cast %88 : vector<1x1x32xf32> to vector<1x32xf32>
    %90 = vector.broadcast %89 : vector<1x32xf32> to vector<2x32xf32>
    %91 = arith.addf %87, %90 : vector<2x32xf32>
    %c6_78 = arith.constant 6 : index
    %c0_79 = arith.constant 0 : index
    %92 = vector.load %arg25[%c6_78, %c0_79] : memref<16x32xf32, #tpu.memory_space<vmem>>, vector<1x32xf32>
    %93 = vector.broadcast %92 : vector<1x32xf32> to vector<2x32xf32>
    %94 = arith.addf %91, %93 : vector<2x32xf32>
    %c0_80 = arith.constant 0 : index
    %c6_81 = arith.constant 6 : index
    %c0_82 = arith.constant 0 : index
    %95 = vector.load %arg28[%c0_80, %c6_81, %c0_82] : memref<2x16x32xf32, #tpu.memory_space<vmem>>, vector<2x1x32xf32>
    %96 = vector.shape_cast %95 : vector<2x1x32xf32> to vector<2x32xf32>
    %97 = vector.shape_cast %94 : vector<2x32xf32> to vector<2x1x32xf32>
    tpu.vector_store %arg28[%c0_80, %c6_81, %c0_82], %97 {strides = array<i32>} : memref<2x16x32xf32, #tpu.memory_space<vmem>>, vector<2x1x32xf32>,
    %c7 = arith.constant 7 : index
    %c0_83 = arith.constant 0 : index
    %c0_84 = arith.constant 0 : index
    %98 = vector.load %arg4[%c7, %c0_83, %c0_84] : memref<8x128x32xf32, #tpu.memory_space<vmem>>, vector<1x128x32xf32>
    %99 = vector.shape_cast %98 : vector<1x128x32xf32> to vector<128x32xf32>
    %cst_85 = arith.constant dense<0.000000e+00> : vector<2x32xf32>
    %100 = tpu.matmul %6, %99, %cst_85 {dimension_numbers = #tpu.dot_dimension_numbers<[1], [0], [0], [1], [0, 0, 1, 1], [], []>} : vector<2x128xf32>, vector<128x32xf32>, vector<2x32xf32> -> vector<2x32xf32>
    %c7_86 = arith.constant 7 : index
    %c0_87 = arith.constant 0 : index
    %c0_88 = arith.constant 0 : index
    %101 = vector.load %arg5[%c7_86, %c0_87, %c0_88] : memref<8x1x32xf32, #tpu.memory_space<vmem>>, vector<1x1x32xf32>
    %102 = vector.shape_cast %101 : vector<1x1x32xf32> to vector<1x32xf32>
    %103 = vector.broadcast %102 : vector<1x32xf32> to vector<2x32xf32>
    %104 = arith.addf %100, %103 : vector<2x32xf32>
    %c7_89 = arith.constant 7 : index
    %c0_90 = arith.constant 0 : index
    %105 = vector.load %arg25[%c7_89, %c0_90] : memref<16x32xf32, #tpu.memory_space<vmem>>, vector<1x32xf32>
    %106 = vector.broadcast %105 : vector<1x32xf32> to vector<2x32xf32>
    %107 = arith.addf %104, %106 : vector<2x32xf32>
    %c0_91 = arith.constant 0 : index
    %c7_92 = arith.constant 7 : index
    %c0_93 = arith.constant 0 : index
    %108 = vector.load %arg28[%c0_91, %c7_92, %c0_93] : memref<2x16x32xf32, #tpu.memory_space<vmem>>, vector<2x1x32xf32>
    %109 = vector.shape_cast %108 : vector<2x1x32xf32> to vector<2x32xf32>
    %110 = vector.shape_cast %107 : vector<2x32xf32> to vector<2x1x32xf32>
    tpu.vector_store %arg28[%c0_91, %c7_92, %c0_93], %110 {strides = array<i32>} : memref<2x16x32xf32, #tpu.memory_space<vmem>>, vector<2x1x32xf32>,
    %111 = tpu.iota {dimensions = array<i32: 1>} : vector<16x128xi32>
    %c0_94 = arith.constant 0 : index
    %c0_95 = arith.constant 0 : index
    %112 = vector.load %arg0[%c0_94, %c0_95] : memref<16x1xi32, #tpu.memory_space<vmem>>, vector<16x1xi32>
    %113 = vector.broadcast %112 : vector<16x1xi32> to vector<16x128xi32>
    %114 = arith.cmpi eq, %111, %113 : vector<16x128xi32>
    %cst_96 = arith.constant 1.000000e+00 : f32
    %cst_97 = arith.constant 0.000000e+00 : f32
    %115 = vector.broadcast %cst_96 : f32 to vector<16x128xf32>
    %116 = vector.broadcast %cst_97 : f32 to vector<16x128xf32>
    %117 = arith.select %114, %115, %116 : vector<16x128xi1>, vector<16x128xf32>
    %c0_98 = arith.constant 0 : index
    %c0_99 = arith.constant 0 : index
    %118 = vector.load %arg24[%c0_98, %c0_99] : memref<128x32xf32, #tpu.memory_space<vmem>>, vector<128x32xf32>
    %cst_100 = arith.constant dense<0.000000e+00> : vector<16x32xf32>
    %119 = tpu.matmul %117, %118, %cst_100 {dimension_numbers = #tpu.dot_dimension_numbers<[1], [0], [0], [1], [0, 0, 1, 1], [], []>} : vector<16x128xf32>, vector<128x32xf32>, vector<16x32xf32> -> vector<16x32xf32>
    %120 = vector.extract_strided_slice %119 {offsets = [0, 0], sizes = [8, 32], strides = [1, 1]} : vector<16x32xf32> to vector<8x32xf32>
    %c8 = arith.constant 8 : index
    %c0_101 = arith.constant 0 : index
    %121 = vector.load %arg25[%c8, %c0_101] : memref<16x32xf32, #tpu.memory_space<vmem>>, vector<8x32xf32>
    %122 = arith.addf %120, %121 : vector<8x32xf32>
    %c0_102 = arith.constant 0 : index
    %c8_103 = arith.constant 8 : index
    %c0_104 = arith.constant 0 : index
    %123 = vector.load %arg28[%c0_102, %c8_103, %c0_104] : memref<2x16x32xf32, #tpu.memory_space<vmem>>, vector<1x8x32xf32>
    %124 = vector.shape_cast %123 : vector<1x8x32xf32> to vector<8x32xf32>
    %125 = vector.shape_cast %122 : vector<8x32xf32> to vector<1x8x32xf32>
    tpu.vector_store %arg28[%c0_102, %c8_103, %c0_104], %125 {strides = array<i32>} : memref<2x16x32xf32, #tpu.memory_space<vmem>>, vector<1x8x32xf32>,
    %126 = vector.extract_strided_slice %119 {offsets = [8, 0], sizes = [8, 32], strides = [1, 1]} : vector<16x32xf32> to vector<8x32xf32>
    %c8_105 = arith.constant 8 : index
    %c0_106 = arith.constant 0 : index
    %127 = vector.load %arg25[%c8_105, %c0_106] : memref<16x32xf32, #tpu.memory_space<vmem>>, vector<8x32xf32>
    %128 = arith.addf %126, %127 : vector<8x32xf32>
    %c1_107 = arith.constant 1 : index
    %c8_108 = arith.constant 8 : index
    %c0_109 = arith.constant 0 : index
    %129 = vector.load %arg28[%c1_107, %c8_108, %c0_109] : memref<2x16x32xf32, #tpu.memory_space<vmem>>, vector<1x8x32xf32>
    %130 = vector.shape_cast %129 : vector<1x8x32xf32> to vector<8x32xf32>
    %131 = vector.shape_cast %128 : vector<8x32xf32> to vector<1x8x32xf32>
    tpu.vector_store %arg28[%c1_107, %c8_108, %c0_109], %131 {strides = array<i32>} : memref<2x16x32xf32, #tpu.memory_space<vmem>>, vector<1x8x32xf32>,
    %c0_110 = arith.constant 0 : index
    %c0_111 = arith.constant 0 : index
    %c0_112 = arith.constant 0 : index
    %132 = vector.load %arg28[%c0_110, %c0_111, %c0_112] : memref<2x16x32xf32, #tpu.memory_space<vmem>>, vector<2x16x32xf32>
    %133 = vector.shape_cast %132 : vector<2x16x32xf32> to vector<32x32xf32>
    %134 = tpu.iota {dimensions = array<i32: 0>} : vector<16x16xi32>
    %135 = tpu.iota {dimensions = array<i32: 1>} : vector<16x16xi32>
    %136 = arith.cmpi sle, %135, %134 : vector<16x16xi32>
    %cst_113 = arith.constant 0.000000e+00 : f32
    %cst_114 = arith.constant -1.000000e+09 : f32
    %137 = vector.broadcast %cst_113 : f32 to vector<16x16xf32>
    %138 = vector.broadcast %cst_114 : f32 to vector<16x16xf32>
    %139 = arith.select %136, %137, %138 : vector<16x16xi1>, vector<16x16xf32>
    %c0_115 = arith.constant 0 : index
    %c0_116 = arith.constant 0 : index
    %c0_117 = arith.constant 0 : index
    %140 = vector.load %arg6[%c0_115, %c0_116, %c0_117] : memref<2x1x32xf32, #tpu.memory_space<vmem>>, vector<1x1x32xf32>
    %141 = vector.shape_cast %140 : vector<1x1x32xf32> to vector<1x32xf32>
    %c0_118 = arith.constant 0 : index
    %c0_119 = arith.constant 0 : index
    %c0_120 = arith.constant 0 : index
    %142 = vector.load %arg7[%c0_118, %c0_119, %c0_120] : memref<2x1x32xf32, #tpu.memory_space<vmem>>, vector<1x1x32xf32>
    %143 = vector.shape_cast %142 : vector<1x1x32xf32> to vector<1x32xf32>
    %cst_121 = arith.constant dense<0.000000e+00> : vector<32xf32>
    %144 = vector.multi_reduction <add>, %133, %cst_121 [1] : vector<32x32xf32> to vector<32xf32>
    %145 = vector.shape_cast %144 : vector<32xf32> to vector<32x1xf32>
    %cst_122 = arith.constant 3.200000e+01 : f32
    %146 = vector.broadcast %cst_122 : f32 to vector<32x1xf32>
    %147 = arith.divf %145, %146 : vector<32x1xf32>
    %148 = arith.mulf %133, %133 : vector<32x32xf32>
    %cst_123 = arith.constant dense<0.000000e+00> : vector<32xf32>
    %149 = vector.multi_reduction <add>, %148, %cst_123 [1] : vector<32x32xf32> to vector<32xf32>
    %150 = vector.shape_cast %149 : vector<32xf32> to vector<32x1xf32>
    %cst_124 = arith.constant 3.200000e+01 : f32
    %151 = vector.broadcast %cst_124 : f32 to vector<32x1xf32>
    %152 = arith.divf %150, %151 : vector<32x1xf32>
    %153 = arith.mulf %147, %147 : vector<32x1xf32>
    %154 = arith.subf %152, %153 : vector<32x1xf32>
    %155 = vector.broadcast %147 : vector<32x1xf32> to vector<32x32xf32>
    %156 = arith.subf %133, %155 : vector<32x32xf32>
    %cst_125 = arith.constant 9.99999974E-6 : f32
    %157 = vector.broadcast %cst_125 : f32 to vector<32x1xf32>
    %158 = arith.addf %154, %157 : vector<32x1xf32>
    %159 = math.rsqrt %158 : vector<32x1xf32>
    %160 = vector.broadcast %159 : vector<32x1xf32> to vector<32x32xf32>
    %161 = arith.mulf %156, %160 : vector<32x32xf32>
    %162 = vector.broadcast %141 : vector<1x32xf32> to vector<32x32xf32>
    %163 = arith.mulf %161, %162 : vector<32x32xf32>
    %164 = vector.broadcast %143 : vector<1x32xf32> to vector<32x32xf32>
    %165 = arith.addf %163, %164 : vector<32x32xf32>
    %166 = vector.extract_strided_slice %165 {offsets = [0, 0], sizes = [16, 32], strides = [1, 1]} : vector<32x32xf32> to vector<16x32xf32>
    %cst_126 = arith.constant 0.000000e+00 : f32
    %167 = vector.broadcast %cst_126 : f32 to vector<16x32xf32>
    %c0_127 = arith.constant 0 : index
    %c0_128 = arith.constant 0 : index
    %c0_129 = arith.constant 0 : index
    %c0_130 = arith.constant 0 : index
    %168 = vector.load %arg8[%c0_127, %c0_128, %c0_129, %c0_130] : memref<2x4x32x8xf32, #tpu.memory_space<vmem>>, vector<1x1x32x8xf32>
    %169 = vector.shape_cast %168 : vector<1x1x32x8xf32> to vector<32x8xf32>
    %cst_131 = arith.constant dense<0.000000e+00> : vector<16x8xf32>
    %170 = tpu.matmul %166, %169, %cst_131 {dimension_numbers = #tpu.dot_dimension_numbers<[1], [0], [0], [1], [0, 0, 1, 1], [], []>} : vector<16x32xf32>, vector<32x8xf32>, vector<16x8xf32> -> vector<16x8xf32>
    %c0_132 = arith.constant 0 : index
    %c0_133 = arith.constant 0 : index
    %c0_134 = arith.constant 0 : index
    %c0_135 = arith.constant 0 : index
    %171 = vector.load %arg9[%c0_132, %c0_133, %c0_134, %c0_135] : memref<2x4x1x8xf32, #tpu.memory_space<vmem>>, vector<1x1x1x8xf32>
    %172 = vector.shape_cast %171 : vector<1x1x1x8xf32> to vector<1x8xf32>
    %173 = vector.broadcast %172 : vector<1x8xf32> to vector<16x8xf32>
    %174 = arith.addf %170, %173 : vector<16x8xf32>
    %c0_136 = arith.constant 0 : index
    %c0_137 = arith.constant 0 : index
    %c0_138 = arith.constant 0 : index
    %c0_139 = arith.constant 0 : index
    %175 = vector.load %arg10[%c0_136, %c0_137, %c0_138, %c0_139] : memref<2x4x32x8xf32, #tpu.memory_space<vmem>>, vector<1x1x32x8xf32>
    %176 = vector.shape_cast %175 : vector<1x1x32x8xf32> to vector<32x8xf32>
    %cst_140 = arith.constant dense<0.000000e+00> : vector<16x8xf32>
    %177 = tpu.matmul %166, %176, %cst_140 {dimension_numbers = #tpu.dot_dimension_numbers<[1], [0], [0], [1], [0, 0, 1, 1], [], []>} : vector<16x32xf32>, vector<32x8xf32>, vector<16x8xf32> -> vector<16x8xf32>
    %c0_141 = arith.constant 0 : index
    %c0_142 = arith.constant 0 : index
    %c0_143 = arith.constant 0 : index
    %c0_144 = arith.constant 0 : index
    %178 = vector.load %arg11[%c0_141, %c0_142, %c0_143, %c0_144] : memref<2x4x1x8xf32, #tpu.memory_space<vmem>>, vector<1x1x1x8xf32>
    %179 = vector.shape_cast %178 : vector<1x1x1x8xf32> to vector<1x8xf32>
    %180 = vector.broadcast %179 : vector<1x8xf32> to vector<16x8xf32>
    %181 = arith.addf %177, %180 : vector<16x8xf32>
    %c0_145 = arith.constant 0 : index
    %c0_146 = arith.constant 0 : index
    %c0_147 = arith.constant 0 : index
    %c0_148 = arith.constant 0 : index
    %182 = vector.load %arg12[%c0_145, %c0_146, %c0_147, %c0_148] : memref<2x4x32x8xf32, #tpu.memory_space<vmem>>, vector<1x1x32x8xf32>
    %183 = vector.shape_cast %182 : vector<1x1x32x8xf32> to vector<32x8xf32>
    %cst_149 = arith.constant dense<0.000000e+00> : vector<16x8xf32>
    %184 = tpu.matmul %166, %183, %cst_149 {dimension_numbers = #tpu.dot_dimension_numbers<[1], [0], [0], [1], [0, 0, 1, 1], [], []>} : vector<16x32xf32>, vector<32x8xf32>, vector<16x8xf32> -> vector<16x8xf32>
    %c0_150 = arith.constant 0 : index
    %c0_151 = arith.constant 0 : index
    %c0_152 = arith.constant 0 : index
    %c0_153 = arith.constant 0 : index
    %185 = vector.load %arg13[%c0_150, %c0_151, %c0_152, %c0_153] : memref<2x4x1x8xf32, #tpu.memory_space<vmem>>, vector<1x1x1x8xf32>
    %186 = vector.shape_cast %185 : vector<1x1x1x8xf32> to vector<1x8xf32>
    %187 = vector.broadcast %186 : vector<1x8xf32> to vector<16x8xf32>
    %188 = arith.addf %184, %187 : vector<16x8xf32>
    "tpu.trace_start"() <{level = 10 : i32, message = "qd,kd->qk"}> : () -> ()
    %cst_154 = arith.constant dense<0.000000e+00> : vector<16x16xf32>
    %189 = tpu.matmul %174, %181, %cst_154 {dimension_numbers = #tpu.dot_dimension_numbers<[1], [1], [0], [0], [0, 0, 1, 0], [], []>} : vector<16x8xf32>, vector<16x8xf32>, vector<16x16xf32> -> vector<16x16xf32>
    "tpu.trace_stop"() : () -> ()
    %190 = arith.addf %189, %139 : vector<16x16xf32>
    %cst_155 = arith.constant dense<0xFF800000> : vector<16xf32>
    %191 = vector.multi_reduction <maximumf>, %190, %cst_155 [1] : vector<16x16xf32> to vector<16xf32>
    %192 = vector.shape_cast %191 : vector<16xf32> to vector<16x1xf32>
    %193 = vector.broadcast %192 : vector<16x1xf32> to vector<16x16xf32>
    %194 = arith.subf %190, %193 : vector<16x16xf32>
    %195 = math.exp %194 : vector<16x16xf32>
    %cst_156 = arith.constant dense<0.000000e+00> : vector<16xf32>
    %196 = vector.multi_reduction <add>, %195, %cst_156 [1] : vector<16x16xf32> to vector<16xf32>
    %197 = vector.shape_cast %196 : vector<16xf32> to vector<16x1xf32>
    %198 = tpu.reciprocal %197 {approx = true} : vector<16x1xf32> -> vector<16x1xf32>
    %199 = vector.broadcast %198 : vector<16x1xf32> to vector<16x16xf32>
    %200 = arith.mulf %195, %199 : vector<16x16xf32>
    %cst_157 = arith.constant dense<0.000000e+00> : vector<16x8xf32>
    %201 = tpu.matmul %200, %188, %cst_157 {dimension_numbers = #tpu.dot_dimension_numbers<[1], [0], [0], [1], [0, 0, 1, 1], [], []>} : vector<16x16xf32>, vector<16x8xf32>, vector<16x8xf32> -> vector<16x8xf32>
    %c0_158 = arith.constant 0 : index
    %c0_159 = arith.constant 0 : index
    %c0_160 = arith.constant 0 : index
    %202 = vector.load %arg14[%c0_158, %c0_159, %c0_160] : memref<2x32x32xf32, #tpu.memory_space<vmem>>, vector<1x8x32xf32>
    %203 = vector.shape_cast %202 : vector<1x8x32xf32> to vector<8x32xf32>
    %cst_161 = arith.constant dense<0.000000e+00> : vector<16x32xf32>
    %204 = tpu.matmul %201, %203, %cst_161 {dimension_numbers = #tpu.dot_dimension_numbers<[1], [0], [0], [1], [0, 0, 1, 1], [], []>} : vector<16x8xf32>, vector<8x32xf32>, vector<16x32xf32> -> vector<16x32xf32>
    %205 = arith.addf %167, %204 : vector<16x32xf32>
    %c0_162 = arith.constant 0 : index
    %c1_163 = arith.constant 1 : index
    %c0_164 = arith.constant 0 : index
    %c0_165 = arith.constant 0 : index
    %206 = vector.load %arg8[%c0_162, %c1_163, %c0_164, %c0_165] : memref<2x4x32x8xf32, #tpu.memory_space<vmem>>, vector<1x1x32x8xf32>
    %207 = vector.shape_cast %206 : vector<1x1x32x8xf32> to vector<32x8xf32>
    %cst_166 = arith.constant dense<0.000000e+00> : vector<16x8xf32>
    %208 = tpu.matmul %166, %207, %cst_166 {dimension_numbers = #tpu.dot_dimension_numbers<[1], [0], [0], [1], [0, 0, 1, 1], [], []>} : vector<16x32xf32>, vector<32x8xf32>, vector<16x8xf32> -> vector<16x8xf32>
    %c0_167 = arith.constant 0 : index
    %c1_168 = arith.constant 1 : index
    %c0_169 = arith.constant 0 : index
    %c0_170 = arith.constant 0 : index
    %209 = vector.load %arg9[%c0_167, %c1_168, %c0_169, %c0_170] : memref<2x4x1x8xf32, #tpu.memory_space<vmem>>, vector<1x1x1x8xf32>
    %210 = vector.shape_cast %209 : vector<1x1x1x8xf32> to vector<1x8xf32>
    %211 = vector.broadcast %210 : vector<1x8xf32> to vector<16x8xf32>
    %212 = arith.addf %208, %211 : vector<16x8xf32>
    %c0_171 = arith.constant 0 : index
    %c1_172 = arith.constant 1 : index
    %c0_173 = arith.constant 0 : index
    %c0_174 = arith.constant 0 : index
    %213 = vector.load %arg10[%c0_171, %c1_172, %c0_173, %c0_174] : memref<2x4x32x8xf32, #tpu.memory_space<vmem>>, vector<1x1x32x8xf32>
    %214 = vector.shape_cast %213 : vector<1x1x32x8xf32> to vector<32x8xf32>
    %cst_175 = arith.constant dense<0.000000e+00> : vector<16x8xf32>
    %215 = tpu.matmul %166, %214, %cst_175 {dimension_numbers = #tpu.dot_dimension_numbers<[1], [0], [0], [1], [0, 0, 1, 1], [], []>} : vector<16x32xf32>, vector<32x8xf32>, vector<16x8xf32> -> vector<16x8xf32>
    %c0_176 = arith.constant 0 : index
    %c1_177 = arith.constant 1 : index
    %c0_178 = arith.constant 0 : index
    %c0_179 = arith.constant 0 : index
    %216 = vector.load %arg11[%c0_176, %c1_177, %c0_178, %c0_179] : memref<2x4x1x8xf32, #tpu.memory_space<vmem>>, vector<1x1x1x8xf32>
    %217 = vector.shape_cast %216 : vector<1x1x1x8xf32> to vector<1x8xf32>
    %218 = vector.broadcast %217 : vector<1x8xf32> to vector<16x8xf32>
    %219 = arith.addf %215, %218 : vector<16x8xf32>
    %c0_180 = arith.constant 0 : index
    %c1_181 = arith.constant 1 : index
    %c0_182 = arith.constant 0 : index
    %c0_183 = arith.constant 0 : index
    %220 = vector.load %arg12[%c0_180, %c1_181, %c0_182, %c0_183] : memref<2x4x32x8xf32, #tpu.memory_space<vmem>>, vector<1x1x32x8xf32>
    %221 = vector.shape_cast %220 : vector<1x1x32x8xf32> to vector<32x8xf32>
    %cst_184 = arith.constant dense<0.000000e+00> : vector<16x8xf32>
    %222 = tpu.matmul %166, %221, %cst_184 {dimension_numbers = #tpu.dot_dimension_numbers<[1], [0], [0], [1], [0, 0, 1, 1], [], []>} : vector<16x32xf32>, vector<32x8xf32>, vector<16x8xf32> -> vector<16x8xf32>
    %c0_185 = arith.constant 0 : index
    %c1_186 = arith.constant 1 : index
    %c0_187 = arith.constant 0 : index
    %c0_188 = arith.constant 0 : index
    %223 = vector.load %arg13[%c0_185, %c1_186, %c0_187, %c0_188] : memref<2x4x1x8xf32, #tpu.memory_space<vmem>>, vector<1x1x1x8xf32>
    %224 = vector.shape_cast %223 : vector<1x1x1x8xf32> to vector<1x8xf32>
    %225 = vector.broadcast %224 : vector<1x8xf32> to vector<16x8xf32>
    %226 = arith.addf %222, %225 : vector<16x8xf32>
    "tpu.trace_start"() <{level = 10 : i32, message = "qd,kd->qk"}> : () -> ()
    %cst_189 = arith.constant dense<0.000000e+00> : vector<16x16xf32>
    %227 = tpu.matmul %212, %219, %cst_189 {dimension_numbers = #tpu.dot_dimension_numbers<[1], [1], [0], [0], [0, 0, 1, 0], [], []>} : vector<16x8xf32>, vector<16x8xf32>, vector<16x16xf32> -> vector<16x16xf32>
    "tpu.trace_stop"() : () -> ()
    %228 = arith.addf %227, %139 : vector<16x16xf32>
    %cst_190 = arith.constant dense<0xFF800000> : vector<16xf32>
    %229 = vector.multi_reduction <maximumf>, %228, %cst_190 [1] : vector<16x16xf32> to vector<16xf32>
    %230 = vector.shape_cast %229 : vector<16xf32> to vector<16x1xf32>
    %231 = vector.broadcast %230 : vector<16x1xf32> to vector<16x16xf32>
    %232 = arith.subf %228, %231 : vector<16x16xf32>
    %233 = math.exp %232 : vector<16x16xf32>
    %cst_191 = arith.constant dense<0.000000e+00> : vector<16xf32>
    %234 = vector.multi_reduction <add>, %233, %cst_191 [1] : vector<16x16xf32> to vector<16xf32>
    %235 = vector.shape_cast %234 : vector<16xf32> to vector<16x1xf32>
    %236 = tpu.reciprocal %235 {approx = true} : vector<16x1xf32> -> vector<16x1xf32>
    %237 = vector.broadcast %236 : vector<16x1xf32> to vector<16x16xf32>
    %238 = arith.mulf %233, %237 : vector<16x16xf32>
    %cst_192 = arith.constant dense<0.000000e+00> : vector<16x8xf32>
    %239 = tpu.matmul %238, %226, %cst_192 {dimension_numbers = #tpu.dot_dimension_numbers<[1], [0], [0], [1], [0, 0, 1, 1], [], []>} : vector<16x16xf32>, vector<16x8xf32>, vector<16x8xf32> -> vector<16x8xf32>
    %c0_193 = arith.constant 0 : index
    %c8_194 = arith.constant 8 : index
    %c0_195 = arith.constant 0 : index
    %240 = vector.load %arg14[%c0_193, %c8_194, %c0_195] : memref<2x32x32xf32, #tpu.memory_space<vmem>>, vector<1x8x32xf32>
    %241 = vector.shape_cast %240 : vector<1x8x32xf32> to vector<8x32xf32>
    %cst_196 = arith.constant dense<0.000000e+00> : vector<16x32xf32>
    %242 = tpu.matmul %239, %241, %cst_196 {dimension_numbers = #tpu.dot_dimension_numbers<[1], [0], [0], [1], [0, 0, 1, 1], [], []>} : vector<16x8xf32>, vector<8x32xf32>, vector<16x32xf32> -> vector<16x32xf32>
    %243 = arith.addf %205, %242 : vector<16x32xf32>
    %c0_197 = arith.constant 0 : index
    %c2_198 = arith.constant 2 : index
    %c0_199 = arith.constant 0 : index
    %c0_200 = arith.constant 0 : index
    %244 = vector.load %arg8[%c0_197, %c2_198, %c0_199, %c0_200] : memref<2x4x32x8xf32, #tpu.memory_space<vmem>>, vector<1x1x32x8xf32>
    %245 = vector.shape_cast %244 : vector<1x1x32x8xf32> to vector<32x8xf32>
    %cst_201 = arith.constant dense<0.000000e+00> : vector<16x8xf32>
    %246 = tpu.matmul %166, %245, %cst_201 {dimension_numbers = #tpu.dot_dimension_numbers<[1], [0], [0], [1], [0, 0, 1, 1], [], []>} : vector<16x32xf32>, vector<32x8xf32>, vector<16x8xf32> -> vector<16x8xf32>
    %c0_202 = arith.constant 0 : index
    %c2_203 = arith.constant 2 : index
    %c0_204 = arith.constant 0 : index
    %c0_205 = arith.constant 0 : index
    %247 = vector.load %arg9[%c0_202, %c2_203, %c0_204, %c0_205] : memref<2x4x1x8xf32, #tpu.memory_space<vmem>>, vector<1x1x1x8xf32>
    %248 = vector.shape_cast %247 : vector<1x1x1x8xf32> to vector<1x8xf32>
    %249 = vector.broadcast %248 : vector<1x8xf32> to vector<16x8xf32>
    %250 = arith.addf %246, %249 : vector<16x8xf32>
    %c0_206 = arith.constant 0 : index
    %c2_207 = arith.constant 2 : index
    %c0_208 = arith.constant 0 : index
    %c0_209 = arith.constant 0 : index
    %251 = vector.load %arg10[%c0_206, %c2_207, %c0_208, %c0_209] : memref<2x4x32x8xf32, #tpu.memory_space<vmem>>, vector<1x1x32x8xf32>
    %252 = vector.shape_cast %251 : vector<1x1x32x8xf32> to vector<32x8xf32>
    %cst_210 = arith.constant dense<0.000000e+00> : vector<16x8xf32>
    %253 = tpu.matmul %166, %252, %cst_210 {dimension_numbers = #tpu.dot_dimension_numbers<[1], [0], [0], [1], [0, 0, 1, 1], [], []>} : vector<16x32xf32>, vector<32x8xf32>, vector<16x8xf32> -> vector<16x8xf32>
    %c0_211 = arith.constant 0 : index
    %c2_212 = arith.constant 2 : index
    %c0_213 = arith.constant 0 : index
    %c0_214 = arith.constant 0 : index
    %254 = vector.load %arg11[%c0_211, %c2_212, %c0_213, %c0_214] : memref<2x4x1x8xf32, #tpu.memory_space<vmem>>, vector<1x1x1x8xf32>
    %255 = vector.shape_cast %254 : vector<1x1x1x8xf32> to vector<1x8xf32>
    %256 = vector.broadcast %255 : vector<1x8xf32> to vector<16x8xf32>
    %257 = arith.addf %253, %256 : vector<16x8xf32>
    %c0_215 = arith.constant 0 : index
    %c2_216 = arith.constant 2 : index
    %c0_217 = arith.constant 0 : index
    %c0_218 = arith.constant 0 : index
    %258 = vector.load %arg12[%c0_215, %c2_216, %c0_217, %c0_218] : memref<2x4x32x8xf32, #tpu.memory_space<vmem>>, vector<1x1x32x8xf32>
    %259 = vector.shape_cast %258 : vector<1x1x32x8xf32> to vector<32x8xf32>
    %cst_219 = arith.constant dense<0.000000e+00> : vector<16x8xf32>
    %260 = tpu.matmul %166, %259, %cst_219 {dimension_numbers = #tpu.dot_dimension_numbers<[1], [0], [0], [1], [0, 0, 1, 1], [], []>} : vector<16x32xf32>, vector<32x8xf32>, vector<16x8xf32> -> vector<16x8xf32>
    %c0_220 = arith.constant 0 : index
    %c2_221 = arith.constant 2 : index
    %c0_222 = arith.constant 0 : index
    %c0_223 = arith.constant 0 : index
    %261 = vector.load %arg13[%c0_220, %c2_221, %c0_222, %c0_223] : memref<2x4x1x8xf32, #tpu.memory_space<vmem>>, vector<1x1x1x8xf32>
    %262 = vector.shape_cast %261 : vector<1x1x1x8xf32> to vector<1x8xf32>
    %263 = vector.broadcast %262 : vector<1x8xf32> to vector<16x8xf32>
    %264 = arith.addf %260, %263 : vector<16x8xf32>
    "tpu.trace_start"() <{level = 10 : i32, message = "qd,kd->qk"}> : () -> ()
    %cst_224 = arith.constant dense<0.000000e+00> : vector<16x16xf32>
    %265 = tpu.matmul %250, %257, %cst_224 {dimension_numbers = #tpu.dot_dimension_numbers<[1], [1], [0], [0], [0, 0, 1, 0], [], []>} : vector<16x8xf32>, vector<16x8xf32>, vector<16x16xf32> -> vector<16x16xf32>
    "tpu.trace_stop"() : () -> ()
    %266 = arith.addf %265, %139 : vector<16x16xf32>
    %cst_225 = arith.constant dense<0xFF800000> : vector<16xf32>
    %267 = vector.multi_reduction <maximumf>, %266, %cst_225 [1] : vector<16x16xf32> to vector<16xf32>
    %268 = vector.shape_cast %267 : vector<16xf32> to vector<16x1xf32>
    %269 = vector.broadcast %268 : vector<16x1xf32> to vector<16x16xf32>
    %270 = arith.subf %266, %269 : vector<16x16xf32>
    %271 = math.exp %270 : vector<16x16xf32>
    %cst_226 = arith.constant dense<0.000000e+00> : vector<16xf32>
    %272 = vector.multi_reduction <add>, %271, %cst_226 [1] : vector<16x16xf32> to vector<16xf32>
    %273 = vector.shape_cast %272 : vector<16xf32> to vector<16x1xf32>
    %274 = tpu.reciprocal %273 {approx = true} : vector<16x1xf32> -> vector<16x1xf32>
    %275 = vector.broadcast %274 : vector<16x1xf32> to vector<16x16xf32>
    %276 = arith.mulf %271, %275 : vector<16x16xf32>
    %cst_227 = arith.constant dense<0.000000e+00> : vector<16x8xf32>
    %277 = tpu.matmul %276, %264, %cst_227 {dimension_numbers = #tpu.dot_dimension_numbers<[1], [0], [0], [1], [0, 0, 1, 1], [], []>} : vector<16x16xf32>, vector<16x8xf32>, vector<16x8xf32> -> vector<16x8xf32>
    %c0_228 = arith.constant 0 : index
    %c16 = arith.constant 16 : index
    %c0_229 = arith.constant 0 : index
    %278 = vector.load %arg14[%c0_228, %c16, %c0_229] : memref<2x32x32xf32, #tpu.memory_space<vmem>>, vector<1x8x32xf32>
    %279 = vector.shape_cast %278 : vector<1x8x32xf32> to vector<8x32xf32>
    %cst_230 = arith.constant dense<0.000000e+00> : vector<16x32xf32>
    %280 = tpu.matmul %277, %279, %cst_230 {dimension_numbers = #tpu.dot_dimension_numbers<[1], [0], [0], [1], [0, 0, 1, 1], [], []>} : vector<16x8xf32>, vector<8x32xf32>, vector<16x32xf32> -> vector<16x32xf32>
    %281 = arith.addf %243, %280 : vector<16x32xf32>
    %c0_231 = arith.constant 0 : index
    %c3_232 = arith.constant 3 : index
    %c0_233 = arith.constant 0 : index
    %c0_234 = arith.constant 0 : index
    %282 = vector.load %arg8[%c0_231, %c3_232, %c0_233, %c0_234] : memref<2x4x32x8xf32, #tpu.memory_space<vmem>>, vector<1x1x32x8xf32>
    %283 = vector.shape_cast %282 : vector<1x1x32x8xf32> to vector<32x8xf32>
    %cst_235 = arith.constant dense<0.000000e+00> : vector<16x8xf32>
    %284 = tpu.matmul %166, %283, %cst_235 {dimension_numbers = #tpu.dot_dimension_numbers<[1], [0], [0], [1], [0, 0, 1, 1], [], []>} : vector<16x32xf32>, vector<32x8xf32>, vector<16x8xf32> -> vector<16x8xf32>
    %c0_236 = arith.constant 0 : index
    %c3_237 = arith.constant 3 : index
    %c0_238 = arith.constant 0 : index
    %c0_239 = arith.constant 0 : index
    %285 = vector.load %arg9[%c0_236, %c3_237, %c0_238, %c0_239] : memref<2x4x1x8xf32, #tpu.memory_space<vmem>>, vector<1x1x1x8xf32>
    %286 = vector.shape_cast %285 : vector<1x1x1x8xf32> to vector<1x8xf32>
    %287 = vector.broadcast %286 : vector<1x8xf32> to vector<16x8xf32>
    %288 = arith.addf %284, %287 : vector<16x8xf32>
    %c0_240 = arith.constant 0 : index
    %c3_241 = arith.constant 3 : index
    %c0_242 = arith.constant 0 : index
    %c0_243 = arith.constant 0 : index
    %289 = vector.load %arg10[%c0_240, %c3_241, %c0_242, %c0_243] : memref<2x4x32x8xf32, #tpu.memory_space<vmem>>, vector<1x1x32x8xf32>
    %290 = vector.shape_cast %289 : vector<1x1x32x8xf32> to vector<32x8xf32>
    %cst_244 = arith.constant dense<0.000000e+00> : vector<16x8xf32>
    %291 = tpu.matmul %166, %290, %cst_244 {dimension_numbers = #tpu.dot_dimension_numbers<[1], [0], [0], [1], [0, 0, 1, 1], [], []>} : vector<16x32xf32>, vector<32x8xf32>, vector<16x8xf32> -> vector<16x8xf32>
    %c0_245 = arith.constant 0 : index
    %c3_246 = arith.constant 3 : index
    %c0_247 = arith.constant 0 : index
    %c0_248 = arith.constant 0 : index
    %292 = vector.load %arg11[%c0_245, %c3_246, %c0_247, %c0_248] : memref<2x4x1x8xf32, #tpu.memory_space<vmem>>, vector<1x1x1x8xf32>
    %293 = vector.shape_cast %292 : vector<1x1x1x8xf32> to vector<1x8xf32>
    %294 = vector.broadcast %293 : vector<1x8xf32> to vector<16x8xf32>
    %295 = arith.addf %291, %294 : vector<16x8xf32>
    %c0_249 = arith.constant 0 : index
    %c3_250 = arith.constant 3 : index
    %c0_251 = arith.constant 0 : index
    %c0_252 = arith.constant 0 : index
    %296 = vector.load %arg12[%c0_249, %c3_250, %c0_251, %c0_252] : memref<2x4x32x8xf32, #tpu.memory_space<vmem>>, vector<1x1x32x8xf32>
    %297 = vector.shape_cast %296 : vector<1x1x32x8xf32> to vector<32x8xf32>
    %cst_253 = arith.constant dense<0.000000e+00> : vector<16x8xf32>
    %298 = tpu.matmul %166, %297, %cst_253 {dimension_numbers = #tpu.dot_dimension_numbers<[1], [0], [0], [1], [0, 0, 1, 1], [], []>} : vector<16x32xf32>, vector<32x8xf32>, vector<16x8xf32> -> vector<16x8xf32>
    %c0_254 = arith.constant 0 : index
    %c3_255 = arith.constant 3 : index
    %c0_256 = arith.constant 0 : index
    %c0_257 = arith.constant 0 : index
    %299 = vector.load %arg13[%c0_254, %c3_255, %c0_256, %c0_257] : memref<2x4x1x8xf32, #tpu.memory_space<vmem>>, vector<1x1x1x8xf32>
    %300 = vector.shape_cast %299 : vector<1x1x1x8xf32> to vector<1x8xf32>
    %301 = vector.broadcast %300 : vector<1x8xf32> to vector<16x8xf32>
    %302 = arith.addf %298, %301 : vector<16x8xf32>
    "tpu.trace_start"() <{level = 10 : i32, message = "qd,kd->qk"}> : () -> ()
    %cst_258 = arith.constant dense<0.000000e+00> : vector<16x16xf32>
    %303 = tpu.matmul %288, %295, %cst_258 {dimension_numbers = #tpu.dot_dimension_numbers<[1], [1], [0], [0], [0, 0, 1, 0], [], []>} : vector<16x8xf32>, vector<16x8xf32>, vector<16x16xf32> -> vector<16x16xf32>
    "tpu.trace_stop"() : () -> ()
    %304 = arith.addf %303, %139 : vector<16x16xf32>
    %cst_259 = arith.constant dense<0xFF800000> : vector<16xf32>
    %305 = vector.multi_reduction <maximumf>, %304, %cst_259 [1] : vector<16x16xf32> to vector<16xf32>
    %306 = vector.shape_cast %305 : vector<16xf32> to vector<16x1xf32>
    %307 = vector.broadcast %306 : vector<16x1xf32> to vector<16x16xf32>
    %308 = arith.subf %304, %307 : vector<16x16xf32>
    %309 = math.exp %308 : vector<16x16xf32>
    %cst_260 = arith.constant dense<0.000000e+00> : vector<16xf32>
    %310 = vector.multi_reduction <add>, %309, %cst_260 [1] : vector<16x16xf32> to vector<16xf32>
    %311 = vector.shape_cast %310 : vector<16xf32> to vector<16x1xf32>
    %312 = tpu.reciprocal %311 {approx = true} : vector<16x1xf32> -> vector<16x1xf32>
    %313 = vector.broadcast %312 : vector<16x1xf32> to vector<16x16xf32>
    %314 = arith.mulf %309, %313 : vector<16x16xf32>
    %cst_261 = arith.constant dense<0.000000e+00> : vector<16x8xf32>
    %315 = tpu.matmul %314, %302, %cst_261 {dimension_numbers = #tpu.dot_dimension_numbers<[1], [0], [0], [1], [0, 0, 1, 1], [], []>} : vector<16x16xf32>, vector<16x8xf32>, vector<16x8xf32> -> vector<16x8xf32>
    %c0_262 = arith.constant 0 : index
    %c24 = arith.constant 24 : index
    %c0_263 = arith.constant 0 : index
    %316 = vector.load %arg14[%c0_262, %c24, %c0_263] : memref<2x32x32xf32, #tpu.memory_space<vmem>>, vector<1x8x32xf32>
    %317 = vector.shape_cast %316 : vector<1x8x32xf32> to vector<8x32xf32>
    %cst_264 = arith.constant dense<0.000000e+00> : vector<16x32xf32>
    %318 = tpu.matmul %315, %317, %cst_264 {dimension_numbers = #tpu.dot_dimension_numbers<[1], [0], [0], [1], [0, 0, 1, 1], [], []>} : vector<16x8xf32>, vector<8x32xf32>, vector<16x32xf32> -> vector<16x32xf32>
    %319 = arith.addf %281, %318 : vector<16x32xf32>
    %320 = vector.extract_strided_slice %165 {offsets = [16, 0], sizes = [16, 32], strides = [1, 1]} : vector<32x32xf32> to vector<16x32xf32>
    %cst_265 = arith.constant 0.000000e+00 : f32
    %321 = vector.broadcast %cst_265 : f32 to vector<16x32xf32>
    %c0_266 = arith.constant 0 : index
    %c0_267 = arith.constant 0 : index
    %c0_268 = arith.constant 0 : index
    %c0_269 = arith.constant 0 : index
    %322 = vector.load %arg8[%c0_266, %c0_267, %c0_268, %c0_269] : memref<2x4x32x8xf32, #tpu.memory_space<vmem>>, vector<1x1x32x8xf32>
    %323 = vector.shape_cast %322 : vector<1x1x32x8xf32> to vector<32x8xf32>
    %cst_270 = arith.constant dense<0.000000e+00> : vector<16x8xf32>
    %324 = tpu.matmul %320, %323, %cst_270 {dimension_numbers = #tpu.dot_dimension_numbers<[1], [0], [0], [1], [0, 0, 1, 1], [], []>} : vector<16x32xf32>, vector<32x8xf32>, vector<16x8xf32> -> vector<16x8xf32>
    %c0_271 = arith.constant 0 : index
    %c0_272 = arith.constant 0 : index
    %c0_273 = arith.constant 0 : index
    %c0_274 = arith.constant 0 : index
    %325 = vector.load %arg9[%c0_271, %c0_272, %c0_273, %c0_274] : memref<2x4x1x8xf32, #tpu.memory_space<vmem>>, vector<1x1x1x8xf32>
    %326 = vector.shape_cast %325 : vector<1x1x1x8xf32> to vector<1x8xf32>
    %327 = vector.broadcast %326 : vector<1x8xf32> to vector<16x8xf32>
    %328 = arith.addf %324, %327 : vector<16x8xf32>
    %c0_275 = arith.constant 0 : index
    %c0_276 = arith.constant 0 : index
    %c0_277 = arith.constant 0 : index
    %c0_278 = arith.constant 0 : index
    %329 = vector.load %arg10[%c0_275, %c0_276, %c0_277, %c0_278] : memref<2x4x32x8xf32, #tpu.memory_space<vmem>>, vector<1x1x32x8xf32>
    %330 = vector.shape_cast %329 : vector<1x1x32x8xf32> to vector<32x8xf32>
    %cst_279 = arith.constant dense<0.000000e+00> : vector<16x8xf32>
    %331 = tpu.matmul %320, %330, %cst_279 {dimension_numbers = #tpu.dot_dimension_numbers<[1], [0], [0], [1], [0, 0, 1, 1], [], []>} : vector<16x32xf32>, vector<32x8xf32>, vector<16x8xf32> -> vector<16x8xf32>
    %c0_280 = arith.constant 0 : index
    %c0_281 = arith.constant 0 : index
    %c0_282 = arith.constant 0 : index
    %c0_283 = arith.constant 0 : index
    %332 = vector.load %arg11[%c0_280, %c0_281, %c0_282, %c0_283] : memref<2x4x1x8xf32, #tpu.memory_space<vmem>>, vector<1x1x1x8xf32>
    %333 = vector.shape_cast %332 : vector<1x1x1x8xf32> to vector<1x8xf32>
    %334 = vector.broadcast %333 : vector<1x8xf32> to vector<16x8xf32>
    %335 = arith.addf %331, %334 : vector<16x8xf32>
    %c0_284 = arith.constant 0 : index
    %c0_285 = arith.constant 0 : index
    %c0_286 = arith.constant 0 : index
    %c0_287 = arith.constant 0 : index
    %336 = vector.load %arg12[%c0_284, %c0_285, %c0_286, %c0_287] : memref<2x4x32x8xf32, #tpu.memory_space<vmem>>, vector<1x1x32x8xf32>
    %337 = vector.shape_cast %336 : vector<1x1x32x8xf32> to vector<32x8xf32>
    %cst_288 = arith.constant dense<0.000000e+00> : vector<16x8xf32>
    %338 = tpu.matmul %320, %337, %cst_288 {dimension_numbers = #tpu.dot_dimension_numbers<[1], [0], [0], [1], [0, 0, 1, 1], [], []>} : vector<16x32xf32>, vector<32x8xf32>, vector<16x8xf32> -> vector<16x8xf32>
    %c0_289 = arith.constant 0 : index
    %c0_290 = arith.constant 0 : index
    %c0_291 = arith.constant 0 : index
    %c0_292 = arith.constant 0 : index
    %339 = vector.load %arg13[%c0_289, %c0_290, %c0_291, %c0_292] : memref<2x4x1x8xf32, #tpu.memory_space<vmem>>, vector<1x1x1x8xf32>
    %340 = vector.shape_cast %339 : vector<1x1x1x8xf32> to vector<1x8xf32>
    %341 = vector.broadcast %340 : vector<1x8xf32> to vector<16x8xf32>
    %342 = arith.addf %338, %341 : vector<16x8xf32>
    "tpu.trace_start"() <{level = 10 : i32, message = "qd,kd->qk"}> : () -> ()
    %cst_293 = arith.constant dense<0.000000e+00> : vector<16x16xf32>
    %343 = tpu.matmul %328, %335, %cst_293 {dimension_numbers = #tpu.dot_dimension_numbers<[1], [1], [0], [0], [0, 0, 1, 0], [], []>} : vector<16x8xf32>, vector<16x8xf32>, vector<16x16xf32> -> vector<16x16xf32>
    "tpu.trace_stop"() : () -> ()
    %344 = arith.addf %343, %139 : vector<16x16xf32>
    %cst_294 = arith.constant dense<0xFF800000> : vector<16xf32>
    %345 = vector.multi_reduction <maximumf>, %344, %cst_294 [1] : vector<16x16xf32> to vector<16xf32>
    %346 = vector.shape_cast %345 : vector<16xf32> to vector<16x1xf32>
    %347 = vector.broadcast %346 : vector<16x1xf32> to vector<16x16xf32>
    %348 = arith.subf %344, %347 : vector<16x16xf32>
    %349 = math.exp %348 : vector<16x16xf32>
    %cst_295 = arith.constant dense<0.000000e+00> : vector<16xf32>
    %350 = vector.multi_reduction <add>, %349, %cst_295 [1] : vector<16x16xf32> to vector<16xf32>
    %351 = vector.shape_cast %350 : vector<16xf32> to vector<16x1xf32>
    %352 = tpu.reciprocal %351 {approx = true} : vector<16x1xf32> -> vector<16x1xf32>
    %353 = vector.broadcast %352 : vector<16x1xf32> to vector<16x16xf32>
    %354 = arith.mulf %349, %353 : vector<16x16xf32>
    %cst_296 = arith.constant dense<0.000000e+00> : vector<16x8xf32>
    %355 = tpu.matmul %354, %342, %cst_296 {dimension_numbers = #tpu.dot_dimension_numbers<[1], [0], [0], [1], [0, 0, 1, 1], [], []>} : vector<16x16xf32>, vector<16x8xf32>, vector<16x8xf32> -> vector<16x8xf32>
    %c0_297 = arith.constant 0 : index
    %c0_298 = arith.constant 0 : index
    %c0_299 = arith.constant 0 : index
    %356 = vector.load %arg14[%c0_297, %c0_298, %c0_299] : memref<2x32x32xf32, #tpu.memory_space<vmem>>, vector<1x8x32xf32>
    %357 = vector.shape_cast %356 : vector<1x8x32xf32> to vector<8x32xf32>
    %cst_300 = arith.constant dense<0.000000e+00> : vector<16x32xf32>
    %358 = tpu.matmul %355, %357, %cst_300 {dimension_numbers = #tpu.dot_dimension_numbers<[1], [0], [0], [1], [0, 0, 1, 1], [], []>} : vector<16x8xf32>, vector<8x32xf32>, vector<16x32xf32> -> vector<16x32xf32>
    %359 = arith.addf %321, %358 : vector<16x32xf32>
    %c0_301 = arith.constant 0 : index
    %c1_302 = arith.constant 1 : index
    %c0_303 = arith.constant 0 : index
    %c0_304 = arith.constant 0 : index
    %360 = vector.load %arg8[%c0_301, %c1_302, %c0_303, %c0_304] : memref<2x4x32x8xf32, #tpu.memory_space<vmem>>, vector<1x1x32x8xf32>
    %361 = vector.shape_cast %360 : vector<1x1x32x8xf32> to vector<32x8xf32>
    %cst_305 = arith.constant dense<0.000000e+00> : vector<16x8xf32>
    %362 = tpu.matmul %320, %361, %cst_305 {dimension_numbers = #tpu.dot_dimension_numbers<[1], [0], [0], [1], [0, 0, 1, 1], [], []>} : vector<16x32xf32>, vector<32x8xf32>, vector<16x8xf32> -> vector<16x8xf32>
    %c0_306 = arith.constant 0 : index
    %c1_307 = arith.constant 1 : index
    %c0_308 = arith.constant 0 : index
    %c0_309 = arith.constant 0 : index
    %363 = vector.load %arg9[%c0_306, %c1_307, %c0_308, %c0_309] : memref<2x4x1x8xf32, #tpu.memory_space<vmem>>, vector<1x1x1x8xf32>
    %364 = vector.shape_cast %363 : vector<1x1x1x8xf32> to vector<1x8xf32>
    %365 = vector.broadcast %364 : vector<1x8xf32> to vector<16x8xf32>
    %366 = arith.addf %362, %365 : vector<16x8xf32>
    %c0_310 = arith.constant 0 : index
    %c1_311 = arith.constant 1 : index
    %c0_312 = arith.constant 0 : index
    %c0_313 = arith.constant 0 : index
    %367 = vector.load %arg10[%c0_310, %c1_311, %c0_312, %c0_313] : memref<2x4x32x8xf32, #tpu.memory_space<vmem>>, vector<1x1x32x8xf32>
    %368 = vector.shape_cast %367 : vector<1x1x32x8xf32> to vector<32x8xf32>
    %cst_314 = arith.constant dense<0.000000e+00> : vector<16x8xf32>
    %369 = tpu.matmul %320, %368, %cst_314 {dimension_numbers = #tpu.dot_dimension_numbers<[1], [0], [0], [1], [0, 0, 1, 1], [], []>} : vector<16x32xf32>, vector<32x8xf32>, vector<16x8xf32> -> vector<16x8xf32>
    %c0_315 = arith.constant 0 : index
    %c1_316 = arith.constant 1 : index
    %c0_317 = arith.constant 0 : index
    %c0_318 = arith.constant 0 : index
    %370 = vector.load %arg11[%c0_315, %c1_316, %c0_317, %c0_318] : memref<2x4x1x8xf32, #tpu.memory_space<vmem>>, vector<1x1x1x8xf32>
    %371 = vector.shape_cast %370 : vector<1x1x1x8xf32> to vector<1x8xf32>
    %372 = vector.broadcast %371 : vector<1x8xf32> to vector<16x8xf32>
    %373 = arith.addf %369, %372 : vector<16x8xf32>
    %c0_319 = arith.constant 0 : index
    %c1_320 = arith.constant 1 : index
    %c0_321 = arith.constant 0 : index
    %c0_322 = arith.constant 0 : index
    %374 = vector.load %arg12[%c0_319, %c1_320, %c0_321, %c0_322] : memref<2x4x32x8xf32, #tpu.memory_space<vmem>>, vector<1x1x32x8xf32>
    %375 = vector.shape_cast %374 : vector<1x1x32x8xf32> to vector<32x8xf32>
    %cst_323 = arith.constant dense<0.000000e+00> : vector<16x8xf32>
    %376 = tpu.matmul %320, %375, %cst_323 {dimension_numbers = #tpu.dot_dimension_numbers<[1], [0], [0], [1], [0, 0, 1, 1], [], []>} : vector<16x32xf32>, vector<32x8xf32>, vector<16x8xf32> -> vector<16x8xf32>
    %c0_324 = arith.constant 0 : index
    %c1_325 = arith.constant 1 : index
    %c0_326 = arith.constant 0 : index
    %c0_327 = arith.constant 0 : index
    %377 = vector.load %arg13[%c0_324, %c1_325, %c0_326, %c0_327] : memref<2x4x1x8xf32, #tpu.memory_space<vmem>>, vector<1x1x1x8xf32>
    %378 = vector.shape_cast %377 : vector<1x1x1x8xf32> to vector<1x8xf32>
    %379 = vector.broadcast %378 : vector<1x8xf32> to vector<16x8xf32>
    %380 = arith.addf %376, %379 : vector<16x8xf32>
    "tpu.trace_start"() <{level = 10 : i32, message = "qd,kd->qk"}> : () -> ()
    %cst_328 = arith.constant dense<0.000000e+00> : vector<16x16xf32>
    %381 = tpu.matmul %366, %373, %cst_328 {dimension_numbers = #tpu.dot_dimension_numbers<[1], [1], [0], [0], [0, 0, 1, 0], [], []>} : vector<16x8xf32>, vector<16x8xf32>, vector<16x16xf32> -> vector<16x16xf32>
    "tpu.trace_stop"() : () -> ()
    %382 = arith.addf %381, %139 : vector<16x16xf32>
    %cst_329 = arith.constant dense<0xFF800000> : vector<16xf32>
    %383 = vector.multi_reduction <maximumf>, %382, %cst_329 [1] : vector<16x16xf32> to vector<16xf32>
    %384 = vector.shape_cast %383 : vector<16xf32> to vector<16x1xf32>
    %385 = vector.broadcast %384 : vector<16x1xf32> to vector<16x16xf32>
    %386 = arith.subf %382, %385 : vector<16x16xf32>
    %387 = math.exp %386 : vector<16x16xf32>
    %cst_330 = arith.constant dense<0.000000e+00> : vector<16xf32>
    %388 = vector.multi_reduction <add>, %387, %cst_330 [1] : vector<16x16xf32> to vector<16xf32>
    %389 = vector.shape_cast %388 : vector<16xf32> to vector<16x1xf32>
    %390 = tpu.reciprocal %389 {approx = true} : vector<16x1xf32> -> vector<16x1xf32>
    %391 = vector.broadcast %390 : vector<16x1xf32> to vector<16x16xf32>
    %392 = arith.mulf %387, %391 : vector<16x16xf32>
    %cst_331 = arith.constant dense<0.000000e+00> : vector<16x8xf32>
    %393 = tpu.matmul %392, %380, %cst_331 {dimension_numbers = #tpu.dot_dimension_numbers<[1], [0], [0], [1], [0, 0, 1, 1], [], []>} : vector<16x16xf32>, vector<16x8xf32>, vector<16x8xf32> -> vector<16x8xf32>
    %c0_332 = arith.constant 0 : index
    %c8_333 = arith.constant 8 : index
    %c0_334 = arith.constant 0 : index
    %394 = vector.load %arg14[%c0_332, %c8_333, %c0_334] : memref<2x32x32xf32, #tpu.memory_space<vmem>>, vector<1x8x32xf32>
    %395 = vector.shape_cast %394 : vector<1x8x32xf32> to vector<8x32xf32>
    %cst_335 = arith.constant dense<0.000000e+00> : vector<16x32xf32>
    %396 = tpu.matmul %393, %395, %cst_335 {dimension_numbers = #tpu.dot_dimension_numbers<[1], [0], [0], [1], [0, 0, 1, 1], [], []>} : vector<16x8xf32>, vector<8x32xf32>, vector<16x32xf32> -> vector<16x32xf32>
    %397 = arith.addf %359, %396 : vector<16x32xf32>
    %c0_336 = arith.constant 0 : index
    %c2_337 = arith.constant 2 : index
    %c0_338 = arith.constant 0 : index
    %c0_339 = arith.constant 0 : index
    %398 = vector.load %arg8[%c0_336, %c2_337, %c0_338, %c0_339] : memref<2x4x32x8xf32, #tpu.memory_space<vmem>>, vector<1x1x32x8xf32>
    %399 = vector.shape_cast %398 : vector<1x1x32x8xf32> to vector<32x8xf32>
    %cst_340 = arith.constant dense<0.000000e+00> : vector<16x8xf32>
    %400 = tpu.matmul %320, %399, %cst_340 {dimension_numbers = #tpu.dot_dimension_numbers<[1], [0], [0], [1], [0, 0, 1, 1], [], []>} : vector<16x32xf32>, vector<32x8xf32>, vector<16x8xf32> -> vector<16x8xf32>
    %c0_341 = arith.constant 0 : index
    %c2_342 = arith.constant 2 : index
    %c0_343 = arith.constant 0 : index
    %c0_344 = arith.constant 0 : index
    %401 = vector.load %arg9[%c0_341, %c2_342, %c0_343, %c0_344] : memref<2x4x1x8xf32, #tpu.memory_space<vmem>>, vector<1x1x1x8xf32>
    %402 = vector.shape_cast %401 : vector<1x1x1x8xf32> to vector<1x8xf32>
    %403 = vector.broadcast %402 : vector<1x8xf32> to vector<16x8xf32>
    %404 = arith.addf %400, %403 : vector<16x8xf32>
    %c0_345 = arith.constant 0 : index
    %c2_346 = arith.constant 2 : index
    %c0_347 = arith.constant 0 : index
    %c0_348 = arith.constant 0 : index
    %405 = vector.load %arg10[%c0_345, %c2_346, %c0_347, %c0_348] : memref<2x4x32x8xf32, #tpu.memory_space<vmem>>, vector<1x1x32x8xf32>
    %406 = vector.shape_cast %405 : vector<1x1x32x8xf32> to vector<32x8xf32>
    %cst_349 = arith.constant dense<0.000000e+00> : vector<16x8xf32>
    %407 = tpu.matmul %320, %406, %cst_349 {dimension_numbers = #tpu.dot_dimension_numbers<[1], [0], [0], [1], [0, 0, 1, 1], [], []>} : vector<16x32xf32>, vector<32x8xf32>, vector<16x8xf32> -> vector<16x8xf32>
    %c0_350 = arith.constant 0 : index
    %c2_351 = arith.constant 2 : index
    %c0_352 = arith.constant 0 : index
    %c0_353 = arith.constant 0 : index
    %408 = vector.load %arg11[%c0_350, %c2_351, %c0_352, %c0_353] : memref<2x4x1x8xf32, #tpu.memory_space<vmem>>, vector<1x1x1x8xf32>
    %409 = vector.shape_cast %408 : vector<1x1x1x8xf32> to vector<1x8xf32>
    %410 = vector.broadcast %409 : vector<1x8xf32> to vector<16x8xf32>
    %411 = arith.addf %407, %410 : vector<16x8xf32>
    %c0_354 = arith.constant 0 : index
    %c2_355 = arith.constant 2 : index
    %c0_356 = arith.constant 0 : index
    %c0_357 = arith.constant 0 : index
    %412 = vector.load %arg12[%c0_354, %c2_355, %c0_356, %c0_357] : memref<2x4x32x8xf32, #tpu.memory_space<vmem>>, vector<1x1x32x8xf32>
    %413 = vector.shape_cast %412 : vector<1x1x32x8xf32> to vector<32x8xf32>
    %cst_358 = arith.constant dense<0.000000e+00> : vector<16x8xf32>
    %414 = tpu.matmul %320, %413, %cst_358 {dimension_numbers = #tpu.dot_dimension_numbers<[1], [0], [0], [1], [0, 0, 1, 1], [], []>} : vector<16x32xf32>, vector<32x8xf32>, vector<16x8xf32> -> vector<16x8xf32>
    %c0_359 = arith.constant 0 : index
    %c2_360 = arith.constant 2 : index
    %c0_361 = arith.constant 0 : index
    %c0_362 = arith.constant 0 : index
    %415 = vector.load %arg13[%c0_359, %c2_360, %c0_361, %c0_362] : memref<2x4x1x8xf32, #tpu.memory_space<vmem>>, vector<1x1x1x8xf32>
    %416 = vector.shape_cast %415 : vector<1x1x1x8xf32> to vector<1x8xf32>
    %417 = vector.broadcast %416 : vector<1x8xf32> to vector<16x8xf32>
    %418 = arith.addf %414, %417 : vector<16x8xf32>
    "tpu.trace_start"() <{level = 10 : i32, message = "qd,kd->qk"}> : () -> ()
    %cst_363 = arith.constant dense<0.000000e+00> : vector<16x16xf32>
    %419 = tpu.matmul %404, %411, %cst_363 {dimension_numbers = #tpu.dot_dimension_numbers<[1], [1], [0], [0], [0, 0, 1, 0], [], []>} : vector<16x8xf32>, vector<16x8xf32>, vector<16x16xf32> -> vector<16x16xf32>
    "tpu.trace_stop"() : () -> ()
    %420 = arith.addf %419, %139 : vector<16x16xf32>
    %cst_364 = arith.constant dense<0xFF800000> : vector<16xf32>
    %421 = vector.multi_reduction <maximumf>, %420, %cst_364 [1] : vector<16x16xf32> to vector<16xf32>
    %422 = vector.shape_cast %421 : vector<16xf32> to vector<16x1xf32>
    %423 = vector.broadcast %422 : vector<16x1xf32> to vector<16x16xf32>
    %424 = arith.subf %420, %423 : vector<16x16xf32>
    %425 = math.exp %424 : vector<16x16xf32>
    %cst_365 = arith.constant dense<0.000000e+00> : vector<16xf32>
    %426 = vector.multi_reduction <add>, %425, %cst_365 [1] : vector<16x16xf32> to vector<16xf32>
    %427 = vector.shape_cast %426 : vector<16xf32> to vector<16x1xf32>
    %428 = tpu.reciprocal %427 {approx = true} : vector<16x1xf32> -> vector<16x1xf32>
    %429 = vector.broadcast %428 : vector<16x1xf32> to vector<16x16xf32>
    %430 = arith.mulf %425, %429 : vector<16x16xf32>
    %cst_366 = arith.constant dense<0.000000e+00> : vector<16x8xf32>
    %431 = tpu.matmul %430, %418, %cst_366 {dimension_numbers = #tpu.dot_dimension_numbers<[1], [0], [0], [1], [0, 0, 1, 1], [], []>} : vector<16x16xf32>, vector<16x8xf32>, vector<16x8xf32> -> vector<16x8xf32>
    %c0_367 = arith.constant 0 : index
    %c16_368 = arith.constant 16 : index
    %c0_369 = arith.constant 0 : index
    %432 = vector.load %arg14[%c0_367, %c16_368, %c0_369] : memref<2x32x32xf32, #tpu.memory_space<vmem>>, vector<1x8x32xf32>
    %433 = vector.shape_cast %432 : vector<1x8x32xf32> to vector<8x32xf32>
    %cst_370 = arith.constant dense<0.000000e+00> : vector<16x32xf32>
    %434 = tpu.matmul %431, %433, %cst_370 {dimension_numbers = #tpu.dot_dimension_numbers<[1], [0], [0], [1], [0, 0, 1, 1], [], []>} : vector<16x8xf32>, vector<8x32xf32>, vector<16x32xf32> -> vector<16x32xf32>
    %435 = arith.addf %397, %434 : vector<16x32xf32>
    %c0_371 = arith.constant 0 : index
    %c3_372 = arith.constant 3 : index
    %c0_373 = arith.constant 0 : index
    %c0_374 = arith.constant 0 : index
    %436 = vector.load %arg8[%c0_371, %c3_372, %c0_373, %c0_374] : memref<2x4x32x8xf32, #tpu.memory_space<vmem>>, vector<1x1x32x8xf32>
    %437 = vector.shape_cast %436 : vector<1x1x32x8xf32> to vector<32x8xf32>
    %cst_375 = arith.constant dense<0.000000e+00> : vector<16x8xf32>
    %438 = tpu.matmul %320, %437, %cst_375 {dimension_numbers = #tpu.dot_dimension_numbers<[1], [0], [0], [1], [0, 0, 1, 1], [], []>} : vector<16x32xf32>, vector<32x8xf32>, vector<16x8xf32> -> vector<16x8xf32>
    %c0_376 = arith.constant 0 : index
    %c3_377 = arith.constant 3 : index
    %c0_378 = arith.constant 0 : index
    %c0_379 = arith.constant 0 : index
    %439 = vector.load %arg9[%c0_376, %c3_377, %c0_378, %c0_379] : memref<2x4x1x8xf32, #tpu.memory_space<vmem>>, vector<1x1x1x8xf32>
    %440 = vector.shape_cast %439 : vector<1x1x1x8xf32> to vector<1x8xf32>
    %441 = vector.broadcast %440 : vector<1x8xf32> to vector<16x8xf32>
    %442 = arith.addf %438, %441 : vector<16x8xf32>
    %c0_380 = arith.constant 0 : index
    %c3_381 = arith.constant 3 : index
    %c0_382 = arith.constant 0 : index
    %c0_383 = arith.constant 0 : index
    %443 = vector.load %arg10[%c0_380, %c3_381, %c0_382, %c0_383] : memref<2x4x32x8xf32, #tpu.memory_space<vmem>>, vector<1x1x32x8xf32>
    %444 = vector.shape_cast %443 : vector<1x1x32x8xf32> to vector<32x8xf32>
    %cst_384 = arith.constant dense<0.000000e+00> : vector<16x8xf32>
    %445 = tpu.matmul %320, %444, %cst_384 {dimension_numbers = #tpu.dot_dimension_numbers<[1], [0], [0], [1], [0, 0, 1, 1], [], []>} : vector<16x32xf32>, vector<32x8xf32>, vector<16x8xf32> -> vector<16x8xf32>
    %c0_385 = arith.constant 0 : index
    %c3_386 = arith.constant 3 : index
    %c0_387 = arith.constant 0 : index
    %c0_388 = arith.constant 0 : index
    %446 = vector.load %arg11[%c0_385, %c3_386, %c0_387, %c0_388] : memref<2x4x1x8xf32, #tpu.memory_space<vmem>>, vector<1x1x1x8xf32>
    %447 = vector.shape_cast %446 : vector<1x1x1x8xf32> to vector<1x8xf32>
    %448 = vector.broadcast %447 : vector<1x8xf32> to vector<16x8xf32>
    %449 = arith.addf %445, %448 : vector<16x8xf32>
    %c0_389 = arith.constant 0 : index
    %c3_390 = arith.constant 3 : index
    %c0_391 = arith.constant 0 : index
    %c0_392 = arith.constant 0 : index
    %450 = vector.load %arg12[%c0_389, %c3_390, %c0_391, %c0_392] : memref<2x4x32x8xf32, #tpu.memory_space<vmem>>, vector<1x1x32x8xf32>
    %451 = vector.shape_cast %450 : vector<1x1x32x8xf32> to vector<32x8xf32>
    %cst_393 = arith.constant dense<0.000000e+00> : vector<16x8xf32>
    %452 = tpu.matmul %320, %451, %cst_393 {dimension_numbers = #tpu.dot_dimension_numbers<[1], [0], [0], [1], [0, 0, 1, 1], [], []>} : vector<16x32xf32>, vector<32x8xf32>, vector<16x8xf32> -> vector<16x8xf32>
    %c0_394 = arith.constant 0 : index
    %c3_395 = arith.constant 3 : index
    %c0_396 = arith.constant 0 : index
    %c0_397 = arith.constant 0 : index
    %453 = vector.load %arg13[%c0_394, %c3_395, %c0_396, %c0_397] : memref<2x4x1x8xf32, #tpu.memory_space<vmem>>, vector<1x1x1x8xf32>
    %454 = vector.shape_cast %453 : vector<1x1x1x8xf32> to vector<1x8xf32>
    %455 = vector.broadcast %454 : vector<1x8xf32> to vector<16x8xf32>
    %456 = arith.addf %452, %455 : vector<16x8xf32>
    "tpu.trace_start"() <{level = 10 : i32, message = "qd,kd->qk"}> : () -> ()
    %cst_398 = arith.constant dense<0.000000e+00> : vector<16x16xf32>
    %457 = tpu.matmul %442, %449, %cst_398 {dimension_numbers = #tpu.dot_dimension_numbers<[1], [1], [0], [0], [0, 0, 1, 0], [], []>} : vector<16x8xf32>, vector<16x8xf32>, vector<16x16xf32> -> vector<16x16xf32>
    "tpu.trace_stop"() : () -> ()
    %458 = arith.addf %457, %139 : vector<16x16xf32>
    %cst_399 = arith.constant dense<0xFF800000> : vector<16xf32>
    %459 = vector.multi_reduction <maximumf>, %458, %cst_399 [1] : vector<16x16xf32> to vector<16xf32>
    %460 = vector.shape_cast %459 : vector<16xf32> to vector<16x1xf32>
    %461 = vector.broadcast %460 : vector<16x1xf32> to vector<16x16xf32>
    %462 = arith.subf %458, %461 : vector<16x16xf32>
    %463 = math.exp %462 : vector<16x16xf32>
    %cst_400 = arith.constant dense<0.000000e+00> : vector<16xf32>
    %464 = vector.multi_reduction <add>, %463, %cst_400 [1] : vector<16x16xf32> to vector<16xf32>
    %465 = vector.shape_cast %464 : vector<16xf32> to vector<16x1xf32>
    %466 = tpu.reciprocal %465 {approx = true} : vector<16x1xf32> -> vector<16x1xf32>
    %467 = vector.broadcast %466 : vector<16x1xf32> to vector<16x16xf32>
    %468 = arith.mulf %463, %467 : vector<16x16xf32>
    %cst_401 = arith.constant dense<0.000000e+00> : vector<16x8xf32>
    %469 = tpu.matmul %468, %456, %cst_401 {dimension_numbers = #tpu.dot_dimension_numbers<[1], [0], [0], [1], [0, 0, 1, 1], [], []>} : vector<16x16xf32>, vector<16x8xf32>, vector<16x8xf32> -> vector<16x8xf32>
    %c0_402 = arith.constant 0 : index
    %c24_403 = arith.constant 24 : index
    %c0_404 = arith.constant 0 : index
    %470 = vector.load %arg14[%c0_402, %c24_403, %c0_404] : memref<2x32x32xf32, #tpu.memory_space<vmem>>, vector<1x8x32xf32>
    %471 = vector.shape_cast %470 : vector<1x8x32xf32> to vector<8x32xf32>
    %cst_405 = arith.constant dense<0.000000e+00> : vector<16x32xf32>
    %472 = tpu.matmul %469, %471, %cst_405 {dimension_numbers = #tpu.dot_dimension_numbers<[1], [0], [0], [1], [0, 0, 1, 1], [], []>} : vector<16x8xf32>, vector<8x32xf32>, vector<16x32xf32> -> vector<16x32xf32>
    %473 = arith.addf %435, %472 : vector<16x32xf32>
    %474 = tpu.concatenate %319, %473 in 0 : vector<16x32xf32>, vector<16x32xf32> -> vector<32x32xf32>
    %475 = arith.addf %133, %474 : vector<32x32xf32>
    %c0_406 = arith.constant 0 : index
    %c0_407 = arith.constant 0 : index
    %c0_408 = arith.constant 0 : index
    %476 = vector.load %arg15[%c0_406, %c0_407, %c0_408] : memref<2x1x32xf32, #tpu.memory_space<vmem>>, vector<1x1x32xf32>
    %477 = vector.shape_cast %476 : vector<1x1x32xf32> to vector<1x32xf32>
    %478 = vector.broadcast %477 : vector<1x32xf32> to vector<32x32xf32>
    %479 = arith.addf %475, %478 : vector<32x32xf32>
    %c0_409 = arith.constant 0 : index
    %c0_410 = arith.constant 0 : index
    %c0_411 = arith.constant 0 : index
    %480 = vector.load %arg16[%c0_409, %c0_410, %c0_411] : memref<2x1x32xf32, #tpu.memory_space<vmem>>, vector<1x1x32xf32>
    %481 = vector.shape_cast %480 : vector<1x1x32xf32> to vector<1x32xf32>
    %c0_412 = arith.constant 0 : index
    %c0_413 = arith.constant 0 : index
    %c0_414 = arith.constant 0 : index
    %482 = vector.load %arg17[%c0_412, %c0_413, %c0_414] : memref<2x1x32xf32, #tpu.memory_space<vmem>>, vector<1x1x32xf32>
    %483 = vector.shape_cast %482 : vector<1x1x32xf32> to vector<1x32xf32>
    %cst_415 = arith.constant dense<0.000000e+00> : vector<32xf32>
    %484 = vector.multi_reduction <add>, %479, %cst_415 [1] : vector<32x32xf32> to vector<32xf32>
    %485 = vector.shape_cast %484 : vector<32xf32> to vector<32x1xf32>
    %cst_416 = arith.constant 3.200000e+01 : f32
    %486 = vector.broadcast %cst_416 : f32 to vector<32x1xf32>
    %487 = arith.divf %485, %486 : vector<32x1xf32>
    %488 = arith.mulf %479, %479 : vector<32x32xf32>
    %cst_417 = arith.constant dense<0.000000e+00> : vector<32xf32>
    %489 = vector.multi_reduction <add>, %488, %cst_417 [1] : vector<32x32xf32> to vector<32xf32>
    %490 = vector.shape_cast %489 : vector<32xf32> to vector<32x1xf32>
    %cst_418 = arith.constant 3.200000e+01 : f32
    %491 = vector.broadcast %cst_418 : f32 to vector<32x1xf32>
    %492 = arith.divf %490, %491 : vector<32x1xf32>
    %493 = arith.mulf %487, %487 : vector<32x1xf32>
    %494 = arith.subf %492, %493 : vector<32x1xf32>
    %495 = vector.broadcast %487 : vector<32x1xf32> to vector<32x32xf32>
    %496 = arith.subf %479, %495 : vector<32x32xf32>
    %cst_419 = arith.constant 9.99999974E-6 : f32
    %497 = vector.broadcast %cst_419 : f32 to vector<32x1xf32>
    %498 = arith.addf %494, %497 : vector<32x1xf32>
    %499 = math.rsqrt %498 : vector<32x1xf32>
    %500 = vector.broadcast %499 : vector<32x1xf32> to vector<32x32xf32>
    %501 = arith.mulf %496, %500 : vector<32x32xf32>
    %502 = vector.broadcast %481 : vector<1x32xf32> to vector<32x32xf32>
    %503 = arith.mulf %501, %502 : vector<32x32xf32>
    %504 = vector.broadcast %483 : vector<1x32xf32> to vector<32x32xf32>
    %505 = arith.addf %503, %504 : vector<32x32xf32>
    %c0_420 = arith.constant 0 : index
    %c0_421 = arith.constant 0 : index
    %c0_422 = arith.constant 0 : index
    %506 = vector.load %arg18[%c0_420, %c0_421, %c0_422] : memref<2x32x128xf32, #tpu.memory_space<vmem>>, vector<1x32x128xf32>
    %507 = vector.shape_cast %506 : vector<1x32x128xf32> to vector<32x128xf32>
    %cst_423 = arith.constant dense<0.000000e+00> : vector<32x128xf32>
    %508 = tpu.matmul %505, %507, %cst_423 {dimension_numbers = #tpu.dot_dimension_numbers<[1], [0], [0], [1], [0, 0, 1, 1], [], []>} : vector<32x32xf32>, vector<32x128xf32>, vector<32x128xf32> -> vector<32x128xf32>
    %c0_424 = arith.constant 0 : index
    %c0_425 = arith.constant 0 : index
    %c0_426 = arith.constant 0 : index
    %509 = vector.load %arg19[%c0_424, %c0_425, %c0_426] : memref<2x1x128xf32, #tpu.memory_space<vmem>>, vector<1x1x128xf32>
    %510 = vector.shape_cast %509 : vector<1x1x128xf32> to vector<1x128xf32>
    %511 = vector.broadcast %510 : vector<1x128xf32> to vector<32x128xf32>
    %512 = arith.addf %508, %511 : vector<32x128xf32>
    %513 = arith.mulf %512, %512 : vector<32x128xf32>
    %514 = arith.mulf %512, %513 : vector<32x128xf32>
    %cst_427 = arith.constant 4.471500e-02 : f32
    %515 = vector.broadcast %cst_427 : f32 to vector<32x128xf32>
    %516 = arith.mulf %515, %514 : vector<32x128xf32>
    %517 = arith.addf %512, %516 : vector<32x128xf32>
    %cst_428 = arith.constant 0.797884583 : f32
    %518 = vector.broadcast %cst_428 : f32 to vector<32x128xf32>
    %519 = arith.mulf %518, %517 : vector<32x128xf32>
    %520 = math.tanh %519 : vector<32x128xf32>
    %cst_429 = arith.constant 1.000000e+00 : f32
    %521 = vector.broadcast %cst_429 : f32 to vector<32x128xf32>
    %522 = arith.addf %521, %520 : vector<32x128xf32>
    %cst_430 = arith.constant 5.000000e-01 : f32
    %523 = vector.broadcast %cst_430 : f32 to vector<32x128xf32>
    %524 = arith.mulf %523, %522 : vector<32x128xf32>
    %525 = arith.mulf %512, %524 : vector<32x128xf32>
    %c0_431 = arith.constant 0 : index
    %c0_432 = arith.constant 0 : index
    %c0_433 = arith.constant 0 : index
    %526 = vector.load %arg20[%c0_431, %c0_432, %c0_433] : memref<2x128x32xf32, #tpu.memory_space<vmem>>, vector<1x128x32xf32>
    %527 = vector.shape_cast %526 : vector<1x128x32xf32> to vector<128x32xf32>
    %cst_434 = arith.constant dense<0.000000e+00> : vector<32x32xf32>
    %528 = tpu.matmul %525, %527, %cst_434 {dimension_numbers = #tpu.dot_dimension_numbers<[1], [0], [0], [1], [0, 0, 1, 1], [], []>} : vector<32x128xf32>, vector<128x32xf32>, vector<32x32xf32> -> vector<32x32xf32>
    %c0_435 = arith.constant 0 : index
    %c0_436 = arith.constant 0 : index
    %c0_437 = arith.constant 0 : index
    %529 = vector.load %arg21[%c0_435, %c0_436, %c0_437] : memref<2x1x32xf32, #tpu.memory_space<vmem>>, vector<1x1x32xf32>
    %530 = vector.shape_cast %529 : vector<1x1x32xf32> to vector<1x32xf32>
    %531 = vector.broadcast %530 : vector<1x32xf32> to vector<32x32xf32>
    %532 = arith.addf %528, %531 : vector<32x32xf32>
    %533 = arith.addf %479, %532 : vector<32x32xf32>
    %c1_438 = arith.constant 1 : index
    %c0_439 = arith.constant 0 : index
    %c0_440 = arith.constant 0 : index
    %534 = vector.load %arg6[%c1_438, %c0_439, %c0_440] : memref<2x1x32xf32, #tpu.memory_space<vmem>>, vector<1x1x32xf32>
    %535 = vector.shape_cast %534 : vector<1x1x32xf32> to vector<1x32xf32>
    %c1_441 = arith.constant 1 : index
    %c0_442 = arith.constant 0 : index
    %c0_443 = arith.constant 0 : index
    %536 = vector.load %arg7[%c1_441, %c0_442, %c0_443] : memref<2x1x32xf32, #tpu.memory_space<vmem>>, vector<1x1x32xf32>
    %537 = vector.shape_cast %536 : vector<1x1x32xf32> to vector<1x32xf32>
    %cst_444 = arith.constant dense<0.000000e+00> : vector<32xf32>
    %538 = vector.multi_reduction <add>, %533, %cst_444 [1] : vector<32x32xf32> to vector<32xf32>
    %539 = vector.shape_cast %538 : vector<32xf32> to vector<32x1xf32>
    %cst_445 = arith.constant 3.200000e+01 : f32
    %540 = vector.broadcast %cst_445 : f32 to vector<32x1xf32>
    %541 = arith.divf %539, %540 : vector<32x1xf32>
    %542 = arith.mulf %533, %533 : vector<32x32xf32>
    %cst_446 = arith.constant dense<0.000000e+00> : vector<32xf32>
    %543 = vector.multi_reduction <add>, %542, %cst_446 [1] : vector<32x32xf32> to vector<32xf32>
    %544 = vector.shape_cast %543 : vector<32xf32> to vector<32x1xf32>
    %cst_447 = arith.constant 3.200000e+01 : f32
    %545 = vector.broadcast %cst_447 : f32 to vector<32x1xf32>
    %546 = arith.divf %544, %545 : vector<32x1xf32>
    %547 = arith.mulf %541, %541 : vector<32x1xf32>
    %548 = arith.subf %546, %547 : vector<32x1xf32>
    %549 = vector.broadcast %541 : vector<32x1xf32> to vector<32x32xf32>
    %550 = arith.subf %533, %549 : vector<32x32xf32>
    %cst_448 = arith.constant 9.99999974E-6 : f32
    %551 = vector.broadcast %cst_448 : f32 to vector<32x1xf32>
    %552 = arith.addf %548, %551 : vector<32x1xf32>
    %553 = math.rsqrt %552 : vector<32x1xf32>
    %554 = vector.broadcast %553 : vector<32x1xf32> to vector<32x32xf32>
    %555 = arith.mulf %550, %554 : vector<32x32xf32>
    %556 = vector.broadcast %535 : vector<1x32xf32> to vector<32x32xf32>
    %557 = arith.mulf %555, %556 : vector<32x32xf32>
    %558 = vector.broadcast %537 : vector<1x32xf32> to vector<32x32xf32>
    %559 = arith.addf %557, %558 : vector<32x32xf32>
    %560 = vector.extract_strided_slice %559 {offsets = [0, 0], sizes = [16, 32], strides = [1, 1]} : vector<32x32xf32> to vector<16x32xf32>
    %cst_449 = arith.constant 0.000000e+00 : f32
    %561 = vector.broadcast %cst_449 : f32 to vector<16x32xf32>
    %c1_450 = arith.constant 1 : index
    %c0_451 = arith.constant 0 : index
    %c0_452 = arith.constant 0 : index
    %c0_453 = arith.constant 0 : index
    %562 = vector.load %arg8[%c1_450, %c0_451, %c0_452, %c0_453] : memref<2x4x32x8xf32, #tpu.memory_space<vmem>>, vector<1x1x32x8xf32>
    %563 = vector.shape_cast %562 : vector<1x1x32x8xf32> to vector<32x8xf32>
    %cst_454 = arith.constant dense<0.000000e+00> : vector<16x8xf32>
    %564 = tpu.matmul %560, %563, %cst_454 {dimension_numbers = #tpu.dot_dimension_numbers<[1], [0], [0], [1], [0, 0, 1, 1], [], []>} : vector<16x32xf32>, vector<32x8xf32>, vector<16x8xf32> -> vector<16x8xf32>
    %c1_455 = arith.constant 1 : index
    %c0_456 = arith.constant 0 : index
    %c0_457 = arith.constant 0 : index
    %c0_458 = arith.constant 0 : index
    %565 = vector.load %arg9[%c1_455, %c0_456, %c0_457, %c0_458] : memref<2x4x1x8xf32, #tpu.memory_space<vmem>>, vector<1x1x1x8xf32>
    %566 = vector.shape_cast %565 : vector<1x1x1x8xf32> to vector<1x8xf32>
    %567 = vector.broadcast %566 : vector<1x8xf32> to vector<16x8xf32>
    %568 = arith.addf %564, %567 : vector<16x8xf32>
    %c1_459 = arith.constant 1 : index
    %c0_460 = arith.constant 0 : index
    %c0_461 = arith.constant 0 : index
    %c0_462 = arith.constant 0 : index
    %569 = vector.load %arg10[%c1_459, %c0_460, %c0_461, %c0_462] : memref<2x4x32x8xf32, #tpu.memory_space<vmem>>, vector<1x1x32x8xf32>
    %570 = vector.shape_cast %569 : vector<1x1x32x8xf32> to vector<32x8xf32>
    %cst_463 = arith.constant dense<0.000000e+00> : vector<16x8xf32>
    %571 = tpu.matmul %560, %570, %cst_463 {dimension_numbers = #tpu.dot_dimension_numbers<[1], [0], [0], [1], [0, 0, 1, 1], [], []>} : vector<16x32xf32>, vector<32x8xf32>, vector<16x8xf32> -> vector<16x8xf32>
    %c1_464 = arith.constant 1 : index
    %c0_465 = arith.constant 0 : index
    %c0_466 = arith.constant 0 : index
    %c0_467 = arith.constant 0 : index
    %572 = vector.load %arg11[%c1_464, %c0_465, %c0_466, %c0_467] : memref<2x4x1x8xf32, #tpu.memory_space<vmem>>, vector<1x1x1x8xf32>
    %573 = vector.shape_cast %572 : vector<1x1x1x8xf32> to vector<1x8xf32>
    %574 = vector.broadcast %573 : vector<1x8xf32> to vector<16x8xf32>
    %575 = arith.addf %571, %574 : vector<16x8xf32>
    %c1_468 = arith.constant 1 : index
    %c0_469 = arith.constant 0 : index
    %c0_470 = arith.constant 0 : index
    %c0_471 = arith.constant 0 : index
    %576 = vector.load %arg12[%c1_468, %c0_469, %c0_470, %c0_471] : memref<2x4x32x8xf32, #tpu.memory_space<vmem>>, vector<1x1x32x8xf32>
    %577 = vector.shape_cast %576 : vector<1x1x32x8xf32> to vector<32x8xf32>
    %cst_472 = arith.constant dense<0.000000e+00> : vector<16x8xf32>
    %578 = tpu.matmul %560, %577, %cst_472 {dimension_numbers = #tpu.dot_dimension_numbers<[1], [0], [0], [1], [0, 0, 1, 1], [], []>} : vector<16x32xf32>, vector<32x8xf32>, vector<16x8xf32> -> vector<16x8xf32>
    %c1_473 = arith.constant 1 : index
    %c0_474 = arith.constant 0 : index
    %c0_475 = arith.constant 0 : index
    %c0_476 = arith.constant 0 : index
    %579 = vector.load %arg13[%c1_473, %c0_474, %c0_475, %c0_476] : memref<2x4x1x8xf32, #tpu.memory_space<vmem>>, vector<1x1x1x8xf32>
    %580 = vector.shape_cast %579 : vector<1x1x1x8xf32> to vector<1x8xf32>
    %581 = vector.broadcast %580 : vector<1x8xf32> to vector<16x8xf32>
    %582 = arith.addf %578, %581 : vector<16x8xf32>
    "tpu.trace_start"() <{level = 10 : i32, message = "qd,kd->qk"}> : () -> ()
    %cst_477 = arith.constant dense<0.000000e+00> : vector<16x16xf32>
    %583 = tpu.matmul %568, %575, %cst_477 {dimension_numbers = #tpu.dot_dimension_numbers<[1], [1], [0], [0], [0, 0, 1, 0], [], []>} : vector<16x8xf32>, vector<16x8xf32>, vector<16x16xf32> -> vector<16x16xf32>
    "tpu.trace_stop"() : () -> ()
    %584 = arith.addf %583, %139 : vector<16x16xf32>
    %cst_478 = arith.constant dense<0xFF800000> : vector<16xf32>
    %585 = vector.multi_reduction <maximumf>, %584, %cst_478 [1] : vector<16x16xf32> to vector<16xf32>
    %586 = vector.shape_cast %585 : vector<16xf32> to vector<16x1xf32>
    %587 = vector.broadcast %586 : vector<16x1xf32> to vector<16x16xf32>
    %588 = arith.subf %584, %587 : vector<16x16xf32>
    %589 = math.exp %588 : vector<16x16xf32>
    %cst_479 = arith.constant dense<0.000000e+00> : vector<16xf32>
    %590 = vector.multi_reduction <add>, %589, %cst_479 [1] : vector<16x16xf32> to vector<16xf32>
    %591 = vector.shape_cast %590 : vector<16xf32> to vector<16x1xf32>
    %592 = tpu.reciprocal %591 {approx = true} : vector<16x1xf32> -> vector<16x1xf32>
    %593 = vector.broadcast %592 : vector<16x1xf32> to vector<16x16xf32>
    %594 = arith.mulf %589, %593 : vector<16x16xf32>
    %cst_480 = arith.constant dense<0.000000e+00> : vector<16x8xf32>
    %595 = tpu.matmul %594, %582, %cst_480 {dimension_numbers = #tpu.dot_dimension_numbers<[1], [0], [0], [1], [0, 0, 1, 1], [], []>} : vector<16x16xf32>, vector<16x8xf32>, vector<16x8xf32> -> vector<16x8xf32>
    %c1_481 = arith.constant 1 : index
    %c0_482 = arith.constant 0 : index
    %c0_483 = arith.constant 0 : index
    %596 = vector.load %arg14[%c1_481, %c0_482, %c0_483] : memref<2x32x32xf32, #tpu.memory_space<vmem>>, vector<1x8x32xf32>
    %597 = vector.shape_cast %596 : vector<1x8x32xf32> to vector<8x32xf32>
    %cst_484 = arith.constant dense<0.000000e+00> : vector<16x32xf32>
    %598 = tpu.matmul %595, %597, %cst_484 {dimension_numbers = #tpu.dot_dimension_numbers<[1], [0], [0], [1], [0, 0, 1, 1], [], []>} : vector<16x8xf32>, vector<8x32xf32>, vector<16x32xf32> -> vector<16x32xf32>
    %599 = arith.addf %561, %598 : vector<16x32xf32>
    %c1_485 = arith.constant 1 : index
    %c1_486 = arith.constant 1 : index
    %c0_487 = arith.constant 0 : index
    %c0_488 = arith.constant 0 : index
    %600 = vector.load %arg8[%c1_485, %c1_486, %c0_487, %c0_488] : memref<2x4x32x8xf32, #tpu.memory_space<vmem>>, vector<1x1x32x8xf32>
    %601 = vector.shape_cast %600 : vector<1x1x32x8xf32> to vector<32x8xf32>
    %cst_489 = arith.constant dense<0.000000e+00> : vector<16x8xf32>
    %602 = tpu.matmul %560, %601, %cst_489 {dimension_numbers = #tpu.dot_dimension_numbers<[1], [0], [0], [1], [0, 0, 1, 1], [], []>} : vector<16x32xf32>, vector<32x8xf32>, vector<16x8xf32> -> vector<16x8xf32>
    %c1_490 = arith.constant 1 : index
    %c1_491 = arith.constant 1 : index
    %c0_492 = arith.constant 0 : index
    %c0_493 = arith.constant 0 : index
    %603 = vector.load %arg9[%c1_490, %c1_491, %c0_492, %c0_493] : memref<2x4x1x8xf32, #tpu.memory_space<vmem>>, vector<1x1x1x8xf32>
    %604 = vector.shape_cast %603 : vector<1x1x1x8xf32> to vector<1x8xf32>
    %605 = vector.broadcast %604 : vector<1x8xf32> to vector<16x8xf32>
    %606 = arith.addf %602, %605 : vector<16x8xf32>
    %c1_494 = arith.constant 1 : index
    %c1_495 = arith.constant 1 : index
    %c0_496 = arith.constant 0 : index
    %c0_497 = arith.constant 0 : index
    %607 = vector.load %arg10[%c1_494, %c1_495, %c0_496, %c0_497] : memref<2x4x32x8xf32, #tpu.memory_space<vmem>>, vector<1x1x32x8xf32>
    %608 = vector.shape_cast %607 : vector<1x1x32x8xf32> to vector<32x8xf32>
    %cst_498 = arith.constant dense<0.000000e+00> : vector<16x8xf32>
    %609 = tpu.matmul %560, %608, %cst_498 {dimension_numbers = #tpu.dot_dimension_numbers<[1], [0], [0], [1], [0, 0, 1, 1], [], []>} : vector<16x32xf32>, vector<32x8xf32>, vector<16x8xf32> -> vector<16x8xf32>
    %c1_499 = arith.constant 1 : index
    %c1_500 = arith.constant 1 : index
    %c0_501 = arith.constant 0 : index
    %c0_502 = arith.constant 0 : index
    %610 = vector.load %arg11[%c1_499, %c1_500, %c0_501, %c0_502] : memref<2x4x1x8xf32, #tpu.memory_space<vmem>>, vector<1x1x1x8xf32>
    %611 = vector.shape_cast %610 : vector<1x1x1x8xf32> to vector<1x8xf32>
    %612 = vector.broadcast %611 : vector<1x8xf32> to vector<16x8xf32>
    %613 = arith.addf %609, %612 : vector<16x8xf32>
    %c1_503 = arith.constant 1 : index
    %c1_504 = arith.constant 1 : index
    %c0_505 = arith.constant 0 : index
    %c0_506 = arith.constant 0 : index
    %614 = vector.load %arg12[%c1_503, %c1_504, %c0_505, %c0_506] : memref<2x4x32x8xf32, #tpu.memory_space<vmem>>, vector<1x1x32x8xf32>
    %615 = vector.shape_cast %614 : vector<1x1x32x8xf32> to vector<32x8xf32>
    %cst_507 = arith.constant dense<0.000000e+00> : vector<16x8xf32>
    %616 = tpu.matmul %560, %615, %cst_507 {dimension_numbers = #tpu.dot_dimension_numbers<[1], [0], [0], [1], [0, 0, 1, 1], [], []>} : vector<16x32xf32>, vector<32x8xf32>, vector<16x8xf32> -> vector<16x8xf32>
    %c1_508 = arith.constant 1 : index
    %c1_509 = arith.constant 1 : index
    %c0_510 = arith.constant 0 : index
    %c0_511 = arith.constant 0 : index
    %617 = vector.load %arg13[%c1_508, %c1_509, %c0_510, %c0_511] : memref<2x4x1x8xf32, #tpu.memory_space<vmem>>, vector<1x1x1x8xf32>
    %618 = vector.shape_cast %617 : vector<1x1x1x8xf32> to vector<1x8xf32>
    %619 = vector.broadcast %618 : vector<1x8xf32> to vector<16x8xf32>
    %620 = arith.addf %616, %619 : vector<16x8xf32>
    "tpu.trace_start"() <{level = 10 : i32, message = "qd,kd->qk"}> : () -> ()
    %cst_512 = arith.constant dense<0.000000e+00> : vector<16x16xf32>
    %621 = tpu.matmul %606, %613, %cst_512 {dimension_numbers = #tpu.dot_dimension_numbers<[1], [1], [0], [0], [0, 0, 1, 0], [], []>} : vector<16x8xf32>, vector<16x8xf32>, vector<16x16xf32> -> vector<16x16xf32>
    "tpu.trace_stop"() : () -> ()
    %622 = arith.addf %621, %139 : vector<16x16xf32>
    %cst_513 = arith.constant dense<0xFF800000> : vector<16xf32>
    %623 = vector.multi_reduction <maximumf>, %622, %cst_513 [1] : vector<16x16xf32> to vector<16xf32>
    %624 = vector.shape_cast %623 : vector<16xf32> to vector<16x1xf32>
    %625 = vector.broadcast %624 : vector<16x1xf32> to vector<16x16xf32>
    %626 = arith.subf %622, %625 : vector<16x16xf32>
    %627 = math.exp %626 : vector<16x16xf32>
    %cst_514 = arith.constant dense<0.000000e+00> : vector<16xf32>
    %628 = vector.multi_reduction <add>, %627, %cst_514 [1] : vector<16x16xf32> to vector<16xf32>
    %629 = vector.shape_cast %628 : vector<16xf32> to vector<16x1xf32>
    %630 = tpu.reciprocal %629 {approx = true} : vector<16x1xf32> -> vector<16x1xf32>
    %631 = vector.broadcast %630 : vector<16x1xf32> to vector<16x16xf32>
    %632 = arith.mulf %627, %631 : vector<16x16xf32>
    %cst_515 = arith.constant dense<0.000000e+00> : vector<16x8xf32>
    %633 = tpu.matmul %632, %620, %cst_515 {dimension_numbers = #tpu.dot_dimension_numbers<[1], [0], [0], [1], [0, 0, 1, 1], [], []>} : vector<16x16xf32>, vector<16x8xf32>, vector<16x8xf32> -> vector<16x8xf32>
    %c1_516 = arith.constant 1 : index
    %c8_517 = arith.constant 8 : index
    %c0_518 = arith.constant 0 : index
    %634 = vector.load %arg14[%c1_516, %c8_517, %c0_518] : memref<2x32x32xf32, #tpu.memory_space<vmem>>, vector<1x8x32xf32>
    %635 = vector.shape_cast %634 : vector<1x8x32xf32> to vector<8x32xf32>
    %cst_519 = arith.constant dense<0.000000e+00> : vector<16x32xf32>
    %636 = tpu.matmul %633, %635, %cst_519 {dimension_numbers = #tpu.dot_dimension_numbers<[1], [0], [0], [1], [0, 0, 1, 1], [], []>} : vector<16x8xf32>, vector<8x32xf32>, vector<16x32xf32> -> vector<16x32xf32>
    %637 = arith.addf %599, %636 : vector<16x32xf32>
    %c1_520 = arith.constant 1 : index
    %c2_521 = arith.constant 2 : index
    %c0_522 = arith.constant 0 : index
    %c0_523 = arith.constant 0 : index
    %638 = vector.load %arg8[%c1_520, %c2_521, %c0_522, %c0_523] : memref<2x4x32x8xf32, #tpu.memory_space<vmem>>, vector<1x1x32x8xf32>
    %639 = vector.shape_cast %638 : vector<1x1x32x8xf32> to vector<32x8xf32>
    %cst_524 = arith.constant dense<0.000000e+00> : vector<16x8xf32>
    %640 = tpu.matmul %560, %639, %cst_524 {dimension_numbers = #tpu.dot_dimension_numbers<[1], [0], [0], [1], [0, 0, 1, 1], [], []>} : vector<16x32xf32>, vector<32x8xf32>, vector<16x8xf32> -> vector<16x8xf32>
    %c1_525 = arith.constant 1 : index
    %c2_526 = arith.constant 2 : index
    %c0_527 = arith.constant 0 : index
    %c0_528 = arith.constant 0 : index
    %641 = vector.load %arg9[%c1_525, %c2_526, %c0_527, %c0_528] : memref<2x4x1x8xf32, #tpu.memory_space<vmem>>, vector<1x1x1x8xf32>
    %642 = vector.shape_cast %641 : vector<1x1x1x8xf32> to vector<1x8xf32>
    %643 = vector.broadcast %642 : vector<1x8xf32> to vector<16x8xf32>
    %644 = arith.addf %640, %643 : vector<16x8xf32>
    %c1_529 = arith.constant 1 : index
    %c2_530 = arith.constant 2 : index
    %c0_531 = arith.constant 0 : index
    %c0_532 = arith.constant 0 : index
    %645 = vector.load %arg10[%c1_529, %c2_530, %c0_531, %c0_532] : memref<2x4x32x8xf32, #tpu.memory_space<vmem>>, vector<1x1x32x8xf32>
    %646 = vector.shape_cast %645 : vector<1x1x32x8xf32> to vector<32x8xf32>
    %cst_533 = arith.constant dense<0.000000e+00> : vector<16x8xf32>
    %647 = tpu.matmul %560, %646, %cst_533 {dimension_numbers = #tpu.dot_dimension_numbers<[1], [0], [0], [1], [0, 0, 1, 1], [], []>} : vector<16x32xf32>, vector<32x8xf32>, vector<16x8xf32> -> vector<16x8xf32>
    %c1_534 = arith.constant 1 : index
    %c2_535 = arith.constant 2 : index
    %c0_536 = arith.constant 0 : index
    %c0_537 = arith.constant 0 : index
    %648 = vector.load %arg11[%c1_534, %c2_535, %c0_536, %c0_537] : memref<2x4x1x8xf32, #tpu.memory_space<vmem>>, vector<1x1x1x8xf32>
    %649 = vector.shape_cast %648 : vector<1x1x1x8xf32> to vector<1x8xf32>
    %650 = vector.broadcast %649 : vector<1x8xf32> to vector<16x8xf32>
    %651 = arith.addf %647, %650 : vector<16x8xf32>
    %c1_538 = arith.constant 1 : index
    %c2_539 = arith.constant 2 : index
    %c0_540 = arith.constant 0 : index
    %c0_541 = arith.constant 0 : index
    %652 = vector.load %arg12[%c1_538, %c2_539, %c0_540, %c0_541] : memref<2x4x32x8xf32, #tpu.memory_space<vmem>>, vector<1x1x32x8xf32>
    %653 = vector.shape_cast %652 : vector<1x1x32x8xf32> to vector<32x8xf32>
    %cst_542 = arith.constant dense<0.000000e+00> : vector<16x8xf32>
    %654 = tpu.matmul %560, %653, %cst_542 {dimension_numbers = #tpu.dot_dimension_numbers<[1], [0], [0], [1], [0, 0, 1, 1], [], []>} : vector<16x32xf32>, vector<32x8xf32>, vector<16x8xf32> -> vector<16x8xf32>
    %c1_543 = arith.constant 1 : index
    %c2_544 = arith.constant 2 : index
    %c0_545 = arith.constant 0 : index
    %c0_546 = arith.constant 0 : index
    %655 = vector.load %arg13[%c1_543, %c2_544, %c0_545, %c0_546] : memref<2x4x1x8xf32, #tpu.memory_space<vmem>>, vector<1x1x1x8xf32>
    %656 = vector.shape_cast %655 : vector<1x1x1x8xf32> to vector<1x8xf32>
    %657 = vector.broadcast %656 : vector<1x8xf32> to vector<16x8xf32>
    %658 = arith.addf %654, %657 : vector<16x8xf32>
    "tpu.trace_start"() <{level = 10 : i32, message = "qd,kd->qk"}> : () -> ()
    %cst_547 = arith.constant dense<0.000000e+00> : vector<16x16xf32>
    %659 = tpu.matmul %644, %651, %cst_547 {dimension_numbers = #tpu.dot_dimension_numbers<[1], [1], [0], [0], [0, 0, 1, 0], [], []>} : vector<16x8xf32>, vector<16x8xf32>, vector<16x16xf32> -> vector<16x16xf32>
    "tpu.trace_stop"() : () -> ()
    %660 = arith.addf %659, %139 : vector<16x16xf32>
    %cst_548 = arith.constant dense<0xFF800000> : vector<16xf32>
    %661 = vector.multi_reduction <maximumf>, %660, %cst_548 [1] : vector<16x16xf32> to vector<16xf32>
    %662 = vector.shape_cast %661 : vector<16xf32> to vector<16x1xf32>
    %663 = vector.broadcast %662 : vector<16x1xf32> to vector<16x16xf32>
    %664 = arith.subf %660, %663 : vector<16x16xf32>
    %665 = math.exp %664 : vector<16x16xf32>
    %cst_549 = arith.constant dense<0.000000e+00> : vector<16xf32>
    %666 = vector.multi_reduction <add>, %665, %cst_549 [1] : vector<16x16xf32> to vector<16xf32>
    %667 = vector.shape_cast %666 : vector<16xf32> to vector<16x1xf32>
    %668 = tpu.reciprocal %667 {approx = true} : vector<16x1xf32> -> vector<16x1xf32>
    %669 = vector.broadcast %668 : vector<16x1xf32> to vector<16x16xf32>
    %670 = arith.mulf %665, %669 : vector<16x16xf32>
    %cst_550 = arith.constant dense<0.000000e+00> : vector<16x8xf32>
    %671 = tpu.matmul %670, %658, %cst_550 {dimension_numbers = #tpu.dot_dimension_numbers<[1], [0], [0], [1], [0, 0, 1, 1], [], []>} : vector<16x16xf32>, vector<16x8xf32>, vector<16x8xf32> -> vector<16x8xf32>
    %c1_551 = arith.constant 1 : index
    %c16_552 = arith.constant 16 : index
    %c0_553 = arith.constant 0 : index
    %672 = vector.load %arg14[%c1_551, %c16_552, %c0_553] : memref<2x32x32xf32, #tpu.memory_space<vmem>>, vector<1x8x32xf32>
    %673 = vector.shape_cast %672 : vector<1x8x32xf32> to vector<8x32xf32>
    %cst_554 = arith.constant dense<0.000000e+00> : vector<16x32xf32>
    %674 = tpu.matmul %671, %673, %cst_554 {dimension_numbers = #tpu.dot_dimension_numbers<[1], [0], [0], [1], [0, 0, 1, 1], [], []>} : vector<16x8xf32>, vector<8x32xf32>, vector<16x32xf32> -> vector<16x32xf32>
    %675 = arith.addf %637, %674 : vector<16x32xf32>
    %c1_555 = arith.constant 1 : index
    %c3_556 = arith.constant 3 : index
    %c0_557 = arith.constant 0 : index
    %c0_558 = arith.constant 0 : index
    %676 = vector.load %arg8[%c1_555, %c3_556, %c0_557, %c0_558] : memref<2x4x32x8xf32, #tpu.memory_space<vmem>>, vector<1x1x32x8xf32>
    %677 = vector.shape_cast %676 : vector<1x1x32x8xf32> to vector<32x8xf32>
    %cst_559 = arith.constant dense<0.000000e+00> : vector<16x8xf32>
    %678 = tpu.matmul %560, %677, %cst_559 {dimension_numbers = #tpu.dot_dimension_numbers<[1], [0], [0], [1], [0, 0, 1, 1], [], []>} : vector<16x32xf32>, vector<32x8xf32>, vector<16x8xf32> -> vector<16x8xf32>
    %c1_560 = arith.constant 1 : index
    %c3_561 = arith.constant 3 : index
    %c0_562 = arith.constant 0 : index
    %c0_563 = arith.constant 0 : index
    %679 = vector.load %arg9[%c1_560, %c3_561, %c0_562, %c0_563] : memref<2x4x1x8xf32, #tpu.memory_space<vmem>>, vector<1x1x1x8xf32>
    %680 = vector.shape_cast %679 : vector<1x1x1x8xf32> to vector<1x8xf32>
    %681 = vector.broadcast %680 : vector<1x8xf32> to vector<16x8xf32>
    %682 = arith.addf %678, %681 : vector<16x8xf32>
    %c1_564 = arith.constant 1 : index
    %c3_565 = arith.constant 3 : index
    %c0_566 = arith.constant 0 : index
    %c0_567 = arith.constant 0 : index
    %683 = vector.load %arg10[%c1_564, %c3_565, %c0_566, %c0_567] : memref<2x4x32x8xf32, #tpu.memory_space<vmem>>, vector<1x1x32x8xf32>
    %684 = vector.shape_cast %683 : vector<1x1x32x8xf32> to vector<32x8xf32>
    %cst_568 = arith.constant dense<0.000000e+00> : vector<16x8xf32>
    %685 = tpu.matmul %560, %684, %cst_568 {dimension_numbers = #tpu.dot_dimension_numbers<[1], [0], [0], [1], [0, 0, 1, 1], [], []>} : vector<16x32xf32>, vector<32x8xf32>, vector<16x8xf32> -> vector<16x8xf32>
    %c1_569 = arith.constant 1 : index
    %c3_570 = arith.constant 3 : index
    %c0_571 = arith.constant 0 : index
    %c0_572 = arith.constant 0 : index
    %686 = vector.load %arg11[%c1_569, %c3_570, %c0_571, %c0_572] : memref<2x4x1x8xf32, #tpu.memory_space<vmem>>, vector<1x1x1x8xf32>
    %687 = vector.shape_cast %686 : vector<1x1x1x8xf32> to vector<1x8xf32>
    %688 = vector.broadcast %687 : vector<1x8xf32> to vector<16x8xf32>
    %689 = arith.addf %685, %688 : vector<16x8xf32>
    %c1_573 = arith.constant 1 : index
    %c3_574 = arith.constant 3 : index
    %c0_575 = arith.constant 0 : index
    %c0_576 = arith.constant 0 : index
    %690 = vector.load %arg12[%c1_573, %c3_574, %c0_575, %c0_576] : memref<2x4x32x8xf32, #tpu.memory_space<vmem>>, vector<1x1x32x8xf32>
    %691 = vector.shape_cast %690 : vector<1x1x32x8xf32> to vector<32x8xf32>
    %cst_577 = arith.constant dense<0.000000e+00> : vector<16x8xf32>
    %692 = tpu.matmul %560, %691, %cst_577 {dimension_numbers = #tpu.dot_dimension_numbers<[1], [0], [0], [1], [0, 0, 1, 1], [], []>} : vector<16x32xf32>, vector<32x8xf32>, vector<16x8xf32> -> vector<16x8xf32>
    %c1_578 = arith.constant 1 : index
    %c3_579 = arith.constant 3 : index
    %c0_580 = arith.constant 0 : index
    %c0_581 = arith.constant 0 : index
    %693 = vector.load %arg13[%c1_578, %c3_579, %c0_580, %c0_581] : memref<2x4x1x8xf32, #tpu.memory_space<vmem>>, vector<1x1x1x8xf32>
    %694 = vector.shape_cast %693 : vector<1x1x1x8xf32> to vector<1x8xf32>
    %695 = vector.broadcast %694 : vector<1x8xf32> to vector<16x8xf32>
    %696 = arith.addf %692, %695 : vector<16x8xf32>
    "tpu.trace_start"() <{level = 10 : i32, message = "qd,kd->qk"}> : () -> ()
    %cst_582 = arith.constant dense<0.000000e+00> : vector<16x16xf32>
    %697 = tpu.matmul %682, %689, %cst_582 {dimension_numbers = #tpu.dot_dimension_numbers<[1], [1], [0], [0], [0, 0, 1, 0], [], []>} : vector<16x8xf32>, vector<16x8xf32>, vector<16x16xf32> -> vector<16x16xf32>
    "tpu.trace_stop"() : () -> ()
    %698 = arith.addf %697, %139 : vector<16x16xf32>
    %cst_583 = arith.constant dense<0xFF800000> : vector<16xf32>
    %699 = vector.multi_reduction <maximumf>, %698, %cst_583 [1] : vector<16x16xf32> to vector<16xf32>
    %700 = vector.shape_cast %699 : vector<16xf32> to vector<16x1xf32>
    %701 = vector.broadcast %700 : vector<16x1xf32> to vector<16x16xf32>
    %702 = arith.subf %698, %701 : vector<16x16xf32>
    %703 = math.exp %702 : vector<16x16xf32>
    %cst_584 = arith.constant dense<0.000000e+00> : vector<16xf32>
    %704 = vector.multi_reduction <add>, %703, %cst_584 [1] : vector<16x16xf32> to vector<16xf32>
    %705 = vector.shape_cast %704 : vector<16xf32> to vector<16x1xf32>
    %706 = tpu.reciprocal %705 {approx = true} : vector<16x1xf32> -> vector<16x1xf32>
    %707 = vector.broadcast %706 : vector<16x1xf32> to vector<16x16xf32>
    %708 = arith.mulf %703, %707 : vector<16x16xf32>
    %cst_585 = arith.constant dense<0.000000e+00> : vector<16x8xf32>
    %709 = tpu.matmul %708, %696, %cst_585 {dimension_numbers = #tpu.dot_dimension_numbers<[1], [0], [0], [1], [0, 0, 1, 1], [], []>} : vector<16x16xf32>, vector<16x8xf32>, vector<16x8xf32> -> vector<16x8xf32>
    %c1_586 = arith.constant 1 : index
    %c24_587 = arith.constant 24 : index
    %c0_588 = arith.constant 0 : index
    %710 = vector.load %arg14[%c1_586, %c24_587, %c0_588] : memref<2x32x32xf32, #tpu.memory_space<vmem>>, vector<1x8x32xf32>
    %711 = vector.shape_cast %710 : vector<1x8x32xf32> to vector<8x32xf32>
    %cst_589 = arith.constant dense<0.000000e+00> : vector<16x32xf32>
    %712 = tpu.matmul %709, %711, %cst_589 {dimension_numbers = #tpu.dot_dimension_numbers<[1], [0], [0], [1], [0, 0, 1, 1], [], []>} : vector<16x8xf32>, vector<8x32xf32>, vector<16x32xf32> -> vector<16x32xf32>
    %713 = arith.addf %675, %712 : vector<16x32xf32>
    %714 = vector.extract_strided_slice %559 {offsets = [16, 0], sizes = [16, 32], strides = [1, 1]} : vector<32x32xf32> to vector<16x32xf32>
    %cst_590 = arith.constant 0.000000e+00 : f32
    %715 = vector.broadcast %cst_590 : f32 to vector<16x32xf32>
    %c1_591 = arith.constant 1 : index
    %c0_592 = arith.constant 0 : index
    %c0_593 = arith.constant 0 : index
    %c0_594 = arith.constant 0 : index
    %716 = vector.load %arg8[%c1_591, %c0_592, %c0_593, %c0_594] : memref<2x4x32x8xf32, #tpu.memory_space<vmem>>, vector<1x1x32x8xf32>
    %717 = vector.shape_cast %716 : vector<1x1x32x8xf32> to vector<32x8xf32>
    %cst_595 = arith.constant dense<0.000000e+00> : vector<16x8xf32>
    %718 = tpu.matmul %714, %717, %cst_595 {dimension_numbers = #tpu.dot_dimension_numbers<[1], [0], [0], [1], [0, 0, 1, 1], [], []>} : vector<16x32xf32>, vector<32x8xf32>, vector<16x8xf32> -> vector<16x8xf32>
    %c1_596 = arith.constant 1 : index
    %c0_597 = arith.constant 0 : index
    %c0_598 = arith.constant 0 : index
    %c0_599 = arith.constant 0 : index
    %719 = vector.load %arg9[%c1_596, %c0_597, %c0_598, %c0_599] : memref<2x4x1x8xf32, #tpu.memory_space<vmem>>, vector<1x1x1x8xf32>
    %720 = vector.shape_cast %719 : vector<1x1x1x8xf32> to vector<1x8xf32>
    %721 = vector.broadcast %720 : vector<1x8xf32> to vector<16x8xf32>
    %722 = arith.addf %718, %721 : vector<16x8xf32>
    %c1_600 = arith.constant 1 : index
    %c0_601 = arith.constant 0 : index
    %c0_602 = arith.constant 0 : index
    %c0_603 = arith.constant 0 : index
    %723 = vector.load %arg10[%c1_600, %c0_601, %c0_602, %c0_603] : memref<2x4x32x8xf32, #tpu.memory_space<vmem>>, vector<1x1x32x8xf32>
    %724 = vector.shape_cast %723 : vector<1x1x32x8xf32> to vector<32x8xf32>
    %cst_604 = arith.constant dense<0.000000e+00> : vector<16x8xf32>
    %725 = tpu.matmul %714, %724, %cst_604 {dimension_numbers = #tpu.dot_dimension_numbers<[1], [0], [0], [1], [0, 0, 1, 1], [], []>} : vector<16x32xf32>, vector<32x8xf32>, vector<16x8xf32> -> vector<16x8xf32>
    %c1_605 = arith.constant 1 : index
    %c0_606 = arith.constant 0 : index
    %c0_607 = arith.constant 0 : index
    %c0_608 = arith.constant 0 : index
    %726 = vector.load %arg11[%c1_605, %c0_606, %c0_607, %c0_608] : memref<2x4x1x8xf32, #tpu.memory_space<vmem>>, vector<1x1x1x8xf32>
    %727 = vector.shape_cast %726 : vector<1x1x1x8xf32> to vector<1x8xf32>
    %728 = vector.broadcast %727 : vector<1x8xf32> to vector<16x8xf32>
    %729 = arith.addf %725, %728 : vector<16x8xf32>
    %c1_609 = arith.constant 1 : index
    %c0_610 = arith.constant 0 : index
    %c0_611 = arith.constant 0 : index
    %c0_612 = arith.constant 0 : index
    %730 = vector.load %arg12[%c1_609, %c0_610, %c0_611, %c0_612] : memref<2x4x32x8xf32, #tpu.memory_space<vmem>>, vector<1x1x32x8xf32>
    %731 = vector.shape_cast %730 : vector<1x1x32x8xf32> to vector<32x8xf32>
    %cst_613 = arith.constant dense<0.000000e+00> : vector<16x8xf32>
    %732 = tpu.matmul %714, %731, %cst_613 {dimension_numbers = #tpu.dot_dimension_numbers<[1], [0], [0], [1], [0, 0, 1, 1], [], []>} : vector<16x32xf32>, vector<32x8xf32>, vector<16x8xf32> -> vector<16x8xf32>
    %c1_614 = arith.constant 1 : index
    %c0_615 = arith.constant 0 : index
    %c0_616 = arith.constant 0 : index
    %c0_617 = arith.constant 0 : index
    %733 = vector.load %arg13[%c1_614, %c0_615, %c0_616, %c0_617] : memref<2x4x1x8xf32, #tpu.memory_space<vmem>>, vector<1x1x1x8xf32>
    %734 = vector.shape_cast %733 : vector<1x1x1x8xf32> to vector<1x8xf32>
    %735 = vector.broadcast %734 : vector<1x8xf32> to vector<16x8xf32>
    %736 = arith.addf %732, %735 : vector<16x8xf32>
    "tpu.trace_start"() <{level = 10 : i32, message = "qd,kd->qk"}> : () -> ()
    %cst_618 = arith.constant dense<0.000000e+00> : vector<16x16xf32>
    %737 = tpu.matmul %722, %729, %cst_618 {dimension_numbers = #tpu.dot_dimension_numbers<[1], [1], [0], [0], [0, 0, 1, 0], [], []>} : vector<16x8xf32>, vector<16x8xf32>, vector<16x16xf32> -> vector<16x16xf32>
    "tpu.trace_stop"() : () -> ()
    %738 = arith.addf %737, %139 : vector<16x16xf32>
    %cst_619 = arith.constant dense<0xFF800000> : vector<16xf32>
    %739 = vector.multi_reduction <maximumf>, %738, %cst_619 [1] : vector<16x16xf32> to vector<16xf32>
    %740 = vector.shape_cast %739 : vector<16xf32> to vector<16x1xf32>
    %741 = vector.broadcast %740 : vector<16x1xf32> to vector<16x16xf32>
    %742 = arith.subf %738, %741 : vector<16x16xf32>
    %743 = math.exp %742 : vector<16x16xf32>
    %cst_620 = arith.constant dense<0.000000e+00> : vector<16xf32>
    %744 = vector.multi_reduction <add>, %743, %cst_620 [1] : vector<16x16xf32> to vector<16xf32>
    %745 = vector.shape_cast %744 : vector<16xf32> to vector<16x1xf32>
    %746 = tpu.reciprocal %745 {approx = true} : vector<16x1xf32> -> vector<16x1xf32>
    %747 = vector.broadcast %746 : vector<16x1xf32> to vector<16x16xf32>
    %748 = arith.mulf %743, %747 : vector<16x16xf32>
    %cst_621 = arith.constant dense<0.000000e+00> : vector<16x8xf32>
    %749 = tpu.matmul %748, %736, %cst_621 {dimension_numbers = #tpu.dot_dimension_numbers<[1], [0], [0], [1], [0, 0, 1, 1], [], []>} : vector<16x16xf32>, vector<16x8xf32>, vector<16x8xf32> -> vector<16x8xf32>
    %c1_622 = arith.constant 1 : index
    %c0_623 = arith.constant 0 : index
    %c0_624 = arith.constant 0 : index
    %750 = vector.load %arg14[%c1_622, %c0_623, %c0_624] : memref<2x32x32xf32, #tpu.memory_space<vmem>>, vector<1x8x32xf32>
    %751 = vector.shape_cast %750 : vector<1x8x32xf32> to vector<8x32xf32>
    %cst_625 = arith.constant dense<0.000000e+00> : vector<16x32xf32>
    %752 = tpu.matmul %749, %751, %cst_625 {dimension_numbers = #tpu.dot_dimension_numbers<[1], [0], [0], [1], [0, 0, 1, 1], [], []>} : vector<16x8xf32>, vector<8x32xf32>, vector<16x32xf32> -> vector<16x32xf32>
    %753 = arith.addf %715, %752 : vector<16x32xf32>
    %c1_626 = arith.constant 1 : index
    %c1_627 = arith.constant 1 : index
    %c0_628 = arith.constant 0 : index
    %c0_629 = arith.constant 0 : index
    %754 = vector.load %arg8[%c1_626, %c1_627, %c0_628, %c0_629] : memref<2x4x32x8xf32, #tpu.memory_space<vmem>>, vector<1x1x32x8xf32>
    %755 = vector.shape_cast %754 : vector<1x1x32x8xf32> to vector<32x8xf32>
    %cst_630 = arith.constant dense<0.000000e+00> : vector<16x8xf32>
    %756 = tpu.matmul %714, %755, %cst_630 {dimension_numbers = #tpu.dot_dimension_numbers<[1], [0], [0], [1], [0, 0, 1, 1], [], []>} : vector<16x32xf32>, vector<32x8xf32>, vector<16x8xf32> -> vector<16x8xf32>
    %c1_631 = arith.constant 1 : index
    %c1_632 = arith.constant 1 : index
    %c0_633 = arith.constant 0 : index
    %c0_634 = arith.constant 0 : index
    %757 = vector.load %arg9[%c1_631, %c1_632, %c0_633, %c0_634] : memref<2x4x1x8xf32, #tpu.memory_space<vmem>>, vector<1x1x1x8xf32>
    %758 = vector.shape_cast %757 : vector<1x1x1x8xf32> to vector<1x8xf32>
    %759 = vector.broadcast %758 : vector<1x8xf32> to vector<16x8xf32>
    %760 = arith.addf %756, %759 : vector<16x8xf32>
    %c1_635 = arith.constant 1 : index
    %c1_636 = arith.constant 1 : index
    %c0_637 = arith.constant 0 : index
    %c0_638 = arith.constant 0 : index
    %761 = vector.load %arg10[%c1_635, %c1_636, %c0_637, %c0_638] : memref<2x4x32x8xf32, #tpu.memory_space<vmem>>, vector<1x1x32x8xf32>
    %762 = vector.shape_cast %761 : vector<1x1x32x8xf32> to vector<32x8xf32>
    %cst_639 = arith.constant dense<0.000000e+00> : vector<16x8xf32>
    %763 = tpu.matmul %714, %762, %cst_639 {dimension_numbers = #tpu.dot_dimension_numbers<[1], [0], [0], [1], [0, 0, 1, 1], [], []>} : vector<16x32xf32>, vector<32x8xf32>, vector<16x8xf32> -> vector<16x8xf32>
    %c1_640 = arith.constant 1 : index
    %c1_641 = arith.constant 1 : index
    %c0_642 = arith.constant 0 : index
    %c0_643 = arith.constant 0 : index
    %764 = vector.load %arg11[%c1_640, %c1_641, %c0_642, %c0_643] : memref<2x4x1x8xf32, #tpu.memory_space<vmem>>, vector<1x1x1x8xf32>
    %765 = vector.shape_cast %764 : vector<1x1x1x8xf32> to vector<1x8xf32>
    %766 = vector.broadcast %765 : vector<1x8xf32> to vector<16x8xf32>
    %767 = arith.addf %763, %766 : vector<16x8xf32>
    %c1_644 = arith.constant 1 : index
    %c1_645 = arith.constant 1 : index
    %c0_646 = arith.constant 0 : index
    %c0_647 = arith.constant 0 : index
    %768 = vector.load %arg12[%c1_644, %c1_645, %c0_646, %c0_647] : memref<2x4x32x8xf32, #tpu.memory_space<vmem>>, vector<1x1x32x8xf32>
    %769 = vector.shape_cast %768 : vector<1x1x32x8xf32> to vector<32x8xf32>
    %cst_648 = arith.constant dense<0.000000e+00> : vector<16x8xf32>
    %770 = tpu.matmul %714, %769, %cst_648 {dimension_numbers = #tpu.dot_dimension_numbers<[1], [0], [0], [1], [0, 0, 1, 1], [], []>} : vector<16x32xf32>, vector<32x8xf32>, vector<16x8xf32> -> vector<16x8xf32>
    %c1_649 = arith.constant 1 : index
    %c1_650 = arith.constant 1 : index
    %c0_651 = arith.constant 0 : index
    %c0_652 = arith.constant 0 : index
    %771 = vector.load %arg13[%c1_649, %c1_650, %c0_651, %c0_652] : memref<2x4x1x8xf32, #tpu.memory_space<vmem>>, vector<1x1x1x8xf32>
    %772 = vector.shape_cast %771 : vector<1x1x1x8xf32> to vector<1x8xf32>
    %773 = vector.broadcast %772 : vector<1x8xf32> to vector<16x8xf32>
    %774 = arith.addf %770, %773 : vector<16x8xf32>
    "tpu.trace_start"() <{level = 10 : i32, message = "qd,kd->qk"}> : () -> ()
    %cst_653 = arith.constant dense<0.000000e+00> : vector<16x16xf32>
    %775 = tpu.matmul %760, %767, %cst_653 {dimension_numbers = #tpu.dot_dimension_numbers<[1], [1], [0], [0], [0, 0, 1, 0], [], []>} : vector<16x8xf32>, vector<16x8xf32>, vector<16x16xf32> -> vector<16x16xf32>
    "tpu.trace_stop"() : () -> ()
    %776 = arith.addf %775, %139 : vector<16x16xf32>
    %cst_654 = arith.constant dense<0xFF800000> : vector<16xf32>
    %777 = vector.multi_reduction <maximumf>, %776, %cst_654 [1] : vector<16x16xf32> to vector<16xf32>
    %778 = vector.shape_cast %777 : vector<16xf32> to vector<16x1xf32>
    %779 = vector.broadcast %778 : vector<16x1xf32> to vector<16x16xf32>
    %780 = arith.subf %776, %779 : vector<16x16xf32>
    %781 = math.exp %780 : vector<16x16xf32>
    %cst_655 = arith.constant dense<0.000000e+00> : vector<16xf32>
    %782 = vector.multi_reduction <add>, %781, %cst_655 [1] : vector<16x16xf32> to vector<16xf32>
    %783 = vector.shape_cast %782 : vector<16xf32> to vector<16x1xf32>
    %784 = tpu.reciprocal %783 {approx = true} : vector<16x1xf32> -> vector<16x1xf32>
    %785 = vector.broadcast %784 : vector<16x1xf32> to vector<16x16xf32>
    %786 = arith.mulf %781, %785 : vector<16x16xf32>
    %cst_656 = arith.constant dense<0.000000e+00> : vector<16x8xf32>
    %787 = tpu.matmul %786, %774, %cst_656 {dimension_numbers = #tpu.dot_dimension_numbers<[1], [0], [0], [1], [0, 0, 1, 1], [], []>} : vector<16x16xf32>, vector<16x8xf32>, vector<16x8xf32> -> vector<16x8xf32>
    %c1_657 = arith.constant 1 : index
    %c8_658 = arith.constant 8 : index
    %c0_659 = arith.constant 0 : index
    %788 = vector.load %arg14[%c1_657, %c8_658, %c0_659] : memref<2x32x32xf32, #tpu.memory_space<vmem>>, vector<1x8x32xf32>
    %789 = vector.shape_cast %788 : vector<1x8x32xf32> to vector<8x32xf32>
    %cst_660 = arith.constant dense<0.000000e+00> : vector<16x32xf32>
    %790 = tpu.matmul %787, %789, %cst_660 {dimension_numbers = #tpu.dot_dimension_numbers<[1], [0], [0], [1], [0, 0, 1, 1], [], []>} : vector<16x8xf32>, vector<8x32xf32>, vector<16x32xf32> -> vector<16x32xf32>
    %791 = arith.addf %753, %790 : vector<16x32xf32>
    %c1_661 = arith.constant 1 : index
    %c2_662 = arith.constant 2 : index
    %c0_663 = arith.constant 0 : index
    %c0_664 = arith.constant 0 : index
    %792 = vector.load %arg8[%c1_661, %c2_662, %c0_663, %c0_664] : memref<2x4x32x8xf32, #tpu.memory_space<vmem>>, vector<1x1x32x8xf32>
    %793 = vector.shape_cast %792 : vector<1x1x32x8xf32> to vector<32x8xf32>
    %cst_665 = arith.constant dense<0.000000e+00> : vector<16x8xf32>
    %794 = tpu.matmul %714, %793, %cst_665 {dimension_numbers = #tpu.dot_dimension_numbers<[1], [0], [0], [1], [0, 0, 1, 1], [], []>} : vector<16x32xf32>, vector<32x8xf32>, vector<16x8xf32> -> vector<16x8xf32>
    %c1_666 = arith.constant 1 : index
    %c2_667 = arith.constant 2 : index
    %c0_668 = arith.constant 0 : index
    %c0_669 = arith.constant 0 : index
    %795 = vector.load %arg9[%c1_666, %c2_667, %c0_668, %c0_669] : memref<2x4x1x8xf32, #tpu.memory_space<vmem>>, vector<1x1x1x8xf32>
    %796 = vector.shape_cast %795 : vector<1x1x1x8xf32> to vector<1x8xf32>
    %797 = vector.broadcast %796 : vector<1x8xf32> to vector<16x8xf32>
    %798 = arith.addf %794, %797 : vector<16x8xf32>
    %c1_670 = arith.constant 1 : index
    %c2_671 = arith.constant 2 : index
    %c0_672 = arith.constant 0 : index
    %c0_673 = arith.constant 0 : index
    %799 = vector.load %arg10[%c1_670, %c2_671, %c0_672, %c0_673] : memref<2x4x32x8xf32, #tpu.memory_space<vmem>>, vector<1x1x32x8xf32>
    %800 = vector.shape_cast %799 : vector<1x1x32x8xf32> to vector<32x8xf32>
    %cst_674 = arith.constant dense<0.000000e+00> : vector<16x8xf32>
    %801 = tpu.matmul %714, %800, %cst_674 {dimension_numbers = #tpu.dot_dimension_numbers<[1], [0], [0], [1], [0, 0, 1, 1], [], []>} : vector<16x32xf32>, vector<32x8xf32>, vector<16x8xf32> -> vector<16x8xf32>
    %c1_675 = arith.constant 1 : index
    %c2_676 = arith.constant 2 : index
    %c0_677 = arith.constant 0 : index
    %c0_678 = arith.constant 0 : index
    %802 = vector.load %arg11[%c1_675, %c2_676, %c0_677, %c0_678] : memref<2x4x1x8xf32, #tpu.memory_space<vmem>>, vector<1x1x1x8xf32>
    %803 = vector.shape_cast %802 : vector<1x1x1x8xf32> to vector<1x8xf32>
    %804 = vector.broadcast %803 : vector<1x8xf32> to vector<16x8xf32>
    %805 = arith.addf %801, %804 : vector<16x8xf32>
    %c1_679 = arith.constant 1 : index
    %c2_680 = arith.constant 2 : index
    %c0_681 = arith.constant 0 : index
    %c0_682 = arith.constant 0 : index
    %806 = vector.load %arg12[%c1_679, %c2_680, %c0_681, %c0_682] : memref<2x4x32x8xf32, #tpu.memory_space<vmem>>, vector<1x1x32x8xf32>
    %807 = vector.shape_cast %806 : vector<1x1x32x8xf32> to vector<32x8xf32>
    %cst_683 = arith.constant dense<0.000000e+00> : vector<16x8xf32>
    %808 = tpu.matmul %714, %807, %cst_683 {dimension_numbers = #tpu.dot_dimension_numbers<[1], [0], [0], [1], [0, 0, 1, 1], [], []>} : vector<16x32xf32>, vector<32x8xf32>, vector<16x8xf32> -> vector<16x8xf32>
    %c1_684 = arith.constant 1 : index
    %c2_685 = arith.constant 2 : index
    %c0_686 = arith.constant 0 : index
    %c0_687 = arith.constant 0 : index
    %809 = vector.load %arg13[%c1_684, %c2_685, %c0_686, %c0_687] : memref<2x4x1x8xf32, #tpu.memory_space<vmem>>, vector<1x1x1x8xf32>
    %810 = vector.shape_cast %809 : vector<1x1x1x8xf32> to vector<1x8xf32>
    %811 = vector.broadcast %810 : vector<1x8xf32> to vector<16x8xf32>
    %812 = arith.addf %808, %811 : vector<16x8xf32>
    "tpu.trace_start"() <{level = 10 : i32, message = "qd,kd->qk"}> : () -> ()
    %cst_688 = arith.constant dense<0.000000e+00> : vector<16x16xf32>
    %813 = tpu.matmul %798, %805, %cst_688 {dimension_numbers = #tpu.dot_dimension_numbers<[1], [1], [0], [0], [0, 0, 1, 0], [], []>} : vector<16x8xf32>, vector<16x8xf32>, vector<16x16xf32> -> vector<16x16xf32>
    "tpu.trace_stop"() : () -> ()
    %814 = arith.addf %813, %139 : vector<16x16xf32>
    %cst_689 = arith.constant dense<0xFF800000> : vector<16xf32>
    %815 = vector.multi_reduction <maximumf>, %814, %cst_689 [1] : vector<16x16xf32> to vector<16xf32>
    %816 = vector.shape_cast %815 : vector<16xf32> to vector<16x1xf32>
    %817 = vector.broadcast %816 : vector<16x1xf32> to vector<16x16xf32>
    %818 = arith.subf %814, %817 : vector<16x16xf32>
    %819 = math.exp %818 : vector<16x16xf32>
    %cst_690 = arith.constant dense<0.000000e+00> : vector<16xf32>
    %820 = vector.multi_reduction <add>, %819, %cst_690 [1] : vector<16x16xf32> to vector<16xf32>
    %821 = vector.shape_cast %820 : vector<16xf32> to vector<16x1xf32>
    %822 = tpu.reciprocal %821 {approx = true} : vector<16x1xf32> -> vector<16x1xf32>
    %823 = vector.broadcast %822 : vector<16x1xf32> to vector<16x16xf32>
    %824 = arith.mulf %819, %823 : vector<16x16xf32>
    %cst_691 = arith.constant dense<0.000000e+00> : vector<16x8xf32>
    %825 = tpu.matmul %824, %812, %cst_691 {dimension_numbers = #tpu.dot_dimension_numbers<[1], [0], [0], [1], [0, 0, 1, 1], [], []>} : vector<16x16xf32>, vector<16x8xf32>, vector<16x8xf32> -> vector<16x8xf32>
    %c1_692 = arith.constant 1 : index
    %c16_693 = arith.constant 16 : index
    %c0_694 = arith.constant 0 : index
    %826 = vector.load %arg14[%c1_692, %c16_693, %c0_694] : memref<2x32x32xf32, #tpu.memory_space<vmem>>, vector<1x8x32xf32>
    %827 = vector.shape_cast %826 : vector<1x8x32xf32> to vector<8x32xf32>
    %cst_695 = arith.constant dense<0.000000e+00> : vector<16x32xf32>
    %828 = tpu.matmul %825, %827, %cst_695 {dimension_numbers = #tpu.dot_dimension_numbers<[1], [0], [0], [1], [0, 0, 1, 1], [], []>} : vector<16x8xf32>, vector<8x32xf32>, vector<16x32xf32> -> vector<16x32xf32>
    %829 = arith.addf %791, %828 : vector<16x32xf32>
    %c1_696 = arith.constant 1 : index
    %c3_697 = arith.constant 3 : index
    %c0_698 = arith.constant 0 : index
    %c0_699 = arith.constant 0 : index
    %830 = vector.load %arg8[%c1_696, %c3_697, %c0_698, %c0_699] : memref<2x4x32x8xf32, #tpu.memory_space<vmem>>, vector<1x1x32x8xf32>
    %831 = vector.shape_cast %830 : vector<1x1x32x8xf32> to vector<32x8xf32>
    %cst_700 = arith.constant dense<0.000000e+00> : vector<16x8xf32>
    %832 = tpu.matmul %714, %831, %cst_700 {dimension_numbers = #tpu.dot_dimension_numbers<[1], [0], [0], [1], [0, 0, 1, 1], [], []>} : vector<16x32xf32>, vector<32x8xf32>, vector<16x8xf32> -> vector<16x8xf32>
    %c1_701 = arith.constant 1 : index
    %c3_702 = arith.constant 3 : index
    %c0_703 = arith.constant 0 : index
    %c0_704 = arith.constant 0 : index
    %833 = vector.load %arg9[%c1_701, %c3_702, %c0_703, %c0_704] : memref<2x4x1x8xf32, #tpu.memory_space<vmem>>, vector<1x1x1x8xf32>
    %834 = vector.shape_cast %833 : vector<1x1x1x8xf32> to vector<1x8xf32>
    %835 = vector.broadcast %834 : vector<1x8xf32> to vector<16x8xf32>
    %836 = arith.addf %832, %835 : vector<16x8xf32>
    %c1_705 = arith.constant 1 : index
    %c3_706 = arith.constant 3 : index
    %c0_707 = arith.constant 0 : index
    %c0_708 = arith.constant 0 : index
    %837 = vector.load %arg10[%c1_705, %c3_706, %c0_707, %c0_708] : memref<2x4x32x8xf32, #tpu.memory_space<vmem>>, vector<1x1x32x8xf32>
    %838 = vector.shape_cast %837 : vector<1x1x32x8xf32> to vector<32x8xf32>
    %cst_709 = arith.constant dense<0.000000e+00> : vector<16x8xf32>
    %839 = tpu.matmul %714, %838, %cst_709 {dimension_numbers = #tpu.dot_dimension_numbers<[1], [0], [0], [1], [0, 0, 1, 1], [], []>} : vector<16x32xf32>, vector<32x8xf32>, vector<16x8xf32> -> vector<16x8xf32>
    %c1_710 = arith.constant 1 : index
    %c3_711 = arith.constant 3 : index
    %c0_712 = arith.constant 0 : index
    %c0_713 = arith.constant 0 : index
    %840 = vector.load %arg11[%c1_710, %c3_711, %c0_712, %c0_713] : memref<2x4x1x8xf32, #tpu.memory_space<vmem>>, vector<1x1x1x8xf32>
    %841 = vector.shape_cast %840 : vector<1x1x1x8xf32> to vector<1x8xf32>
    %842 = vector.broadcast %841 : vector<1x8xf32> to vector<16x8xf32>
    %843 = arith.addf %839, %842 : vector<16x8xf32>
    %c1_714 = arith.constant 1 : index
    %c3_715 = arith.constant 3 : index
    %c0_716 = arith.constant 0 : index
    %c0_717 = arith.constant 0 : index
    %844 = vector.load %arg12[%c1_714, %c3_715, %c0_716, %c0_717] : memref<2x4x32x8xf32, #tpu.memory_space<vmem>>, vector<1x1x32x8xf32>
    %845 = vector.shape_cast %844 : vector<1x1x32x8xf32> to vector<32x8xf32>
    %cst_718 = arith.constant dense<0.000000e+00> : vector<16x8xf32>
    %846 = tpu.matmul %714, %845, %cst_718 {dimension_numbers = #tpu.dot_dimension_numbers<[1], [0], [0], [1], [0, 0, 1, 1], [], []>} : vector<16x32xf32>, vector<32x8xf32>, vector<16x8xf32> -> vector<16x8xf32>
    %c1_719 = arith.constant 1 : index
    %c3_720 = arith.constant 3 : index
    %c0_721 = arith.constant 0 : index
    %c0_722 = arith.constant 0 : index
    %847 = vector.load %arg13[%c1_719, %c3_720, %c0_721, %c0_722] : memref<2x4x1x8xf32, #tpu.memory_space<vmem>>, vector<1x1x1x8xf32>
    %848 = vector.shape_cast %847 : vector<1x1x1x8xf32> to vector<1x8xf32>
    %849 = vector.broadcast %848 : vector<1x8xf32> to vector<16x8xf32>
    %850 = arith.addf %846, %849 : vector<16x8xf32>
    "tpu.trace_start"() <{level = 10 : i32, message = "qd,kd->qk"}> : () -> ()
    %cst_723 = arith.constant dense<0.000000e+00> : vector<16x16xf32>
    %851 = tpu.matmul %836, %843, %cst_723 {dimension_numbers = #tpu.dot_dimension_numbers<[1], [1], [0], [0], [0, 0, 1, 0], [], []>} : vector<16x8xf32>, vector<16x8xf32>, vector<16x16xf32> -> vector<16x16xf32>
    "tpu.trace_stop"() : () -> ()
    %852 = arith.addf %851, %139 : vector<16x16xf32>
    %cst_724 = arith.constant dense<0xFF800000> : vector<16xf32>
    %853 = vector.multi_reduction <maximumf>, %852, %cst_724 [1] : vector<16x16xf32> to vector<16xf32>
    %854 = vector.shape_cast %853 : vector<16xf32> to vector<16x1xf32>
    %855 = vector.broadcast %854 : vector<16x1xf32> to vector<16x16xf32>
    %856 = arith.subf %852, %855 : vector<16x16xf32>
    %857 = math.exp %856 : vector<16x16xf32>
    %cst_725 = arith.constant dense<0.000000e+00> : vector<16xf32>
    %858 = vector.multi_reduction <add>, %857, %cst_725 [1] : vector<16x16xf32> to vector<16xf32>
    %859 = vector.shape_cast %858 : vector<16xf32> to vector<16x1xf32>
    %860 = tpu.reciprocal %859 {approx = true} : vector<16x1xf32> -> vector<16x1xf32>
    %861 = vector.broadcast %860 : vector<16x1xf32> to vector<16x16xf32>
    %862 = arith.mulf %857, %861 : vector<16x16xf32>
    %cst_726 = arith.constant dense<0.000000e+00> : vector<16x8xf32>
    %863 = tpu.matmul %862, %850, %cst_726 {dimension_numbers = #tpu.dot_dimension_numbers<[1], [0], [0], [1], [0, 0, 1, 1], [], []>} : vector<16x16xf32>, vector<16x8xf32>, vector<16x8xf32> -> vector<16x8xf32>
    %c1_727 = arith.constant 1 : index
    %c24_728 = arith.constant 24 : index
    %c0_729 = arith.constant 0 : index
    %864 = vector.load %arg14[%c1_727, %c24_728, %c0_729] : memref<2x32x32xf32, #tpu.memory_space<vmem>>, vector<1x8x32xf32>
    %865 = vector.shape_cast %864 : vector<1x8x32xf32> to vector<8x32xf32>
    %cst_730 = arith.constant dense<0.000000e+00> : vector<16x32xf32>
    %866 = tpu.matmul %863, %865, %cst_730 {dimension_numbers = #tpu.dot_dimension_numbers<[1], [0], [0], [1], [0, 0, 1, 1], [], []>} : vector<16x8xf32>, vector<8x32xf32>, vector<16x32xf32> -> vector<16x32xf32>
    %867 = arith.addf %829, %866 : vector<16x32xf32>
    %868 = tpu.concatenate %713, %867 in 0 : vector<16x32xf32>, vector<16x32xf32> -> vector<32x32xf32>
    %869 = arith.addf %533, %868 : vector<32x32xf32>
    %c1_731 = arith.constant 1 : index
    %c0_732 = arith.constant 0 : index
    %c0_733 = arith.constant 0 : index
    %870 = vector.load %arg15[%c1_731, %c0_732, %c0_733] : memref<2x1x32xf32, #tpu.memory_space<vmem>>, vector<1x1x32xf32>
    %871 = vector.shape_cast %870 : vector<1x1x32xf32> to vector<1x32xf32>
    %872 = vector.broadcast %871 : vector<1x32xf32> to vector<32x32xf32>
    %873 = arith.addf %869, %872 : vector<32x32xf32>
    %c1_734 = arith.constant 1 : index
    %c0_735 = arith.constant 0 : index
    %c0_736 = arith.constant 0 : index
    %874 = vector.load %arg16[%c1_734, %c0_735, %c0_736] : memref<2x1x32xf32, #tpu.memory_space<vmem>>, vector<1x1x32xf32>
    %875 = vector.shape_cast %874 : vector<1x1x32xf32> to vector<1x32xf32>
    %c1_737 = arith.constant 1 : index
    %c0_738 = arith.constant 0 : index
    %c0_739 = arith.constant 0 : index
    %876 = vector.load %arg17[%c1_737, %c0_738, %c0_739] : memref<2x1x32xf32, #tpu.memory_space<vmem>>, vector<1x1x32xf32>
    %877 = vector.shape_cast %876 : vector<1x1x32xf32> to vector<1x32xf32>
    %cst_740 = arith.constant dense<0.000000e+00> : vector<32xf32>
    %878 = vector.multi_reduction <add>, %873, %cst_740 [1] : vector<32x32xf32> to vector<32xf32>
    %879 = vector.shape_cast %878 : vector<32xf32> to vector<32x1xf32>
    %cst_741 = arith.constant 3.200000e+01 : f32
    %880 = vector.broadcast %cst_741 : f32 to vector<32x1xf32>
    %881 = arith.divf %879, %880 : vector<32x1xf32>
    %882 = arith.mulf %873, %873 : vector<32x32xf32>
    %cst_742 = arith.constant dense<0.000000e+00> : vector<32xf32>
    %883 = vector.multi_reduction <add>, %882, %cst_742 [1] : vector<32x32xf32> to vector<32xf32>
    %884 = vector.shape_cast %883 : vector<32xf32> to vector<32x1xf32>
    %cst_743 = arith.constant 3.200000e+01 : f32
    %885 = vector.broadcast %cst_743 : f32 to vector<32x1xf32>
    %886 = arith.divf %884, %885 : vector<32x1xf32>
    %887 = arith.mulf %881, %881 : vector<32x1xf32>
    %888 = arith.subf %886, %887 : vector<32x1xf32>
    %889 = vector.broadcast %881 : vector<32x1xf32> to vector<32x32xf32>
    %890 = arith.subf %873, %889 : vector<32x32xf32>
    %cst_744 = arith.constant 9.99999974E-6 : f32
    %891 = vector.broadcast %cst_744 : f32 to vector<32x1xf32>
    %892 = arith.addf %888, %891 : vector<32x1xf32>
    %893 = math.rsqrt %892 : vector<32x1xf32>
    %894 = vector.broadcast %893 : vector<32x1xf32> to vector<32x32xf32>
    %895 = arith.mulf %890, %894 : vector<32x32xf32>
    %896 = vector.broadcast %875 : vector<1x32xf32> to vector<32x32xf32>
    %897 = arith.mulf %895, %896 : vector<32x32xf32>
    %898 = vector.broadcast %877 : vector<1x32xf32> to vector<32x32xf32>
    %899 = arith.addf %897, %898 : vector<32x32xf32>
    %c1_745 = arith.constant 1 : index
    %c0_746 = arith.constant 0 : index
    %c0_747 = arith.constant 0 : index
    %900 = vector.load %arg18[%c1_745, %c0_746, %c0_747] : memref<2x32x128xf32, #tpu.memory_space<vmem>>, vector<1x32x128xf32>
    %901 = vector.shape_cast %900 : vector<1x32x128xf32> to vector<32x128xf32>
    %cst_748 = arith.constant dense<0.000000e+00> : vector<32x128xf32>
    %902 = tpu.matmul %899, %901, %cst_748 {dimension_numbers = #tpu.dot_dimension_numbers<[1], [0], [0], [1], [0, 0, 1, 1], [], []>} : vector<32x32xf32>, vector<32x128xf32>, vector<32x128xf32> -> vector<32x128xf32>
    %c1_749 = arith.constant 1 : index
    %c0_750 = arith.constant 0 : index
    %c0_751 = arith.constant 0 : index
    %903 = vector.load %arg19[%c1_749, %c0_750, %c0_751] : memref<2x1x128xf32, #tpu.memory_space<vmem>>, vector<1x1x128xf32>
    %904 = vector.shape_cast %903 : vector<1x1x128xf32> to vector<1x128xf32>
    %905 = vector.broadcast %904 : vector<1x128xf32> to vector<32x128xf32>
    %906 = arith.addf %902, %905 : vector<32x128xf32>
    %907 = arith.mulf %906, %906 : vector<32x128xf32>
    %908 = arith.mulf %906, %907 : vector<32x128xf32>
    %cst_752 = arith.constant 4.471500e-02 : f32
    %909 = vector.broadcast %cst_752 : f32 to vector<32x128xf32>
    %910 = arith.mulf %909, %908 : vector<32x128xf32>
    %911 = arith.addf %906, %910 : vector<32x128xf32>
    %cst_753 = arith.constant 0.797884583 : f32
    %912 = vector.broadcast %cst_753 : f32 to vector<32x128xf32>
    %913 = arith.mulf %912, %911 : vector<32x128xf32>
    %914 = math.tanh %913 : vector<32x128xf32>
    %cst_754 = arith.constant 1.000000e+00 : f32
    %915 = vector.broadcast %cst_754 : f32 to vector<32x128xf32>
    %916 = arith.addf %915, %914 : vector<32x128xf32>
    %cst_755 = arith.constant 5.000000e-01 : f32
    %917 = vector.broadcast %cst_755 : f32 to vector<32x128xf32>
    %918 = arith.mulf %917, %916 : vector<32x128xf32>
    %919 = arith.mulf %906, %918 : vector<32x128xf32>
    %c1_756 = arith.constant 1 : index
    %c0_757 = arith.constant 0 : index
    %c0_758 = arith.constant 0 : index
    %920 = vector.load %arg20[%c1_756, %c0_757, %c0_758] : memref<2x128x32xf32, #tpu.memory_space<vmem>>, vector<1x128x32xf32>
    %921 = vector.shape_cast %920 : vector<1x128x32xf32> to vector<128x32xf32>
    %cst_759 = arith.constant dense<0.000000e+00> : vector<32x32xf32>
    %922 = tpu.matmul %919, %921, %cst_759 {dimension_numbers = #tpu.dot_dimension_numbers<[1], [0], [0], [1], [0, 0, 1, 1], [], []>} : vector<32x128xf32>, vector<128x32xf32>, vector<32x32xf32> -> vector<32x32xf32>
    %c1_760 = arith.constant 1 : index
    %c0_761 = arith.constant 0 : index
    %c0_762 = arith.constant 0 : index
    %923 = vector.load %arg21[%c1_760, %c0_761, %c0_762] : memref<2x1x32xf32, #tpu.memory_space<vmem>>, vector<1x1x32xf32>
    %924 = vector.shape_cast %923 : vector<1x1x32xf32> to vector<1x32xf32>
    %925 = vector.broadcast %924 : vector<1x32xf32> to vector<32x32xf32>
    %926 = arith.addf %922, %925 : vector<32x32xf32>
    %927 = arith.addf %873, %926 : vector<32x32xf32>
    %c0_763 = arith.constant 0 : index
    %c0_764 = arith.constant 0 : index
    %928 = vector.load %arg22[%c0_763, %c0_764] : memref<1x32xf32, #tpu.memory_space<vmem>>, vector<1x32xf32>
    %c0_765 = arith.constant 0 : index
    %c0_766 = arith.constant 0 : index
    %929 = vector.load %arg23[%c0_765, %c0_766] : memref<1x32xf32, #tpu.memory_space<vmem>>, vector<1x32xf32>
    %cst_767 = arith.constant dense<0.000000e+00> : vector<32xf32>
    %930 = vector.multi_reduction <add>, %927, %cst_767 [1] : vector<32x32xf32> to vector<32xf32>
    %931 = vector.shape_cast %930 : vector<32xf32> to vector<32x1xf32>
    %cst_768 = arith.constant 3.200000e+01 : f32
    %932 = vector.broadcast %cst_768 : f32 to vector<32x1xf32>
    %933 = arith.divf %931, %932 : vector<32x1xf32>
    %934 = arith.mulf %927, %927 : vector<32x32xf32>
    %cst_769 = arith.constant dense<0.000000e+00> : vector<32xf32>
    %935 = vector.multi_reduction <add>, %934, %cst_769 [1] : vector<32x32xf32> to vector<32xf32>
    %936 = vector.shape_cast %935 : vector<32xf32> to vector<32x1xf32>
    %cst_770 = arith.constant 3.200000e+01 : f32
    %937 = vector.broadcast %cst_770 : f32 to vector<32x1xf32>
    %938 = arith.divf %936, %937 : vector<32x1xf32>
    %939 = arith.mulf %933, %933 : vector<32x1xf32>
    %940 = arith.subf %938, %939 : vector<32x1xf32>
    %941 = vector.broadcast %933 : vector<32x1xf32> to vector<32x32xf32>
    %942 = arith.subf %927, %941 : vector<32x32xf32>
    %cst_771 = arith.constant 9.99999974E-6 : f32
    %943 = vector.broadcast %cst_771 : f32 to vector<32x1xf32>
    %944 = arith.addf %940, %943 : vector<32x1xf32>
    %945 = math.rsqrt %944 : vector<32x1xf32>
    %946 = vector.broadcast %945 : vector<32x1xf32> to vector<32x32xf32>
    %947 = arith.mulf %942, %946 : vector<32x32xf32>
    %948 = vector.broadcast %928 : vector<1x32xf32> to vector<32x32xf32>
    %949 = arith.mulf %947, %948 : vector<32x32xf32>
    %950 = vector.broadcast %929 : vector<1x32xf32> to vector<32x32xf32>
    %951 = arith.addf %949, %950 : vector<32x32xf32>
    %c0_772 = arith.constant 0 : index
    %c0_773 = arith.constant 0 : index
    %952 = vector.load %arg26[%c0_772, %c0_773] : memref<32x128xf32, #tpu.memory_space<vmem>>, vector<32x128xf32>
    %cst_774 = arith.constant dense<0.000000e+00> : vector<32x128xf32>
    %953 = tpu.matmul %951, %952, %cst_774 {dimension_numbers = #tpu.dot_dimension_numbers<[1], [0], [0], [1], [0, 0, 1, 1], [], []>} : vector<32x32xf32>, vector<32x128xf32>, vector<32x128xf32> -> vector<32x128xf32>
    %954 = vector.shape_cast %953 : vector<32x128xf32> to vector<2x16x128xf32>
    %c0_775 = arith.constant 0 : index
    %c0_776 = arith.constant 0 : index
    %c0_777 = arith.constant 0 : index
    %955 = vector.load %arg27[%c0_775, %c0_776, %c0_777] : memref<2x16x128xf32, #tpu.memory_space<vmem>>, vector<2x16x128xf32>
    tpu.vector_store %arg27[%c0_775, %c0_776, %c0_777], %954 {strides = array<i32>} : memref<2x16x128xf32, #tpu.memory_space<vmem>>, vector<2x16x128xf32>,
    return
  }
}

</mosaic_0001>

<bundles_post_ra>
// kernel: clip_caption_forward.1
= control target key start
LH: loop header
LB: loop body
LE: loop exit
PB: predicated region body
PF: predicated region fallthrough
CT: control target
= control target key end

     0   :  { %s8466_s0 = inlined_call_operand.vmem [shape: s32[16,1], index: 0, kind: input, shape index: {}]   ;;  %s8467_s1 = inlined_call_operand.vmem [shape: f32[2,64], index: 1, kind: input, shape index: {}]   ;;  %s8468_s2 = inlined_call_operand.vmem [shape: f32[64,128], index: 2, kind: input, shape index: {}]   ;;  %s8469_s3 = inlined_call_operand.vmem [shape: f32[1,128], index: 3, kind: input, shape index: {}]   ;;  %s8470_s4 = inlined_call_operand.vmem [shape: f32[8,128,32], index: 4, kind: input, shape index: {}]   ;;  %s8471_s5 = inlined_call_operand.vmem [shape: f32[8,1,32], index: 5, kind: input, shape index: {}]   ;;  %s8472_s6 = inlined_call_operand.vmem [shape: f32[2,1,32], index: 6, kind: input, shape index: {}]   ;;  %s8473_s7 = inlined_call_operand.vmem [shape: f32[2,1,32], index: 7, kind: input, shape index: {}]   ;;  %s8474_s8 = inlined_call_operand.vmem [shape: f32[2,4,32,8], index: 8, kind: input, shape index: {}]   ;;  %s8475_s9 = inlined_call_operand.vmem [shape: f32[2,4,1,8], index: 9, kind: input, shape index: {}]   ;;  %s8476_s10 = inlined_call_operand.vmem [shape: f32[2,4,32,8], index: 10, kind: input, shape index: {}]   ;;  %s8477_s11 = inlined_call_operand.vmem [shape: f32[2,4,1,8], index: 11, kind: input, shape index: {}]   ;;  %s8478_s12 = inlined_call_operand.vmem [shape: f32[2,4,32,8], index: 12, kind: input, shape index: {}]   ;;  %s8479_s13 = inlined_call_operand.vmem [shape: f32[2,4,1,8], index: 13, kind: input, shape index: {}]   ;;  %s8480_s14 = inlined_call_operand.vmem [shape: f32[2,32,32], index: 14, kind: input, shape index: {}]   ;;  %s8481_s15 = inlined_call_operand.vmem [shape: f32[2,1,32], index: 15, kind: input, shape index: {}]   ;;  %s8482_s16 = inlined_call_operand.vmem [shape: f32[2,1,32], index: 16, kind: input, shape index: {}]   ;;  %s8483_s17 = inlined_call_operand.vmem [shape: f32[2,1,32], index: 17, kind: input, shape index: {}]   ;;  %s8484_s18 = inlined_call_operand.vmem [shape: f32[2,32,128], index: 18, kind: input, shape index: {}]   ;;  %s8485_s19 = inlined_call_operand.vmem [shape: f32[2,1,128], index: 19, kind: input, shape index: {}]   ;;  %s8486_s20 = inlined_call_operand.vmem [shape: f32[2,128,32], index: 20, kind: input, shape index: {}]   ;;  %s8487_s21 = inlined_call_operand.vmem [shape: f32[2,1,32], index: 21, kind: input, shape index: {}]   ;;  %s8488_s22 = inlined_call_operand.vmem [shape: f32[1,32], index: 22, kind: input, shape index: {}]   ;;  %s8489_s23 = inlined_call_operand.vmem [shape: f32[1,32], index: 23, kind: input, shape index: {}]   ;;  %s8490_s24 = inlined_call_operand.vmem [shape: f32[128,32], index: 24, kind: input, shape index: {}]   ;;  %s8491_s25 = inlined_call_operand.vmem [shape: f32[16,32], index: 25, kind: input, shape index: {}]   ;;  %s8492_s26 = inlined_call_operand.vmem [shape: f32[32,128], index: 26, kind: input, shape index: {}]   ;;  %s8493_s27 = inlined_call_operand.hbm [shape: f32[2,16,128], index: 27, kind: output, shape index: {}]  }
   0x1   :  { %8521 = sst [smem:[#allocation17_spill]] %s8466_s0 }
   0x2   :  { %8522 = sst [smem:[#allocation18_spill]] %s8467_s1 }
   0x3   :  { %8523 = sst [smem:[#allocation19_spill]] %s8468_s2 }
   0x4   :  { %8524 = sst [smem:[#allocation20_spill]] %s8469_s3 }
   0x5   :  { %8525 = sst [smem:[#allocation21_spill]] %s8470_s4 }
   0x6   :  { %8526 = sst [smem:[#allocation22_spill]] %s8471_s5 }
   0x7   :  { %8527 = sst [smem:[#allocation23_spill]] %s8472_s6 }
   0x8   :  { %8528 = sst [smem:[#allocation24_spill]] %s8473_s7 }
   0x9   :  { %8529 = sst [smem:[#allocation25_spill]] %s8474_s8 }
   0xa   :  { %8530 = sst [smem:[#allocation26_spill]] %s8475_s9 }
   0xb   :  { %8531 = sst [smem:[#allocation27_spill]] %s8476_s10 }
   0xc   :  { %8532 = sst [smem:[#allocation28_spill]] %s8477_s11 }
   0xd   :  { %s8533_s8 = sld [smem:[#allocation19_spill]]  ;;  %v5881_v2 = vmov 0   ;;  %vm100_vm0 = vcmask 523264  }
   0xe   :  { %5578 = vset.pattern.permute.xlu0 %v5881_v2  ;;  %5579 = vset.pattern.permute.xlu2 %v5881_v2  ;;  %s8534_s29 = sld [smem:[#allocation17_spill]] }
   0xf   :  { %s8535_s11 = sld [smem:[#allocation21_spill]] }
  0x10   :  { %s8536_s5 = sld [smem:[#allocation18_spill]] }
  0x13   :  { %v95_v0 = vld [vmem:[%s8533_s8 + $0x38] sm:$0xff]  ;;  %v94_v1 = vld [vmem:[%s8533_s8 + $0x30] sm:$0xff]  ;;  %v93_v3 = vld [vmem:[%s8533_s8 + $0x28] sm:$0xff] }
  0x14   :  { %112 = vmatpush.msra.mxu0 %v95_v0  ;;  %v526_v4 = vld [vmem:[%s8534_s29] sm:$0xff]  ;;  %v91_v11 = vld [vmem:[%s8533_s8 + $0x18] sm:$0xff]  ;;  %v90_v16 = vld [vmem:[%s8533_s8 + $0x10] sm:$0xff] }
  0x15   :  { %v140_v5 = vld [vmem:[%s8535_s11 + $0x78] sm:$0xff]  ;;  %v139_v6 = vld [vmem:[%s8535_s11 + $0x70] sm:$0xff]  ;;  %v92_v7 = vld [vmem:[%s8533_s8 + $0x20] sm:$0xff]  ;;  %529 = vperm.xlu0 %5578, %v526_v4  }
  0x16   :  { %113 = vmatpush.msra.mxu0 %v94_v1  ;;  %145 = vmatpush.msra.mxu1 %v140_v5  ;;  %v138_v8 = vld [vmem:[%s8535_s11 + $0x68] sm:$0xff]  ;;  %v4984_v9 = vld [vmem:[%s8535_s11 + $0xf8] sm:$0xff]  ;;  %v4983_v12 = vld [vmem:[%s8535_s11 + $0xf0] sm:$0xff] }
  0x17   :  { %v5001_v10 = vld [vmem:[%s8535_s11 + $0x178] sm:$0xff]  ;;  %196 = vmatpush.msra.mxu2 %v4984_v9  ;;  %v5000_v13 = vld [vmem:[%s8535_s11 + $0x170] sm:$0xff]  ;;  %v137_v14 = vld [vmem:[%s8535_s11 + $0x60] sm:$0xff] }
  0x18   :  { %114 = vmatpush.msra.mxu0 %v93_v3  ;;  %146 = vmatpush.msra.mxu1 %v139_v6  ;;  %v4982_v15 = vld [vmem:[%s8535_s11 + $0xe8] sm:$0xff]  ;;  %v136_v18 = vld [vmem:[%s8535_s11 + $0x58] sm:$0xff]  ;;  %v4981_v19 = vld [vmem:[%s8535_s11 + $0xe0] sm:$0xff] }
  0x19   :  { %246 = vmatpush.msra.mxu3 %v5001_v10  ;;  %197 = vmatpush.msra.mxu2 %v4983_v12  ;;  %v4999_v17 = vld [vmem:[%s8535_s11 + $0x168] sm:$0xff]  ;;  %v4998_v21 = vld [vmem:[%s8535_s11 + $0x160] sm:$0xff]  ;;  %v135_v22 = vld [vmem:[%s8535_s11 + $0x50] sm:$0xff] }
  0x1a   :  { %115 = vmatpush.msra.mxu0 %v92_v7  ;;  %147 = vmatpush.msra.mxu1 %v138_v8  ;;  %v89_v20 = vld [vmem:[%s8533_s8 + $0x8] sm:$0xff]  ;;  %v4980_v23 = vld [vmem:[%s8535_s11 + $0xd8] sm:$0xff]  ;;  %v88_v24 = vld [vmem:[%s8533_s8] sm:$0xff] }
  0x1b   :  { %247 = vmatpush.msra.mxu3 %v5000_v13  ;;  %198 = vmatpush.msra.mxu2 %v4982_v15  ;;  %v4997_v25 = vld [vmem:[%s8535_s11 + $0x158] sm:$0xff]  ;;  %v87_v26 = vld [vmem:[%s8536_s5] sm:$0x3]  ;;  %v134_v27 = vld [vmem:[%s8535_s11 + $0x48] sm:$0xff] }
  0x1c   :  { %116 = vmatpush.msra.mxu0 %v91_v11  ;;  %148 = vmatpush.msra.mxu1 %v137_v14  ;;  %v5018_v28 = vld [vmem:[%s8535_s11 + $0x1f8] sm:$0xff]  ;;  %v4979_v29 = vld [vmem:[%s8535_s11 + $0xd0] sm:$0xff]  ;;  %v133_v30 = vld [vmem:[%s8535_s11 + $0x40] sm:$0xff] }
  0x1d   :  { %248 = vmatpush.msra.mxu3 %v4999_v17  ;;  %199 = vmatpush.msra.mxu2 %v4981_v19  ;;  %v4996_v31 = vld [vmem:[%s8535_s11 + $0x150] sm:$0xff]  ;;  %v4978_v33 = vld [vmem:[%s8535_s11 + $0xc8] sm:$0xff]  ;;  %v132_v34 = vld [vmem:[%s8535_s11 + $0x38] sm:$0xff] }
  0x1e   :  { %117 = vmatpush.msra.mxu0 %v90_v16  ;;  %149 = vmatpush.msra.mxu1 %v136_v18  ;;  %v5017_v32 = vld [vmem:[%s8535_s11 + $0x1f0] sm:$0xff]  ;;  %v4995_v35 = vld [vmem:[%s8535_s11 + $0x148] sm:$0xff]  ;;  %v4977_v37 = vld [vmem:[%s8535_s11 + $0xc0] sm:$0xff] }
  0x1f   :  { %249 = vmatpush.msra.mxu3 %v4998_v21  ;;  %200 = vmatpush.msra.mxu2 %v4980_v23  ;;  %v5016_v36 = vld [vmem:[%s8535_s11 + $0x1e8] sm:$0xff]  ;;  %v131_v38 = vld [vmem:[%s8535_s11 + $0x30] sm:$0xff]  ;;  %v4994_v39 = vld [vmem:[%s8535_s11 + $0x140] sm:$0xff] }
  0x20   :  { %118 = vmatpush.msra.mxu0 %v89_v20  ;;  %150 = vmatpush.msra.mxu1 %v135_v22  ;;  %v5015_v40 = vld [vmem:[%s8535_s11 + $0x1e0] sm:$0xff]  ;;  %v4976_v41 = vld [vmem:[%s8535_s11 + $0xb8] sm:$0xff]  ;;  %v130_v42 = vld [vmem:[%s8535_s11 + $0x28] sm:$0xff] }
  0x21   :  { %250 = vmatpush.msra.mxu3 %v4997_v25  ;;  %201 = vmatpush.msra.mxu2 %v4979_v29  ;;  %v4993_v43 = vld [vmem:[%s8535_s11 + $0x138] sm:$0xff]  ;;  %v4975_v45 = vld [vmem:[%s8535_s11 + $0xb0] sm:$0xff]  ;;  %v129_v46 = vld [vmem:[%s8535_s11 + $0x20] sm:$0xff] }
  0x22   :  { %119 = vmatpush.msra.mxu0 %v88_v24  ;;  %151 = vmatpush.msra.mxu1 %v134_v27  ;;  %v5014_v44 = vld [vmem:[%s8535_s11 + $0x1d8] sm:$0xff]  ;;  %v4992_v47 = vld [vmem:[%s8535_s11 + $0x130] sm:$0xff]  ;;  %v4974_v49 = vld [vmem:[%s8535_s11 + $0xa8] sm:$0xff] }
  0x23   :  { %4968 = vmatmul.msk.f32.vlgmr.msra.gmra.mxu0 %vm100_vm0, %v87_v26  ;;  %251 = vmatpush.msra.mxu3 %v4996_v31  ;;  %v5013_v48 = vld [vmem:[%s8535_s11 + $0x1d0] sm:$0xff]  ;;  %v128_v50 = vld [vmem:[%s8535_s11 + $0x18] sm:$0xff]  ;;  %v4991_v51 = vld [vmem:[%s8535_s11 + $0x128] sm:$0xff] }
  0x24   :  { %296 = vmatpush.msrb.mxu0 %v5018_v28  ;;  %152 = vmatpush.msra.mxu1 %v133_v30  ;;  %v5012_v52 = vld [vmem:[%s8535_s11 + $0x1c8] sm:$0xff]  ;;  %v4973_v53 = vld [vmem:[%s8535_s11 + $0xa0] sm:$0xff]  ;;  %v127_v54 = vld [vmem:[%s8535_s11 + $0x10] sm:$0xff] }
  0x25   :  { %202 = vmatpush.msra.mxu2 %v4978_v33  ;;  %252 = vmatpush.msra.mxu3 %v4995_v35  ;;  %v4990_v55 = vld [vmem:[%s8535_s11 + $0x120] sm:$0xff]  ;;  %v4972_v57 = vld [vmem:[%s8535_s11 + $0x98] sm:$0xff]  ;;  %v126_v58 = vld [vmem:[%s8535_s11 + $0x8] sm:$0xff] }
  0x26   :  { %297 = vmatpush.msrb.mxu0 %v5017_v32  ;;  %153 = vmatpush.msra.mxu1 %v132_v34  ;;  %v5011_v56 = vld [vmem:[%s8535_s11 + $0x1c0] sm:$0xff]  ;;  %v4989_v59 = vld [vmem:[%s8535_s11 + $0x118] sm:$0xff]  ;;  %v4971_v61 = vld [vmem:[%s8535_s11 + $0x90] sm:$0xff] }
  0x27   :  { %203 = vmatpush.msra.mxu2 %v4977_v37  ;;  %253 = vmatpush.msra.mxu3 %v4994_v39  ;;  %v5010_v60 = vld [vmem:[%s8535_s11 + $0x1b8] sm:$0xff]  ;;  %v125_v62 = vld [vmem:[%s8535_s11] sm:$0xff]  ;;  %v4988_v63 = vld [vmem:[%s8535_s11 + $0x110] sm:$0xff] }
  0x28   :  { %298 = vmatpush.msrb.mxu0 %v5016_v36  ;;  %154 = vmatpush.msra.mxu1 %v131_v38  ;;  %v5009_v0 = vld [vmem:[%s8535_s11 + $0x1b0] sm:$0xff]  ;;  %v5008_v1 = vld [vmem:[%s8535_s11 + $0x1a8] sm:$0xff]  ;;  %v5035_v2 = vld [vmem:[%s8535_s11 + $0x278] sm:$0xff] }
  0x29   :  { %204 = vmatpush.msra.mxu2 %v4976_v41  ;;  %254 = vmatpush.msra.mxu3 %v4993_v43  ;;  %v5034_v3 = vld [vmem:[%s8535_s11 + $0x270] sm:$0xff]  ;;  %v4970_v4 = vld [vmem:[%s8535_s11 + $0x88] sm:$0xff]  ;;  %v5007_v6 = vld [vmem:[%s8535_s11 + $0x1a0] sm:$0xff] }
  0x2a   :  { %299 = vmatpush.msrb.mxu0 %v5015_v40  ;;  %155 = vmatpush.msra.mxu1 %v130_v42  ;;  %v4987_v5 = vld [vmem:[%s8535_s11 + $0x108] sm:$0xff]  ;;  %v4969_v8 = vld [vmem:[%s8535_s11 + $0x80] sm:$0xff]  ;;  %v5052_v10 = vld [vmem:[%s8535_s11 + $0x2f8] sm:$0xff] }
  0x2b   :  { %205 = vmatpush.msra.mxu2 %v4975_v45  ;;  %255 = vmatpush.msra.mxu3 %v4992_v47  ;;  %v5033_v7 = vld [vmem:[%s8535_s11 + $0x268] sm:$0xff]  ;;  %v4986_v9 = vld [vmem:[%s8535_s11 + $0x100] sm:$0xff]  ;;  %v5069_v11 = vld [vmem:[%s8535_s11 + $0x378] sm:$0xff] }
  0x2c   :  { %300 = vmatpush.msrb.mxu0 %v5014_v44  ;;  %156 = vmatpush.msra.mxu1 %v129_v46  ;;  %v5006_v12 = vld [vmem:[%s8535_s11 + $0x198] sm:$0xff]  ;;  %v5032_v13 = vld [vmem:[%s8535_s11 + $0x260] sm:$0xff]  ;;  %v5051_v14 = vld [vmem:[%s8535_s11 + $0x2f0] sm:$0xff] }
  0x2d   :  { %206 = vmatpush.msra.mxu2 %v4974_v49  ;;  %256 = vmatpush.msra.mxu3 %v4991_v51  ;;  %v5068_v15 = vld [vmem:[%s8535_s11 + $0x370] sm:$0xff]  ;;  %v5031_v17 = vld [vmem:[%s8535_s11 + $0x258] sm:$0xff]  ;;  %v5050_v18 = vld [vmem:[%s8535_s11 + $0x2e8] sm:$0xff] }
  0x2e   :  { %301 = vmatpush.msrb.mxu0 %v5013_v48  ;;  %157 = vmatpush.msra.mxu1 %v128_v50  ;;  %v5005_v16 = vld [vmem:[%s8535_s11 + $0x190] sm:$0xff]  ;;  %v5067_v19 = vld [vmem:[%s8535_s11 + $0x368] sm:$0xff]  ;;  %v5049_v22 = vld [vmem:[%s8535_s11 + $0x2e0] sm:$0xff] }
  0x2f   :  { %207 = vmatpush.msra.mxu2 %v4973_v53  ;;  %257 = vmatpush.msra.mxu3 %v4990_v55  ;;  %v5004_v20 = vld [vmem:[%s8535_s11 + $0x188] sm:$0xff]  ;;  %v5030_v21 = vld [vmem:[%s8535_s11 + $0x250] sm:$0xff]  ;;  %v5066_v23 = vld [vmem:[%s8535_s11 + $0x360] sm:$0xff] }
  0x30   :  { %302 = vmatpush.msrb.mxu0 %v5012_v52  ;;  %158 = vmatpush.msra.mxu1 %v127_v54  ;;  %v5003_v24 = vld [vmem:[%s8535_s11 + $0x180] sm:$0xff]  ;;  %v5029_v25 = vld [vmem:[%s8535_s11 + $0x248] sm:$0xff]  ;;  %v5086_v26 = vld [vmem:[%s8535_s11 + $0x3f8] sm:$0xff] }
  0x31   :  { %208 = vmatpush.msra.mxu2 %v4972_v57  ;;  %258 = vmatpush.msra.mxu3 %v4989_v59  ;;  %v5048_v27 = vld [vmem:[%s8535_s11 + $0x2d8] sm:$0xff]  ;;  %v5028_v28 = vld [vmem:[%s8535_s11 + $0x240] sm:$0xff]  ;;  %v5085_v30 = vld [vmem:[%s8535_s11 + $0x3f0] sm:$0xff] }
  0x32   :  { %303 = vmatpush.msrb.mxu0 %v5011_v56  ;;  %159 = vmatpush.msra.mxu1 %v126_v58  ;;  %v5065_v29 = vld [vmem:[%s8535_s11 + $0x358] sm:$0xff]  ;;  %v5047_v31 = vld [vmem:[%s8535_s11 + $0x2d0] sm:$0xff]  ;;  %v5084_v34 = vld [vmem:[%s8535_s11 + $0x3e8] sm:$0xff] }
  0x33   :  { %209 = vmatpush.msra.mxu2 %v4971_v61  ;;  %259 = vmatpush.msra.mxu3 %v4988_v63  ;;  %v5027_v32 = vld [vmem:[%s8535_s11 + $0x238] sm:$0xff]  ;;  %v5064_v33 = vld [vmem:[%s8535_s11 + $0x350] sm:$0xff]  ;;  %v5046_v35 = vld [vmem:[%s8535_s11 + $0x2c8] sm:$0xff] }
  0x34   :  { %304 = vmatpush.msrb.mxu0 %v5010_v60  ;;  %160 = vmatpush.msra.mxu1 %v125_v62  ;;  %v5026_v36 = vld [vmem:[%s8535_s11 + $0x230] sm:$0xff]  ;;  %v5063_v37 = vld [vmem:[%s8535_s11 + $0x348] sm:$0xff]  ;;  %v5083_v38 = vld [vmem:[%s8535_s11 + $0x3e0] sm:$0xff] }
  0x35   :  { %210 = vmatpush.msra.mxu2 %v4970_v4  ;;  %260 = vmatpush.msra.mxu3 %v4987_v5  ;;  %v5025_v39 = vld [vmem:[%s8535_s11 + $0x228] sm:$0xff]  ;;  %v5082_v40 = vld [vmem:[%s8535_s11 + $0x3d8] sm:$0xff]  ;;  %v5081_v41 = vld [vmem:[%s8535_s11 + $0x3d0] sm:$0xff] }
  0x36   :  { %305 = vmatpush.msrb.mxu0 %v5009_v0  ;;  %346 = vmatpush.msrb.mxu1 %v5035_v2  ;;  %v5080_v42 = vld [vmem:[%s8535_s11 + $0x3c8] sm:$0xff] }
  0x37   :  { %211 = vmatpush.msra.mxu2 %v4969_v8  ;;  %261 = vmatpush.msra.mxu3 %v4986_v9 }
  0x38   :  { %306 = vmatpush.msrb.mxu0 %v5008_v1  ;;  %347 = vmatpush.msrb.mxu1 %v5034_v3 }
  0x39   :  { %396 = vmatpush.msrb.mxu2 %v5052_v10  ;;  %446 = vmatpush.msrb.mxu3 %v5069_v11 }
  0x3a   :  { %307 = vmatpush.msrb.mxu0 %v5007_v6  ;;  %348 = vmatpush.msrb.mxu1 %v5033_v7 }
  0x3b   :  { %397 = vmatpush.msrb.mxu2 %v5051_v14  ;;  %447 = vmatpush.msrb.mxu3 %v5068_v15 }
  0x3c   :  { %308 = vmatpush.msrb.mxu0 %v5006_v12  ;;  %349 = vmatpush.msrb.mxu1 %v5032_v13 }
  0x3d   :  { %398 = vmatpush.msrb.mxu2 %v5050_v18  ;;  %448 = vmatpush.msrb.mxu3 %v5067_v19 }
  0x3e   :  { %309 = vmatpush.msrb.mxu0 %v5005_v16  ;;  %350 = vmatpush.msrb.mxu1 %v5031_v17 }
  0x3f   :  { %399 = vmatpush.msrb.mxu2 %v5049_v22  ;;  %449 = vmatpush.msrb.mxu3 %v5066_v23 }
  0x40   :  { %310 = vmatpush.msrb.mxu0 %v5004_v20  ;;  %351 = vmatpush.msrb.mxu1 %v5030_v21 }
  0x41   :  { %400 = vmatpush.msrb.mxu2 %v5048_v27  ;;  %450 = vmatpush.msrb.mxu3 %v5065_v29 }
  0x42   :  { %311 = vmatpush.msrb.mxu0 %v5003_v24  ;;  %352 = vmatpush.msrb.mxu1 %v5029_v25 }
  0x43   :  { %401 = vmatpush.msrb.mxu2 %v5047_v31  ;;  %451 = vmatpush.msrb.mxu3 %v5064_v33 }
  0x44   :  { %496 = vmatpush.msra.mxu0 %v5086_v26  ;;  %353 = vmatpush.msrb.mxu1 %v5028_v28 }
  0x45   :  { %402 = vmatpush.msrb.mxu2 %v5046_v35  ;;  %452 = vmatpush.msrb.mxu3 %v5063_v37 }
  0x46   :  { %497 = vmatpush.msra.mxu0 %v5085_v30  ;;  %354 = vmatpush.msrb.mxu1 %v5027_v32 }
  0x48   :  { %498 = vmatpush.msra.mxu0 %v5084_v34  ;;  %355 = vmatpush.msrb.mxu1 %v5026_v36 }
  0x4a   :  { %499 = vmatpush.msra.mxu0 %v5083_v38  ;;  %356 = vmatpush.msrb.mxu1 %v5025_v39 }
  0x4c   :  { %500 = vmatpush.msra.mxu0 %v5082_v40 }
  0x4e   :  { %501 = vmatpush.msra.mxu0 %v5081_v41 }
  0x50   :  { %502 = vmatpush.msra.mxu0 %v5080_v42 }
  0x51   :  { %32 = vsyncpa [#allocation4], 0  ;;  %v5024_v43 = vld [vmem:[%s8535_s11 + $0x220] sm:$0xff]  ;;  %v5023_v47 = vld [vmem:[%s8535_s11 + $0x218] sm:$0xff]  ;;  %s8537_s6 = sld [smem:[#allocation20_spill]]  ;;  %v524_v27 = vlaneseq  ;;  %v5882_v34 = vmov 1.0  }
  0x52   :  { %v5045_v44 = vld [vmem:[%s8535_s11 + $0x2c0] sm:$0xff]  ;;  %357 = vmatpush.msrb.mxu1 %v5024_v43  ;;  %v5044_v48 = vld [vmem:[%s8535_s11 + $0x2b8] sm:$0xff]  ;;  %v5022_v51 = vld [vmem:[%s8535_s11 + $0x210] sm:$0xff]  ;;  %s8538_s9 = sld [smem:[#allocation22_spill]]  ;;  %vm171_vm2 = vcmask 253952   ;;  %vm579_vm3 = vcmask 261120  }
  0x53   :  { %v5062_v45 = vld [vmem:[%s8535_s11 + $0x340] sm:$0xff]  ;;  %403 = vmatpush.msrb.mxu2 %v5045_v44  ;;  %v5061_v49 = vld [vmem:[%s8535_s11 + $0x338] sm:$0xff]  ;;  %v5043_v52 = vld [vmem:[%s8535_s11 + $0x2b0] sm:$0xff]  ;;  %v6488_v30 = vand.u32 127, %v524_v27  ;;  %s8539_s8 = sld [smem:[#allocation27_spill]]  ;;  %vm814_vm12 = vcmask 64512  }
  0x54   :  { %v5079_v46 = vld [vmem:[%s8535_s11 + $0x3c0] sm:$0xff]  ;;  %453 = vmatpush.msrb.mxu3 %v5062_v45  ;;  %358 = vmatpush.msrb.mxu1 %v5023_v47  ;;  %v5078_v50 = vld [vmem:[%s8535_s11 + $0x3b8] sm:$0xff]  ;;  %v5060_v53 = vld [vmem:[%s8535_s11 + $0x330] sm:$0xff]  ;;  %s8542_s4 = sld [smem:[#allocation24_spill]]  ;;  %vm850_vm14 = vcmask 130048   ;;  %s4956_s2 = sshll.u32 %s8493_s27, 4  ;;  %s4957_s2 = int_to_ptr.hbm [resolvable:$true] %s4956_s2 }
  0x55   :  { %503 = vmatpush.msra.mxu0 %v5079_v46  ;;  %404 = vmatpush.msrb.mxu2 %v5044_v48  ;;  %v5077_v54 = vld [vmem:[%s8535_s11 + $0x3b0] sm:$0xff]  ;;  %v5021_v55 = vld [vmem:[%s8535_s11 + $0x208] sm:$0xff]  ;;  %v5020_v59 = vld [vmem:[%s8535_s11 + $0x200] sm:$0xff]  ;;  %s8543_s0 = sld [smem:[#allocation28_spill]] }
  0x56   :  { %454 = vmatpush.msrb.mxu3 %v5061_v49  ;;  %359 = vmatpush.msrb.mxu1 %v5022_v51  ;;  %v5042_v56 = vld [vmem:[%s8535_s11 + $0x2a8] sm:$0xff]  ;;  %v5041_v60 = vld [vmem:[%s8535_s11 + $0x2a0] sm:$0xff]  ;;  %v5040_v63 = vld [vmem:[%s8535_s11 + $0x298] sm:$0xff] }
  0x57   :  { %504 = vmatpush.msra.mxu0 %v5078_v50  ;;  %405 = vmatpush.msrb.mxu2 %v5043_v52  ;;  %v5059_v57 = vld [vmem:[%s8535_s11 + $0x328] sm:$0xff]  ;;  %v5058_v61 = vld [vmem:[%s8535_s11 + $0x320] sm:$0xff]  ;;  %v5057_v0 = vld [vmem:[%s8535_s11 + $0x318] sm:$0xff] }
  0x58   :  { %v5076_v58 = vld [vmem:[%s8535_s11 + $0x3a8] sm:$0xff]  ;;  %455 = vmatpush.msrb.mxu3 %v5060_v53  ;;  %360 = vmatpush.msrb.mxu1 %v5021_v55  ;;  %v5075_v62 = vld [vmem:[%s8535_s11 + $0x3a0] sm:$0xff]  ;;  %v5074_v1 = vld [vmem:[%s8535_s11 + $0x398] sm:$0xff] }
  0x59   :  { %505 = vmatpush.msra.mxu0 %v5077_v54  ;;  %406 = vmatpush.msrb.mxu2 %v5042_v56  ;;  %v5039_v2 = vld [vmem:[%s8535_s11 + $0x290] sm:$0xff]  ;;  %v5038_v5 = vld [vmem:[%s8535_s11 + $0x288] sm:$0xff]  ;;  %v5037_v8 = vld [vmem:[%s8535_s11 + $0x280] sm:$0xff] }
  0x5a   :  { %456 = vmatpush.msrb.mxu3 %v5059_v57  ;;  %361 = vmatpush.msrb.mxu1 %v5020_v59  ;;  %v5056_v3 = vld [vmem:[%s8535_s11 + $0x310] sm:$0xff]  ;;  %v5055_v6 = vld [vmem:[%s8535_s11 + $0x308] sm:$0xff]  ;;  %v5054_v9 = vld [vmem:[%s8535_s11 + $0x300] sm:$0xff] }
  0x5b   :  { %506 = vmatpush.msra.mxu0 %v5076_v58  ;;  %407 = vmatpush.msrb.mxu2 %v5041_v60  ;;  %v5073_v4 = vld [vmem:[%s8535_s11 + $0x390] sm:$0xff]  ;;  %v5072_v7 = vld [vmem:[%s8535_s11 + $0x388] sm:$0xff]  ;;  %v5071_v10 = vld [vmem:[%s8535_s11 + $0x380] sm:$0xff]  ;;  %s8540_s11 = sld [smem:[#allocation25_spill]] }
  0x5c   :  { %457 = vmatpush.msrb.mxu3 %v5058_v61  ;;  %v5580_v11 = vld [vmem:[%s8537_s6] ss:$0 sm:$0xff]  ;;  %v553_v15 = vld [vmem:[%s8490_s24 + $0x78] sm:$0xff]  ;;  %v552_v16 = vld [vmem:[%s8490_s24 + $0x70] sm:$0xff] }
  0x5d   :  { %507 = vmatpush.msra.mxu0 %v5075_v62  ;;  %408 = vmatpush.msrb.mxu2 %v5040_v63  ;;  %v551_v17 = vld [vmem:[%s8490_s24 + $0x68] sm:$0xff]  ;;  %v550_v18 = vld [vmem:[%s8490_s24 + $0x60] sm:$0xff]  ;;  %v549_v19 = vld [vmem:[%s8490_s24 + $0x58] sm:$0xff] }
  0x5e   :  { %458 = vmatpush.msrb.mxu3 %v5057_v0  ;;  %v548_v20 = vld [vmem:[%s8490_s24 + $0x50] sm:$0xff]  ;;  %v547_v21 = vld [vmem:[%s8490_s24 + $0x48] sm:$0xff]  ;;  %v546_v22 = vld [vmem:[%s8490_s24 + $0x40] sm:$0xff] }
  0x5f   :  { %508 = vmatpush.msra.mxu0 %v5074_v1  ;;  %409 = vmatpush.msrb.mxu2 %v5039_v2  ;;  %v545_v23 = vld [vmem:[%s8490_s24 + $0x38] sm:$0xff]  ;;  %v544_v24 = vld [vmem:[%s8490_s24 + $0x30] sm:$0xff]  ;;  %v543_v25 = vld [vmem:[%s8490_s24 + $0x28] sm:$0xff] }
  0x60   :  { %459 = vmatpush.msrb.mxu3 %v5056_v3  ;;  %v542_v26 = vld [vmem:[%s8490_s24 + $0x20] sm:$0xff]  ;;  %v541_v28 = vld [vmem:[%s8490_s24 + $0x18] sm:$0xff]  ;;  %v540_v29 = vld [vmem:[%s8490_s24 + $0x10] sm:$0xff] }
  0x61   :  { %509 = vmatpush.msra.mxu0 %v5073_v4  ;;  %410 = vmatpush.msrb.mxu2 %v5038_v5  ;;  %v539_v31 = vld [vmem:[%s8490_s24 + $0x8] sm:$0xff]  ;;  %v538_v33 = vld [vmem:[%s8490_s24] sm:$0xff]  ;;  %s8544_s24 = sld [smem:[#allocation26_spill]] }
  0x62   :  { %460 = vmatpush.msrb.mxu3 %v5055_v6  ;;  %v5581_v35 = vld [vmem:[%s8538_s9] ss:$0 sm:$0xff]  ;;  %v5583_v36 = vld [vmem:[%s8538_s9 + $0x3] ss:$0 sm:$0xff]  ;;  %v5585_v44 = vld [vmem:[%s8538_s9 + $0x1] ss:$0 sm:$0xff] }
  0x63   :  { %510 = vmatpush.msra.mxu0 %v5072_v7  ;;  %411 = vmatpush.msrb.mxu2 %v5037_v8  ;;  %v5582_v37 = vld [vmem:[%s8491_s25] ss:$0 sm:$0xff]  ;;  %v5584_v39 = vld [vmem:[%s8491_s25 + $0x3] ss:$0 sm:$0xff]  ;;  %v5586_v46 = vld [vmem:[%s8491_s25 + $0x1] ss:$0 sm:$0xff] }
  0x64   :  { %461 = vmatpush.msrb.mxu3 %v5054_v9  ;;  %v5587_v47 = vld [vmem:[%s8538_s9 + $0x2] ss:$0 sm:$0xff]  ;;  %v5589_v52 = vld [vmem:[%s8538_s9 + $0x4] ss:$0 sm:$0xff]  ;;  %v5591_v55 = vld [vmem:[%s8538_s9 + $0x7] ss:$0 sm:$0xff] }
  0x65   :  { %511 = vmatpush.msra.mxu0 %v5071_v10  ;;  %v5588_v49 = vld [vmem:[%s8491_s25 + $0x2] ss:$0 sm:$0xff]  ;;  %v5590_v57 = vld [vmem:[%s8491_s25 + $0x4] ss:$0 sm:$0xff]  ;;  %v5592_v60 = vld [vmem:[%s8491_s25 + $0x7] ss:$0 sm:$0xff] }
  0x66   :  { %v5593_v2 = vld [vmem:[%s8538_s9 + $0x5] ss:$0 sm:$0xff]  ;;  %v5595_v5 = vld [vmem:[%s8538_s9 + $0x6] ss:$0 sm:$0xff] }
  0x67   :  { %v5594_v7 = vld [vmem:[%s8491_s25 + $0x5] ss:$0 sm:$0xff]  ;;  %v5596_v10 = vld [vmem:[%s8491_s25 + $0x6] ss:$0 sm:$0xff] }
  0x87   :  { %v530_v32 = vpop.permute.xlu0 %529 }
  0x88   :  { %vm534_vm1 = vcmp.eq.s32.totalorder %v6488_v30, %v530_v32  ;;  %v527_v32 = vld [vmem:[%s8534_s29 + $0x8] sm:$0xff]  ;;  %s8541_s29 = sld [smem:[#allocation23_spill]] }
  0xa0   :  { %v121_v12 = vpop.f32.mrf.mxu0 }
  0xa1   :  { %v122_v13 = vadd.f32 %v5580_v11, %v121_v12 }
  0xa3   :  { %5661 = vtanh.f32 %v122_v13 }
  0xa9   :  { %v5662_v14 = vpop.eup %5661 }
  0xaa   :  { %161 = vmatmul.f32.vlgmr.msra.gmra.mxu1 %v5662_v14  ;;  %212 = vmatmul.f32.vlgmr.msra.gmra.mxu2 %v5662_v14 }
  0xab   :  { %262 = vmatmul.f32.vlgmr.msra.gmra.mxu3 %v5662_v14  ;;  %312 = vmatmul.f32.vlgmr.msrb.gmra.mxu0 %v5662_v14 }
  0xac   :  { %554 = vmatpush.msra.mxu1 %v553_v15 }
  0xae   :  { %555 = vmatpush.msra.mxu1 %v552_v16 }
  0xb0   :  { %556 = vmatpush.msra.mxu1 %v551_v17 }
  0xb2   :  { %557 = vmatpush.msra.mxu1 %v550_v18  ;;  %412 = vmatmul.f32.vlgmr.msrb.gmra.mxu2 %v5662_v14 }
  0xb3   :  { %362 = vmatmul.f32.vlgmr.msrb.gmra.mxu1 %v5662_v14  ;;  %462 = vmatmul.f32.vlgmr.msrb.gmra.mxu3 %v5662_v14 }
  0xb4   :  { %512 = vmatmul.f32.vlgmr.msra.gmra.mxu0 %v5662_v14  ;;  %558 = vmatpush.msra.mxu1 %v549_v19 }
  0xb6   :  { %559 = vmatpush.msra.mxu1 %v548_v20 }
  0xb8   :  { %560 = vmatpush.msra.mxu1 %v547_v21 }
  0xba   :  { %561 = vmatpush.msra.mxu1 %v546_v22 }
  0xbc   :  { %562 = vmatpush.msra.mxu1 %v545_v23  ;;  %v6572_v23 = vld [vmem:[%s8491_s25 + $0x8] sm:$0xff] }
  0xbe   :  { %563 = vmatpush.msra.mxu1 %v544_v24 }
  0xc0   :  { %564 = vmatpush.msra.mxu1 %v543_v25 }
  0xc2   :  { %565 = vmatpush.msra.mxu1 %v542_v26 }
  0xc4   :  { %566 = vmatpush.msra.mxu1 %v541_v28 }
  0xc6   :  { %567 = vmatpush.msra.mxu1 %v540_v29 }
  0xc8   :  { %568 = vmatpush.msra.mxu1 %v539_v31 }
  0xca   :  { %569 = vmatpush.msra.mxu1 %v538_v33  ;;  %v5883_v33 = vmov 32.0  }
  0xcb   :  { %5088 = vmatmul.msk.f32.vlgmr.msra.gmra.mxu1 %vm534_vm1, %v5882_v34  ;;  %5663 = vrcp.f32 %v5883_v33 }
 0x127   :  { %v162_v38 = vpop.f32.mrf.mxu1 }
 0x128   :  { %v163_v40 = vadd.f32 %v5581_v35, %v162_v38  ;;  %v313_v41 = vpop.f32.mrf.mxu0  ;;  %v5664_v35 = vpop.eup %5663 }
 0x129   :  { %v314_v42 = vadd.f32 %v5583_v36, %v313_v41  ;;  %v611_v36 = vmul.f32 32.0, %v5664_v35  ;;  %vm615_vm4 = vweird.f32 %v5664_v35  ;;  %v6594_v41 = vld [vmem:[%s8478_s12 + $0x18] sm:$0xff] }
 0x12a   :  { %v167_v43 = vadd.f32 %v5582_v37, %v163_v40  ;;  %v6589_v40 = vld [vmem:[%s8539_s8 + $0x18] sm:$0xff]  ;;  %803 = vmatpush.msrb.mxu0 %v6594_v41 }
 0x12b   :  { %v318_v45 = vadd.f32 %v5584_v39, %v314_v42  ;;  %v612_v37 = vsub.f32 1.0, %v611_v36  ;;  %772 = vmatpush.msra.mxu3 %v6589_v40 }
 0x12c   :  { %v169_v48 = vrot.slane %v167_v43, 1  ;;  %172 = vst.msk [vmem:[#allocation2] sm:$0x1] %vm171_vm2, %v167_v43  ;;  %v6603_v43 = vld [vmem:[%s8540_s11 + $0x18] sm:$0xff] }
 0x12d   :  { %v320_v50 = vrot.slane %v318_v45, 1  ;;  %322 = vst.msk [vmem:[#allocation2 + $0x3] sm:$0x1] %vm171_vm2, %v318_v45  ;;  %v213_v51 = vpop.f32.mrf.mxu2  ;;  %v613_v38 = vmul.f32 %v5664_v35, %v612_v37  ;;  %v6613_v45 = vld [vmem:[%s8478_s12 + $0x10] sm:$0xff]  ;;  %741 = vmatpush.msrb.mxu1 %v6603_v43 }
 0x12e   :  { %173 = vst.msk [vmem:[#allocation2 + $0x10] sm:$0x1] %vm171_vm2, %v169_v48  ;;  %v214_v53 = vadd.f32 %v5585_v44, %v213_v51  ;;  %v263_v54 = vpop.f32.mrf.mxu3  ;;  %v6608_v44 = vld [vmem:[%s8539_s8 + $0x10] sm:$0xff]  ;;  %804 = vmatpush.msrb.mxu0 %v6613_v45  ;;  %v6626_v48 = vld [vmem:[%s8539_s8 + $0x8] sm:$0xff] }
 0x12f   :  { %323 = vst.msk [vmem:[#allocation2 + $0x13] sm:$0x1] %vm171_vm2, %v320_v50  ;;  %v264_v56 = vadd.f32 %v5587_v47, %v263_v54  ;;  %v614_v39 = vadd.f32 %v5664_v35, %v613_v38  ;;  %773 = vmatpush.msra.mxu3 %v6608_v44  ;;  %v6621_v47 = vld [vmem:[%s8540_s11 + $0x10] sm:$0xff]  ;;  %v6650_v54 = vld [vmem:[%s8478_s12] sm:$0xff] }
 0x130   :  { %v218_v58 = vadd.f32 %v5586_v46, %v214_v53  ;;  %v363_v59 = vpop.f32.mrf.mxu1  ;;  %742 = vmatpush.msrb.mxu1 %v6621_v47  ;;  %v6645_v53 = vld [vmem:[%s8539_s8] sm:$0xff] }
 0x131   :  { %v268_v61 = vadd.f32 %v5588_v49, %v264_v56  ;;  %v364_v62 = vadd.f32 %v5589_v52, %v363_v59  ;;  %v513_v63 = vpop.f32.mrf.mxu0  ;;  %v6598_v42 = vsel %vm615_vm4, %v5664_v35, %v614_v39  ;;  %v6631_v49 = vld [vmem:[%s8478_s12 + $0x8] sm:$0xff]  ;;  %774 = vmatpush.msra.mxu3 %v6626_v48  ;;  %v5599_v39 = vld [vmem:[%s8479_s13] ss:$0 sm:$0xff] }
 0x132   :  { %v220_v0 = vrot.slane %v218_v58, 1  ;;  %222 = vst.msk [vmem:[#allocation2 + $0x1] sm:$0x1] %vm171_vm2, %v218_v58  ;;  %v514_v1 = vadd.f32 %v5591_v55, %v513_v63  ;;  %805 = vmatpush.msrb.mxu0 %v6631_v49  ;;  %v6640_v52 = vld [vmem:[%s8540_s11 + $0x8] sm:$0xff] }
 0x133   :  { %v270_v3 = vrot.slane %v268_v61, 1  ;;  %272 = vst.msk [vmem:[#allocation2 + $0x2] sm:$0x1] %vm171_vm2, %v268_v61  ;;  %v368_v4 = vadd.f32 %v5590_v57, %v364_v62  ;;  %743 = vmatpush.msrb.mxu1 %v6640_v52  ;;  %775 = vmatpush.msra.mxu3 %v6645_v53  ;;  %v6659_v57 = vld [vmem:[%s8540_s11] sm:$0xff] }
 0x134   :  { %223 = vst.msk [vmem:[#allocation2 + $0x11] sm:$0x1] %vm171_vm2, %v220_v0  ;;  %v518_v6 = vadd.f32 %v5592_v60, %v514_v1  ;;  %806 = vmatpush.msrb.mxu0 %v6650_v54 }
 0x135   :  { %273 = vst.msk [vmem:[#allocation2 + $0x12] sm:$0x1] %vm171_vm2, %v270_v3  ;;  %v370_v8 = vrot.slane %v368_v4, 1  ;;  %v413_v9 = vpop.f32.mrf.mxu2  ;;  %744 = vmatpush.msrb.mxu1 %v6659_v57  ;;  %v6671_v3 = vld [vmem:[%s8540_s11 + $0x30] sm:$0xff] }
 0x136   :  { %372 = vst.msk [vmem:[#allocation2 + $0x4] sm:$0x1] %vm171_vm2, %v368_v4  ;;  %v520_v11 = vrot.slane %v518_v6, 1  ;;  %v414_v12 = vadd.f32 %v5593_v2, %v413_v9  ;;  %v463_v13 = vpop.f32.mrf.mxu3  ;;  %v6666_v2 = vld [vmem:[%s8540_s11 + $0x38] sm:$0xff] }
 0x137   :  { %373 = vst.msk [vmem:[#allocation2 + $0x14] sm:$0x1] %vm171_vm2, %v370_v8  ;;  %v464_v14 = vadd.f32 %v5595_v5, %v463_v13  ;;  %925 = vmatpush.msra.mxu0 %v6666_v2 }
 0x138   :  { %522 = vst.msk [vmem:[#allocation2 + $0x7] sm:$0x1] %vm171_vm2, %v518_v6  ;;  %v418_v15 = vadd.f32 %v5594_v7, %v414_v12  ;;  %v6678_v7 = vld [vmem:[%s8540_s11 + $0x28] sm:$0xff] }
 0x139   :  { %523 = vst.msk [vmem:[#allocation2 + $0x17] sm:$0x1] %vm171_vm2, %v520_v11  ;;  %v468_v16 = vadd.f32 %v5596_v10, %v464_v14  ;;  %926 = vmatpush.msra.mxu0 %v6671_v3  ;;  %v6684_v10 = vld [vmem:[%s8540_s11 + $0x20] sm:$0xff] }
 0x13a   :  { %v420_v17 = vrot.slane %v418_v15, 1  ;;  %422 = vst.msk [vmem:[#allocation2 + $0x5] sm:$0x1] %vm171_vm2, %v418_v15  ;;  %v6691_v14 = vld [vmem:[%s8541_s29] ss:$0 sm:$0xff] }
 0x13b   :  { %v470_v18 = vrot.slane %v468_v16, 1  ;;  %472 = vst.msk [vmem:[#allocation2 + $0x6] sm:$0x1] %vm171_vm2, %v468_v16  ;;  %927 = vmatpush.msra.mxu0 %v6678_v7 }
 0x13c   :  { %423 = vst.msk [vmem:[#allocation2 + $0x15] sm:$0x1] %vm171_vm2, %v420_v17  ;;  %v6697_v17 = vld [vmem:[%s8542_s4] ss:$0 sm:$0xff] }
 0x13d   :  { %473 = vst.msk [vmem:[#allocation2 + $0x16] sm:$0x1] %vm171_vm2, %v470_v18  ;;  %928 = vmatpush.msra.mxu0 %v6684_v10 }
 0x142   :  { %v6562_v19 = vld [vmem:[#allocation2] sm:$0xff] }
 0x143   :  { %v598_v20 = vsel %vm579_vm3, %v6562_v19, 0.0  ;;  %v621_v21 = vmul.f32 %v6562_v19, %v6562_v19 }
 0x144   :  { %599 = vadd.xlane.f32.xlu0 %v598_v20 }
 0x145   :  { %v625_v22 = vsel %vm579_vm3, %v621_v21, 0.0 }
 0x146   :  { %626 = vadd.xlane.f32.xlu1 %v625_v22 }
 0x148   :  { %v571_v24 = vpop.f32.mrf.mxu1 }
 0x149   :  { %v578_v25 = vadd.f32 %v6572_v23, %v571_v24 }
 0x14b   :  { %580 = vst.msk [vmem:[#allocation2 + $0x8] sm:$0xff] %vm579_vm3, %v578_v25 }
 0x152   :  { %v6576_v26 = vld [vmem:[#allocation2 + $0x8] sm:$0xff] }
 0x153   :  { %v601_v28 = vsel %vm579_vm3, %v6576_v26, 0.0  ;;  %v622_v29 = vmul.f32 %v6576_v26, %v6576_v26 }
 0x154   :  { %602 = vadd.xlane.f32.xlu1 %v601_v28 }
 0x155   :  { %v628_v31 = vsel %vm579_vm3, %v622_v29, 0.0 }
 0x156   :  { %629 = vadd.xlane.f32.xlu2 %v628_v31 }
 0x16e   :  { %532 = vperm.xlu2 %5579, %v527_v32  }
 0x1b7   :  { %v600_v46 = vpop.xlane.xlu0 %599 }
 0x1b8   :  { %v617_v50 = vmul.f32 %v6598_v42, %v600_v46 }
 0x1b9   :  { %v627_v51 = vpop.xlane.xlu1 %626 }
 0x1ba   :  { %v641_v55 = vmul.f32 %v617_v50, %v617_v50  ;;  %v637_v56 = vmul.f32 %v627_v51, %v6598_v42  ;;  %v649_v13 = vsub.f32 %v6562_v19, %v617_v50 }
 0x1bc   :  { %v645_v58 = vsub.f32 %v637_v56, %v641_v55  ;;  %v5601_v55 = vld [vmem:[%s8543_s0] ss:$0 sm:$0xff] }
 0x1be   :  { %v653_v59 = vadd.f32 1e-05, %v645_v58  ;;  %v5600_v58 = vld [vmem:[%s8544_s24] ss:$0 sm:$0xff] }
 0x1c0   :  { %5665 = vrsqrt.f32 %v653_v59  ;;  %vm663_vm6 = vweird.f32 %v653_v59 }
 0x1c6   :  { %v5666_v60 = vpop.eup %5665 }
 0x1c7   :  { %v658_v61 = vmul.f32 %v5666_v60, %v653_v59  ;;  %v603_v62 = vpop.xlane.xlu1 %602  ;;  %vm664_vm5 = vweird.f32 %v5666_v60 }
 0x1c8   :  { %v618_v63 = vmul.f32 %v6598_v42, %v603_v62  ;;  %vm665_vm7 = vmor %vm663_vm6, %vm664_vm5 }
 0x1c9   :  { %v659_v0 = vmul.f32 %v5666_v60, %v658_v61  ;;  %v630_v1 = vpop.xlane.xlu2 %629  ;;  %v6741_v61 = vld [vmem:[%s8539_s8 + $0x38] sm:$0xff] }
 0x1ca   :  { %v642_v4 = vmul.f32 %v618_v63, %v618_v63  ;;  %v638_v5 = vmul.f32 %v630_v1, %v6598_v42  ;;  %v650_v29 = vsub.f32 %v6576_v26, %v618_v63  ;;  %v6748_v63 = vld [vmem:[%s8539_s8 + $0x30] sm:$0xff]  ;;  %v6760_v1 = vld [vmem:[%s8539_s8 + $0x20] sm:$0xff] }
 0x1cb   :  { %v660_v6 = vmul.f32 0.5, %v659_v0  ;;  %v6754_v0 = vld [vmem:[%s8539_s8 + $0x28] sm:$0xff] }
 0x1cc   :  { %v646_v8 = vsub.f32 %v638_v5, %v642_v4 }
 0x1cd   :  { %v661_v9 = vsub.f32 1.5, %v660_v6  ;;  %v590_v6 = vshrl.u32 %v524_v27, 7 }
 0x1ce   :  { %v654_v11 = vadd.f32 1e-05, %v646_v8  ;;  %v5884_v8 = vmov -1e+09  }
 0x1cf   :  { %v662_v12 = vmul.f32 %v5666_v60, %v661_v9  ;;  %vm592_vm13 = vcmp.le.s32.totalorder %v6488_v30, %v590_v6 }
 0x1d0   :  { %5667 = vrsqrt.f32 %v654_v11  ;;  %vm673_vm10 = vweird.f32 %v654_v11  ;;  %v6771_v9 = vsel %vm592_vm13, 0.0, %v5884_v8 }
 0x1d1   :  { %v666_v15 = vsel %vm665_vm7, %v5666_v60, %v662_v12  ;;  %v533_v16 = vpop.permute.xlu2 %532 }
 0x1d2   :  { %v697_v18 = vmul.f32 %v666_v15, %v649_v13  ;;  %vm535_vm8 = vcmp.eq.s32.totalorder %v6488_v30, %v533_v16 }
 0x1d3   :  { %5089 = vmatmul.msk.f32.gmra.mxu1 %vm535_vm8, %v5882_v34 }
 0x1d4   :  { %v704_v19 = vmul.f32 %v6691_v14, %v697_v18 }
 0x1d6   :  { %v5668_v20 = vpop.eup %5667  ;;  %v6703_v21 = vadd.f32 %v6697_v17, %v704_v19 }
 0x1d7   :  { %v668_v22 = vmul.f32 %v5668_v20, %v654_v11  ;;  %vm674_vm9 = vweird.f32 %v5668_v20  ;;  %v591_v11 = vadd.s32 8, %v590_v6 }
 0x1d8   :  { %5092 = vmatmul.msk.f32.vlgmr.msra.gmra.mxu3 %vm579_vm3, %v6703_v21  ;;  %5094 = vmatmul.msk.f32.vlgmr.msrb.gmra.mxu0 %vm579_vm3, %v6703_v21  ;;  %vm675_vm11 = vmor %vm673_vm10, %vm674_vm9 }
 0x1d9   :  { %v669_v24 = vmul.f32 %v5668_v20, %v668_v22  ;;  %vm593_vm15 = vcmp.le.s32.totalorder %v6488_v30, %v591_v11  ;;  %v5603_v22 = vld [vmem:[%s8543_s0 + $0x1] ss:$0 sm:$0xff]  ;;  %v6827_v11 = vld [vmem:[%s8478_s12 + $0x38] sm:$0xff] }
 0x1da   :  { %v6776_v16 = vsel %vm593_vm15, 0.0, %v5884_v8  ;;  %v5602_v30 = vld [vmem:[%s8544_s24 + $0x1] ss:$0 sm:$0xff] }
 0x1db   :  { %v670_v25 = vmul.f32 0.5, %v669_v24  ;;  %5090 = vmatmul.msk.f32.vlgmr.msrb.gmra.mxu1 %vm579_vm3, %v6703_v21 }
 0x1dd   :  { %v671_v28 = vsub.f32 1.5, %v670_v25 }
 0x1df   :  { %v672_v34 = vmul.f32 %v5668_v20, %v671_v28 }
 0x1e1   :  { %v676_v31 = vsel %vm675_vm11, %v5668_v20, %v672_v34 }
 0x1e2   :  { %v698_v32 = vmul.f32 %v676_v31, %v650_v29  ;;  %v6790_v29 = vld [vmem:[%s8540_s11 + $0x58] sm:$0xff] }
 0x1e4   :  { %v705_v33 = vmul.f32 %v6691_v14, %v698_v32  ;;  %v6797_v32 = vld [vmem:[%s8540_s11 + $0x50] sm:$0xff] }
 0x1e6   :  { %v6714_v35 = vadd.f32 %v6697_v17, %v705_v33  ;;  %v6803_v33 = vld [vmem:[%s8540_s11 + $0x48] sm:$0xff] }
 0x1e8   :  { %5091 = vmatmul.msk.f32.gmra.mxu1 %vm579_vm3, %v6714_v35  ;;  %5093 = vmatmul.msk.f32.gmra.mxu3 %vm579_vm3, %v6714_v35 }
 0x1e9   :  { %5095 = vmatmul.msk.f32.gmra.mxu0 %vm579_vm3, %v6714_v35 }
 0x1f1   :  { %5107 = vmatmul.msk.f32.vlgmr.msra.gmra.mxu0 %vm579_vm3, %v6703_v21 }
 0x1f9   :  { %5108 = vmatmul.msk.f32.gmra.mxu0 %vm579_vm3, %v6714_v35 }
 0x250   :  { %v574_v26 = vpop.f32.mrf.mxu1 }
 0x251   :  { %v582_v36 = vadd.f32 %v6572_v23, %v574_v26  ;;  %v6809_v26 = vld [vmem:[%s8540_s11 + $0x40] sm:$0xff] }
 0x253   :  { %584 = vst.msk [vmem:[#allocation2 + $0x18] sm:$0xff] %vm579_vm3, %v582_v36 }
 0x255   :  { %v808_v37 = vpop.f32.mrf.mxu0 }
 0x256   :  { %v809_v51 = vadd.f32 %v5599_v39, %v808_v37 }
 0x258   :  { %v746_v59 = vpop.f32.mrf.mxu1 }
 0x259   :  { %v747_v62 = vadd.f32 %v5600_v58, %v746_v59 }
 0x25b   :  { %v777_v38 = vpop.f32.mrf.mxu3 }
 0x25c   :  { %v778_v60 = vadd.f32 %v5601_v55, %v777_v38 }
 0x265   :  { %v749_v4 = vpop.f32.mrf.mxu1 }
 0x266   :  { %v811_v46 = vpop.f32.mrf.mxu0  ;;  %v750_v5 = vadd.f32 %v5600_v58, %v749_v4 }
 0x267   :  { %v812_v50 = vadd.f32 %v5599_v39, %v811_v46 }
 0x269   :  { %893 = vmatpush.msrb.mxu3 %v812_v50 }
 0x26b   :  { %894 = vmatpush.msrb.mxu3 %v809_v51  ;;  %v780_v56 = vpop.f32.mrf.mxu3 }
 0x26c   :  { %v781_v23 = vadd.f32 %v5601_v55, %v780_v56 }
 0x26d   :  { %991 = vmatpush.msra.mxu3 %v6827_v11 }
 0x26e   :  { %5096 = vmatpush.xpose.msk.msra.mxu2 %vm814_vm12, %v781_v23  ;;  %v930_v28 = vpop.f32.mrf.mxu0 }
 0x26f   :  { %v931_v31 = vadd.f32 %v5602_v30, %v930_v28 }
 0x272   :  { %5097 = vmatpush.xpose.msk.msra.mxu2 %vm814_vm12, %v778_v60 }
 0x275   :  { %5098 = vmatmul.msk.f32.vlgmr.msra.gmra.mxu2 %vm814_vm12, %v747_v62 }
 0x276   :  { %958 = vmatpush.msrb.mxu2 %v6741_v61  ;;  %v933_v36 = vpop.f32.mrf.mxu0 }
 0x277   :  { %v934_v37 = vadd.f32 %v5602_v30, %v933_v36 }
 0x278   :  { %959 = vmatpush.msrb.mxu2 %v6748_v63 }
 0x27a   :  { %960 = vmatpush.msrb.mxu2 %v6754_v0 }
 0x27c   :  { %961 = vmatpush.msrb.mxu2 %v6760_v1 }
 0x27d   :  { %5099 = vmatmul.msk.f32.gmra.mxu2 %vm814_vm12, %v750_v5 }
 0x285   :  { %5114 = vmatmul.msk.f32.vlgmr.msrb.gmra.mxu2 %vm579_vm3, %v6703_v21 }
 0x28d   :  { %5115 = vmatmul.msk.f32.gmra.mxu2 %vm579_vm3, %v6714_v35 }
 0x2f8   :  { %v844_v12 = vpop.f32.mrf.mxu2 }
 0x2f9   :  { %v845_v13 = vadd.f32 %v844_v12, %v6771_v9  ;;  %v6832_v12 = vld [vmem:[%s8478_s12 + $0x30] sm:$0xff] }
 0x2fa   :  { %992 = vmatpush.msra.mxu3 %v6832_v12 }
 0x2fb   :  { %v851_v15 = vsel %vm850_vm14, %v845_v13, -inf }
 0x2fc   :  { %852 = vmax.xlane.f32.xlu1 %v851_v15  ;;  %v6844_v15 = vld [vmem:[%s8478_s12 + $0x20] sm:$0xff] }
 0x300   :  { %v847_v18 = vpop.f32.mrf.mxu2 }
 0x301   :  { %v848_v27 = vadd.f32 %v847_v18, %v6776_v16 }
 0x303   :  { %v854_v19 = vsel %vm850_vm14, %v848_v27, -inf }
 0x304   :  { %855 = vmax.xlane.f32.xlu1 %v854_v19 }
 0x308   :  { %v963_v20 = vpop.f32.mrf.mxu2 }
 0x309   :  { %v964_v34 = vadd.f32 %v5603_v22, %v963_v20 }
 0x310   :  { %v966_v24 = vpop.f32.mrf.mxu2 }
 0x311   :  { %v967_v25 = vadd.f32 %v5603_v22, %v966_v24 }
 0x313   :  { %5123 = vmatpush.xpose.msk.msra.mxu1 %vm814_vm12, %v967_v25 }
 0x317   :  { %5124 = vmatpush.xpose.msk.msra.mxu1 %vm814_vm12, %v964_v34 }
 0x31a   :  { %5125 = vmatmul.msk.f32.vlgmr.msra.gmra.mxu1 %vm814_vm12, %v931_v31 }
 0x31b   :  { %1169 = vmatpush.msrb.mxu1 %v6790_v29 }
 0x31d   :  { %1170 = vmatpush.msrb.mxu1 %v6797_v32 }
 0x31f   :  { %1171 = vmatpush.msrb.mxu1 %v6803_v33 }
 0x321   :  { %1172 = vmatpush.msrb.mxu1 %v6809_v26 }
 0x322   :  { %5126 = vmatmul.msk.f32.gmra.mxu1 %vm814_vm12, %v934_v37 }
 0x32a   :  { %5138 = vmatmul.msk.f32.vlgmr.msrb.gmra.mxu1 %vm579_vm3, %v6703_v21 }
 0x332   :  { %5139 = vmatmul.msk.f32.gmra.mxu1 %vm579_vm3, %v6714_v35 }
 0x36f   :  { %v853_v38 = vpop.xlane.xlu1 %852 }
 0x370   :  { %v857_v39 = vsub.f32 %v845_v13, %v853_v38  ;;  %v6838_v13 = vld [vmem:[%s8478_s12 + $0x28] sm:$0xff] }
 0x371   :  { %993 = vmatpush.msra.mxu3 %v6838_v13 }
 0x372   :  { %v859_v46 = vmul.f32 1.442695, %v857_v39 }
 0x373   :  { %994 = vmatpush.msra.mxu3 %v6844_v15 }
 0x374   :  { %5669 = vpow2.f32 %v859_v46 }
 0x377   :  { %v856_v50 = vpop.xlane.xlu1 %855 }
 0x378   :  { %v858_v51 = vsub.f32 %v848_v27, %v856_v50  ;;  %v6859_v50 = vld [vmem:[%s8480_s14] sm:$0xff] }
 0x37a   :  { %v5670_v55 = vpop.eup %5669  ;;  %v861_v56 = vmul.f32 1.442695, %v858_v51 }
 0x37b   :  { %v863_v23 = vsel %vm850_vm14, %v5670_v55, 0.0 }
 0x37c   :  { %5671 = vpow2.f32 %v861_v56  ;;  %864 = vadd.xlane.f32.xlu1 %v863_v23 }
 0x382   :  { %v5672_v58 = vpop.eup %5671 }
 0x383   :  { %v866_v59 = vsel %vm850_vm14, %v5672_v58, 0.0 }
 0x384   :  { %867 = vadd.xlane.f32.xlu2 %v866_v59 }
 0x397   :  { %v1031_v60 = vpop.f32.mrf.mxu1 }
 0x398   :  { %v1032_v62 = vadd.f32 %v1031_v60, %v6771_v9 }
 0x39a   :  { %v1037_v4 = vsel %vm850_vm14, %v1032_v62, -inf }
 0x39b   :  { %1038 = vmax.xlane.f32.xlu1 %v1037_v4 }
 0x39f   :  { %v1034_v5 = vpop.f32.mrf.mxu1 }
 0x3a0   :  { %v1035_v6 = vadd.f32 %v1034_v5, %v6776_v16 }
 0x3a2   :  { %v1040_v8 = vsel %vm850_vm14, %v1035_v6, -inf }
 0x3a3   :  { %1041 = vmax.xlane.f32.xlu1 %v1040_v8  ;;  %v6870_v8 = vld [vmem:[%s8539_s8 + $0x58] sm:$0xff] }
 0x3ef   :  { %v865_v18 = vpop.xlane.xlu1 %864 }
 0x3f0   :  { %5673 = vrcp.f32 %v865_v18  ;;  %v6876_v18 = vld [vmem:[%s8539_s8 + $0x50] sm:$0xff] }
 0x3f6   :  { %v5674_v27 = vpop.eup %5673 }
 0x3f7   :  { %v871_v19 = vmul.f32 %v5674_v27, %v5670_v55  ;;  %v868_v20 = vpop.xlane.xlu2 %867  ;;  %v6882_v27 = vld [vmem:[%s8539_s8 + $0x48] sm:$0xff] }
 0x3f8   :  { %5675 = vrcp.f32 %v868_v20  ;;  %v6888_v20 = vld [vmem:[%s8539_s8 + $0x40] sm:$0xff] }
 0x3f9   :  { %5100 = vmatmul.msk.f32.vlgmr.msrb.gmra.mxu3 %vm850_vm14, %v871_v19 }
 0x3fa   :  { %1139 = vmatpush.msrb.mxu3 %v6859_v50 }
 0x3fe   :  { %v5676_v22 = vpop.eup %5675 }
 0x3ff   :  { %v872_v24 = vmul.f32 %v5676_v22, %v5672_v58  ;;  %v5605_v58 = vld [vmem:[%s8479_s13 + $0x1] ss:$0 sm:$0xff] }
 0x401   :  { %5101 = vmatmul.msk.f32.gmra.mxu3 %vm850_vm14, %v872_v24  ;;  %v6900_v24 = vld [vmem:[%s8480_s14 + $0x8] sm:$0xff] }
 0x402   :  { %1110 = vmatpush.msra.mxu2 %v6900_v24 }
 0x409   :  { %5121 = vmatmul.msk.f32.vlgmr.msra.gmra.mxu3 %vm579_vm3, %v6703_v21 }
 0x40e   :  { %v1039_v25 = vpop.xlane.xlu1 %1038 }
 0x40f   :  { %v1043_v28 = vsub.f32 %v1032_v62, %v1039_v25  ;;  %v6906_v25 = vld [vmem:[%s8478_s12 + $0x58] sm:$0xff] }
 0x410   :  { %1235 = vmatpush.msrb.mxu2 %v6906_v25 }
 0x411   :  { %v1045_v30 = vmul.f32 1.442695, %v1043_v28  ;;  %5122 = vmatmul.msk.f32.gmra.mxu3 %vm579_vm3, %v6714_v35  ;;  %v6911_v28 = vld [vmem:[%s8478_s12 + $0x50] sm:$0xff] }
 0x412   :  { %1236 = vmatpush.msrb.mxu2 %v6911_v28 }
 0x413   :  { %5677 = vpow2.f32 %v1045_v30  ;;  %v6917_v30 = vld [vmem:[%s8478_s12 + $0x48] sm:$0xff] }
 0x414   :  { %1237 = vmatpush.msrb.mxu2 %v6917_v30 }
 0x416   :  { %v1042_v34 = vpop.xlane.xlu1 %1041 }
 0x417   :  { %v1044_v31 = vsub.f32 %v1035_v6, %v1042_v34  ;;  %v6924_v34 = vld [vmem:[%s8478_s12 + $0x40] sm:$0xff] }
 0x418   :  { %1238 = vmatpush.msrb.mxu2 %v6924_v34 }
 0x419   :  { %v5678_v36 = vpop.eup %5677  ;;  %v1047_v37 = vmul.f32 1.442695, %v1044_v31  ;;  %v6930_v31 = vld [vmem:[%s8540_s11 + $0x78] sm:$0xff] }
 0x41a   :  { %v1049_v38 = vsel %vm850_vm14, %v5678_v36, 0.0 }
 0x41b   :  { %5679 = vpow2.f32 %v1047_v37  ;;  %1050 = vadd.xlane.f32.xlu0 %v1049_v38  ;;  %v6936_v37 = vld [vmem:[%s8540_s11 + $0x70] sm:$0xff]  ;;  %v6942_v38 = vld [vmem:[%s8540_s11 + $0x68] sm:$0xff] }
 0x41c   :  { %8545 = vst [vmem:[#allocation6_spill] sm:$0xff] %v6942_v38 }
 0x421   :  { %v5680_v39 = vpop.eup %5679 }
 0x422   :  { %v1052_v46 = vsel %vm850_vm14, %v5680_v39, 0.0 }
 0x423   :  { %1053 = vadd.xlane.f32.xlu1 %v1052_v46 }
 0x47c   :  { %v896_v51 = vpop.f32.mrf.mxu3 }
 0x47d   :  { %5131 = vmatmul.msk.f32.vlgmr.msrb.gmra.mxu3 %vm814_vm12, %v896_v51 }
 0x484   :  { %v899_v55 = vpop.f32.mrf.mxu3 }
 0x485   :  { %5132 = vmatmul.msk.f32.gmra.mxu3 %vm814_vm12, %v899_v55  ;;  %v5606_v55 = vld [vmem:[%s8543_s0 + $0x2] ss:$0 sm:$0xff] }
 0x48c   :  { %v996_v56 = vpop.f32.mrf.mxu3 }
 0x48d   :  { %v997_v5 = vadd.f32 %v5605_v58, %v996_v56 }
 0x48e   :  { %v1051_v23 = vpop.xlane.xlu0 %1050 }
 0x48f   :  { %5681 = vrcp.f32 %v1051_v23 }
 0x494   :  { %v999_v59 = vpop.f32.mrf.mxu3 }
 0x495   :  { %v5682_v60 = vpop.eup %5681  ;;  %v1000_v62 = vadd.f32 %v5605_v58, %v999_v59  ;;  %v1174_v58 = vpop.f32.mrf.mxu1  ;;  %v5604_v59 = vld [vmem:[%s8544_s24 + $0x2] ss:$0 sm:$0xff] }
 0x496   :  { %v1054_v4 = vpop.xlane.xlu1 %1053  ;;  %v1057_v6 = vmul.f32 %v5682_v60, %v5678_v36 }
 0x497   :  { %5683 = vrcp.f32 %v1054_v4  ;;  %1079 = vmatpush.msrb.mxu0 %v1000_v62  ;;  %v6967_v62 = vld [vmem:[%s8539_s8 + $0x78] sm:$0xff]  ;;  %v1175_v4 = vadd.f32 %v5604_v59, %v1174_v58 }
 0x498   :  { %8547 = vst [vmem:[#allocation8_spill] sm:$0xff] %v6967_v62 }
 0x499   :  { %1080 = vmatpush.msrb.mxu0 %v997_v5  ;;  %v6974_v5 = vld [vmem:[%s8539_s8 + $0x70] sm:$0xff] }
 0x49a   :  { %5127 = vmatmul.msk.f32.vlgmr.msrb.gmra.mxu0 %vm850_vm14, %v1057_v6  ;;  %8548 = vst [vmem:[#allocation9_spill] sm:$0xff] %v6974_v5  ;;  %v6982_v6 = vld [vmem:[%s8539_s8 + $0x68] sm:$0xff] }
 0x49b   :  { %1202 = vmatpush.msra.mxu0 %v6870_v8  ;;  %8549 = vst [vmem:[#allocation10_spill] sm:$0xff] %v6982_v6 }
 0x49d   :  { %v5684_v19 = vpop.eup %5683  ;;  %1203 = vmatpush.msra.mxu0 %v6876_v18 }
 0x49e   :  { %v1058_v22 = vmul.f32 %v5684_v19, %v5680_v39  ;;  %v6948_v39 = vld [vmem:[%s8540_s11 + $0x60] sm:$0xff] }
 0x49f   :  { %1204 = vmatpush.msra.mxu0 %v6882_v27  ;;  %8546 = vst [vmem:[#allocation7_spill] sm:$0xff] %v6948_v39  ;;  %v6988_v19 = vld [vmem:[%s8539_s8 + $0x60] sm:$0xff] }
 0x4a0   :  { %8550 = vst [vmem:[#allocation11_spill] sm:$0xff] %v6988_v19 }
 0x4a1   :  { %1205 = vmatpush.msra.mxu0 %v6888_v20 }
 0x4a2   :  { %5128 = vmatmul.msk.f32.gmra.mxu0 %vm850_vm14, %v1058_v22  ;;  %v1177_v22 = vpop.f32.mrf.mxu1 }
 0x4aa   :  { %5145 = vmatmul.msk.f32.vlgmr.msra.gmra.mxu0 %vm579_vm3, %v6703_v21 }
 0x4b2   :  { %5146 = vmatmul.msk.f32.gmra.mxu0 %vm579_vm3, %v6714_v35 }
 0x517   :  { %v1082_v36 = vpop.f32.mrf.mxu0 }
 0x518   :  { %5129 = vmatmul.msk.f32.vlgmr.msra.gmra.mxu2 %vm814_vm12, %v1082_v36  ;;  %v1178_v36 = vadd.f32 %v5604_v59, %v1177_v22 }
 0x519   :  { %1386 = vmatpush.msra.mxu2 %v6930_v31 }
 0x51b   :  { %1387 = vmatpush.msra.mxu2 %v6936_v37 }
 0x51d   :  { %1388 = vmatpush.msra.mxu2 %v6942_v38 }
 0x51f   :  { %v1085_v46 = vpop.f32.mrf.mxu0  ;;  %1389 = vmatpush.msra.mxu2 %v6948_v39 }
 0x520   :  { %5130 = vmatmul.msk.f32.gmra.mxu2 %vm814_vm12, %v1085_v46 }
 0x527   :  { %v1207_v51 = vpop.f32.mrf.mxu0 }
 0x528   :  { %5152 = vmatmul.msk.f32.vlgmr.msrb.gmra.mxu2 %vm579_vm3, %v6703_v21  ;;  %v1208_v60 = vadd.f32 %v5606_v55, %v1207_v51 }
 0x52f   :  { %v1210_v56 = vpop.f32.mrf.mxu0 }
 0x530   :  { %v1211_v23 = vadd.f32 %v5606_v55, %v1210_v56  ;;  %5153 = vmatmul.msk.f32.gmra.mxu2 %vm579_vm3, %v6714_v35  ;;  %v7003_v55 = vpop.f32.mrf.mxu3 }
 0x531   :  { %8553 = vst [vmem:[#allocation14_spill] sm:$0xff] %v7003_v55 }
 0x532   :  { %5154 = vmatpush.xpose.msk.msra.mxu3 %vm814_vm12, %v1211_v23  ;;  %v5607_v23 = vld [vmem:[%s8479_s13 + $0x2] ss:$0 sm:$0xff] }
 0x536   :  { %5155 = vmatpush.xpose.msk.msra.mxu3 %vm814_vm12, %v1208_v60 }
 0x538   :  { %5167 = vmatmul.msk.f32.vlgmr.msra.gmra.mxu2 %vm579_vm3, %v6703_v21  ;;  %v7008_v59 = vpop.f32.mrf.mxu3 }
 0x539   :  { %5156 = vmatmul.msk.f32.vlgmr.msra.gmra.mxu3 %vm814_vm12, %v1175_v4  ;;  %8554 = vst [vmem:[#allocation15_spill] sm:$0xff] %v7008_v59  ;;  %v7013_v4 = vld [vmem:[%s8480_s14 + $0x10] sm:$0xff] }
 0x53a   :  { %1419 = vmatpush.msrb.mxu3 %v6967_v62  ;;  %1354 = vmatpush.msrb.mxu0 %v7013_v4 }
 0x53c   :  { %1420 = vmatpush.msrb.mxu3 %v6974_v5 }
 0x53e   :  { %1421 = vmatpush.msrb.mxu3 %v6982_v6 }
 0x540   :  { %1422 = vmatpush.msrb.mxu3 %v6988_v19  ;;  %5168 = vmatmul.msk.f32.gmra.mxu2 %vm579_vm3, %v6714_v35 }
 0x541   :  { %5157 = vmatmul.msk.f32.gmra.mxu3 %vm814_vm12, %v1178_v36 }
 0x549   :  { %5174 = vmatmul.msk.f32.vlgmr.msrb.gmra.mxu3 %vm579_vm3, %v6703_v21 }
 0x551   :  { %5175 = vmatmul.msk.f32.gmra.mxu3 %vm579_vm3, %v6714_v35 }
 0x59b   :  { %v6999_v46 = vpop.f32.mrf.mxu2 }
 0x59c   :  { %8551 = vst [vmem:[#allocation12_spill] sm:$0xff] %v6999_v46 }
 0x5a3   :  { %v7001_v51 = vpop.f32.mrf.mxu2 }
 0x5a4   :  { %8552 = vst [vmem:[#allocation13_spill] sm:$0xff] %v7001_v51 }
 0x5ab   :  { %v1240_v56 = vpop.f32.mrf.mxu2 }
 0x5ac   :  { %v1241_v22 = vadd.f32 %v5607_v23, %v1240_v56  ;;  %v5609_v56 = vld [vmem:[%s8543_s0 + $0x3] ss:$0 sm:$0xff] }
 0x5b3   :  { %v1243_v58 = vpop.f32.mrf.mxu2 }
 0x5b4   :  { %v1244_v60 = vadd.f32 %v5607_v23, %v1243_v58 }
 0x5b6   :  { %1323 = vmatpush.msra.mxu1 %v1244_v60 }
 0x5b8   :  { %1324 = vmatpush.msra.mxu1 %v1241_v22 }
 0x5bc   :  { %v1275_v36 = vpop.f32.mrf.mxu3 }
 0x5bd   :  { %v1276_v51 = vadd.f32 %v1275_v36, %v6771_v9 }
 0x5bf   :  { %v1281_v55 = vsel %vm850_vm14, %v1276_v51, -inf }
 0x5c0   :  { %1282 = vmax.xlane.f32.xlu0 %v1281_v55 }
 0x5c4   :  { %v1278_v46 = vpop.f32.mrf.mxu3 }
 0x5c5   :  { %v1279_v59 = vadd.f32 %v1278_v46, %v6776_v16 }
 0x5c7   :  { %v1284_v58 = vsel %vm850_vm14, %v1279_v59, -inf }
 0x5c8   :  { %1285 = vmax.xlane.f32.xlu1 %v1284_v58 }
 0x5cc   :  { %v1424_v19 = vpop.f32.mrf.mxu3 }
 0x5cd   :  { %v1425_v22 = vadd.f32 %v5609_v56, %v1424_v19 }
 0x5d4   :  { %v1427_v23 = vpop.f32.mrf.mxu3 }
 0x5d5   :  { %v1428_v60 = vadd.f32 %v5609_v56, %v1427_v23  ;;  %v7050_v56 = vld [vmem:[%s8478_s12 + $0x68] sm:$0xff] }
 0x5d7   :  { %5183 = vmatpush.xpose.msk.msra.mxu0 %vm814_vm12, %v1428_v60  ;;  %v7027_v60 = vld [vmem:[#allocation2 + $0x10] sm:$0xff] }
 0x5d8   :  { %v604_v19 = vsel %vm579_vm3, %v7027_v60, 0.0 }
 0x5db   :  { %5184 = vmatpush.xpose.msk.msra.mxu0 %vm814_vm12, %v1425_v22  ;;  %v7057_v22 = vld [vmem:[%s8478_s12 + $0x60] sm:$0xff] }
 0x633   :  { %v1283_v36 = vpop.xlane.xlu0 %1282 }
 0x634   :  { %v1287_v55 = vsub.f32 %v1276_v51, %v1283_v36  ;;  %v7031_v51 = vld [vmem:[#allocation2 + $0x18] sm:$0xff] }
 0x636   :  { %v1289_v6 = vmul.f32 1.442695, %v1287_v55 }
 0x638   :  { %5685 = vpow2.f32 %v1289_v6  ;;  %v624_v6 = vmul.f32 %v7031_v51, %v7031_v51 }
 0x63b   :  { %v1286_v46 = vpop.xlane.xlu1 %1285 }
 0x63c   :  { %v1288_v5 = vsub.f32 %v1279_v59, %v1286_v46  ;;  %v7044_v59 = vld [vmem:[%s8478_s12 + $0x70] sm:$0xff] }
 0x63e   :  { %v5686_v62 = vpop.eup %5685  ;;  %v1291_v58 = vmul.f32 1.442695, %v1288_v5  ;;  %v634_v5 = vsel %vm579_vm3, %v624_v6, 0.0 }
 0x63f   :  { %v1293_v39 = vsel %vm850_vm14, %v5686_v62, 0.0 }
 0x640   :  { %5687 = vpow2.f32 %v1291_v58  ;;  %1294 = vadd.xlane.f32.xlu0 %v1293_v39  ;;  %v7039_v39 = vld [vmem:[%s8478_s12 + $0x78] sm:$0xff] }
 0x641   :  { %1452 = vmatpush.msrb.mxu1 %v7039_v39 }
 0x643   :  { %1453 = vmatpush.msrb.mxu1 %v7044_v59 }
 0x645   :  { %1454 = vmatpush.msrb.mxu1 %v7050_v56 }
 0x646   :  { %v5688_v38 = vpop.eup %5687 }
 0x647   :  { %v1296_v23 = vsel %vm850_vm14, %v5688_v38, 0.0  ;;  %1455 = vmatpush.msrb.mxu1 %v7057_v22 }
 0x648   :  { %1297 = vadd.xlane.f32.xlu1 %v1296_v23 }
 0x650   :  { %605 = vadd.xlane.f32.xlu1 %v604_v19 }
 0x658   :  { %635 = vadd.xlane.f32.xlu1 %v634_v5  ;;  %v623_v5 = vmul.f32 %v7027_v60, %v7027_v60 }
 0x6b3   :  { %v1295_v36 = vpop.xlane.xlu0 %1294 }
 0x6b4   :  { %5689 = vrcp.f32 %v1295_v36  ;;  %v607_v36 = vsel %vm579_vm3, %v7031_v51, 0.0 }
 0x6ba   :  { %v5690_v55 = vpop.eup %5689 }
 0x6bb   :  { %v1301_v46 = vmul.f32 %v5690_v55, %v5686_v62  ;;  %v1298_v58 = vpop.xlane.xlu1 %1297 }
 0x6bc   :  { %5691 = vrcp.f32 %v1298_v58 }
 0x6bd   :  { %5158 = vmatmul.msk.f32.vlgmr.msra.gmra.mxu1 %vm850_vm14, %v1301_v46 }
 0x6be   :  { %1607 = vmatpush.msra.mxu1 %v6603_v43 }
 0x6c0   :  { %1608 = vmatpush.msra.mxu1 %v6621_v47  ;;  %v1391_v47 = vpop.f32.mrf.mxu2 }
 0x6c2   :  { %v5692_v23 = vpop.eup %5691  ;;  %1609 = vmatpush.msra.mxu1 %v6640_v52  ;;  %v5608_v52 = vld [vmem:[%s8544_s24 + $0x3] ss:$0 sm:$0xff] }
 0x6c3   :  { %v1302_v19 = vmul.f32 %v5692_v23, %v5688_v38  ;;  %v606_v58 = vpop.xlane.xlu1 %605 }
 0x6c4   :  { %1610 = vmatpush.msra.mxu1 %v6659_v57  ;;  %v1392_v57 = vadd.f32 %v5608_v52, %v1391_v47 }
 0x6c5   :  { %5159 = vmatmul.msk.f32.gmra.mxu1 %vm850_vm14, %v1302_v19  ;;  %v619_v19 = vmul.f32 %v6598_v42, %v606_v58 }
 0x6c7   :  { %v643_v47 = vmul.f32 %v619_v19, %v619_v19 }
 0x6cd   :  { %5181 = vmatmul.msk.f32.vlgmr.msrb.gmra.mxu1 %vm579_vm3, %v6703_v21 }
 0x6d5   :  { %5182 = vmatmul.msk.f32.gmra.mxu1 %vm579_vm3, %v6714_v35 }
 0x73a   :  { %v1326_v62 = vpop.f32.mrf.mxu1 }
 0x73b   :  { %5160 = vmatmul.msk.f32.vlgmr.msrb.gmra.mxu0 %vm814_vm12, %v1326_v62 }
 0x73c   :  { %1638 = vmatpush.msrb.mxu0 %v6589_v40  ;;  %v1394_v40 = vpop.f32.mrf.mxu2 }
 0x73e   :  { %1639 = vmatpush.msrb.mxu0 %v6608_v44  ;;  %v1395_v44 = vadd.f32 %v5608_v52, %v1394_v40 }
 0x740   :  { %1640 = vmatpush.msrb.mxu0 %v6626_v48  ;;  %v5610_v48 = vld [vmem:[%s8479_s13 + $0x3] ss:$0 sm:$0xff] }
 0x742   :  { %v1329_v43 = vpop.f32.mrf.mxu1  ;;  %1641 = vmatpush.msrb.mxu0 %v6645_v53 }
 0x743   :  { %5161 = vmatmul.msk.f32.gmra.mxu0 %vm814_vm12, %v1329_v43 }
 0x74a   :  { %v1457_v21 = vpop.f32.mrf.mxu1 }
 0x74b   :  { %5185 = vmatmul.msk.f32.vlgmr.msra.gmra.mxu0 %vm814_vm12, %v1392_v57  ;;  %v1458_v38 = vadd.f32 %v5610_v48, %v1457_v21 }
 0x74c   :  { %1787 = vmatpush.msra.mxu0 %v6666_v2 }
 0x74e   :  { %1788 = vmatpush.msra.mxu0 %v6671_v3 }
 0x750   :  { %1789 = vmatpush.msra.mxu0 %v6678_v7 }
 0x752   :  { %v1460_v53 = vpop.f32.mrf.mxu1  ;;  %1790 = vmatpush.msra.mxu0 %v6684_v10 }
 0x753   :  { %v1461_v35 = vadd.f32 %v5610_v48, %v1460_v53  ;;  %5186 = vmatmul.msk.f32.gmra.mxu0 %vm814_vm12, %v1395_v44 }
 0x755   :  { %1540 = vmatpush.msrb.mxu2 %v1461_v35  ;;  %v636_v35 = vpop.xlane.xlu1 %635 }
 0x757   :  { %1541 = vmatpush.msrb.mxu2 %v1458_v38 }
 0x759   :  { %1669 = vmatpush.msra.mxu2 %v6594_v41 }
 0x75b   :  { %1670 = vmatpush.msra.mxu2 %v6613_v45 }
 0x75d   :  { %1671 = vmatpush.msra.mxu2 %v6631_v49 }
 0x75f   :  { %1672 = vmatpush.msra.mxu2 %v6650_v54  ;;  %v631_v54 = vsel %vm579_vm3, %v623_v5, 0.0 }
 0x7b8   :  { %v7092_v2 = vpop.f32.mrf.mxu0 }
 0x7c0   :  { %v7094_v3 = vpop.f32.mrf.mxu0 }
 0x7c8   :  { %v1492_v7 = vpop.f32.mrf.mxu0 }
 0x7c9   :  { %v1493_v10 = vadd.f32 %v1492_v7, %v6771_v9 }
 0x7cb   :  { %v1498_v6 = vsel %vm850_vm14, %v1493_v10, -inf }
 0x7cc   :  { %1499 = vmax.xlane.f32.xlu2 %v1498_v6  ;;  %v640_v6 = vmul.f32 %v636_v35, %v6598_v42 }
 0x7d0   :  { %v1495_v41 = vpop.f32.mrf.mxu0 }
 0x7d1   :  { %v1496_v45 = vadd.f32 %v1495_v41, %v6776_v16 }
 0x7d3   :  { %v1501_v49 = vsel %vm850_vm14, %v1496_v45, -inf }
 0x7d4   :  { %1502 = vmax.xlane.f32.xlu0 %v1501_v49  ;;  %632 = vadd.xlane.f32.xlu2 %v631_v54 }
 0x7dc   :  { %608 = vadd.xlane.f32.xlu0 %v607_v36 }
 0x83f   :  { %v1500_v55 = vpop.xlane.xlu2 %1499 }
 0x840   :  { %v1504_v46 = vsub.f32 %v1493_v10, %v1500_v55 }
 0x842   :  { %v1506_v23 = vmul.f32 1.442695, %v1504_v46 }
 0x844   :  { %5693 = vpow2.f32 %v1506_v23 }
 0x847   :  { %v1503_v62 = vpop.xlane.xlu0 %1502  ;;  %v633_v43 = vpop.xlane.xlu2 %632 }
 0x848   :  { %v1505_v52 = vsub.f32 %v1496_v45, %v1503_v62  ;;  %v639_v57 = vmul.f32 %v633_v43, %v6598_v42  ;;  %v651_v43 = vsub.f32 %v7027_v60, %v619_v19 }
 0x84a   :  { %v5694_v21 = vpop.eup %5693  ;;  %v1508_v40 = vmul.f32 1.442695, %v1505_v52  ;;  %v647_v44 = vsub.f32 %v639_v57, %v643_v47 }
 0x84b   :  { %v1510_v48 = vsel %vm850_vm14, %v5694_v21, 0.0 }
 0x84c   :  { %5695 = vpow2.f32 %v1508_v40  ;;  %v655_v53 = vadd.f32 1e-05, %v647_v44  ;;  %1511 = vadd.xlane.f32.xlu2 %v1510_v48 }
 0x84e   :  { %5697 = vrsqrt.f32 %v655_v53  ;;  %vm683_vm1 = vweird.f32 %v655_v53 }
 0x84f   :  { %v609_v38 = vpop.xlane.xlu0 %608 }
 0x850   :  { %v620_v7 = vmul.f32 %v6598_v42, %v609_v38 }
 0x852   :  { %v5696_v10 = vpop.eup %5695  ;;  %v644_v5 = vmul.f32 %v620_v7, %v620_v7  ;;  %v652_v19 = vsub.f32 %v7031_v51, %v620_v7 }
 0x853   :  { %v1513_v41 = vsel %vm850_vm14, %v5696_v10, 0.0 }
 0x854   :  { %v5698_v45 = vpop.eup %5697  ;;  %v648_v49 = vsub.f32 %v640_v6, %v644_v5  ;;  %1514 = vadd.xlane.f32.xlu0 %v1513_v41 }
 0x855   :  { %v678_v54 = vmul.f32 %v5698_v45, %v655_v53  ;;  %vm684_vm0 = vweird.f32 %v5698_v45 }
 0x856   :  { %v656_v36 = vadd.f32 1e-05, %v648_v49  ;;  %vm685_vm2 = vmor %vm683_vm1, %vm684_vm0  ;;  %v1549_v49 = vld [vmem:[%s8480_s14 + $0x18] sm:$0xff] }
 0x857   :  { %v679_v55 = vmul.f32 %v5698_v45, %v678_v54  ;;  %1571 = vmatpush.msra.mxu3 %v1549_v49 }
 0x858   :  { %5699 = vrsqrt.f32 %v656_v36  ;;  %vm693_vm5 = vweird.f32 %v656_v36 }
 0x859   :  { %v680_v46 = vmul.f32 0.5, %v679_v55 }
 0x85b   :  { %v681_v58 = vsub.f32 1.5, %v680_v46 }
 0x85d   :  { %v682_v23 = vmul.f32 %v5698_v45, %v681_v58 }
 0x85e   :  { %v5700_v62 = vpop.eup %5699 }
 0x85f   :  { %v686_v47 = vsel %vm685_vm2, %v5698_v45, %v682_v23  ;;  %v688_v52 = vmul.f32 %v5700_v62, %v656_v36  ;;  %vm694_vm4 = vweird.f32 %v5700_v62 }
 0x860   :  { %v699_v57 = vmul.f32 %v686_v47, %v651_v43  ;;  %vm695_vm6 = vmor %vm693_vm5, %vm694_vm4 }
 0x861   :  { %v689_v40 = vmul.f32 %v5700_v62, %v688_v52 }
 0x862   :  { %v706_v44 = vmul.f32 %v6691_v14, %v699_v57 }
 0x863   :  { %v690_v48 = vmul.f32 0.5, %v689_v40 }
 0x864   :  { %v7114_v35 = vadd.f32 %v6697_v17, %v706_v44 }
 0x865   :  { %v691_v38 = vsub.f32 1.5, %v690_v48 }
 0x866   :  { %5191 = vmatmul.msk.f32.vlgmr.msra.gmra.mxu1 %vm579_vm3, %v7114_v35  ;;  %5193 = vmatmul.msk.f32.vlgmr.msrb.gmra.mxu0 %vm579_vm3, %v7114_v35 }
 0x867   :  { %v692_v60 = vmul.f32 %v5700_v62, %v691_v38 }
 0x869   :  { %v696_v53 = vsel %vm695_vm6, %v5700_v62, %v692_v60 }
 0x86a   :  { %v700_v6 = vmul.f32 %v696_v53, %v652_v19  ;;  %v5617_v19 = vld [vmem:[%s8479_s13 + $0x1] ss:$0 sm:$0xff] }
 0x86c   :  { %v707_v5 = vmul.f32 %v6691_v14, %v700_v6 }
 0x86e   :  { %v7123_v41 = vadd.f32 %v6697_v17, %v707_v5 }
 0x870   :  { %5192 = vmatmul.msk.f32.gmra.mxu1 %vm579_vm3, %v7123_v41  ;;  %5194 = vmatmul.msk.f32.gmra.mxu0 %vm579_vm3, %v7123_v41 }
 0x878   :  { %5208 = vmatmul.msk.f32.vlgmr.msra.gmra.mxu0 %vm579_vm3, %v7114_v35 }
 0x880   :  { %5209 = vmatmul.msk.f32.gmra.mxu0 %vm579_vm3, %v7123_v41 }
 0x8bf   :  { %v1512_v51 = vpop.xlane.xlu2 %1511 }
 0x8c0   :  { %5701 = vrcp.f32 %v1512_v51 }
 0x8c6   :  { %v5702_v7 = vpop.eup %5701 }
 0x8c7   :  { %v1518_v45 = vmul.f32 %v5702_v7, %v5694_v21  ;;  %v1515_v14 = vpop.xlane.xlu0 %1514 }
 0x8c8   :  { %5703 = vrcp.f32 %v1515_v14 }
 0x8c9   :  { %5187 = vmatmul.msk.f32.vlgmr.msrb.gmra.mxu2 %vm850_vm14, %v1518_v45 }
 0x8ca   :  { %1818 = vmatpush.msrb.mxu2 %v6741_v61 }
 0x8cc   :  { %1819 = vmatpush.msrb.mxu2 %v6748_v63  ;;  %v5612_v63 = vld [vmem:[%s8543_s0] ss:$0 sm:$0xff] }
 0x8ce   :  { %v5704_v17 = vpop.eup %5703  ;;  %1820 = vmatpush.msrb.mxu2 %v6754_v0 }
 0x8cf   :  { %v1519_v54 = vmul.f32 %v5704_v17, %v5696_v10 }
 0x8d0   :  { %1821 = vmatpush.msrb.mxu2 %v6760_v1 }
 0x8d1   :  { %5188 = vmatmul.msk.f32.gmra.mxu2 %vm850_vm14, %v1519_v54 }
 0x8d9   :  { %5195 = vmatmul.msk.f32.vlgmr.msra.gmra.mxu2 %vm579_vm3, %v7114_v35 }
 0x8da   :  { %1968 = vmatpush.msra.mxu2 %v6900_v24 }
 0x8e1   :  { %5196 = vmatmul.msk.f32.gmra.mxu2 %vm579_vm3, %v7123_v41 }
 0x8e3   :  { %v1643_v61 = vpop.f32.mrf.mxu0 }
 0x8e4   :  { %v1644_v24 = vadd.f32 %v5612_v63, %v1643_v61 }
 0x8e9   :  { %5215 = vmatmul.msk.f32.vlgmr.msrb.gmra.mxu2 %vm579_vm3, %v7114_v35 }
 0x8ea   :  { %2087 = vmatpush.msrb.mxu2 %v6906_v25 }
 0x8ec   :  { %2088 = vmatpush.msrb.mxu2 %v6911_v28 }
 0x8ed   :  { %v1646_v0 = vpop.f32.mrf.mxu0 }
 0x8ee   :  { %v1647_v1 = vadd.f32 %v5612_v63, %v1646_v0  ;;  %2089 = vmatpush.msrb.mxu2 %v6917_v30  ;;  %v5611_v30 = vld [vmem:[%s8544_s24] ss:$0 sm:$0xff] }
 0x8f0   :  { %5197 = vmatpush.xpose.msk.msrb.mxu3 %vm814_vm12, %v1647_v1  ;;  %2090 = vmatpush.msrb.mxu2 %v6924_v34  ;;  %v1612_v34 = vpop.f32.mrf.mxu1 }
 0x8f1   :  { %5216 = vmatmul.msk.f32.gmra.mxu2 %vm579_vm3, %v7123_v41  ;;  %v1613_v21 = vadd.f32 %v5611_v30, %v1612_v34 }
 0x8f4   :  { %5198 = vmatpush.xpose.msk.msrb.mxu3 %vm814_vm12, %v1644_v24 }
 0x94c   :  { %v1543_v25 = vpop.f32.mrf.mxu2 }
 0x94d   :  { %5189 = vmatmul.msk.f32.vlgmr.msra.gmra.mxu3 %vm814_vm12, %v1543_v25  ;;  %v1792_v25 = vpop.f32.mrf.mxu0 }
 0x94e   :  { %1849 = vmatpush.msra.mxu3 %v6827_v11  ;;  %v1615_v11 = vpop.f32.mrf.mxu1 }
 0x950   :  { %1850 = vmatpush.msra.mxu3 %v6832_v12  ;;  %v1616_v12 = vadd.f32 %v5611_v30, %v1615_v11 }
 0x952   :  { %1851 = vmatpush.msra.mxu3 %v6838_v13  ;;  %v5614_v13 = vld [vmem:[%s8479_s13] ss:$0 sm:$0xff] }
 0x954   :  { %v1546_v28 = vpop.f32.mrf.mxu2  ;;  %1852 = vmatpush.msra.mxu3 %v6844_v15 }
 0x955   :  { %5190 = vmatmul.msk.f32.gmra.mxu3 %vm814_vm12, %v1546_v28  ;;  %v5613_v28 = vld [vmem:[%s8544_s24 + $0x1] ss:$0 sm:$0xff]  ;;  %v1795_v34 = vpop.f32.mrf.mxu0 }
 0x956   :  { %v1793_v30 = vadd.f32 %v5613_v28, %v1792_v25  ;;  %v5620_v25 = vld [vmem:[%s8479_s13 + $0x2] ss:$0 sm:$0xff] }
 0x95c   :  { %v1674_v10 = vpop.f32.mrf.mxu2 }
 0x95d   :  { %5199 = vmatmul.msk.f32.vlgmr.msrb.gmra.mxu3 %vm814_vm12, %v1613_v21  ;;  %v1675_v55 = vadd.f32 %v5614_v13, %v1674_v10 }
 0x95e   :  { %1997 = vmatpush.msrb.mxu3 %v6859_v50  ;;  %v5615_v50 = vld [vmem:[%s8543_s0 + $0x1] ss:$0 sm:$0xff] }
 0x964   :  { %v1677_v15 = vpop.f32.mrf.mxu2 }
 0x965   :  { %v1678_v36 = vadd.f32 %v5614_v13, %v1677_v15  ;;  %5200 = vmatmul.msk.f32.gmra.mxu3 %vm814_vm12, %v1616_v12 }
 0x967   :  { %1757 = vmatpush.msrb.mxu1 %v1678_v36 }
 0x969   :  { %1758 = vmatpush.msrb.mxu1 %v1675_v55 }
 0x96c   :  { %v1823_v46 = vpop.f32.mrf.mxu2 }
 0x96d   :  { %5222 = vmatmul.msk.f32.vlgmr.msra.gmra.mxu3 %vm579_vm3, %v7114_v35  ;;  %v1824_v62 = vadd.f32 %v5615_v50, %v1823_v46 }
 0x974   :  { %v1826_v58 = vpop.f32.mrf.mxu2 }
 0x975   :  { %v1827_v23 = vadd.f32 %v5615_v50, %v1826_v58  ;;  %5223 = vmatmul.msk.f32.gmra.mxu3 %vm579_vm3, %v7123_v41 }
 0x977   :  { %5224 = vmatpush.xpose.msk.msra.mxu1 %vm814_vm12, %v1827_v23 }
 0x97b   :  { %5225 = vmatpush.xpose.msk.msra.mxu1 %vm814_vm12, %v1824_v62 }
 0x9d0   :  { %v7184_v43 = vpop.f32.mrf.mxu3 }
 0x9d8   :  { %v7186_v47 = vpop.f32.mrf.mxu3 }
 0x9e0   :  { %v1709_v52 = vpop.f32.mrf.mxu3 }
 0x9e1   :  { %v1710_v57 = vadd.f32 %v1709_v52, %v6771_v9 }
 0x9e3   :  { %v1715_v40 = vsel %vm850_vm14, %v1710_v57, -inf }
 0x9e4   :  { %1716 = vmax.xlane.f32.xlu1 %v1715_v40 }
 0x9e8   :  { %v1712_v44 = vpop.f32.mrf.mxu3 }
 0x9e9   :  { %v1713_v48 = vadd.f32 %v1712_v44, %v6776_v16 }
 0x9eb   :  { %v1718_v38 = vsel %vm850_vm14, %v1713_v48, -inf }
 0x9ec   :  { %1719 = vmax.xlane.f32.xlu2 %v1718_v38 }
 0x9f0   :  { %v1854_v60 = vpop.f32.mrf.mxu3 }
 0x9f1   :  { %v1855_v5 = vadd.f32 %v5617_v19, %v1854_v60 }
 0x9f8   :  { %v1857_v53 = vpop.f32.mrf.mxu3 }
 0x9f9   :  { %v1858_v6 = vadd.f32 %v5617_v19, %v1857_v53 }
 0x9fb   :  { %1937 = vmatpush.msrb.mxu0 %v1858_v6  ;;  %v8555_v6 = vld [vmem:[#allocation6_spill] sm:$0xff] }
 0x9fd   :  { %1938 = vmatpush.msrb.mxu0 %v1855_v5  ;;  %v8556_v5 = vld [vmem:[#allocation7_spill] sm:$0xff] }
 0x9ff   :  { %2056 = vmatpush.msra.mxu0 %v6870_v8 }
 0xa01   :  { %2057 = vmatpush.msra.mxu0 %v6876_v18 }
 0xa03   :  { %2058 = vmatpush.msra.mxu0 %v6882_v27 }
 0xa05   :  { %2059 = vmatpush.msra.mxu0 %v6888_v20 }
 0xa57   :  { %v1717_v51 = vpop.xlane.xlu1 %1716 }
 0xa58   :  { %v1721_v7 = vsub.f32 %v1710_v57, %v1717_v51 }
 0xa5a   :  { %v1723_v45 = vmul.f32 1.442695, %v1721_v7  ;;  %v5619_v7 = vld [vmem:[%s8543_s0 + $0x2] ss:$0 sm:$0xff] }
 0xa5c   :  { %5705 = vpow2.f32 %v1723_v45 }
 0xa5f   :  { %v1720_v14 = vpop.xlane.xlu2 %1719 }
 0xa60   :  { %v1722_v17 = vsub.f32 %v1713_v48, %v1720_v14 }
 0xa62   :  { %v5706_v49 = vpop.eup %5705  ;;  %v1725_v54 = vmul.f32 1.442695, %v1722_v17 }
 0xa63   :  { %v1727_v61 = vsel %vm850_vm14, %v5706_v49, 0.0 }
 0xa64   :  { %5707 = vpow2.f32 %v1725_v54  ;;  %1728 = vadd.xlane.f32.xlu0 %v1727_v61  ;;  %v8557_v54 = vld [vmem:[#allocation8_spill] sm:$0xff]  ;;  %v8558_v61 = vld [vmem:[#allocation9_spill] sm:$0xff] }
 0xa6a   :  { %v5708_v63 = vpop.eup %5707 }
 0xa6b   :  { %v1730_v8 = vsel %vm850_vm14, %v5708_v63, 0.0 }
 0xa6c   :  { %1731 = vadd.xlane.f32.xlu1 %v1730_v8  ;;  %v8559_v8 = vld [vmem:[#allocation10_spill] sm:$0xff] }
 0xad7   :  { %v1729_v18 = vpop.xlane.xlu0 %1728 }
 0xad8   :  { %5709 = vrcp.f32 %v1729_v18  ;;  %v8560_v18 = vld [vmem:[#allocation11_spill] sm:$0xff] }
 0xade   :  { %v5710_v27 = vpop.eup %5709 }
 0xadf   :  { %v1735_v20 = vmul.f32 %v5710_v27, %v5706_v49  ;;  %v1732_v0 = vpop.xlane.xlu1 %1731 }
 0xae0   :  { %5711 = vrcp.f32 %v1732_v0 }
 0xae1   :  { %5201 = vmatmul.msk.f32.vlgmr.msrb.gmra.mxu1 %vm850_vm14, %v1735_v20 }
 0xae2   :  { %2025 = vmatpush.msrb.mxu1 %v6790_v29  ;;  %v1796_v29 = vadd.f32 %v5613_v28, %v1795_v34 }
 0xae4   :  { %2026 = vmatpush.msrb.mxu1 %v6797_v32 }
 0xae6   :  { %v5712_v1 = vpop.eup %5711  ;;  %2027 = vmatpush.msrb.mxu1 %v6803_v33 }
 0xae7   :  { %v1736_v24 = vmul.f32 %v5712_v1, %v5708_v63 }
 0xae8   :  { %2028 = vmatpush.msrb.mxu1 %v6809_v26 }
 0xae9   :  { %5202 = vmatmul.msk.f32.gmra.mxu1 %vm850_vm14, %v1736_v24 }
 0xaf1   :  { %5226 = vmatmul.msk.f32.vlgmr.msra.gmra.mxu1 %vm814_vm12, %v1793_v30 }
 0xaf9   :  { %5227 = vmatmul.msk.f32.gmra.mxu1 %vm814_vm12, %v1796_v29 }
 0xb01   :  { %5239 = vmatmul.msk.f32.vlgmr.msrb.gmra.mxu1 %vm579_vm3, %v7114_v35 }
 0xb09   :  { %5240 = vmatmul.msk.f32.gmra.mxu1 %vm579_vm3, %v7123_v41 }
 0xb5e   :  { %v1760_v32 = vpop.f32.mrf.mxu1 }
 0xb5f   :  { %5232 = vmatmul.msk.f32.vlgmr.msrb.gmra.mxu3 %vm814_vm12, %v1760_v32 }
 0xb66   :  { %v1763_v33 = vpop.f32.mrf.mxu1 }
 0xb67   :  { %5233 = vmatmul.msk.f32.gmra.mxu3 %vm814_vm12, %v1763_v33 }
 0xb6e   :  { %v1889_v26 = vpop.f32.mrf.mxu1 }
 0xb6f   :  { %v1890_v21 = vadd.f32 %v1889_v26, %v6771_v9  ;;  %v8561_v26 = vld [vmem:[#allocation12_spill] sm:$0xff] }
 0xb71   :  { %v1895_v10 = vsel %vm850_vm14, %v1890_v21, -inf }
 0xb72   :  { %1896 = vmax.xlane.f32.xlu2 %v1895_v10 }
 0xb76   :  { %v1892_v11 = vpop.f32.mrf.mxu1 }
 0xb77   :  { %v1893_v12 = vadd.f32 %v1892_v11, %v6776_v16 }
 0xb79   :  { %v1898_v13 = vsel %vm850_vm14, %v1893_v12, -inf }
 0xb7a   :  { %1899 = vmax.xlane.f32.xlu0 %v1898_v13  ;;  %v8563_v13 = vld [vmem:[#allocation13_spill] sm:$0xff] }
 0xbe2   :  { %v7267_v1 = vpop.f32.mrf.mxu3 }
 0xbe5   :  { %v1897_v15 = vpop.xlane.xlu2 %1896 }
 0xbe6   :  { %v1901_v36 = vsub.f32 %v1890_v21, %v1897_v15  ;;  %v8562_v21 = vld [vmem:[#allocation14_spill] sm:$0xff]  ;;  %v8564_v15 = vld [vmem:[#allocation15_spill] sm:$0xff] }
 0xbe7   :  { %v1142_v10 = vadd.f32 %v8562_v21, %v8561_v26  ;;  %v2551_v21 = vld [vmem:[%s8484_s18] sm:$0xff] }
 0xbe8   :  { %v1903_v55 = vmul.f32 1.442695, %v1901_v36 }
 0xbea   :  { %5713 = vpow2.f32 %v1903_v55  ;;  %v7272_v30 = vpop.f32.mrf.mxu3 }
 0xbed   :  { %v1900_v46 = vpop.xlane.xlu0 %1899 }
 0xbee   :  { %v1902_v50 = vsub.f32 %v1893_v12, %v1900_v46  ;;  %v1362_v12 = vadd.f32 %v7092_v2, %v1142_v10  ;;  %v5849_v46 = vld [vmem:[#allocation2] sm:$0xff] }
 0xbf0   :  { %v5714_v58 = vpop.eup %5713  ;;  %v1905_v23 = vmul.f32 1.442695, %v1902_v50 }
 0xbf1   :  { %v1907_v62 = vsel %vm850_vm14, %v5714_v58, 0.0 }
 0xbf2   :  { %5715 = vpow2.f32 %v1905_v23  ;;  %1908 = vadd.xlane.f32.xlu1 %v1907_v62 }
 0xbf8   :  { %v5716_v52 = vpop.eup %5715 }
 0xbf9   :  { %v1910_v57 = vsel %vm850_vm14, %v5716_v52, 0.0 }
 0xbfa   :  { %1911 = vadd.xlane.f32.xlu2 %v1910_v57 }
 0xc65   :  { %v1909_v40 = vpop.xlane.xlu1 %1908 }
 0xc66   :  { %5717 = vrcp.f32 %v1909_v40 }
 0xc6c   :  { %v5718_v44 = vpop.eup %5717 }
 0xc6d   :  { %v1915_v48 = vmul.f32 %v5718_v44, %v5714_v58  ;;  %v1912_v38 = vpop.xlane.xlu2 %1911  ;;  %v7291_v58 = vld [vmem:[%s8481_s15] ss:$0 sm:$0xff] }
 0xc6e   :  { %5719 = vrcp.f32 %v1912_v38 }
 0xc6f   :  { %5228 = vmatmul.msk.f32.vlgmr.msrb.gmra.mxu0 %vm850_vm14, %v1915_v48 }
 0xc70   :  { %2206 = vmatpush.msrb.mxu0 %v7013_v4 }
 0xc74   :  { %v5720_v60 = vpop.eup %5719 }
 0xc75   :  { %v1916_v19 = vmul.f32 %v5720_v60, %v5716_v52 }
 0xc77   :  { %5229 = vmatmul.msk.f32.gmra.mxu0 %vm850_vm14, %v1916_v19 }
 0xc7f   :  { %5246 = vmatmul.msk.f32.vlgmr.msra.gmra.mxu0 %vm579_vm3, %v7114_v35 }
 0xc87   :  { %5247 = vmatmul.msk.f32.gmra.mxu0 %vm579_vm3, %v7123_v41 }
 0xcec   :  { %v1940_v53 = vpop.f32.mrf.mxu0 }
 0xced   :  { %5230 = vmatmul.msk.f32.vlgmr.msra.gmra.mxu2 %vm814_vm12, %v1940_v53 }
 0xcee   :  { %2236 = vmatpush.msra.mxu2 %v6930_v31  ;;  %v2030_v31 = vpop.f32.mrf.mxu1 }
 0xcf0   :  { %2237 = vmatpush.msra.mxu2 %v6936_v37  ;;  %v5618_v37 = vld [vmem:[%s8544_s24 + $0x2] ss:$0 sm:$0xff] }
 0xcf1   :  { %v2031_v49 = vadd.f32 %v5618_v37, %v2030_v31 }
 0xcf2   :  { %2238 = vmatpush.msra.mxu2 %v8555_v6 }
 0xcf4   :  { %v1943_v4 = vpop.f32.mrf.mxu0  ;;  %2239 = vmatpush.msra.mxu2 %v8556_v5 }
 0xcf5   :  { %5231 = vmatmul.msk.f32.gmra.mxu2 %vm814_vm12, %v1943_v4 }
 0xcf6   :  { %v2033_v63 = vpop.f32.mrf.mxu1 }
 0xcf7   :  { %v2034_v27 = vadd.f32 %v5618_v37, %v2033_v63 }
 0xcfc   :  { %v2061_v51 = vpop.f32.mrf.mxu0 }
 0xcfd   :  { %5253 = vmatmul.msk.f32.vlgmr.msrb.gmra.mxu2 %vm579_vm3, %v7114_v35  ;;  %v2062_v17 = vadd.f32 %v5619_v7, %v2061_v51 }
 0xd04   :  { %v2064_v45 = vpop.f32.mrf.mxu0 }
 0xd05   :  { %v2065_v14 = vadd.f32 %v5619_v7, %v2064_v45  ;;  %5254 = vmatmul.msk.f32.gmra.mxu2 %vm579_vm3, %v7123_v41 }
 0xd07   :  { %5255 = vmatpush.xpose.msk.msra.mxu3 %vm814_vm12, %v2065_v14 }
 0xd0b   :  { %5256 = vmatpush.xpose.msk.msra.mxu3 %vm814_vm12, %v2062_v17 }
 0xd0d   :  { %5268 = vmatmul.msk.f32.vlgmr.msra.gmra.mxu2 %vm579_vm3, %v7114_v35 }
 0xd0e   :  { %5257 = vmatmul.msk.f32.vlgmr.msra.gmra.mxu3 %vm814_vm12, %v2031_v49 }
 0xd0f   :  { %2267 = vmatpush.msrb.mxu3 %v8557_v54 }
 0xd11   :  { %2268 = vmatpush.msrb.mxu3 %v8558_v61 }
 0xd13   :  { %2269 = vmatpush.msrb.mxu3 %v8559_v8 }
 0xd15   :  { %2270 = vmatpush.msrb.mxu3 %v8560_v18  ;;  %5269 = vmatmul.msk.f32.gmra.mxu2 %vm579_vm3, %v7123_v41 }
 0xd16   :  { %5258 = vmatmul.msk.f32.gmra.mxu3 %vm814_vm12, %v2034_v27 }
 0xd1e   :  { %5275 = vmatmul.msk.f32.vlgmr.msrb.gmra.mxu3 %vm579_vm3, %v7114_v35 }
 0xd26   :  { %5276 = vmatmul.msk.f32.gmra.mxu3 %vm579_vm3, %v7123_v41 }
 0xd70   :  { %v7263_v20 = vpop.f32.mrf.mxu2 }
 0xd78   :  { %v7265_v0 = vpop.f32.mrf.mxu2 }
 0xd80   :  { %v2092_v24 = vpop.f32.mrf.mxu2 }
 0xd81   :  { %v2093_v29 = vadd.f32 %v5620_v25, %v2092_v24 }
 0xd88   :  { %v2095_v28 = vpop.f32.mrf.mxu2 }
 0xd89   :  { %v2096_v34 = vadd.f32 %v5620_v25, %v2095_v28  ;;  %v2554_v25 = vld [vmem:[%s8484_s18 + $0x18] sm:$0xff] }
 0xd8b   :  { %2175 = vmatpush.msra.mxu1 %v2096_v34 }
 0xd8d   :  { %2176 = vmatpush.msra.mxu1 %v2093_v29  ;;  %v2553_v29 = vld [vmem:[%s8484_s18 + $0x10] sm:$0xff] }
 0xd8f   :  { %2298 = vmatpush.msrb.mxu1 %v7039_v39  ;;  %v1145_v39 = vadd.f32 %v8564_v15, %v8563_v13 }
 0xd91   :  { %2299 = vmatpush.msrb.mxu1 %v7044_v59  ;;  %v2127_v32 = vpop.f32.mrf.mxu3  ;;  %v1579_v59 = vadd.f32 %v7184_v43, %v1362_v12  ;;  %v1363_v55 = vadd.f32 %v7094_v3, %v1145_v39  ;;  %v5850_v43 = vld [vmem:[#allocation2 + $0x8] sm:$0xff] }
 0xd92   :  { %v2128_v33 = vadd.f32 %v2127_v32, %v6771_v9 }
 0xd93   :  { %2300 = vmatpush.msrb.mxu1 %v7050_v56  ;;  %v2427_v50 = vadd.f32 %v5849_v46, %v1579_v59 }
 0xd94   :  { %v2133_v11 = vsel %vm850_vm14, %v2128_v33, -inf }
 0xd95   :  { %2301 = vmatpush.msrb.mxu1 %v7057_v22  ;;  %2134 = vmax.xlane.f32.xlu0 %v2133_v11  ;;  %v1580_v22 = vadd.f32 %v7186_v47, %v1363_v55  ;;  %v7296_v23 = vadd.f32 %v7291_v58, %v2427_v50  ;;  %v5622_v47 = vld [vmem:[%s8543_s0 + $0x3] ss:$0 sm:$0xff] }
 0xd97   :  { %v2428_v62 = vadd.f32 %v5850_v43, %v1580_v22  ;;  %v2441_v57 = vsel %vm579_vm3, %v7296_v23, 0.0  ;;  %v2457_v14 = vmul.f32 %v7296_v23, %v7296_v23 }
 0xd99   :  { %v2130_v36 = vpop.f32.mrf.mxu3  ;;  %v7299_v52 = vadd.f32 %v7291_v58, %v2428_v62  ;;  %v2461_v17 = vsel %vm579_vm3, %v2457_v14, 0.0 }
 0xd9a   :  { %v2131_v56 = vadd.f32 %v2130_v36, %v6776_v16 }
 0xd9b   :  { %v2458_v40 = vmul.f32 %v7299_v52, %v7299_v52  ;;  %v2444_v49 = vsel %vm579_vm3, %v7299_v52, 0.0 }
 0xd9c   :  { %v2136_v2 = vsel %vm850_vm14, %v2131_v56, -inf }
 0xd9d   :  { %2137 = vmax.xlane.f32.xlu1 %v2136_v2  ;;  %v2464_v38 = vsel %vm579_vm3, %v2458_v40, 0.0 }
 0xda1   :  { %v2272_v3 = vpop.f32.mrf.mxu3 }
 0xda2   :  { %v2273_v60 = vadd.f32 %v5622_v47, %v2272_v3 }
 0xda5   :  { %2442 = vadd.xlane.f32.xlu1 %v2441_v57  ;;  %v7342_v57 = vld [vmem:[%s8482_s16] ss:$0 sm:$0xff] }
 0xda9   :  { %v2275_v44 = vpop.f32.mrf.mxu3 }
 0xdaa   :  { %v2276_v48 = vadd.f32 %v5622_v47, %v2275_v44 }
 0xdac   :  { %5284 = vmatpush.xpose.msk.msra.mxu0 %vm814_vm12, %v2276_v48 }
 0xdad   :  { %2465 = vadd.xlane.f32.xlu1 %v2464_v38 }
 0xdb0   :  { %5285 = vmatpush.xpose.msk.msra.mxu0 %vm814_vm12, %v2273_v60 }
 0xe08   :  { %v2135_v19 = vpop.xlane.xlu0 %2134 }
 0xe09   :  { %v2139_v53 = vsub.f32 %v2128_v33, %v2135_v19  ;;  %v2552_v33 = vld [vmem:[%s8484_s18 + $0x8] sm:$0xff] }
 0xe0b   :  { %v2141_v6 = vmul.f32 1.442695, %v2139_v53 }
 0xe0d   :  { %5721 = vpow2.f32 %v2141_v6 }
 0xe10   :  { %v2138_v4 = vpop.xlane.xlu1 %2137 }
 0xe11   :  { %v2140_v5 = vsub.f32 %v2131_v56, %v2138_v4 }
 0xe13   :  { %v5722_v51 = vpop.eup %5721  ;;  %v2143_v7 = vmul.f32 1.442695, %v2140_v5 }
 0xe14   :  { %v2145_v45 = vsel %vm850_vm14, %v5722_v51, 0.0 }
 0xe15   :  { %5723 = vpow2.f32 %v2143_v7  ;;  %2146 = vadd.xlane.f32.xlu2 %v2145_v45  ;;  %v2651_v45 = vld [vmem:[%s8486_s20 + $0x78] sm:$0xff] }
 0xe18   :  { %v2443_v61 = vpop.xlane.xlu1 %2442 }
 0xe19   :  { %v2453_v63 = vmul.f32 %v2443_v61, %v6598_v42  ;;  %v2646_v61 = vld [vmem:[%s8486_s20 + $0x50] sm:$0xff] }
 0xe1b   :  { %v5724_v31 = vpop.eup %5723  ;;  %v2477_v28 = vmul.f32 %v2453_v63, %v2453_v63  ;;  %v2485_v3 = vsub.f32 %v7296_v23, %v2453_v63  ;;  %v2241_v63 = vpop.f32.mrf.mxu2 }
 0xe1c   :  { %v2148_v37 = vsel %vm850_vm14, %v5724_v31, 0.0 }
 0xe1d   :  { %2149 = vadd.xlane.f32.xlu0 %v2148_v37  ;;  %2462 = vadd.xlane.f32.xlu2 %v2461_v17  ;;  %v2649_v37 = vld [vmem:[%s8486_s20 + $0x68] sm:$0xff]  ;;  %v2648_v17 = vld [vmem:[%s8486_s20 + $0x60] sm:$0xff] }
 0xe20   :  { %v2466_v11 = vpop.xlane.xlu1 %2465 }
 0xe21   :  { %v2474_v39 = vmul.f32 %v2466_v11, %v6598_v42 }
 0xe25   :  { %2445 = vadd.xlane.f32.xlu0 %v2444_v49  ;;  %v2647_v49 = vld [vmem:[%s8486_s20 + $0x58] sm:$0xff] }
 0xe88   :  { %v2147_v54 = vpop.xlane.xlu2 %2146 }
 0xe89   :  { %5725 = vrcp.f32 %v2147_v54 }
 0xe8f   :  { %v5726_v8 = vpop.eup %5725 }
 0xe90   :  { %v2153_v18 = vmul.f32 %v5726_v8, %v5722_v51  ;;  %v2463_v27 = vpop.xlane.xlu2 %2462  ;;  %v2150_v24 = vpop.xlane.xlu0 %2149  ;;  %v5621_v8 = vld [vmem:[%s8544_s24 + $0x3] ss:$0 sm:$0xff] }
 0xe91   :  { %v2473_v34 = vmul.f32 %v2463_v27, %v6598_v42  ;;  %5727 = vrcp.f32 %v2150_v24  ;;  %v2644_v27 = vld [vmem:[%s8486_s20 + $0x40] sm:$0xff]  ;;  %v2242_v24 = vadd.f32 %v5621_v8, %v2241_v63 }
 0xe92   :  { %5259 = vmatmul.msk.f32.vlgmr.msra.gmra.mxu1 %vm850_vm14, %v2153_v18  ;;  %v2645_v18 = vld [vmem:[%s8486_s20 + $0x48] sm:$0xff] }
 0xe93   :  { %v2481_v32 = vsub.f32 %v2473_v34, %v2477_v28  ;;  %2583 = vmatpush.msra.mxu1 %v2554_v25  ;;  %v2643_v25 = vld [vmem:[%s8486_s20 + $0x38] sm:$0xff]  ;;  %v2642_v34 = vld [vmem:[%s8486_s20 + $0x30] sm:$0xff] }
 0xe95   :  { %v2489_v26 = vadd.f32 1e-05, %v2481_v32  ;;  %2584 = vmatpush.msra.mxu1 %v2553_v29  ;;  %v2641_v29 = vld [vmem:[%s8486_s20 + $0x28] sm:$0xff]  ;;  %v2244_v32 = vpop.f32.mrf.mxu2 }
 0xe97   :  { %v5728_v10 = vpop.eup %5727  ;;  %5729 = vrsqrt.f32 %v2489_v26  ;;  %2585 = vmatpush.msra.mxu1 %v2552_v33  ;;  %vm2499_vm8 = vweird.f32 %v2489_v26  ;;  %v2640_v33 = vld [vmem:[%s8486_s20 + $0x20] sm:$0xff] }
 0xe98   :  { %v2446_v12 = vpop.xlane.xlu0 %2445  ;;  %v2154_v13 = vmul.f32 %v5728_v10, %v5724_v31  ;;  %v2650_v31 = vld [vmem:[%s8486_s20 + $0x70] sm:$0xff]  ;;  %v2639_v10 = vld [vmem:[%s8486_s20 + $0x18] sm:$0xff] }
 0xe99   :  { %v2454_v15 = vmul.f32 %v2446_v12, %v6598_v42  ;;  %2586 = vmatpush.msra.mxu1 %v2551_v21  ;;  %v5625_v21 = vld [vmem:[%s8479_s13 + $0x3] ss:$0 sm:$0xff] }
 0xe9a   :  { %5260 = vmatmul.msk.f32.gmra.mxu1 %vm850_vm14, %v2154_v13  ;;  %v2638_v13 = vld [vmem:[%s8486_s20 + $0x10] sm:$0xff] }
 0xe9b   :  { %v2478_v59 = vmul.f32 %v2454_v15, %v2454_v15  ;;  %v2486_v4 = vsub.f32 %v7299_v52, %v2454_v15 }
 0xe9d   :  { %v5730_v36 = vpop.eup %5729  ;;  %v2482_v55 = vsub.f32 %v2474_v39, %v2478_v59  ;;  %v2637_v39 = vld [vmem:[%s8486_s20 + $0x8] sm:$0xff]  ;;  %v7416_v59 = vld [vmem:[%s8485_s19] ss:$0 sm:$0xff] }
 0xe9e   :  { %v2494_v56 = vmul.f32 %v5730_v36, %v2489_v26  ;;  %vm2500_vm7 = vweird.f32 %v5730_v36  ;;  %v2245_v26 = vadd.f32 %v5621_v8, %v2244_v32 }
 0xe9f   :  { %v2490_v46 = vadd.f32 1e-05, %v2482_v55  ;;  %vm2501_vm9 = vmor %vm2499_vm8, %vm2500_vm7 }
 0xea0   :  { %v2495_v50 = vmul.f32 %v5730_v36, %v2494_v56 }
 0xea1   :  { %5731 = vrsqrt.f32 %v2490_v46  ;;  %vm2509_vm11 = vweird.f32 %v2490_v46 }
 0xea2   :  { %v2496_v22 = vmul.f32 0.5, %v2495_v50  ;;  %5282 = vmatmul.msk.f32.vlgmr.msrb.gmra.mxu1 %vm579_vm3, %v7114_v35  ;;  %v7349_v35 = vld [vmem:[%s8483_s17] ss:$0 sm:$0xff] }
 0xea4   :  { %v2497_v2 = vsub.f32 1.5, %v2496_v22 }
 0xea6   :  { %v2498_v43 = vmul.f32 %v5730_v36, %v2497_v2 }
 0xea7   :  { %v5732_v62 = vpop.eup %5731 }
 0xea8   :  { %v2502_v47 = vsel %vm2501_vm9, %v5730_v36, %v2498_v43  ;;  %v2504_v40 = vmul.f32 %v5732_v62, %v2490_v46  ;;  %vm2510_vm10 = vweird.f32 %v5732_v62  ;;  %v2636_v36 = vld [vmem:[%s8486_s20] sm:$0xff] }
 0xea9   :  { %v2533_v44 = vmul.f32 %v2502_v47, %v2485_v3  ;;  %vm2511_vm13 = vmor %vm2509_vm11, %vm2510_vm10 }
 0xeaa   :  { %v2505_v48 = vmul.f32 %v5732_v62, %v2504_v40  ;;  %5283 = vmatmul.msk.f32.gmra.mxu1 %vm579_vm3, %v7123_v41 }
 0xeab   :  { %v2540_v38 = vmul.f32 %v7342_v57, %v2533_v44 }
 0xeac   :  { %v2506_v60 = vmul.f32 0.5, %v2505_v48 }
 0xead   :  { %v2547_v53 = vadd.f32 %v7349_v35, %v2540_v38 }
 0xeae   :  { %v2507_v19 = vsub.f32 1.5, %v2506_v60 }
 0xeb0   :  { %v2508_v6 = vmul.f32 %v5732_v62, %v2507_v19 }
 0xeb2   :  { %v2512_v5 = vsel %vm2511_vm13, %v5732_v62, %v2508_v6  ;;  %5292 = vmatmul.msk.f32.vlgmr.msra.gmra.mxu1 %vm579_vm3, %v2547_v53 }
 0xeb3   :  { %v2534_v41 = vmul.f32 %v2512_v5, %v2486_v4 }
 0xeb5   :  { %v2541_v51 = vmul.f32 %v7342_v57, %v2534_v41 }
 0xeb7   :  { %v2548_v7 = vadd.f32 %v7349_v35, %v2541_v51 }
 0xeba   :  { %5293 = vmatmul.msk.f32.gmra.mxu1 %vm579_vm3, %v2548_v7 }
 0xf0f   :  { %v2178_v14 = vpop.f32.mrf.mxu1 }
 0xf10   :  { %5261 = vmatmul.msk.f32.vlgmr.msrb.gmra.mxu0 %vm814_vm12, %v2178_v14 }
 0xf11   :  { %2656 = vmatpush.msrb.mxu0 %v2651_v45 }
 0xf13   :  { %2657 = vmatpush.msrb.mxu0 %v2650_v31 }
 0xf15   :  { %2658 = vmatpush.msrb.mxu0 %v2649_v37 }
 0xf17   :  { %v2181_v54 = vpop.f32.mrf.mxu1  ;;  %2659 = vmatpush.msrb.mxu0 %v2648_v17 }
 0xf18   :  { %5262 = vmatmul.msk.f32.gmra.mxu0 %vm814_vm12, %v2181_v54 }
 0xf19   :  { %2660 = vmatpush.msrb.mxu0 %v2647_v49 }
 0xf1b   :  { %2661 = vmatpush.msrb.mxu0 %v2646_v61  ;;  %v7434_v61 = vld [vmem:[%s8487_s21] ss:$0 sm:$0xff] }
 0xf1d   :  { %2662 = vmatpush.msrb.mxu0 %v2645_v18 }
 0xf1f   :  { %v2303_v28 = vpop.f32.mrf.mxu1  ;;  %2663 = vmatpush.msrb.mxu0 %v2644_v27 }
 0xf20   :  { %5286 = vmatmul.msk.f32.vlgmr.msra.gmra.mxu0 %vm814_vm12, %v2242_v24  ;;  %v2304_v15 = vadd.f32 %v5625_v21, %v2303_v28 }
 0xf21   :  { %2664 = vmatpush.msrb.mxu0 %v2643_v25 }
 0xf23   :  { %2665 = vmatpush.msrb.mxu0 %v2642_v34 }
 0xf25   :  { %2666 = vmatpush.msrb.mxu0 %v2641_v29 }
 0xf27   :  { %v2306_v11 = vpop.f32.mrf.mxu1  ;;  %2667 = vmatpush.msrb.mxu0 %v2640_v33 }
 0xf28   :  { %v2307_v12 = vadd.f32 %v5625_v21, %v2306_v11  ;;  %5287 = vmatmul.msk.f32.gmra.mxu0 %vm814_vm12, %v2245_v26 }
 0xf29   :  { %2668 = vmatpush.msrb.mxu0 %v2639_v10 }
 0xf2a   :  { %2386 = vmatpush.msrb.mxu2 %v2307_v12 }
 0xf2b   :  { %2669 = vmatpush.msrb.mxu0 %v2638_v13 }
 0xf2c   :  { %2387 = vmatpush.msrb.mxu2 %v2304_v15 }
 0xf2d   :  { %2670 = vmatpush.msrb.mxu0 %v2637_v39 }
 0xf2f   :  { %v2588_v55 = vpop.f32.mrf.mxu1  ;;  %2671 = vmatpush.msrb.mxu0 %v2636_v36 }
 0xf30   :  { %v2589_v56 = vadd.f32 %v7416_v59, %v2588_v55 }
 0xf32   :  { %v2600_v46 = vmul.f32 %v2589_v56, %v2589_v56 }
 0xf34   :  { %v2604_v50 = vmul.f32 %v2600_v46, %v2589_v56 }
 0xf36   :  { %v2608_v22 = vmul.f32 0.044715, %v2604_v50  ;;  %v7465_v50 = vld [vmem:[%s8540_s11 + $0x90] sm:$0xff] }
 0xf37   :  { %v2591_v2 = vpop.f32.mrf.mxu1 }
 0xf38   :  { %v2612_v43 = vadd.f32 %v2608_v22, %v2589_v56  ;;  %v2592_v62 = vadd.f32 %v7416_v59, %v2591_v2  ;;  %v7472_v2 = vld [vmem:[%s8540_s11 + $0x88] sm:$0xff] }
 0xf3a   :  { %v2616_v3 = vmul.f32 0.7978846, %v2612_v43  ;;  %v2601_v47 = vmul.f32 %v2592_v62, %v2592_v62 }
 0xf3c   :  { %5733 = vtanh.f32 %v2616_v3  ;;  %v2605_v40 = vmul.f32 %v2601_v47, %v2592_v62 }
 0xf3e   :  { %v2609_v44 = vmul.f32 0.044715, %v2605_v40 }
 0xf40   :  { %v2613_v48 = vadd.f32 %v2609_v44, %v2592_v62 }
 0xf42   :  { %v5734_v38 = vpop.eup %5733  ;;  %v2617_v60 = vmul.f32 0.7978846, %v2613_v48 }
 0xf43   :  { %v2624_v19 = vadd.f32 1.0, %v5734_v38 }
 0xf44   :  { %5735 = vtanh.f32 %v2617_v60 }
 0xf45   :  { %v2628_v53 = vmul.f32 0.5, %v2624_v19 }
 0xf47   :  { %v2632_v6 = vmul.f32 %v2628_v53, %v2589_v56  ;;  %v7459_v56 = vld [vmem:[%s8540_s11 + $0x98] sm:$0xff] }
 0xf48   :  { %2831 = vmatpush.msra.mxu2 %v7459_v56 }
 0xf49   :  { %2672 = vmatmul.f32.vlgmr.msrb.gmra.mxu0 %v2632_v6 }
 0xf4a   :  { %v5736_v4 = vpop.eup %5735  ;;  %2832 = vmatpush.msra.mxu2 %v7465_v50 }
 0xf4b   :  { %v2625_v5 = vadd.f32 1.0, %v5736_v4 }
 0xf4c   :  { %2833 = vmatpush.msra.mxu2 %v7472_v2 }
 0xf4d   :  { %v2629_v41 = vmul.f32 0.5, %v2625_v5 }
 0xf4f   :  { %v2633_v51 = vmul.f32 %v2629_v41, %v2592_v62  ;;  %v7478_v62 = vld [vmem:[%s8540_s11 + $0x80] sm:$0xff]  ;;  %v5315_v41 = vld [vmem:[%s8478_s12 + $0x98] sm:$0xff] }
 0xf50   :  { %2834 = vmatpush.msra.mxu2 %v7478_v62 }
 0xf51   :  { %2675 = vmatmul.f32.gmra.mxu0 %v2633_v51  ;;  %v5314_v51 = vld [vmem:[%s8478_s12 + $0x90] sm:$0xff] }
 0xf8d   :  { %v7423_v7 = vpop.f32.mrf.mxu0 }
 0xf95   :  { %v7425_v45 = vpop.f32.mrf.mxu0 }
 0xf9d   :  { %v2338_v14 = vpop.f32.mrf.mxu0 }
 0xf9e   :  { %v2339_v31 = vadd.f32 %v2338_v14, %v6771_v9 }
 0xfa0   :  { %v2344_v37 = vsel %vm850_vm14, %v2339_v31, -inf }
 0xfa1   :  { %2345 = vmax.xlane.f32.xlu2 %v2344_v37  ;;  %v5313_v37 = vld [vmem:[%s8478_s12 + $0x88] sm:$0xff] }
 0xfa5   :  { %v2341_v17 = vpop.f32.mrf.mxu0 }
 0xfa6   :  { %v2342_v49 = vadd.f32 %v2341_v17, %v6776_v16 }
 0xfa8   :  { %v2347_v54 = vsel %vm850_vm14, %v2342_v49, -inf }
 0xfa9   :  { %2348 = vmax.xlane.f32.xlu0 %v2347_v54 }
 0xfc6   :  { %v2673_v63 = vpop.f32.mrf.mxu0 }
 0xfc7   :  { %v2674_v8 = vadd.f32 %v7434_v61, %v2673_v63  ;;  %v5312_v63 = vld [vmem:[%s8478_s12 + $0x80] sm:$0xff] }
 0xfc9   :  { %v7438_v18 = vadd.f32 %v2674_v8, %v7296_v23 }
 0xfcb   :  { %8565 = vst [vmem:[#allocation6_spill] sm:$0xff] %v7438_v18  ;;  %v2693_v27 = vsel %vm579_vm3, %v7438_v18, 0.0 }
 0xfcc   :  { %2694 = vadd.xlane.f32.xlu0 %v2693_v27 }
 0xfce   :  { %v2676_v24 = vpop.f32.mrf.mxu0 }
 0xfcf   :  { %v2677_v25 = vadd.f32 %v7434_v61, %v2676_v24 }
 0xfd1   :  { %v7444_v28 = vadd.f32 %v2677_v25, %v7299_v52  ;;  %v2709_v52 = vmul.f32 %v7438_v18, %v7438_v18 }
 0xfd3   :  { %8566 = vst [vmem:[#allocation7_spill] sm:$0xff] %v7444_v28  ;;  %v2710_v34 = vmul.f32 %v7444_v28, %v7444_v28  ;;  %v2713_v39 = vsel %vm579_vm3, %v2709_v52, 0.0  ;;  %v2696_v36 = vsel %vm579_vm3, %v7444_v28, 0.0 }
 0xfd5   :  { %v2716_v29 = vsel %vm579_vm3, %v2710_v34, 0.0 }
 0xfd6   :  { %2717 = vadd.xlane.f32.xlu0 %v2716_v29 }
0x1014   :  { %v2346_v32 = vpop.xlane.xlu2 %2345 }
0x1015   :  { %v2350_v33 = vsub.f32 %v2339_v31, %v2346_v32 }
0x1017   :  { %v2352_v23 = vmul.f32 1.442695, %v2350_v33  ;;  %v5628_v33 = vld [vmem:[%s8541_s29 + $0x1] ss:$0 sm:$0xff] }
0x1019   :  { %5737 = vpow2.f32 %v2352_v23 }
0x101c   :  { %v2349_v26 = vpop.xlane.xlu0 %2348 }
0x101d   :  { %v2351_v21 = vsub.f32 %v2342_v49, %v2349_v26 }
0x101f   :  { %v5738_v10 = vpop.eup %5737  ;;  %v2354_v11 = vmul.f32 1.442695, %v2351_v21  ;;  %v7505_v21 = vld [vmem:[%s8542_s4 + $0x1] ss:$0 sm:$0xff] }
0x1020   :  { %v2356_v12 = vsel %vm850_vm14, %v5738_v10, 0.0 }
0x1021   :  { %5739 = vpow2.f32 %v2354_v11  ;;  %2357 = vadd.xlane.f32.xlu1 %v2356_v12 }
0x1027   :  { %v5740_v13 = vpop.eup %5739 }
0x1028   :  { %v2359_v15 = vsel %vm850_vm14, %v5740_v13, 0.0 }
0x1029   :  { %2360 = vadd.xlane.f32.xlu2 %v2359_v15  ;;  %2714 = vadd.xlane.f32.xlu1 %v2713_v39  ;;  %v7513_v15 = vld [vmem:[%s8540_s11 + $0xb8] sm:$0xff] }
0x1031   :  { %2697 = vadd.xlane.f32.xlu2 %v2696_v36  ;;  %v7520_v36 = vld [vmem:[%s8540_s11 + $0xb0] sm:$0xff] }
0x103f   :  { %v2695_v46 = vpop.xlane.xlu0 %2694 }
0x1040   :  { %v2705_v22 = vmul.f32 %v2695_v46, %v6598_v42 }
0x1042   :  { %v2729_v44 = vmul.f32 %v2705_v22, %v2705_v22  ;;  %v2737_v32 = vsub.f32 %v7438_v18, %v2705_v22  ;;  %v7527_v22 = vld [vmem:[%s8540_s11 + $0xa8] sm:$0xff] }
0x1049   :  { %v2718_v53 = vpop.xlane.xlu0 %2717 }
0x104a   :  { %v2726_v14 = vmul.f32 %v2718_v53, %v6598_v42  ;;  %v7573_v53 = vld [vmem:[%s8539_s8 + $0x80] sm:$0xff] }
0x1094   :  { %v2358_v55 = vpop.xlane.xlu1 %2357 }
0x1095   :  { %5741 = vrcp.f32 %v2358_v55 }
0x109b   :  { %v5742_v43 = vpop.eup %5741 }
0x109c   :  { %v2364_v3 = vmul.f32 %v5742_v43, %v5738_v10  ;;  %v2715_v47 = vpop.xlane.xlu1 %2714  ;;  %v2361_v40 = vpop.xlane.xlu2 %2360 }
0x109d   :  { %v2725_v48 = vmul.f32 %v2715_v47, %v6598_v42  ;;  %5743 = vrcp.f32 %v2361_v40  ;;  %v7533_v47 = vld [vmem:[%s8540_s11 + $0xa0] sm:$0xff] }
0x109e   :  { %5288 = vmatmul.msk.f32.vlgmr.msrb.gmra.mxu2 %vm850_vm14, %v2364_v3 }
0x109f   :  { %v2733_v38 = vsub.f32 %v2725_v48, %v2729_v44  ;;  %2897 = vmatpush.msrb.mxu2 %v5315_v41  ;;  %v2395_v48 = vld [vmem:[%s8480_s14 + $0x18] sm:$0xff] }
0x10a0   :  { %2417 = vmatpush.msra.mxu3 %v2395_v48  ;;  %v7637_v48 = vld [vmem:[%s8539_s8 + $0xa0] sm:$0xff] }
0x10a1   :  { %v2741_v60 = vadd.f32 1e-05, %v2733_v38  ;;  %2898 = vmatpush.msrb.mxu2 %v5314_v51  ;;  %v7556_v38 = vld [vmem:[%s8539_s8 + $0x98] sm:$0xff] }
0x10a2   :  { %2864 = vmatpush.msrb.mxu3 %v7556_v38 }
0x10a3   :  { %v5744_v19 = vpop.eup %5743  ;;  %5745 = vrsqrt.f32 %v2741_v60  ;;  %2899 = vmatpush.msrb.mxu2 %v5313_v37  ;;  %vm2751_vm0 = vweird.f32 %v2741_v60 }
0x10a4   :  { %v2698_v6 = vpop.xlane.xlu2 %2697  ;;  %v2365_v4 = vmul.f32 %v5744_v19, %v5740_v13  ;;  %v7567_v19 = vld [vmem:[%s8539_s8 + $0x88] sm:$0xff] }
0x10a5   :  { %v2706_v5 = vmul.f32 %v2698_v6, %v6598_v42  ;;  %2900 = vmatpush.msrb.mxu2 %v5312_v63 }
0x10a6   :  { %5289 = vmatmul.msk.f32.gmra.mxu2 %vm850_vm14, %v2365_v4 }
0x10a7   :  { %v2730_v31 = vmul.f32 %v2706_v5, %v2706_v5  ;;  %v2738_v46 = vsub.f32 %v7444_v28, %v2706_v5 }
0x10a9   :  { %v5746_v17 = vpop.eup %5745  ;;  %v2734_v49 = vsub.f32 %v2726_v14, %v2730_v31  ;;  %v5631_v14 = vld [vmem:[%s8479_s13 + $0x4] ss:$0 sm:$0xff] }
0x10aa   :  { %v2746_v54 = vmul.f32 %v5746_v17, %v2741_v60  ;;  %vm2752_vm15 = vweird.f32 %v5746_v17  ;;  %v7561_v60 = vld [vmem:[%s8539_s8 + $0x90] sm:$0xff] }
0x10ab   :  { %v2742_v8 = vadd.f32 1e-05, %v2734_v49  ;;  %vm2753_vm1 = vmor %vm2751_vm0, %vm2752_vm15  ;;  %2865 = vmatpush.msrb.mxu3 %v7561_v60  ;;  %v2000_v49 = vadd.f32 %v7267_v1, %v7263_v20 }
0x10ac   :  { %v2747_v27 = vmul.f32 %v5746_v17, %v2746_v54 }
0x10ad   :  { %5747 = vrsqrt.f32 %v2742_v8  ;;  %vm2761_vm4 = vweird.f32 %v2742_v8  ;;  %2866 = vmatpush.msrb.mxu3 %v7567_v19  ;;  %v2214_v54 = vadd.f32 %v7423_v7, %v2000_v49 }
0x10ae   :  { %v2748_v24 = vmul.f32 0.5, %v2747_v27  ;;  %v5851_v27 = vld [vmem:[#allocation2 + $0x10] sm:$0xff] }
0x10af   :  { %2867 = vmatpush.msrb.mxu3 %v7573_v53 }
0x10b0   :  { %v2749_v25 = vsub.f32 1.5, %v2748_v24 }
0x10b2   :  { %v2750_v34 = vmul.f32 %v5746_v17, %v2749_v25  ;;  %v2003_v25 = vadd.f32 %v7272_v30, %v7265_v0 }
0x10b3   :  { %v5748_v29 = vpop.eup %5747 }
0x10b4   :  { %v2754_v23 = vsel %vm2753_vm1, %v5746_v17, %v2750_v34  ;;  %v2756_v26 = vmul.f32 %v5748_v29, %v2742_v8  ;;  %vm2762_vm2 = vweird.f32 %v5748_v29 }
0x10b5   :  { %v2785_v10 = vmul.f32 %v2754_v23, %v2737_v32  ;;  %vm2763_vm5 = vmor %vm2761_vm4, %vm2762_vm2  ;;  %v5852_v23 = vld [vmem:[#allocation2 + $0x18] sm:$0xff] }
0x10b6   :  { %v2757_v11 = vmul.f32 %v5748_v29, %v2756_v26 }
0x10b7   :  { %v2792_v12 = vmul.f32 %v5628_v33, %v2785_v10 }
0x10b8   :  { %v2758_v52 = vmul.f32 0.5, %v2757_v11 }
0x10b9   :  { %v7508_v13 = vadd.f32 %v7505_v21, %v2792_v12  ;;  %v5633_v12 = vld [vmem:[%s8543_s0 + $0x4] ss:$0 sm:$0xff] }
0x10ba   :  { %v2759_v39 = vsub.f32 1.5, %v2758_v52 }
0x10bb   :  { %5303 = vmatmul.msk.f32.vlgmr.msra.gmra.mxu2 %vm579_vm3, %v7508_v13 }
0x10bc   :  { %v2760_v55 = vmul.f32 %v5748_v29, %v2759_v39  ;;  %3018 = vmatpush.msra.mxu2 %v7513_v15 }
0x10be   :  { %v2764_v43 = vsel %vm2763_vm5, %v5748_v29, %v2760_v55  ;;  %3019 = vmatpush.msra.mxu2 %v7520_v36  ;;  %v2215_v29 = vadd.f32 %v7425_v45, %v2003_v25 }
0x10bf   :  { %v2786_v3 = vmul.f32 %v2764_v43, %v2738_v46  ;;  %v7618_v46 = vld [vmem:[%s8539_s8 + $0xb8] sm:$0xff] }
0x10c0   :  { %3020 = vmatpush.msra.mxu2 %v7527_v22 }
0x10c1   :  { %v2793_v40 = vmul.f32 %v5628_v33, %v2786_v3  ;;  %v7625_v3 = vld [vmem:[%s8539_s8 + $0xb0] sm:$0xff] }
0x10c2   :  { %3021 = vmatpush.msra.mxu2 %v7533_v47 }
0x10c3   :  { %v7538_v44 = vadd.f32 %v7505_v21, %v2793_v40  ;;  %v7631_v40 = vld [vmem:[%s8539_s8 + $0xa8] sm:$0xff] }
0x10c5   :  { %5304 = vmatmul.msk.f32.gmra.mxu2 %vm579_vm3, %v7538_v44 }
0x10cd   :  { %5317 = vmatmul.msk.f32.vlgmr.msrb.gmra.mxu2 %vm579_vm3, %v7508_v13 }
0x10d5   :  { %5318 = vmatmul.msk.f32.gmra.mxu2 %vm579_vm3, %v7538_v44 }
0x10dd   :  { %5331 = vmatmul.msk.f32.vlgmr.msra.gmra.mxu2 %vm579_vm3, %v7508_v13 }
0x10e5   :  { %5332 = vmatmul.msk.f32.gmra.mxu2 %vm579_vm3, %v7538_v44 }
0x1121   :  { %v2389_v6 = vpop.f32.mrf.mxu2 }
0x1122   :  { %5290 = vmatmul.msk.f32.vlgmr.msra.gmra.mxu3 %vm814_vm12, %v2389_v6 }
0x1129   :  { %v2392_v4 = vpop.f32.mrf.mxu2 }
0x112a   :  { %5291 = vmatmul.msk.f32.gmra.mxu3 %vm814_vm12, %v2392_v4 }
0x1132   :  { %5310 = vmatmul.msk.f32.vlgmr.msrb.gmra.mxu3 %vm579_vm3, %v7508_v13 }
0x113a   :  { %5311 = vmatmul.msk.f32.gmra.mxu3 %vm579_vm3, %v7538_v44 }
0x113e   :  { %v2836_v5 = vpop.f32.mrf.mxu2 }
0x1148   :  { %v2839_v41 = vpop.f32.mrf.mxu2 }
0x1150   :  { %v2902_v51 = vpop.f32.mrf.mxu2 }
0x1151   :  { %v2903_v17 = vadd.f32 %v5631_v14, %v2902_v51 }
0x1158   :  { %v2905_v31 = vpop.f32.mrf.mxu2 }
0x1159   :  { %v2906_v37 = vadd.f32 %v5631_v14, %v2905_v31 }
0x115b   :  { %2985 = vmatpush.msrb.mxu1 %v2906_v37 }
0x115d   :  { %2986 = vmatpush.msrb.mxu1 %v2903_v17 }
0x11a5   :  { %v2419_v63 = vpop.f32.mrf.mxu3 }
0x11a6   :  { %v2425_v8 = vadd.f32 %v2419_v63, %v2214_v54 }
0x11a8   :  { %v2429_v24 = vadd.f32 %v5851_v27, %v2425_v8 }
0x11aa   :  { %v7592_v34 = vadd.f32 %v7291_v58, %v2429_v24 }
0x11ac   :  { %v2447_v32 = vsel %vm579_vm3, %v7592_v34, 0.0  ;;  %v2459_v20 = vmul.f32 %v7592_v34, %v7592_v34 }
0x11ad   :  { %2448 = vadd.xlane.f32.xlu1 %v2447_v32  ;;  %v2422_v1 = vpop.f32.mrf.mxu3 }
0x11ae   :  { %v2426_v7 = vadd.f32 %v2422_v1, %v2215_v29  ;;  %v2467_v33 = vsel %vm579_vm3, %v2459_v20, 0.0 }
0x11af   :  { %2468 = vadd.xlane.f32.xlu2 %v2467_v33 }
0x11b0   :  { %v2430_v26 = vadd.f32 %v5852_v23, %v2426_v7 }
0x11b2   :  { %v7601_v0 = vadd.f32 %v7291_v58, %v2430_v26  ;;  %v5630_v58 = vld [vmem:[%s8544_s24 + $0x4] ss:$0 sm:$0xff] }
0x11b3   :  { %v2837_v43 = vadd.f32 %v5630_v58, %v2836_v5  ;;  %v2840_v6 = vadd.f32 %v5630_v58, %v2839_v41 }
0x11b4   :  { %v2450_v30 = vsel %vm579_vm3, %v7601_v0, 0.0  ;;  %v2460_v45 = vmul.f32 %v7601_v0, %v7601_v0 }
0x11b5   :  { %v2869_v10 = vpop.f32.mrf.mxu3  ;;  %2451 = vadd.xlane.f32.xlu0 %v2450_v30 }
0x11b6   :  { %v2470_v11 = vsel %vm579_vm3, %v2460_v45, 0.0  ;;  %v2870_v55 = vadd.f32 %v5633_v12, %v2869_v10 }
0x11b7   :  { %2471 = vadd.xlane.f32.xlu1 %v2470_v11 }
0x11bd   :  { %v2872_v52 = vpop.f32.mrf.mxu3 }
0x11be   :  { %v2873_v39 = vadd.f32 %v5633_v12, %v2872_v52 }
0x11c0   :  { %5319 = vmatpush.xpose.msk.msra.mxu3 %vm814_vm12, %v2873_v39 }
0x11c4   :  { %5320 = vmatpush.xpose.msk.msra.mxu3 %vm814_vm12, %v2870_v55 }
0x11c7   :  { %5321 = vmatmul.msk.f32.vlgmr.msra.gmra.mxu3 %vm814_vm12, %v2837_v43 }
0x11c8   :  { %3051 = vmatpush.msrb.mxu3 %v7618_v46 }
0x11ca   :  { %3052 = vmatpush.msrb.mxu3 %v7625_v3 }
0x11cc   :  { %3053 = vmatpush.msrb.mxu3 %v7631_v40 }
0x11ce   :  { %3054 = vmatpush.msrb.mxu3 %v7637_v48 }
0x11cf   :  { %5322 = vmatmul.msk.f32.gmra.mxu3 %vm814_vm12, %v2840_v6 }
0x11d7   :  { %5338 = vmatmul.msk.f32.vlgmr.msrb.gmra.mxu3 %vm579_vm3, %v7508_v13 }
0x11df   :  { %5339 = vmatmul.msk.f32.gmra.mxu3 %vm579_vm3, %v7538_v44 }
0x1220   :  { %v2449_v4 = vpop.xlane.xlu1 %2448 }
0x1221   :  { %v2455_v5 = vmul.f32 %v2449_v4, %v6598_v42 }
0x1222   :  { %v2469_v51 = vpop.xlane.xlu2 %2468 }
0x1223   :  { %v2479_v14 = vmul.f32 %v2455_v5, %v2455_v5  ;;  %v2475_v31 = vmul.f32 %v2469_v51, %v6598_v42  ;;  %v2487_v26 = vsub.f32 %v7592_v34, %v2455_v5 }
0x1225   :  { %v2483_v37 = vsub.f32 %v2475_v31, %v2479_v14 }
0x1227   :  { %v2491_v17 = vadd.f32 1e-05, %v2483_v37 }
0x1228   :  { %v2452_v49 = vpop.xlane.xlu0 %2451 }
0x1229   :  { %5749 = vrsqrt.f32 %v2491_v17  ;;  %v2456_v41 = vmul.f32 %v2452_v49, %v6598_v42  ;;  %vm2519_vm7 = vweird.f32 %v2491_v17 }
0x122a   :  { %v2472_v54 = vpop.xlane.xlu1 %2471 }
0x122b   :  { %v2480_v63 = vmul.f32 %v2456_v41, %v2456_v41  ;;  %v2476_v8 = vmul.f32 %v2472_v54, %v6598_v42  ;;  %v2488_v55 = vsub.f32 %v7601_v0, %v2456_v41 }
0x122d   :  { %v2484_v27 = vsub.f32 %v2476_v8, %v2480_v63 }
0x122f   :  { %v5750_v24 = vpop.eup %5749  ;;  %v2492_v25 = vadd.f32 1e-05, %v2484_v27 }
0x1230   :  { %v2514_v29 = vmul.f32 %v5750_v24, %v2491_v17  ;;  %vm2520_vm6 = vweird.f32 %v5750_v24 }
0x1231   :  { %5751 = vrsqrt.f32 %v2492_v25  ;;  %vm2521_vm8 = vmor %vm2519_vm7, %vm2520_vm6  ;;  %vm2529_vm10 = vweird.f32 %v2492_v25 }
0x1232   :  { %v2515_v32 = vmul.f32 %v5750_v24, %v2514_v29 }
0x1234   :  { %v2516_v20 = vmul.f32 0.5, %v2515_v32 }
0x1236   :  { %v2517_v1 = vsub.f32 1.5, %v2516_v20 }
0x1237   :  { %v5752_v7 = vpop.eup %5751 }
0x1238   :  { %v2518_v33 = vmul.f32 %v5750_v24, %v2517_v1  ;;  %v2524_v23 = vmul.f32 %v5752_v7, %v2492_v25  ;;  %vm2530_vm9 = vweird.f32 %v5752_v7 }
0x1239   :  { %vm2531_vm11 = vmor %vm2529_vm10, %vm2530_vm9 }
0x123a   :  { %v2522_v30 = vsel %vm2521_vm8, %v5750_v24, %v2518_v33  ;;  %v2525_v45 = vmul.f32 %v5752_v7, %v2524_v23 }
0x123b   :  { %v2535_v10 = vmul.f32 %v2522_v30, %v2487_v26 }
0x123c   :  { %v2526_v11 = vmul.f32 0.5, %v2525_v45 }
0x123d   :  { %v2542_v12 = vmul.f32 %v7342_v57, %v2535_v10 }
0x123e   :  { %v2527_v52 = vsub.f32 1.5, %v2526_v11 }
0x123f   :  { %v2549_v39 = vadd.f32 %v7349_v35, %v2542_v12 }
0x1240   :  { %v2528_v58 = vmul.f32 %v5752_v7, %v2527_v52 }
0x1241   :  { %5294 = vmatmul.msk.f32.gmra.mxu1 %vm579_vm3, %v2549_v39 }
0x1242   :  { %v2532_v43 = vsel %vm2531_vm11, %v5752_v7, %v2528_v58 }
0x1243   :  { %v2536_v6 = vmul.f32 %v2532_v43, %v2488_v55  ;;  %v7673_v43 = vld [vmem:[%s8540_s11 + $0xd8] sm:$0xff] }
0x1245   :  { %v2543_v4 = vmul.f32 %v7342_v57, %v2536_v6  ;;  %v5634_v57 = vld [vmem:[%s8543_s0 + $0x5] ss:$0 sm:$0xff] }
0x1247   :  { %v2550_v5 = vadd.f32 %v7349_v35, %v2543_v4 }
0x1249   :  { %5295 = vmatmul.msk.f32.gmra.mxu1 %vm579_vm3, %v2550_v5 }
0x124a   :  { %v2937_v51 = vpop.f32.mrf.mxu3 }
0x124b   :  { %v2938_v14 = vadd.f32 %v2937_v51, %v6771_v9  ;;  %v7684_v51 = vld [vmem:[%s8540_s11 + $0xc8] sm:$0xff] }
0x124d   :  { %v2943_v31 = vsel %vm850_vm14, %v2938_v14, -inf }
0x124e   :  { %2944 = vmax.xlane.f32.xlu2 %v2943_v31 }
0x1252   :  { %v2940_v37 = vpop.f32.mrf.mxu3 }
0x1253   :  { %v2941_v17 = vadd.f32 %v2940_v37, %v6776_v16  ;;  %v7690_v37 = vld [vmem:[%s8540_s11 + $0xc0] sm:$0xff] }
0x1255   :  { %v2946_v49 = vsel %vm850_vm14, %v2941_v17, -inf }
0x1256   :  { %2947 = vmax.xlane.f32.xlu0 %v2946_v49 }
0x125a   :  { %v3056_v41 = vpop.f32.mrf.mxu3 }
0x125b   :  { %v3057_v63 = vadd.f32 %v5634_v57, %v3056_v41 }
0x1262   :  { %v3059_v35 = vpop.f32.mrf.mxu3 }
0x1263   :  { %v3060_v54 = vadd.f32 %v5634_v57, %v3059_v35 }
0x1265   :  { %5347 = vmatpush.xpose.msk.msra.mxu0 %vm814_vm12, %v3060_v54 }
0x1269   :  { %5348 = vmatpush.xpose.msk.msra.mxu0 %vm814_vm12, %v3057_v63  ;;  %v3023_v63 = vpop.f32.mrf.mxu2 }
0x126d   :  { %3262 = vmatpush.msrb.mxu0 %v7673_v43 }
0x12be   :  { %v2594_v8 = vpop.f32.mrf.mxu1 }
0x12bf   :  { %v2595_v27 = vadd.f32 %v7416_v59, %v2594_v8  ;;  %v5632_v8 = vld [vmem:[%s8544_s24 + $0x5] ss:$0 sm:$0xff] }
0x12c1   :  { %v2602_v24 = vmul.f32 %v2595_v27, %v2595_v27  ;;  %v2945_v25 = vpop.xlane.xlu2 %2944 }
0x12c2   :  { %v2949_v29 = vsub.f32 %v2938_v14, %v2945_v25  ;;  %v3026_v25 = vpop.f32.mrf.mxu2 }
0x12c3   :  { %v2606_v32 = vmul.f32 %v2602_v24, %v2595_v27  ;;  %v3024_v24 = vadd.f32 %v5632_v8, %v3023_v63 }
0x12c4   :  { %v2951_v20 = vmul.f32 1.442695, %v2949_v29  ;;  %v3027_v29 = vadd.f32 %v5632_v8, %v3026_v25 }
0x12c5   :  { %v2610_v1 = vmul.f32 0.044715, %v2606_v32  ;;  %v7713_v32 = vld [vmem:[%s8478_s12 + $0xb0] sm:$0xff] }
0x12c6   :  { %5753 = vpow2.f32 %v2951_v20  ;;  %v2597_v7 = vpop.f32.mrf.mxu1  ;;  %v7719_v20 = vld [vmem:[%s8478_s12 + $0xa8] sm:$0xff] }
0x12c7   :  { %v2598_v33 = vadd.f32 %v7416_v59, %v2597_v7  ;;  %v2614_v23 = vadd.f32 %v2610_v1, %v2595_v27  ;;  %v7678_v59 = vld [vmem:[%s8540_s11 + $0xd0] sm:$0xff]  ;;  %v7724_v1 = vld [vmem:[%s8478_s12 + $0xa0] sm:$0xff] }
0x12c8   :  { %3263 = vmatpush.msrb.mxu0 %v7678_v59 }
0x12c9   :  { %v2603_v26 = vmul.f32 %v2598_v33, %v2598_v33  ;;  %v2948_v30 = vpop.xlane.xlu0 %2947  ;;  %v2618_v45 = vmul.f32 0.7978846, %v2614_v23 }
0x12ca   :  { %v2950_v10 = vsub.f32 %v2941_v17, %v2948_v30  ;;  %3264 = vmatpush.msrb.mxu0 %v7684_v51 }
0x12cb   :  { %v2607_v11 = vmul.f32 %v2603_v26, %v2598_v33  ;;  %5755 = vtanh.f32 %v2618_v45 }
0x12cc   :  { %v5754_v12 = vpop.eup %5753  ;;  %v2953_v52 = vmul.f32 1.442695, %v2950_v10  ;;  %3265 = vmatpush.msrb.mxu0 %v7690_v37 }
0x12cd   :  { %v2611_v39 = vmul.f32 0.044715, %v2607_v11  ;;  %v2955_v58 = vsel %vm850_vm14, %v5754_v12, 0.0 }
0x12ce   :  { %5757 = vpow2.f32 %v2953_v52  ;;  %2956 = vadd.xlane.f32.xlu1 %v2955_v58 }
0x12cf   :  { %v2615_v55 = vadd.f32 %v2611_v39, %v2598_v33 }
0x12d1   :  { %v5756_v6 = vpop.eup %5755  ;;  %v2619_v4 = vmul.f32 0.7978846, %v2615_v55 }
0x12d2   :  { %v2626_v5 = vadd.f32 1.0, %v5756_v6 }
0x12d3   :  { %5759 = vtanh.f32 %v2619_v4  ;;  %v7745_v4 = vld [vmem:[%s8480_s14 + $0x20] sm:$0xff] }
0x12d4   :  { %v5758_v14 = vpop.eup %5757  ;;  %v2630_v31 = vmul.f32 0.5, %v2626_v5 }
0x12d5   :  { %v2958_v17 = vsel %vm850_vm14, %v5758_v14, 0.0 }
0x12d6   :  { %2959 = vadd.xlane.f32.xlu2 %v2958_v17  ;;  %v2634_v49 = vmul.f32 %v2630_v31, %v2595_v27  ;;  %v7707_v27 = vld [vmem:[%s8478_s12 + $0xb8] sm:$0xff] }
0x12d7   :  { %3084 = vmatpush.msra.mxu1 %v7707_v27 }
0x12d8   :  { %2678 = vmatmul.f32.gmra.mxu0 %v2634_v49 }
0x12d9   :  { %v5760_v41 = vpop.eup %5759  ;;  %3085 = vmatpush.msra.mxu1 %v7713_v32 }
0x12da   :  { %v2627_v57 = vadd.f32 1.0, %v5760_v41  ;;  %v5636_v41 = vld [vmem:[%s8479_s13 + $0x5] ss:$0 sm:$0xff] }
0x12db   :  { %3086 = vmatpush.msra.mxu1 %v7719_v20 }
0x12dc   :  { %v2631_v35 = vmul.f32 0.5, %v2627_v57 }
0x12dd   :  { %3087 = vmatpush.msra.mxu1 %v7724_v1 }
0x12de   :  { %v2635_v54 = vmul.f32 %v2631_v35, %v2598_v33 }
0x12e0   :  { %2681 = vmatmul.f32.gmra.mxu0 %v2635_v54 }
0x12e8   :  { %5349 = vmatmul.msk.f32.vlgmr.msra.gmra.mxu0 %vm814_vm12, %v3024_v24 }
0x12f0   :  { %5350 = vmatmul.msk.f32.gmra.mxu0 %vm814_vm12, %v3027_v29 }
0x12f8   :  { %5363 = vmatmul.msk.f32.vlgmr.msrb.gmra.mxu0 %vm579_vm3, %v7508_v13 }
0x1300   :  { %5364 = vmatmul.msk.f32.gmra.mxu0 %vm579_vm3, %v7538_v44 }
0x1341   :  { %v2957_v7 = vpop.xlane.xlu1 %2956 }
0x1342   :  { %5761 = vrcp.f32 %v2957_v7 }
0x1348   :  { %v5762_v33 = vpop.eup %5761 }
0x1349   :  { %v2963_v23 = vmul.f32 %v5762_v33, %v5754_v12  ;;  %v2960_v26 = vpop.xlane.xlu2 %2959 }
0x134a   :  { %5763 = vrcp.f32 %v2960_v26  ;;  %v7758_v26 = vld [vmem:[%s8539_s8 + $0xd8] sm:$0xff] }
0x134b   :  { %5323 = vmatmul.msk.f32.vlgmr.msrb.gmra.mxu1 %vm850_vm14, %v2963_v23 }
0x134c   :  { %3232 = vmatpush.msrb.mxu1 %v7745_v4 }
0x1350   :  { %v5764_v30 = vpop.eup %5763 }
0x1351   :  { %v2964_v45 = vmul.f32 %v5764_v30, %v5758_v14  ;;  %v7763_v30 = vld [vmem:[%s8539_s8 + $0xd0] sm:$0xff] }
0x1353   :  { %5324 = vmatmul.msk.f32.gmra.mxu1 %vm850_vm14, %v2964_v45  ;;  %v7769_v45 = vld [vmem:[%s8539_s8 + $0xc8] sm:$0xff] }
0x1355   :  { %v7730_v10 = vpop.f32.mrf.mxu0 }
0x135b   :  { %5345 = vmatmul.msk.f32.vlgmr.msra.gmra.mxu1 %vm579_vm3, %v7508_v13 }
0x135d   :  { %v7734_v11 = vpop.f32.mrf.mxu0 }
0x1363   :  { %5346 = vmatmul.msk.f32.gmra.mxu1 %vm579_vm3, %v7538_v44 }
0x1365   :  { %v3124_v52 = vpop.f32.mrf.mxu0 }
0x1366   :  { %v3125_v12 = vadd.f32 %v3124_v52, %v6771_v9  ;;  %v7775_v52 = vld [vmem:[%s8539_s8 + $0xc0] sm:$0xff] }
0x1368   :  { %v3130_v39 = vsel %vm850_vm14, %v3125_v12, -inf }
0x1369   :  { %3131 = vmax.xlane.f32.xlu0 %v3130_v39 }
0x136d   :  { %v3127_v58 = vpop.f32.mrf.mxu0 }
0x136e   :  { %v3128_v55 = vadd.f32 %v3127_v58, %v6776_v16 }
0x1370   :  { %v3133_v6 = vsel %vm850_vm14, %v3128_v55, -inf }
0x1371   :  { %3134 = vmax.xlane.f32.xlu1 %v3133_v6 }
0x13c8   :  { %v2988_v5 = vpop.f32.mrf.mxu1 }
0x13c9   :  { %5356 = vmatmul.msk.f32.vlgmr.msrb.gmra.mxu1 %vm814_vm12, %v2988_v5 }
0x13d0   :  { %v2991_v14 = vpop.f32.mrf.mxu1 }
0x13d1   :  { %5357 = vmatmul.msk.f32.gmra.mxu1 %vm814_vm12, %v2991_v14  ;;  %v7788_v14 = vld [vmem:[%s8480_s14 + $0x28] sm:$0xff] }
0x13d2   :  { %3203 = vmatpush.msra.mxu3 %v7788_v14 }
0x13d8   :  { %v3089_v31 = vpop.f32.mrf.mxu1 }
0x13d9   :  { %v3090_v63 = vadd.f32 %v5636_v41, %v3089_v31  ;;  %v7794_v31 = vld [vmem:[%s8478_s12 + $0xd8] sm:$0xff] }
0x13da   :  { %3328 = vmatpush.msrb.mxu3 %v7794_v31 }
0x13dc   :  { %v3132_v17 = vpop.xlane.xlu0 %3131 }
0x13dd   :  { %v3136_v49 = vsub.f32 %v3125_v12, %v3132_v17  ;;  %v7799_v17 = vld [vmem:[%s8478_s12 + $0xd0] sm:$0xff] }
0x13de   :  { %3329 = vmatpush.msrb.mxu3 %v7799_v17 }
0x13df   :  { %v3138_v57 = vmul.f32 1.442695, %v3136_v49  ;;  %v7805_v49 = vld [vmem:[%s8478_s12 + $0xc8] sm:$0xff] }
0x13e0   :  { %v3092_v35 = vpop.f32.mrf.mxu1  ;;  %3330 = vmatpush.msrb.mxu3 %v7805_v49 }
0x13e1   :  { %5765 = vpow2.f32 %v3138_v57  ;;  %v3093_v54 = vadd.f32 %v5636_v41, %v3092_v35  ;;  %v7812_v41 = vld [vmem:[%s8478_s12 + $0xc0] sm:$0xff]  ;;  %v7818_v57 = vld [vmem:[%s8540_s11 + $0xf8] sm:$0xff] }
0x13e2   :  { %3331 = vmatpush.msrb.mxu3 %v7812_v41  ;;  %8567 = vst [vmem:[#allocation8_spill] sm:$0xff] %v7818_v57 }
0x13e3   :  { %3172 = vmatpush.msrb.mxu2 %v3093_v54  ;;  %v7824_v54 = vld [vmem:[%s8540_s11 + $0xf0] sm:$0xff] }
0x13e4   :  { %v3135_v8 = vpop.xlane.xlu1 %3134  ;;  %8568 = vst [vmem:[#allocation9_spill] sm:$0xff] %v7824_v54 }
0x13e5   :  { %v3137_v24 = vsub.f32 %v3128_v55, %v3135_v8  ;;  %3173 = vmatpush.msrb.mxu2 %v3090_v63  ;;  %v7830_v63 = vld [vmem:[%s8540_s11 + $0xe8] sm:$0xff]  ;;  %v7836_v8 = vld [vmem:[%s8540_s11 + $0xe0] sm:$0xff] }
0x13e6   :  { %8569 = vst [vmem:[#allocation10_spill] sm:$0xff] %v7830_v63 }
0x13e7   :  { %v5766_v25 = vpop.eup %5765  ;;  %v3140_v29 = vmul.f32 1.442695, %v3137_v24  ;;  %3295 = vmatpush.msra.mxu2 %v7758_v26  ;;  %8570 = vst [vmem:[#allocation11_spill] sm:$0xff] %v7836_v8 }
0x13e8   :  { %v3142_v7 = vsel %vm850_vm14, %v5766_v25, 0.0 }
0x13e9   :  { %5767 = vpow2.f32 %v3140_v29  ;;  %3143 = vadd.xlane.f32.xlu2 %v3142_v7  ;;  %3296 = vmatpush.msra.mxu2 %v7763_v30  ;;  %v5637_v29 = vld [vmem:[%s8543_s0 + $0x6] ss:$0 sm:$0xff] }
0x13eb   :  { %3297 = vmatpush.msra.mxu2 %v7769_v45 }
0x13ed   :  { %3298 = vmatpush.msra.mxu2 %v7775_v52 }
0x13ef   :  { %v5768_v33 = vpop.eup %5767 }
0x13f0   :  { %v3145_v23 = vsel %vm850_vm14, %v5768_v33, 0.0 }
0x13f1   :  { %3146 = vadd.xlane.f32.xlu0 %v3145_v23  ;;  %v3267_v23 = vpop.f32.mrf.mxu0 }
0x145c   :  { %v3144_v12 = vpop.xlane.xlu2 %3143 }
0x145d   :  { %5769 = vrcp.f32 %v3144_v12  ;;  %v5635_v12 = vld [vmem:[%s8544_s24 + $0x6] ss:$0 sm:$0xff] }
0x1463   :  { %v5770_v39 = vpop.eup %5769 }
0x1464   :  { %v3150_v58 = vmul.f32 %v5770_v39, %v5766_v25  ;;  %v3147_v55 = vpop.xlane.xlu0 %3146 }
0x1465   :  { %5771 = vrcp.f32 %v3147_v55  ;;  %v3268_v55 = vadd.f32 %v5635_v12, %v3267_v23 }
0x1466   :  { %5351 = vmatmul.msk.f32.vlgmr.msrb.gmra.mxu2 %vm850_vm14, %v3150_v58  ;;  %v7855_v58 = vld [vmem:[%s8539_s8 + $0xf8] sm:$0xff] }
0x1467   :  { %8571 = vst [vmem:[#allocation12_spill] sm:$0xff] %v7855_v58 }
0x146b   :  { %v5772_v6 = vpop.eup %5771 }
0x146c   :  { %v3151_v5 = vmul.f32 %v5772_v6, %v5768_v33  ;;  %v7862_v6 = vld [vmem:[%s8539_s8 + $0xf0] sm:$0xff] }
0x146d   :  { %8572 = vst [vmem:[#allocation14_spill] sm:$0xff] %v7862_v6 }
0x146e   :  { %5352 = vmatmul.msk.f32.gmra.mxu2 %vm850_vm14, %v3151_v5  ;;  %v7870_v5 = vld [vmem:[%s8539_s8 + $0xe8] sm:$0xff] }
0x146f   :  { %8573 = vst [vmem:[#allocation13_spill] sm:$0xff] %v7870_v5 }
0x1476   :  { %5370 = vmatmul.msk.f32.vlgmr.msra.gmra.mxu2 %vm579_vm3, %v7508_v13 }
0x147e   :  { %5371 = vmatmul.msk.f32.gmra.mxu2 %vm579_vm3, %v7538_v44 }
0x14e9   :  { %v3175_v35 = vpop.f32.mrf.mxu2 }
0x14ea   :  { %5354 = vmatmul.msk.f32.vlgmr.msra.gmra.mxu3 %vm814_vm12, %v3175_v35  ;;  %v7876_v35 = vld [vmem:[%s8539_s8 + $0xe0] sm:$0xff] }
0x14eb   :  { %3479 = vmatpush.msra.mxu3 %v7818_v57  ;;  %8574 = vst [vmem:[#allocation15_spill] sm:$0xff] %v7876_v35 }
0x14ed   :  { %3480 = vmatpush.msra.mxu3 %v7824_v54 }
0x14ef   :  { %3481 = vmatpush.msra.mxu3 %v7830_v63 }
0x14f1   :  { %v3178_v24 = vpop.f32.mrf.mxu2  ;;  %3482 = vmatpush.msra.mxu3 %v7836_v8 }
0x14f2   :  { %5355 = vmatmul.msk.f32.gmra.mxu3 %vm814_vm12, %v3178_v24  ;;  %v3270_v24 = vpop.f32.mrf.mxu0 }
0x14f9   :  { %v3300_v25 = vpop.f32.mrf.mxu2 }
0x14fa   :  { %5377 = vmatmul.msk.f32.vlgmr.msrb.gmra.mxu3 %vm579_vm3, %v7508_v13  ;;  %v3301_v39 = vadd.f32 %v5637_v29, %v3300_v25  ;;  %v3271_v25 = vadd.f32 %v5635_v12, %v3270_v24  ;;  %v5638_v24 = vld [vmem:[%s8479_s13 + $0x6] ss:$0 sm:$0xff] }
0x1501   :  { %v3303_v7 = vpop.f32.mrf.mxu2 }
0x1502   :  { %v3304_v33 = vadd.f32 %v5637_v29, %v3303_v7  ;;  %5378 = vmatmul.msk.f32.gmra.mxu3 %vm579_vm3, %v7538_v44  ;;  %v7887_v29 = vpop.f32.mrf.mxu1 }
0x1504   :  { %5379 = vmatpush.xpose.msk.msra.mxu1 %vm814_vm12, %v3304_v33 }
0x1508   :  { %5380 = vmatpush.xpose.msk.msra.mxu1 %vm814_vm12, %v3301_v39 }
0x150a   :  { %5393 = vmatmul.msk.f32.vlgmr.msra.gmra.mxu3 %vm579_vm3, %v7508_v13  ;;  %v3237_v33 = vpop.f32.mrf.mxu1 }
0x150b   :  { %5381 = vmatmul.msk.f32.vlgmr.msra.gmra.mxu1 %vm814_vm12, %v3268_v55  ;;  %v7896_v55 = vld [vmem:[%s8480_s14 + $0x30] sm:$0xff] }
0x150c   :  { %3512 = vmatpush.msrb.mxu1 %v7855_v58  ;;  %8575 = vst [vmem:[#allocation16_spill] sm:$0xff] %v7896_v55  ;;  %3447 = vmatpush.msrb.mxu2 %v7896_v55 }
0x150e   :  { %3513 = vmatpush.msrb.mxu1 %v7862_v6 }
0x1510   :  { %3514 = vmatpush.msrb.mxu1 %v7870_v5 }
0x1512   :  { %3515 = vmatpush.msrb.mxu1 %v7876_v35  ;;  %5394 = vmatmul.msk.f32.gmra.mxu3 %vm579_vm3, %v7538_v44 }
0x1513   :  { %5382 = vmatmul.msk.f32.gmra.mxu1 %vm814_vm12, %v3271_v25 }
0x151b   :  { %5400 = vmatmul.msk.f32.vlgmr.msrb.gmra.mxu1 %vm579_vm3, %v7508_v13 }
0x1523   :  { %5401 = vmatmul.msk.f32.gmra.mxu1 %vm579_vm3, %v7538_v44 }
0x156d   :  { %v7889_v7 = vpop.f32.mrf.mxu3 }
0x1575   :  { %v3208_v23 = vpop.f32.mrf.mxu3 }
0x1576   :  { %v7891_v39 = vadd.f32 %v3237_v33, %v3208_v23 }
0x157d   :  { %v3333_v12 = vpop.f32.mrf.mxu3 }
0x157e   :  { %v3334_v18 = vadd.f32 %v5638_v24, %v3333_v12 }
0x1585   :  { %v3336_v25 = vpop.f32.mrf.mxu3 }
0x1586   :  { %v3337_v28 = vadd.f32 %v5638_v24, %v3336_v25  ;;  %v5640_v25 = vld [vmem:[%s8543_s0 + $0x7] ss:$0 sm:$0xff] }
0x1588   :  { %v3368_v35 = vpop.f32.mrf.mxu1  ;;  %3416 = vmatpush.msra.mxu0 %v3337_v28 }
0x1589   :  { %v3369_v33 = vadd.f32 %v3368_v35, %v6771_v9 }
0x158a   :  { %3417 = vmatpush.msra.mxu0 %v3334_v18 }
0x158b   :  { %v3374_v23 = vsel %vm850_vm14, %v3369_v33, -inf }
0x158c   :  { %3375 = vmax.xlane.f32.xlu1 %v3374_v23 }
0x1590   :  { %v3371_v5 = vpop.f32.mrf.mxu1 }
0x1591   :  { %v3372_v6 = vadd.f32 %v3371_v5, %v6776_v16 }
0x1593   :  { %v3377_v58 = vsel %vm850_vm14, %v3372_v6, -inf }
0x1594   :  { %3378 = vmax.xlane.f32.xlu2 %v3377_v58 }
0x1598   :  { %v3517_v8 = vpop.f32.mrf.mxu1 }
0x1599   :  { %v3518_v28 = vadd.f32 %v5640_v25, %v3517_v8 }
0x15a0   :  { %v3520_v12 = vpop.f32.mrf.mxu1 }
0x15a1   :  { %v3521_v24 = vadd.f32 %v5640_v25, %v3520_v12  ;;  %v2680_v12 = vadd.f32 %v7434_v61, %v7730_v10 }
0x15a3   :  { %5409 = vmatpush.xpose.msk.msra.mxu2 %vm814_vm12, %v3521_v24  ;;  %v7916_v25 = vadd.f32 %v2680_v12, %v7592_v34  ;;  %v7931_v34 = vld [vmem:[%s8478_s12 + $0xf8] sm:$0xff] }
0x15a4   :  { %3545 = vmatpush.msrb.mxu0 %v7931_v34 }
0x15a7   :  { %5410 = vmatpush.xpose.msk.msra.mxu2 %vm814_vm12, %v3518_v28 }
0x15ff   :  { %v3376_v18 = vpop.xlane.xlu1 %3375 }
0x1600   :  { %v3380_v35 = vsub.f32 %v3369_v33, %v3376_v18  ;;  %v2683_v33 = vadd.f32 %v7434_v61, %v7734_v11  ;;  %v7936_v61 = vld [vmem:[%s8478_s12 + $0xf0] sm:$0xff]  ;;  %v7949_v11 = vld [vmem:[%s8478_s12 + $0xe0] sm:$0xff] }
0x1601   :  { %3546 = vmatpush.msrb.mxu0 %v7936_v61 }
0x1602   :  { %v3382_v23 = vmul.f32 1.442695, %v3380_v35 }
0x1604   :  { %5773 = vpow2.f32 %v3382_v23 }
0x1607   :  { %v3379_v5 = vpop.xlane.xlu2 %3378 }
0x1608   :  { %v3381_v63 = vsub.f32 %v3372_v6, %v3379_v5  ;;  %v7921_v6 = vadd.f32 %v2683_v33, %v7601_v0  ;;  %v7942_v0 = vld [vmem:[%s8478_s12 + $0xe8] sm:$0xff] }
0x1609   :  { %3547 = vmatpush.msrb.mxu0 %v7942_v0 }
0x160a   :  { %v5774_v54 = vpop.eup %5773  ;;  %v3384_v58 = vmul.f32 1.442695, %v3381_v63  ;;  %v2699_v63 = vsel %vm579_vm3, %v7916_v25, 0.0 }
0x160b   :  { %v3386_v57 = vsel %vm850_vm14, %v5774_v54, 0.0  ;;  %3548 = vmatpush.msrb.mxu0 %v7949_v11 }
0x160c   :  { %5775 = vpow2.f32 %v3384_v58  ;;  %3387 = vadd.xlane.f32.xlu0 %v3386_v57  ;;  %v2712_v57 = vmul.f32 %v7921_v6, %v7921_v6 }
0x160e   :  { %v2722_v10 = vsel %vm579_vm3, %v2712_v57, 0.0 }
0x1612   :  { %v5776_v55 = vpop.eup %5775 }
0x1613   :  { %v3389_v8 = vsel %vm850_vm14, %v5776_v55, 0.0 }
0x1614   :  { %3390 = vadd.xlane.f32.xlu1 %v3389_v8 }
0x161c   :  { %2700 = vadd.xlane.f32.xlu1 %v2699_v63  ;;  %v2711_v63 = vmul.f32 %v7916_v25, %v7916_v25 }
0x1624   :  { %2723 = vadd.xlane.f32.xlu1 %v2722_v10 }
0x167f   :  { %v3388_v24 = vpop.xlane.xlu0 %3387 }
0x1680   :  { %5777 = vrcp.f32 %v3388_v24 }
0x1686   :  { %v5778_v28 = vpop.eup %5777 }
0x1687   :  { %v3394_v18 = vmul.f32 %v5778_v28, %v5774_v54  ;;  %v3391_v35 = vpop.xlane.xlu1 %3390 }
0x1688   :  { %5779 = vrcp.f32 %v3391_v35 }
0x1689   :  { %5383 = vmatmul.msk.f32.vlgmr.msra.gmra.mxu0 %vm850_vm14, %v3394_v18 }
0x168a   :  { %3700 = vmatpush.msra.mxu0 %v7459_v56 }
0x168c   :  { %3701 = vmatpush.msra.mxu0 %v7465_v50  ;;  %v3484_v50 = vpop.f32.mrf.mxu3 }
0x168e   :  { %v5780_v23 = vpop.eup %5779  ;;  %3702 = vmatpush.msra.mxu0 %v7472_v2  ;;  %v5639_v2 = vld [vmem:[%s8544_s24 + $0x7] ss:$0 sm:$0xff] }
0x168f   :  { %v3395_v5 = vmul.f32 %v5780_v23, %v5776_v55  ;;  %v2701_v18 = vpop.xlane.xlu1 %2700 }
0x1690   :  { %3703 = vmatpush.msra.mxu0 %v7478_v62  ;;  %v3485_v62 = vadd.f32 %v5639_v2, %v3484_v50  ;;  %v2707_v23 = vmul.f32 %v2701_v18, %v6598_v42 }
0x1691   :  { %5384 = vmatmul.msk.f32.gmra.mxu0 %vm850_vm14, %v3395_v5 }
0x1699   :  { %5407 = vmatmul.msk.f32.vlgmr.msrb.gmra.mxu0 %vm579_vm3, %v7508_v13 }
0x16a1   :  { %5408 = vmatmul.msk.f32.gmra.mxu0 %vm579_vm3, %v7538_v44  ;;  %v3487_v44 = vpop.f32.mrf.mxu3 }
0x1706   :  { %v3419_v54 = vpop.f32.mrf.mxu0 }
0x1707   :  { %5386 = vmatmul.msk.f32.vlgmr.msrb.gmra.mxu2 %vm814_vm12, %v3419_v54 }
0x1708   :  { %3731 = vmatpush.msrb.mxu2 %v7556_v38  ;;  %v3488_v38 = vadd.f32 %v5639_v2, %v3487_v44 }
0x170a   :  { %3732 = vmatpush.msrb.mxu2 %v7561_v60  ;;  %v5641_v60 = vld [vmem:[%s8479_s13 + $0x7] ss:$0 sm:$0xff] }
0x170c   :  { %3733 = vmatpush.msrb.mxu2 %v7567_v19 }
0x170e   :  { %v3422_v56 = vpop.f32.mrf.mxu0  ;;  %3734 = vmatpush.msrb.mxu2 %v7573_v53 }
0x170f   :  { %5387 = vmatmul.msk.f32.gmra.mxu2 %vm814_vm12, %v3422_v56  ;;  %v2731_v56 = vmul.f32 %v2707_v23, %v2707_v23 }
0x1716   :  { %v3550_v13 = vpop.f32.mrf.mxu0 }
0x1717   :  { %5411 = vmatmul.msk.f32.vlgmr.msra.gmra.mxu2 %vm814_vm12, %v3485_v62  ;;  %v3551_v55 = vadd.f32 %v5641_v60, %v3550_v13 }
0x1718   :  { %3880 = vmatpush.msra.mxu2 %v7513_v15  ;;  %v3235_v15 = vadd.f32 %v7887_v29, %v7889_v7  ;;  %v2719_v7 = vsel %vm579_vm3, %v2711_v63, 0.0 }
0x171a   :  { %3881 = vmatpush.msra.mxu2 %v7520_v36 }
0x171c   :  { %3882 = vmatpush.msra.mxu2 %v7527_v22 }
0x171e   :  { %v3553_v19 = vpop.f32.mrf.mxu0  ;;  %3883 = vmatpush.msra.mxu2 %v7533_v47 }
0x171f   :  { %v3554_v53 = vadd.f32 %v5641_v60, %v3553_v19  ;;  %5412 = vmatmul.msk.f32.gmra.mxu2 %vm814_vm12, %v3488_v38  ;;  %v2724_v19 = vpop.xlane.xlu1 %2723 }
0x1721   :  { %3633 = vmatpush.msrb.mxu3 %v3554_v53 }
0x1723   :  { %3634 = vmatpush.msrb.mxu3 %v3551_v55 }
0x178a   :  { %v3449_v36 = vpop.f32.mrf.mxu2 }
0x178b   :  { %v7982_v58 = vadd.f32 %v3449_v36, %v3235_v15  ;;  %v2728_v36 = vmul.f32 %v2724_v19, %v6598_v42 }
0x1792   :  { %v3452_v22 = vpop.f32.mrf.mxu2 }
0x1793   :  { %v7985_v12 = vadd.f32 %v3452_v22, %v7891_v39  ;;  %v2702_v39 = vsel %vm579_vm3, %v7921_v6, 0.0 }
0x179a   :  { %v3585_v8 = vpop.f32.mrf.mxu2 }
0x179b   :  { %v3586_v33 = vadd.f32 %v3585_v8, %v6771_v9 }
0x179d   :  { %v3591_v47 = vsel %vm850_vm14, %v3586_v33, -inf }
0x179e   :  { %3592 = vmax.xlane.f32.xlu2 %v3591_v47 }
0x17a2   :  { %v3588_v57 = vpop.f32.mrf.mxu2 }
0x17a3   :  { %v3589_v10 = vadd.f32 %v3588_v57, %v6776_v16 }
0x17a5   :  { %v3594_v29 = vsel %vm850_vm14, %v3589_v10, -inf }
0x17a6   :  { %3595 = vmax.xlane.f32.xlu0 %v3594_v29  ;;  %2720 = vadd.xlane.f32.xlu2 %v2719_v7 }
0x17ae   :  { %2703 = vadd.xlane.f32.xlu0 %v2702_v39 }
0x1811   :  { %v3593_v24 = vpop.xlane.xlu2 %3592 }
0x1812   :  { %v3597_v28 = vsub.f32 %v3586_v33, %v3593_v24 }
0x1814   :  { %v3599_v35 = vmul.f32 1.442695, %v3597_v28  ;;  %v2739_v28 = vsub.f32 %v7916_v25, %v2707_v23 }
0x1816   :  { %5781 = vpow2.f32 %v3599_v35 }
0x1819   :  { %v3596_v5 = vpop.xlane.xlu0 %3595  ;;  %v2721_v54 = vpop.xlane.xlu2 %2720 }
0x181a   :  { %v3598_v50 = vsub.f32 %v3589_v10, %v3596_v5  ;;  %v2727_v2 = vmul.f32 %v2721_v54, %v6598_v42 }
0x181c   :  { %v7998_v62 = vpop.eup %5781  ;;  %v3601_v13 = vmul.f32 1.442695, %v3598_v50  ;;  %v2735_v44 = vsub.f32 %v2727_v2, %v2731_v56  ;;  %v5853_v56 = vld [vmem:[%s8541_s29 + $0x1] ss:$0 sm:$0xff] }
0x181d   :  { %v3603_v38 = vsel %vm850_vm14, %v7998_v62, 0.0 }
0x181e   :  { %5783 = vpow2.f32 %v3601_v13  ;;  %v2743_v60 = vadd.f32 1e-05, %v2735_v44  ;;  %3604 = vadd.xlane.f32.xlu2 %v3603_v38 }
0x1820   :  { %5785 = vrsqrt.f32 %v2743_v60  ;;  %vm2771_vm15 = vweird.f32 %v2743_v60 }
0x1821   :  { %v2704_v53 = vpop.xlane.xlu0 %2703 }
0x1822   :  { %v2708_v55 = vmul.f32 %v2704_v53, %v6598_v42 }
0x1824   :  { %v8003_v15 = vpop.eup %5783  ;;  %v2732_v22 = vmul.f32 %v2708_v55, %v2708_v55  ;;  %v2740_v38 = vsub.f32 %v7921_v6, %v2708_v55  ;;  %v5435_v55 = vld [vmem:[%s8478_s12 + $0x98] sm:$0xff] }
0x1825   :  { %v3606_v8 = vsel %vm850_vm14, %v8003_v15, 0.0  ;;  %3762 = vmatpush.msra.mxu3 %v5435_v55 }
0x1826   :  { %v5786_v33 = vpop.eup %5785  ;;  %v2736_v47 = vsub.f32 %v2728_v36, %v2732_v22  ;;  %3607 = vadd.xlane.f32.xlu0 %v3606_v8  ;;  %v5434_v22 = vld [vmem:[%s8478_s12 + $0x90] sm:$0xff]  ;;  %v5433_v8 = vld [vmem:[%s8478_s12 + $0x88] sm:$0xff] }
0x1827   :  { %v2766_v63 = vmul.f32 %v5786_v33, %v2743_v60  ;;  %vm2772_vm13 = vweird.f32 %v5786_v33  ;;  %3763 = vmatpush.msra.mxu3 %v5434_v22 }
0x1828   :  { %v2744_v57 = vadd.f32 1e-05, %v2736_v47  ;;  %vm2773_vm0 = vmor %vm2771_vm15, %vm2772_vm13 }
0x1829   :  { %v2767_v10 = vmul.f32 %v5786_v33, %v2766_v63  ;;  %3764 = vmatpush.msra.mxu3 %v5433_v8 }
0x182a   :  { %5787 = vrsqrt.f32 %v2744_v57  ;;  %vm2781_vm2 = vweird.f32 %v2744_v57 }
0x182b   :  { %v2768_v29 = vmul.f32 0.5, %v2767_v10 }
0x182d   :  { %v2769_v7 = vsub.f32 1.5, %v2768_v29 }
0x182f   :  { %v2770_v39 = vmul.f32 %v5786_v33, %v2769_v7 }
0x1830   :  { %v5788_v24 = vpop.eup %5787 }
0x1831   :  { %v2774_v18 = vsel %vm2773_vm0, %v5786_v33, %v2770_v39  ;;  %v2776_v35 = vmul.f32 %v5788_v24, %v2744_v57  ;;  %vm2782_vm1 = vweird.f32 %v5788_v24  ;;  %v5432_v33 = vld [vmem:[%s8478_s12 + $0x80] sm:$0xff]  ;;  %s5886_s12 = smov 128  }
0x1832   :  { %v2787_v5 = vmul.f32 %v2774_v18, %v2739_v28  ;;  %vm2783_vm4 = vmor %vm2781_vm2, %vm2782_vm1  ;;  %3765 = vmatpush.msra.mxu3 %v5432_v33 }
0x1833   :  { %v2777_v54 = vmul.f32 %v5788_v24, %v2776_v35 }
0x1834   :  { %v2794_v50 = vmul.f32 %v5853_v56, %v2787_v5 }
0x1835   :  { %v2778_v2 = vmul.f32 0.5, %v2777_v54 }
0x1836   :  { %v8013_v13 = vadd.f32 %v7505_v21, %v2794_v50  ;;  %v5854_v21 = vld [vmem:[%s8542_s4 + $0x1] ss:$0 sm:$0xff] }
0x1837   :  { %v2779_v44 = vsub.f32 1.5, %v2778_v2 }
0x1838   :  { %5423 = vmatmul.msk.f32.vlgmr.msra.gmra.mxu0 %vm579_vm3, %v8013_v13  ;;  %5430 = vmatmul.msk.f32.vlgmr.msrb.gmra.mxu2 %vm579_vm3, %v8013_v13 }
0x1839   :  { %v2780_v23 = vmul.f32 %v5788_v24, %v2779_v44 }
0x183b   :  { %v2784_v60 = vsel %vm2783_vm4, %v5788_v24, %v2780_v23 }
0x183c   :  { %v2788_v19 = vmul.f32 %v2784_v60, %v2740_v38 }
0x183e   :  { %v2795_v53 = vmul.f32 %v5853_v56, %v2788_v19 }
0x1840   :  { %v8023_v36 = vadd.f32 %v5854_v21, %v2795_v53 }
0x1842   :  { %5424 = vmatmul.msk.f32.gmra.mxu0 %vm579_vm3, %v8023_v36  ;;  %5431 = vmatmul.msk.f32.gmra.mxu2 %vm579_vm3, %v8023_v36 }
0x184a   :  { %5451 = vmatmul.msk.f32.vlgmr.msra.gmra.mxu2 %vm579_vm3, %v8013_v13 }
0x1852   :  { %5452 = vmatmul.msk.f32.gmra.mxu2 %vm579_vm3, %v8023_v36 }
0x1891   :  { %v3605_v47 = vpop.xlane.xlu2 %3604 }
0x1892   :  { %5789 = vrcp.f32 %v3605_v47 }
0x1898   :  { %v5790_v63 = vpop.eup %5789 }
0x1899   :  { %v3611_v57 = vmul.f32 %v5790_v63, %v7998_v62  ;;  %v3608_v10 = vpop.xlane.xlu0 %3607  ;;  %v8056_v62 = vld [vmem:[%s8480_s14 + $0x38] sm:$0xff] }
0x189a   :  { %5791 = vrcp.f32 %v3608_v10  ;;  %3664 = vmatpush.msra.mxu1 %v8056_v62 }
0x189b   :  { %5413 = vmatmul.msk.f32.vlgmr.msrb.gmra.mxu3 %vm850_vm14, %v3611_v57 }
0x189c   :  { %3911 = vmatpush.msrb.mxu3 %v7618_v46 }
0x189e   :  { %3912 = vmatpush.msrb.mxu3 %v7625_v3  ;;  %v5643_v3 = vld [vmem:[%s8543_s0 + $0x4] ss:$0 sm:$0xff] }
0x18a0   :  { %v5792_v29 = vpop.eup %5791  ;;  %3913 = vmatpush.msrb.mxu3 %v7631_v40 }
0x18a1   :  { %v3612_v7 = vmul.f32 %v5792_v29, %v8003_v15 }
0x18a2   :  { %3914 = vmatpush.msrb.mxu3 %v7637_v48 }
0x18a3   :  { %5414 = vmatmul.msk.f32.gmra.mxu3 %vm850_vm14, %v3612_v7 }
0x18ab   :  { %5437 = vmatmul.msk.f32.vlgmr.msra.gmra.mxu3 %vm579_vm3, %v8013_v13 }
0x18ac   :  { %4061 = vmatpush.msra.mxu3 %v7788_v14 }
0x18b3   :  { %5438 = vmatmul.msk.f32.gmra.mxu3 %vm579_vm3, %v8023_v36 }
0x18bb   :  { %5458 = vmatmul.msk.f32.vlgmr.msrb.gmra.mxu3 %vm579_vm3, %v8013_v13  ;;  %v3736_v46 = vpop.f32.mrf.mxu2 }
0x18bc   :  { %4180 = vmatpush.msrb.mxu3 %v7794_v31  ;;  %v3737_v14 = vadd.f32 %v5643_v3, %v3736_v46 }
0x18be   :  { %4181 = vmatpush.msrb.mxu3 %v7799_v17 }
0x18c0   :  { %4182 = vmatpush.msrb.mxu3 %v7805_v49  ;;  %v5642_v49 = vld [vmem:[%s8544_s24 + $0x4] ss:$0 sm:$0xff] }
0x18c2   :  { %4183 = vmatpush.msrb.mxu3 %v7812_v41  ;;  %v3705_v41 = vpop.f32.mrf.mxu0 }
0x18c3   :  { %5459 = vmatmul.msk.f32.gmra.mxu3 %vm579_vm3, %v8023_v36  ;;  %v3706_v15 = vadd.f32 %v5642_v49, %v3705_v41 }
0x18c5   :  { %v3739_v40 = vpop.f32.mrf.mxu2 }
0x18c6   :  { %v3740_v48 = vadd.f32 %v5643_v3, %v3739_v40 }
0x18c8   :  { %5439 = vmatpush.xpose.msk.msrb.mxu1 %vm814_vm12, %v3740_v48 }
0x18cc   :  { %5440 = vmatpush.xpose.msk.msrb.mxu1 %vm814_vm12, %v3737_v14 }
0x191e   :  { %v3636_v31 = vpop.f32.mrf.mxu3 }
0x191f   :  { %5416 = vmatmul.msk.f32.vlgmr.msra.gmra.mxu1 %vm814_vm12, %v3636_v31  ;;  %v3885_v31 = vpop.f32.mrf.mxu2 }
0x1920   :  { %3942 = vmatpush.msra.mxu1 %v7707_v27  ;;  %v3708_v27 = vpop.f32.mrf.mxu0 }
0x1922   :  { %3943 = vmatpush.msra.mxu1 %v7713_v32  ;;  %v3709_v32 = vadd.f32 %v5642_v49, %v3708_v27 }
0x1924   :  { %3944 = vmatpush.msra.mxu1 %v7719_v20  ;;  %v5645_v20 = vld [vmem:[%s8479_s13 + $0x4] ss:$0 sm:$0xff] }
0x1926   :  { %v3639_v17 = vpop.f32.mrf.mxu3  ;;  %3945 = vmatpush.msra.mxu1 %v7724_v1 }
0x1927   :  { %5417 = vmatmul.msk.f32.gmra.mxu1 %vm814_vm12, %v3639_v17  ;;  %v5644_v17 = vld [vmem:[%s8544_s24 + $0x5] ss:$0 sm:$0xff]  ;;  %v3888_v41 = vpop.f32.mrf.mxu2 }
0x1928   :  { %v3886_v49 = vadd.f32 %v5644_v17, %v3885_v31 }
0x192e   :  { %v3767_v39 = vpop.f32.mrf.mxu3 }
0x192f   :  { %5441 = vmatmul.msk.f32.vlgmr.msrb.gmra.mxu1 %vm814_vm12, %v3706_v15  ;;  %v3768_v28 = vadd.f32 %v5645_v20, %v3767_v39 }
0x1930   :  { %4090 = vmatpush.msrb.mxu1 %v7745_v4  ;;  %v5646_v4 = vld [vmem:[%s8543_s0 + $0x5] ss:$0 sm:$0xff] }
0x1936   :  { %v3770_v1 = vpop.f32.mrf.mxu3 }
0x1937   :  { %v3771_v24 = vadd.f32 %v5645_v20, %v3770_v1  ;;  %5442 = vmatmul.msk.f32.gmra.mxu1 %vm814_vm12, %v3709_v32 }
0x1939   :  { %3850 = vmatpush.msrb.mxu0 %v3771_v24 }
0x193b   :  { %3851 = vmatpush.msrb.mxu0 %v3768_v28 }
0x193e   :  { %v3916_v18 = vpop.f32.mrf.mxu3 }
0x193f   :  { %5465 = vmatmul.msk.f32.vlgmr.msra.gmra.mxu1 %vm579_vm3, %v8013_v13  ;;  %v3917_v54 = vadd.f32 %v5646_v4, %v3916_v18 }
0x1946   :  { %v3919_v35 = vpop.f32.mrf.mxu3 }
0x1947   :  { %v3920_v5 = vadd.f32 %v5646_v4, %v3919_v35  ;;  %5466 = vmatmul.msk.f32.gmra.mxu1 %vm579_vm3, %v8023_v36 }
0x1949   :  { %5467 = vmatpush.xpose.msk.msra.mxu0 %vm814_vm12, %v3920_v5 }
0x194d   :  { %5468 = vmatpush.xpose.msk.msra.mxu0 %vm814_vm12, %v3917_v54 }
0x199c   :  { %v3666_v56 = vpop.f32.mrf.mxu1 }
0x199d   :  { %v8102_v50 = vadd.f32 %v3666_v56, %v7982_v58  ;;  %v5648_v58 = vld [vmem:[%s8479_s13 + $0x5] ss:$0 sm:$0xff] }
0x19a4   :  { %v3669_v2 = vpop.f32.mrf.mxu1 }
0x19a5   :  { %v8105_v44 = vadd.f32 %v3669_v2, %v7985_v12 }
0x19ac   :  { %v3802_v23 = vpop.f32.mrf.mxu1 }
0x19ad   :  { %v3803_v38 = vadd.f32 %v3802_v23, %v6771_v9 }
0x19af   :  { %v3808_v60 = vsel %vm850_vm14, %v3803_v38, -inf }
0x19b0   :  { %3809 = vmax.xlane.f32.xlu1 %v3808_v60 }
0x19b4   :  { %v3805_v19 = vpop.f32.mrf.mxu1 }
0x19b5   :  { %v3806_v53 = vadd.f32 %v3805_v19, %v6776_v16 }
0x19b7   :  { %v3811_v21 = vsel %vm850_vm14, %v3806_v53, -inf }
0x19b8   :  { %3812 = vmax.xlane.f32.xlu2 %v3811_v21 }
0x19bc   :  { %v3947_v55 = vpop.f32.mrf.mxu1 }
0x19bd   :  { %v3948_v8 = vadd.f32 %v5648_v58, %v3947_v55 }
0x19c4   :  { %v3950_v22 = vpop.f32.mrf.mxu1 }
0x19c5   :  { %v3951_v12 = vadd.f32 %v5648_v58, %v3950_v22  ;;  %v8577_v22 = vld [vmem:[#allocation8_spill] sm:$0xff] }
0x19c7   :  { %4030 = vmatpush.msrb.mxu2 %v3951_v12  ;;  %v8578_v12 = vld [vmem:[#allocation9_spill] sm:$0xff] }
0x19c9   :  { %4031 = vmatpush.msrb.mxu2 %v3948_v8  ;;  %v8579_v8 = vld [vmem:[#allocation10_spill] sm:$0xff] }
0x19cb   :  { %4149 = vmatpush.msra.mxu2 %v7758_v26 }
0x19cd   :  { %4150 = vmatpush.msra.mxu2 %v7763_v30 }
0x19cf   :  { %4151 = vmatpush.msra.mxu2 %v7769_v45 }
0x19d1   :  { %4152 = vmatpush.msra.mxu2 %v7775_v52 }
0x1a23   :  { %v3810_v33 = vpop.xlane.xlu1 %3809 }
0x1a24   :  { %v3814_v47 = vsub.f32 %v3803_v38, %v3810_v33 }
0x1a26   :  { %v3816_v63 = vmul.f32 1.442695, %v3814_v47  ;;  %v8580_v47 = vld [vmem:[#allocation11_spill] sm:$0xff] }
0x1a28   :  { %5793 = vpow2.f32 %v3816_v63 }
0x1a2b   :  { %v3813_v57 = vpop.xlane.xlu2 %3812 }
0x1a2c   :  { %v3815_v10 = vsub.f32 %v3806_v53, %v3813_v57  ;;  %v8576_v53 = vld [vmem:[#allocation16_spill] sm:$0xff]  ;;  %v5650_v57 = vld [vmem:[%s8543_s0 + $0x6] ss:$0 sm:$0xff] }
0x1a2e   :  { %v5794_v29 = vpop.eup %5793  ;;  %v3818_v7 = vmul.f32 1.442695, %v3815_v10 }
0x1a2f   :  { %v3820_v46 = vsel %vm850_vm14, %v5794_v29, 0.0 }
0x1a30   :  { %5795 = vpow2.f32 %v3818_v7  ;;  %3821 = vadd.xlane.f32.xlu0 %v3820_v46  ;;  %v5649_v46 = vld [vmem:[%s8544_s24 + $0x6] ss:$0 sm:$0xff] }
0x1a36   :  { %v5796_v3 = vpop.eup %5795 }
0x1a37   :  { %v3823_v26 = vsel %vm850_vm14, %v5796_v3, 0.0 }
0x1a38   :  { %3824 = vadd.xlane.f32.xlu1 %v3823_v26 }
0x1aa3   :  { %v3822_v30 = vpop.xlane.xlu0 %3821 }
0x1aa4   :  { %5797 = vrcp.f32 %v3822_v30  ;;  %v8581_v30 = vld [vmem:[#allocation12_spill] sm:$0xff] }
0x1aaa   :  { %v5798_v45 = vpop.eup %5797 }
0x1aab   :  { %v3828_v52 = vmul.f32 %v5798_v45, %v5794_v29  ;;  %v3825_v40 = vpop.xlane.xlu1 %3824  ;;  %v8582_v45 = vld [vmem:[#allocation14_spill] sm:$0xff] }
0x1aac   :  { %5799 = vrcp.f32 %v3825_v40  ;;  %v8583_v40 = vld [vmem:[#allocation13_spill] sm:$0xff] }
0x1aad   :  { %5443 = vmatmul.msk.f32.vlgmr.msrb.gmra.mxu0 %vm850_vm14, %v3828_v52 }
0x1aae   :  { %4118 = vmatpush.msrb.mxu0 %v7673_v43  ;;  %v3889_v43 = vadd.f32 %v5644_v17, %v3888_v41 }
0x1ab0   :  { %4119 = vmatpush.msrb.mxu0 %v7678_v59 }
0x1ab2   :  { %v5800_v48 = vpop.eup %5799  ;;  %4120 = vmatpush.msrb.mxu0 %v7684_v51 }
0x1ab3   :  { %v3829_v14 = vmul.f32 %v5800_v48, %v5796_v3  ;;  %v8584_v48 = vld [vmem:[#allocation15_spill] sm:$0xff] }
0x1ab4   :  { %4121 = vmatpush.msrb.mxu0 %v7690_v37 }
0x1ab5   :  { %5444 = vmatmul.msk.f32.gmra.mxu0 %vm850_vm14, %v3829_v14 }
0x1abd   :  { %5469 = vmatmul.msk.f32.vlgmr.msra.gmra.mxu0 %vm814_vm12, %v3886_v49 }
0x1ac5   :  { %5470 = vmatmul.msk.f32.gmra.mxu0 %vm814_vm12, %v3889_v43 }
0x1acd   :  { %5483 = vmatmul.msk.f32.vlgmr.msrb.gmra.mxu0 %vm579_vm3, %v8013_v13 }
0x1ad5   :  { %5484 = vmatmul.msk.f32.gmra.mxu0 %vm579_vm3, %v8023_v36 }
0x1b2a   :  { %v3853_v59 = vpop.f32.mrf.mxu0 }
0x1b2b   :  { %5476 = vmatmul.msk.f32.vlgmr.msrb.gmra.mxu1 %vm814_vm12, %v3853_v59  ;;  %v5651_v59 = vld [vmem:[%s8479_s13 + $0x6] ss:$0 sm:$0xff] }
0x1b32   :  { %v3856_v51 = vpop.f32.mrf.mxu0 }
0x1b33   :  { %5477 = vmatmul.msk.f32.gmra.mxu1 %vm814_vm12, %v3856_v51 }
0x1b3a   :  { %v3982_v37 = vpop.f32.mrf.mxu0 }
0x1b3b   :  { %v3983_v15 = vadd.f32 %v3982_v37, %v6771_v9 }
0x1b3d   :  { %v3988_v39 = vsel %vm850_vm14, %v3983_v15, -inf }
0x1b3e   :  { %3989 = vmax.xlane.f32.xlu2 %v3988_v39 }
0x1b42   :  { %v3985_v27 = vpop.f32.mrf.mxu0 }
0x1b43   :  { %v3986_v32 = vadd.f32 %v3985_v27, %v6776_v16 }
0x1b45   :  { %v3991_v20 = vsel %vm850_vm14, %v3986_v32, -inf }
0x1b46   :  { %3992 = vmax.xlane.f32.xlu0 %v3991_v20 }
0x1b4a   :  { %v4123_v7 = vpop.f32.mrf.mxu0 }
0x1b4b   :  { %v4124_v26 = vadd.f32 %v5649_v46, %v4123_v7 }
0x1b52   :  { %v4126_v52 = vpop.f32.mrf.mxu0 }
0x1b53   :  { %v4127_v14 = vadd.f32 %v5649_v46, %v4126_v52 }
0x1ba8   :  { %v8183_v31 = vpop.f32.mrf.mxu1 }
0x1bb0   :  { %v4095_v49 = vpop.f32.mrf.mxu1 }
0x1bb1   :  { %v3990_v1 = vpop.xlane.xlu2 %3989 }
0x1bb2   :  { %v3994_v24 = vsub.f32 %v3983_v15, %v3990_v1 }
0x1bb4   :  { %v3996_v28 = vmul.f32 1.442695, %v3994_v24 }
0x1bb6   :  { %5801 = vpow2.f32 %v3996_v28 }
0x1bb9   :  { %v3993_v18 = vpop.xlane.xlu0 %3992 }
0x1bba   :  { %v3995_v4 = vsub.f32 %v3986_v32, %v3993_v18  ;;  %v5653_v18 = vld [vmem:[%s8543_s0 + $0x7] ss:$0 sm:$0xff] }
0x1bbc   :  { %v5802_v35 = vpop.eup %5801  ;;  %v3998_v5 = vmul.f32 1.442695, %v3995_v4 }
0x1bbd   :  { %v4000_v54 = vsel %vm850_vm14, %v5802_v35, 0.0 }
0x1bbe   :  { %5803 = vpow2.f32 %v3998_v5  ;;  %4001 = vadd.xlane.f32.xlu1 %v4000_v54 }
0x1bc4   :  { %v5804_v56 = vpop.eup %5803 }
0x1bc5   :  { %v4003_v2 = vsel %vm850_vm14, %v5804_v56, 0.0 }
0x1bc6   :  { %4004 = vadd.xlane.f32.xlu2 %v4003_v2 }
0x1c31   :  { %v4002_v23 = vpop.xlane.xlu1 %4001 }
0x1c32   :  { %5805 = vrcp.f32 %v4002_v23 }
0x1c38   :  { %v5806_v38 = vpop.eup %5805 }
0x1c39   :  { %v4008_v60 = vmul.f32 %v5806_v38, %v5802_v35  ;;  %v4005_v19 = vpop.xlane.xlu2 %4004 }
0x1c3a   :  { %5807 = vrcp.f32 %v4005_v19 }
0x1c3b   :  { %5471 = vmatmul.msk.f32.vlgmr.msrb.gmra.mxu2 %vm850_vm14, %v4008_v60 }
0x1c3c   :  { %4299 = vmatpush.msrb.mxu2 %v8576_v53 }
0x1c40   :  { %v5808_v21 = vpop.eup %5807 }
0x1c41   :  { %v4009_v55 = vmul.f32 %v5808_v21, %v5804_v56 }
0x1c43   :  { %5472 = vmatmul.msk.f32.gmra.mxu2 %vm850_vm14, %v4009_v55 }
0x1c4b   :  { %5490 = vmatmul.msk.f32.vlgmr.msra.gmra.mxu2 %vm579_vm3, %v8013_v13 }
0x1c53   :  { %5491 = vmatmul.msk.f32.gmra.mxu2 %vm579_vm3, %v8023_v36 }
0x1cbe   :  { %v4033_v58 = vpop.f32.mrf.mxu2 }
0x1cbf   :  { %5474 = vmatmul.msk.f32.vlgmr.msra.gmra.mxu3 %vm814_vm12, %v4033_v58 }
0x1cc0   :  { %4329 = vmatpush.msra.mxu3 %v8577_v22 }
0x1cc2   :  { %4330 = vmatpush.msra.mxu3 %v8578_v12 }
0x1cc4   :  { %4331 = vmatpush.msra.mxu3 %v8579_v8 }
0x1cc6   :  { %v4036_v33 = vpop.f32.mrf.mxu2  ;;  %4332 = vmatpush.msra.mxu3 %v8580_v47  ;;  %v5652_v47 = vld [vmem:[%s8544_s24 + $0x7] ss:$0 sm:$0xff] }
0x1cc7   :  { %5475 = vmatmul.msk.f32.gmra.mxu3 %vm814_vm12, %v4036_v33 }
0x1cce   :  { %v4154_v63 = vpop.f32.mrf.mxu2 }
0x1ccf   :  { %5497 = vmatmul.msk.f32.vlgmr.msrb.gmra.mxu3 %vm579_vm3, %v8013_v13  ;;  %v4155_v3 = vadd.f32 %v5650_v57, %v4154_v63 }
0x1cd6   :  { %v4157_v10 = vpop.f32.mrf.mxu2 }
0x1cd7   :  { %v4158_v29 = vadd.f32 %v5650_v57, %v4157_v10  ;;  %5498 = vmatmul.msk.f32.gmra.mxu3 %vm579_vm3, %v8023_v36 }
0x1cd9   :  { %5499 = vmatpush.xpose.msk.msra.mxu1 %vm814_vm12, %v4158_v29 }
0x1cdd   :  { %5500 = vmatpush.xpose.msk.msra.mxu1 %vm814_vm12, %v4155_v3 }
0x1cdf   :  { %5513 = vmatmul.msk.f32.vlgmr.msra.gmra.mxu3 %vm579_vm3, %v8013_v13 }
0x1ce0   :  { %5501 = vmatmul.msk.f32.vlgmr.msra.gmra.mxu1 %vm814_vm12, %v4124_v26 }
0x1ce1   :  { %4360 = vmatpush.msrb.mxu1 %v8581_v30 }
0x1ce3   :  { %4361 = vmatpush.msrb.mxu1 %v8582_v45 }
0x1ce5   :  { %4362 = vmatpush.msrb.mxu1 %v8583_v40 }
0x1ce7   :  { %4363 = vmatpush.msrb.mxu1 %v8584_v48  ;;  %5514 = vmatmul.msk.f32.gmra.mxu3 %vm579_vm3, %v8023_v36 }
0x1ce8   :  { %5502 = vmatmul.msk.f32.gmra.mxu1 %vm814_vm12, %v4127_v14 }
0x1ce9   :  { %4510 = vmatpush.msra.mxu1 %v8056_v62 }
0x1cf0   :  { %5520 = vmatmul.msk.f32.vlgmr.msrb.gmra.mxu1 %vm579_vm3, %v8013_v13 }
0x1cf8   :  { %5521 = vmatmul.msk.f32.gmra.mxu1 %vm579_vm3, %v8023_v36 }
0x1d42   :  { %v8185_v17 = vpop.f32.mrf.mxu3 }
0x1d43   :  { %v4093_v3 = vadd.f32 %v8183_v31, %v8185_v17  ;;  %v8238_v31 = vld [vmem:[%s8481_s15 + $0x1] ss:$0 sm:$0xff] }
0x1d4a   :  { %v4066_v41 = vpop.f32.mrf.mxu3 }
0x1d4b   :  { %v8187_v43 = vadd.f32 %v4095_v49, %v4066_v41 }
0x1d52   :  { %v4185_v62 = vpop.f32.mrf.mxu3 }
0x1d53   :  { %v4186_v15 = vadd.f32 %v5651_v59, %v4185_v62  ;;  %v8585_v62 = vld [vmem:[#allocation6_spill] sm:$0xff] }
0x1d5a   :  { %v4188_v51 = vpop.f32.mrf.mxu3 }
0x1d5b   :  { %v4189_v37 = vadd.f32 %v5651_v59, %v4188_v51  ;;  %v4520_v59 = vadd.f32 %v8102_v50, %v8585_v62  ;;  %v8288_v62 = vld [vmem:[%s8483_s17 + $0x1] ss:$0 sm:$0xff] }
0x1d5d   :  { %v4220_v39 = vpop.f32.mrf.mxu1  ;;  %4268 = vmatpush.msra.mxu0 %v4189_v37 }
0x1d5e   :  { %v4221_v27 = vadd.f32 %v4220_v39, %v6771_v9 }
0x1d5f   :  { %4269 = vmatpush.msra.mxu0 %v4186_v15 }
0x1d60   :  { %v4226_v32 = vsel %vm850_vm14, %v4221_v27, -inf }
0x1d61   :  { %4391 = vmatpush.msrb.mxu0 %v7931_v34  ;;  %4227 = vmax.xlane.f32.xlu0 %v4226_v32 }
0x1d62   :  { %v4334_v33 = vpop.f32.mrf.mxu3 }
0x1d63   :  { %4392 = vmatpush.msrb.mxu0 %v7936_v61  ;;  %v4335_v63 = vadd.f32 %v5652_v47, %v4334_v33 }
0x1d65   :  { %4393 = vmatpush.msrb.mxu0 %v7942_v0  ;;  %v4223_v20 = vpop.f32.mrf.mxu1 }
0x1d66   :  { %v4224_v1 = vadd.f32 %v4223_v20, %v6776_v16 }
0x1d67   :  { %4394 = vmatpush.msrb.mxu0 %v7949_v11 }
0x1d68   :  { %v4229_v24 = vsel %vm850_vm14, %v4224_v1, -inf }
0x1d69   :  { %4230 = vmax.xlane.f32.xlu1 %v4229_v24 }
0x1d6a   :  { %v4337_v10 = vpop.f32.mrf.mxu3 }
0x1d6d   :  { %v4365_v28 = vpop.f32.mrf.mxu1 }
0x1d6e   :  { %v4366_v61 = vadd.f32 %v5653_v18, %v4365_v28 }
0x1d75   :  { %v4368_v4 = vpop.f32.mrf.mxu1 }
0x1d76   :  { %v4369_v34 = vadd.f32 %v5653_v18, %v4368_v4 }
0x1d78   :  { %5529 = vmatpush.xpose.msk.msra.mxu2 %vm814_vm12, %v4369_v34 }
0x1d7c   :  { %5530 = vmatpush.xpose.msk.msra.mxu2 %vm814_vm12, %v4366_v61 }
0x1dd4   :  { %v4228_v0 = vpop.xlane.xlu0 %4227 }
0x1dd5   :  { %v4232_v35 = vsub.f32 %v4221_v27, %v4228_v0 }
0x1dd7   :  { %v4234_v5 = vmul.f32 1.442695, %v4232_v35 }
0x1dd9   :  { %5809 = vpow2.f32 %v4234_v5  ;;  %v5544_v5 = vld [vmem:[%s8484_s18 + $0x38] sm:$0xff] }
0x1ddc   :  { %v4231_v11 = vpop.xlane.xlu1 %4230 }
0x1ddd   :  { %v4233_v54 = vsub.f32 %v4224_v1, %v4231_v11 }
0x1ddf   :  { %v5810_v56 = vpop.eup %5809  ;;  %v4236_v2 = vmul.f32 1.442695, %v4233_v54  ;;  %v5543_v54 = vld [vmem:[%s8484_s18 + $0x30] sm:$0xff] }
0x1de0   :  { %v4238_v23 = vsel %vm850_vm14, %v5810_v56, 0.0 }
0x1de1   :  { %5811 = vpow2.f32 %v4236_v2  ;;  %4239 = vadd.xlane.f32.xlu2 %v4238_v23  ;;  %v5542_v2 = vld [vmem:[%s8484_s18 + $0x28] sm:$0xff] }
0x1de7   :  { %v5812_v38 = vpop.eup %5811 }
0x1de8   :  { %v4241_v60 = vsel %vm850_vm14, %v5812_v38, 0.0 }
0x1de9   :  { %4242 = vadd.xlane.f32.xlu0 %v4241_v60 }
0x1e54   :  { %v4240_v19 = vpop.xlane.xlu2 %4239 }
0x1e55   :  { %5813 = vrcp.f32 %v4240_v19 }
0x1e5b   :  { %v5814_v53 = vpop.eup %5813 }
0x1e5c   :  { %v4246_v21 = vmul.f32 %v5814_v53, %v5810_v56  ;;  %v4243_v55 = vpop.xlane.xlu0 %4242 }
0x1e5d   :  { %5815 = vrcp.f32 %v4243_v55 }
0x1e5e   :  { %5503 = vmatmul.msk.f32.vlgmr.msra.gmra.mxu0 %vm850_vm14, %v4246_v21 }
0x1e5f   :  { %4681 = vmatpush.msra.mxu0 %v5544_v5  ;;  %v5557_v5 = vld [vmem:[%s8486_s20 + $0xb8] sm:$0xff] }
0x1e61   :  { %4682 = vmatpush.msra.mxu0 %v5543_v54  ;;  %v5555_v54 = vld [vmem:[%s8486_s20 + $0xa8] sm:$0xff] }
0x1e63   :  { %v5816_v58 = vpop.eup %5815  ;;  %4683 = vmatpush.msra.mxu0 %v5542_v2  ;;  %v5554_v2 = vld [vmem:[%s8486_s20 + $0xa0] sm:$0xff] }
0x1e64   :  { %v4247_v22 = vmul.f32 %v5816_v58, %v5812_v38  ;;  %v5541_v38 = vld [vmem:[%s8484_s18 + $0x20] sm:$0xff] }
0x1e65   :  { %4684 = vmatpush.msra.mxu0 %v5541_v38  ;;  %v5552_v38 = vld [vmem:[%s8486_s20 + $0x90] sm:$0xff] }
0x1e66   :  { %5504 = vmatmul.msk.f32.gmra.mxu0 %vm850_vm14, %v4247_v22 }
0x1e6e   :  { %5527 = vmatmul.msk.f32.vlgmr.msrb.gmra.mxu0 %vm579_vm3, %v8013_v13  ;;  %v4338_v13 = vadd.f32 %v5652_v47, %v4337_v10 }
0x1e76   :  { %5528 = vmatmul.msk.f32.gmra.mxu0 %vm579_vm3, %v8023_v36  ;;  %v5654_v36 = vld [vmem:[%s8479_s13 + $0x7] ss:$0 sm:$0xff] }
0x1edb   :  { %v4271_v12 = vpop.f32.mrf.mxu0 }
0x1edc   :  { %5506 = vmatmul.msk.f32.vlgmr.msrb.gmra.mxu2 %vm814_vm12, %v4271_v12 }
0x1ee3   :  { %v4274_v8 = vpop.f32.mrf.mxu0 }
0x1ee4   :  { %5507 = vmatmul.msk.f32.gmra.mxu2 %vm814_vm12, %v4274_v8 }
0x1eeb   :  { %v4396_v57 = vpop.f32.mrf.mxu0 }
0x1eec   :  { %5531 = vmatmul.msk.f32.vlgmr.msra.gmra.mxu2 %vm814_vm12, %v4335_v63  ;;  %v4397_v46 = vadd.f32 %v5654_v36, %v4396_v57 }
0x1ef3   :  { %v4399_v29 = vpop.f32.mrf.mxu0 }
0x1ef4   :  { %v4400_v7 = vadd.f32 %v5654_v36, %v4399_v29  ;;  %5532 = vmatmul.msk.f32.gmra.mxu2 %vm814_vm12, %v4338_v13 }
0x1ef6   :  { %4479 = vmatpush.msrb.mxu3 %v4400_v7 }
0x1ef8   :  { %4480 = vmatpush.msrb.mxu3 %v4397_v46 }
0x1f5f   :  { %v4301_v26 = vpop.f32.mrf.mxu2 }
0x1f60   :  { %v8225_v30 = vadd.f32 %v4301_v26, %v4093_v3 }
0x1f67   :  { %v4304_v45 = vpop.f32.mrf.mxu2 }
0x1f68   :  { %v8228_v52 = vadd.f32 %v4304_v45, %v8187_v43  ;;  %v8242_v43 = vadd.f32 %v8238_v31, %v4520_v59 }
0x1f6a   :  { %v4553_v18 = vmul.f32 %v8242_v43, %v8242_v43 }
0x1f6c   :  { %v4557_v61 = vsel %vm579_vm3, %v4553_v18, 0.0  ;;  %v5562_v18 = vld [vmem:[%s8486_s20 + $0xe0] sm:$0xff] }
0x1f6f   :  { %v4431_v40 = vpop.f32.mrf.mxu2 }
0x1f70   :  { %v4432_v48 = vadd.f32 %v4431_v40, %v6771_v9  ;;  %v8586_v9 = vld [vmem:[#allocation7_spill] sm:$0xff] }
0x1f71   :  { %v4521_v51 = vadd.f32 %v8105_v44, %v8586_v9 }
0x1f72   :  { %v4437_v14 = vsel %vm850_vm14, %v4432_v48, -inf }
0x1f73   :  { %4438 = vmax.xlane.f32.xlu1 %v4437_v14  ;;  %v8247_v37 = vadd.f32 %v8238_v31, %v4521_v51  ;;  %v8283_v14 = vld [vmem:[%s8482_s16 + $0x1] ss:$0 sm:$0xff]  ;;  %s5887_s16 = smov 8  }
0x1f75   :  { %v4554_v50 = vmul.f32 %v8247_v37, %v8247_v37  ;;  %v4540_v0 = vsel %vm579_vm3, %v8247_v37, 0.0 }
0x1f77   :  { %v4434_v49 = vpop.f32.mrf.mxu2  ;;  %v4560_v15 = vsel %vm579_vm3, %v4554_v50, 0.0 }
0x1f78   :  { %v4435_v41 = vadd.f32 %v4434_v49, %v6776_v16  ;;  %v4537_v16 = vsel %vm579_vm3, %v8242_v43, 0.0 }
0x1f7a   :  { %v4440_v17 = vsel %vm850_vm14, %v4435_v41, -inf }
0x1f7b   :  { %4441 = vmax.xlane.f32.xlu2 %v4440_v17 }
0x1f83   :  { %4538 = vadd.xlane.f32.xlu2 %v4537_v16 }
0x1f8b   :  { %4561 = vadd.xlane.f32.xlu2 %v4560_v15 }
0x1fe6   :  { %v4439_v39 = vpop.xlane.xlu1 %4438 }
0x1fe7   :  { %v4443_v27 = vsub.f32 %v4432_v48, %v4439_v39 }
0x1fe9   :  { %v4445_v32 = vmul.f32 1.442695, %v4443_v27 }
0x1feb   :  { %5817 = vpow2.f32 %v4445_v32 }
0x1fee   :  { %v4442_v20 = vpop.xlane.xlu2 %4441 }
0x1fef   :  { %v4444_v1 = vsub.f32 %v4435_v41, %v4442_v20 }
0x1ff1   :  { %v5818_v44 = vpop.eup %5817  ;;  %v4447_v24 = vmul.f32 1.442695, %v4444_v1 }
0x1ff2   :  { %v4449_v28 = vsel %vm850_vm14, %v5818_v44, 0.0 }
0x1ff3   :  { %5819 = vpow2.f32 %v4447_v24  ;;  %4450 = vadd.xlane.f32.xlu0 %v4449_v28  ;;  %v5564_v24 = vld [vmem:[%s8486_s20 + $0xf0] sm:$0xff]  ;;  %v5563_v28 = vld [vmem:[%s8486_s20 + $0xe8] sm:$0xff] }
0x1ff6   :  { %v4539_v11 = vpop.xlane.xlu2 %4538 }
0x1ff7   :  { %v4549_v56 = vmul.f32 %v4539_v11, %v6598_v42  ;;  %v5556_v11 = vld [vmem:[%s8486_s20 + $0xb0] sm:$0xff] }
0x1ff9   :  { %v5820_v4 = vpop.eup %5819  ;;  %v4573_v21 = vmul.f32 %v4549_v56, %v4549_v56  ;;  %v4581_v48 = vsub.f32 %v8242_v43, %v4549_v56 }
0x1ffa   :  { %v4452_v34 = vsel %vm850_vm14, %v5820_v4, 0.0 }
0x1ffb   :  { %4453 = vadd.xlane.f32.xlu1 %v4452_v34  ;;  %4558 = vadd.xlane.f32.xlu0 %v4557_v61  ;;  %v5560_v34 = vld [vmem:[%s8486_s20 + $0xd0] sm:$0xff]  ;;  %v5559_v61 = vld [vmem:[%s8486_s20 + $0xc8] sm:$0xff] }
0x1ffe   :  { %v4562_v8 = vpop.xlane.xlu2 %4561 }
0x1fff   :  { %v4570_v57 = vmul.f32 %v4562_v8, %v6598_v42 }
0x2003   :  { %4541 = vadd.xlane.f32.xlu1 %v4540_v0 }
0x2066   :  { %v4451_v35 = vpop.xlane.xlu0 %4450 }
0x2067   :  { %5821 = vrcp.f32 %v4451_v35  ;;  %v5558_v35 = vld [vmem:[%s8486_s20 + $0xc0] sm:$0xff] }
0x206d   :  { %v5822_v23 = vpop.eup %5821 }
0x206e   :  { %v4457_v60 = vmul.f32 %v5822_v23, %v5818_v44  ;;  %v4559_v19 = vpop.xlane.xlu0 %4558  ;;  %v4454_v53 = vpop.xlane.xlu1 %4453  ;;  %v5565_v44 = vld [vmem:[%s8486_s20 + $0xf8] sm:$0xff] }
0x206f   :  { %v4569_v55 = vmul.f32 %v4559_v19, %v6598_v42  ;;  %5823 = vrcp.f32 %v4454_v53  ;;  %4756 = vmatpush.msrb.mxu2 %v5565_v44  ;;  %v5553_v23 = vld [vmem:[%s8486_s20 + $0x98] sm:$0xff]  ;;  %v5550_v19 = vld [vmem:[%s8486_s20 + $0x80] sm:$0xff] }
0x2070   :  { %5533 = vmatmul.msk.f32.vlgmr.msrb.gmra.mxu3 %vm850_vm14, %v4457_v60  ;;  %v5551_v60 = vld [vmem:[%s8486_s20 + $0x88] sm:$0xff]  ;;  %v8350_v53 = vld [vmem:[%s8485_s19 + $0x1] ss:$0 sm:$0xff] }
0x2071   :  { %v4577_v58 = vsub.f32 %v4569_v55, %v4573_v21  ;;  %4757 = vmatpush.msrb.mxu2 %v5564_v24 }
0x2073   :  { %v4585_v22 = vadd.f32 1e-05, %v4577_v58  ;;  %4758 = vmatpush.msrb.mxu2 %v5563_v28 }
0x2075   :  { %v5824_v12 = vpop.eup %5823  ;;  %5825 = vrsqrt.f32 %v4585_v22  ;;  %vm4595_vm6 = vweird.f32 %v4585_v22  ;;  %4759 = vmatpush.msrb.mxu2 %v5562_v18 }
0x2076   :  { %v4542_v33 = vpop.xlane.xlu1 %4541  ;;  %v4458_v47 = vmul.f32 %v5824_v12, %v5820_v4  ;;  %v5561_v4 = vld [vmem:[%s8486_s20 + $0xd8] sm:$0xff] }
0x2077   :  { %v4550_v63 = vmul.f32 %v4542_v33, %v6598_v42  ;;  %4760 = vmatpush.msrb.mxu2 %v5561_v4 }
0x2078   :  { %5534 = vmatmul.msk.f32.gmra.mxu3 %vm850_vm14, %v4458_v47 }
0x2079   :  { %v4574_v10 = vmul.f32 %v4550_v63, %v4550_v63  ;;  %v4582_v39 = vsub.f32 %v8247_v37, %v4550_v63  ;;  %4761 = vmatpush.msrb.mxu2 %v5560_v34 }
0x207b   :  { %v5826_v13 = vpop.eup %5825  ;;  %v4578_v36 = vsub.f32 %v4570_v57, %v4574_v10  ;;  %4762 = vmatpush.msrb.mxu2 %v5559_v61 }
0x207c   :  { %v4590_v29 = vmul.f32 %v5826_v13, %v4585_v22  ;;  %vm4596_vm5 = vweird.f32 %v5826_v13 }
0x207d   :  { %v4586_v7 = vadd.f32 1e-05, %v4578_v36  ;;  %vm4597_vm14 = vmor %vm4595_vm6, %vm4596_vm5  ;;  %4763 = vmatpush.msrb.mxu2 %v5558_v35 }
0x207e   :  { %v4591_v46 = vmul.f32 %v5826_v13, %v4590_v29 }
0x207f   :  { %5827 = vrsqrt.f32 %v4586_v7  ;;  %vm4605_vm8 = vweird.f32 %v4586_v7  ;;  %4764 = vmatpush.msrb.mxu2 %v5557_v5 }
0x2080   :  { %v4592_v3 = vmul.f32 0.5, %v4591_v46 }
0x2081   :  { %4765 = vmatpush.msrb.mxu2 %v5556_v11 }
0x2082   :  { %v4593_v26 = vsub.f32 1.5, %v4592_v3 }
0x2083   :  { %4766 = vmatpush.msrb.mxu2 %v5555_v54 }
0x2084   :  { %v4594_v45 = vmul.f32 %v5826_v13, %v4593_v26 }
0x2085   :  { %v5828_v40 = vpop.eup %5827  ;;  %4767 = vmatpush.msrb.mxu2 %v5554_v2 }
0x2086   :  { %v4598_v49 = vsel %vm4597_vm14, %v5826_v13, %v4594_v45  ;;  %v4600_v41 = vmul.f32 %v5828_v40, %v4586_v7  ;;  %vm4606_vm7 = vweird.f32 %v5828_v40 }
0x2087   :  { %v4629_v59 = vmul.f32 %v4598_v49, %v4581_v48  ;;  %vm4607_vm9 = vmor %vm4605_vm8, %vm4606_vm7  ;;  %4768 = vmatpush.msrb.mxu2 %v5553_v23 }
0x2088   :  { %v4601_v17 = vmul.f32 %v5828_v40, %v4600_v41 }
0x2089   :  { %v4636_v9 = vmul.f32 %v8283_v14, %v4629_v59  ;;  %4769 = vmatpush.msrb.mxu2 %v5552_v38 }
0x208a   :  { %v4602_v51 = vmul.f32 0.5, %v4601_v17 }
0x208b   :  { %v4643_v16 = vadd.f32 %v8288_v62, %v4636_v9  ;;  %4770 = vmatpush.msrb.mxu2 %v5551_v60 }
0x208c   :  { %v4603_v50 = vsub.f32 1.5, %v4602_v51 }
0x208d   :  { %5546 = vmatmul.msk.f32.vlgmr.msra.gmra.mxu0 %vm579_vm3, %v4643_v16  ;;  %4771 = vmatpush.msrb.mxu2 %v5550_v19 }
0x208e   :  { %v4604_v15 = vmul.f32 %v5828_v40, %v4603_v50 }
0x2090   :  { %v4608_v27 = vsel %vm4607_vm9, %v5828_v40, %v4604_v15 }
0x2091   :  { %v4630_v32 = vmul.f32 %v4608_v27, %v4582_v39 }
0x2093   :  { %v4637_v20 = vmul.f32 %v8283_v14, %v4630_v32 }
0x2095   :  { %v4644_v1 = vadd.f32 %v8288_v62, %v4637_v20 }
0x2097   :  { %5547 = vmatmul.msk.f32.gmra.mxu0 %vm579_vm3, %v4644_v1 }
0x20f3   :  { %v4482_v0 = vpop.f32.mrf.mxu3 }
0x20f4   :  { %5536 = vmatmul.msk.f32.vlgmr.msra.gmra.mxu1 %vm814_vm12, %v4482_v0 }
0x20fb   :  { %v4485_v56 = vpop.f32.mrf.mxu3 }
0x20fc   :  { %5537 = vmatmul.msk.f32.gmra.mxu1 %vm814_vm12, %v4485_v56 }
0x210a   :  { %v4686_v21 = vpop.f32.mrf.mxu0 }
0x210b   :  { %v4687_v55 = vadd.f32 %v8350_v53, %v4686_v21 }
0x210d   :  { %v4698_v58 = vmul.f32 %v4687_v55, %v4687_v55 }
0x210f   :  { %v4702_v22 = vmul.f32 %v4698_v58, %v4687_v55 }
0x2111   :  { %v4706_v12 = vmul.f32 0.044715, %v4702_v22 }
0x2113   :  { %v4710_v8 = vadd.f32 %v4706_v12, %v4687_v55 }
0x2114   :  { %v4689_v33 = vpop.f32.mrf.mxu0 }
0x2115   :  { %v4714_v47 = vmul.f32 0.7978846, %v4710_v8  ;;  %v4690_v63 = vadd.f32 %v8350_v53, %v4689_v33 }
0x2117   :  { %5829 = vtanh.f32 %v4714_v47  ;;  %v4699_v57 = vmul.f32 %v4690_v63, %v4690_v63 }
0x2119   :  { %v4703_v10 = vmul.f32 %v4699_v57, %v4690_v63 }
0x211b   :  { %v4707_v13 = vmul.f32 0.044715, %v4703_v10 }
0x211d   :  { %v5830_v36 = vpop.eup %5829  ;;  %v4711_v29 = vadd.f32 %v4707_v13, %v4690_v63 }
0x211e   :  { %v4722_v7 = vadd.f32 1.0, %v5830_v36 }
0x211f   :  { %v4715_v46 = vmul.f32 0.7978846, %v4711_v29 }
0x2120   :  { %v4726_v3 = vmul.f32 0.5, %v4722_v7 }
0x2121   :  { %5831 = vtanh.f32 %v4715_v46 }
0x2122   :  { %v4730_v26 = vmul.f32 %v4726_v3, %v4687_v55 }
0x2124   :  { %4772 = vmatmul.f32.vlgmr.msrb.gmra.mxu2 %v4730_v26 }
0x2127   :  { %v5832_v45 = vpop.eup %5831 }
0x2128   :  { %v4723_v40 = vadd.f32 1.0, %v5832_v45 }
0x212a   :  { %v4727_v48 = vmul.f32 0.5, %v4723_v40 }
0x212c   :  { %v4731_v49 = vmul.f32 %v4727_v48, %v4690_v63 }
0x212e   :  { %4775 = vmatmul.f32.gmra.mxu2 %v4731_v49 }
0x2171   :  { %v4512_v41 = vpop.f32.mrf.mxu1 }
0x2172   :  { %v4518_v59 = vadd.f32 %v4512_v41, %v8225_v30 }
0x2174   :  { %v4522_v17 = vadd.f32 %v4518_v59, %v7916_v25 }
0x2176   :  { %v8357_v9 = vadd.f32 %v8238_v31, %v4522_v17 }
0x2178   :  { %v4543_v51 = vsel %vm579_vm3, %v8357_v9, 0.0  ;;  %v4555_v16 = vmul.f32 %v8357_v9, %v8357_v9 }
0x2179   :  { %4544 = vadd.xlane.f32.xlu0 %v4543_v51  ;;  %v4515_v50 = vpop.f32.mrf.mxu1  ;;  %v4904_v51 = vld [vmem:[%s8492_s26 + $0x18] sm:$0xff] }
0x217a   :  { %v4519_v15 = vadd.f32 %v4515_v50, %v8228_v52  ;;  %v4563_v39 = vsel %vm579_vm3, %v4555_v16, 0.0  ;;  %v8377_v52 = vld [vmem:[%s8487_s21 + $0x1] ss:$0 sm:$0xff]  ;;  %4929 = vmatpush.msra.mxu3 %v4904_v51  ;;  %v4903_v16 = vld [vmem:[%s8492_s26 + $0x10] sm:$0xff]  ;;  %v4902_v50 = vld [vmem:[%s8492_s26 + $0x8] sm:$0xff] }
0x217b   :  { %4564 = vadd.xlane.f32.xlu1 %v4563_v39 }
0x217c   :  { %v4523_v30 = vadd.f32 %v4519_v15, %v7921_v6  ;;  %4930 = vmatpush.msra.mxu3 %v4903_v16 }
0x217e   :  { %v8367_v25 = vadd.f32 %v8238_v31, %v4523_v30  ;;  %4931 = vmatpush.msra.mxu3 %v4902_v50 }
0x2180   :  { %v4546_v27 = vsel %vm579_vm3, %v8367_v25, 0.0  ;;  %v4556_v32 = vmul.f32 %v8367_v25, %v8367_v25 }
0x2181   :  { %4547 = vadd.xlane.f32.xlu2 %v4546_v27 }
0x2182   :  { %v4566_v20 = vsel %vm579_vm3, %v4556_v32, 0.0 }
0x2183   :  { %4567 = vadd.xlane.f32.xlu0 %v4566_v20 }
0x21a7   :  { %v4773_v1 = vpop.f32.mrf.mxu2 }
0x21a8   :  { %v4774_v6 = vadd.f32 %v8377_v52, %v4773_v1 }
0x21aa   :  { %v8381_v31 = vadd.f32 %v4774_v6, %v8242_v43 }
0x21ac   :  { %v4791_v44 = vsel %vm579_vm3, %v8381_v31, 0.0  ;;  %v4807_v24 = vmul.f32 %v8381_v31, %v8381_v31 }
0x21ad   :  { %4792 = vadd.xlane.f32.xlu1 %v4791_v44 }
0x21ae   :  { %v4811_v28 = vsel %vm579_vm3, %v4807_v24, 0.0 }
0x21af   :  { %4812 = vadd.xlane.f32.xlu2 %v4811_v28 }
0x21b1   :  { %v4776_v18 = vpop.f32.mrf.mxu2 }
0x21b2   :  { %v4777_v4 = vadd.f32 %v8377_v52, %v4776_v18 }
0x21b4   :  { %v8390_v34 = vadd.f32 %v4777_v4, %v8247_v37 }
0x21b6   :  { %v4794_v43 = vsel %vm579_vm3, %v8390_v34, 0.0  ;;  %v4808_v61 = vmul.f32 %v8390_v34, %v8390_v34 }
0x21b7   :  { %4795 = vadd.xlane.f32.xlu0 %v4794_v43 }
0x21b8   :  { %v4814_v0 = vsel %vm579_vm3, %v4808_v61, 0.0 }
0x21b9   :  { %4815 = vadd.xlane.f32.xlu1 %v4814_v0 }
0x21ec   :  { %v4545_v35 = vpop.xlane.xlu0 %4544 }
0x21ed   :  { %v4551_v5 = vmul.f32 %v4545_v35, %v6598_v42 }
0x21ee   :  { %v4565_v11 = vpop.xlane.xlu1 %4564 }
0x21ef   :  { %v4575_v54 = vmul.f32 %v4551_v5, %v4551_v5  ;;  %v4571_v56 = vmul.f32 %v4565_v11, %v6598_v42  ;;  %v4583_v13 = vsub.f32 %v8357_v9, %v4551_v5 }
0x21f1   :  { %v4579_v2 = vsub.f32 %v4571_v56, %v4575_v54 }
0x21f3   :  { %v4587_v37 = vadd.f32 1e-05, %v4579_v2  ;;  %v8429_v2 = vld [vmem:[%s8488_s22] ss:$0 sm:$0xff]  ;;  %s5885_s22 = smov [#allocation3]  }
0x21f4   :  { %v4548_v23 = vpop.xlane.xlu2 %4547 }
0x21f5   :  { %5833 = vrsqrt.f32 %v4587_v37  ;;  %v4552_v38 = vmul.f32 %v4548_v23, %v6598_v42  ;;  %vm4615_vm10 = vweird.f32 %v4587_v37 }
0x21f6   :  { %v4568_v60 = vpop.xlane.xlu0 %4567 }
0x21f7   :  { %v4576_v19 = vmul.f32 %v4552_v38, %v4552_v38  ;;  %v4572_v21 = vmul.f32 %v4568_v60, %v6598_v42  ;;  %v4584_v48 = vsub.f32 %v8367_v25, %v4552_v38  ;;  %v8434_v38 = vld [vmem:[%s8489_s23] ss:$0 sm:$0xff]  ;;  %s4954_s23 = sshll.u32 %s5885_s22, 4  ;;  %s4955_s23 = int_to_ptr.vmem [resolvable:$true] %s4954_s23 }
0x21f9   :  { %v4580_v55 = vsub.f32 %v4572_v21, %v4576_v19 }
0x21fb   :  { %v5834_v58 = vpop.eup %5833  ;;  %v4588_v22 = vadd.f32 1e-05, %v4580_v55 }
0x21fc   :  { %v4610_v12 = vmul.f32 %v5834_v58, %v4587_v37  ;;  %vm4616_vm12 = vweird.f32 %v5834_v58 }
0x21fd   :  { %5835 = vrsqrt.f32 %v4588_v22  ;;  %vm4617_vm11 = vmor %vm4615_vm10, %vm4616_vm12  ;;  %vm4625_vm15 = vweird.f32 %v4588_v22 }
0x21fe   :  { %v4611_v8 = vmul.f32 %v5834_v58, %v4610_v12 }
0x2200   :  { %v4612_v33 = vmul.f32 0.5, %v4611_v8 }
0x2202   :  { %v4613_v47 = vsub.f32 1.5, %v4612_v33 }
0x2203   :  { %v5836_v63 = vpop.eup %5835 }
0x2204   :  { %v4614_v57 = vmul.f32 %v5834_v58, %v4613_v47  ;;  %v4620_v10 = vmul.f32 %v5836_v63, %v4588_v22  ;;  %vm4626_vm13 = vweird.f32 %v5836_v63 }
0x2205   :  { %vm4627_vm0 = vmor %vm4625_vm15, %vm4626_vm13 }
0x2206   :  { %v4618_v36 = vsel %vm4617_vm11, %v5834_v58, %v4614_v57  ;;  %v4621_v29 = vmul.f32 %v5836_v63, %v4620_v10 }
0x2207   :  { %v4631_v7 = vmul.f32 %v4618_v36, %v4583_v13 }
0x2208   :  { %v4622_v46 = vmul.f32 0.5, %v4621_v29 }
0x2209   :  { %v4638_v3 = vmul.f32 %v8283_v14, %v4631_v7 }
0x220a   :  { %v4623_v26 = vsub.f32 1.5, %v4622_v46 }
0x220b   :  { %v4645_v45 = vadd.f32 %v8288_v62, %v4638_v3 }
0x220c   :  { %v4624_v40 = vmul.f32 %v5836_v63, %v4623_v26 }
0x220d   :  { %5548 = vmatmul.msk.f32.gmra.mxu0 %vm579_vm3, %v4645_v45 }
0x220e   :  { %v4628_v49 = vsel %vm4627_vm0, %v5836_v63, %v4624_v40 }
0x220f   :  { %v4632_v41 = vmul.f32 %v4628_v49, %v4584_v48 }
0x2211   :  { %v4639_v59 = vmul.f32 %v8283_v14, %v4632_v41 }
0x2213   :  { %v4646_v17 = vadd.f32 %v8288_v62, %v4639_v59  ;;  %v4901_v62 = vld [vmem:[%s8492_s26] sm:$0xff] }
0x2214   :  { %4932 = vmatpush.msra.mxu3 %v4901_v62 }
0x2215   :  { %5549 = vmatmul.msk.f32.gmra.mxu0 %vm579_vm3, %v4646_v17 }
0x2220   :  { %v4793_v15 = vpop.xlane.xlu1 %4792 }
0x2221   :  { %v4803_v14 = vmul.f32 %v4793_v15, %v6598_v42 }
0x2222   :  { %v4813_v39 = vpop.xlane.xlu2 %4812 }
0x2223   :  { %v4827_v30 = vmul.f32 %v4803_v14, %v4803_v14  ;;  %v4823_v27 = vmul.f32 %v4813_v39, %v6598_v42  ;;  %v4835_v56 = vsub.f32 %v8381_v31, %v4803_v14 }
0x2225   :  { %v4831_v32 = vsub.f32 %v4823_v27, %v4827_v30 }
0x2227   :  { %v4839_v20 = vadd.f32 1e-05, %v4831_v32 }
0x2229   :  { %5837 = vrsqrt.f32 %v4839_v20  ;;  %vm4849_vm2 = vweird.f32 %v4839_v20 }
0x222a   :  { %v4796_v1 = vpop.xlane.xlu0 %4795 }
0x222b   :  { %v4804_v6 = vmul.f32 %v4796_v1, %v6598_v42 }
0x222c   :  { %v4816_v44 = vpop.xlane.xlu1 %4815 }
0x222d   :  { %v4828_v24 = vmul.f32 %v4804_v6, %v4804_v6  ;;  %v4824_v28 = vmul.f32 %v4816_v44, %v6598_v42  ;;  %v4836_v12 = vsub.f32 %v8390_v34, %v4804_v6 }
0x222f   :  { %v5838_v18 = vpop.eup %5837  ;;  %v4832_v4 = vsub.f32 %v4824_v28, %v4828_v24 }
0x2230   :  { %v4844_v43 = vmul.f32 %v5838_v18, %v4839_v20  ;;  %vm4850_vm1 = vweird.f32 %v5838_v18 }
0x2231   :  { %v4840_v61 = vadd.f32 1e-05, %v4832_v4  ;;  %vm4851_vm4 = vmor %vm4849_vm2, %vm4850_vm1 }
0x2232   :  { %v4845_v0 = vmul.f32 %v5838_v18, %v4844_v43 }
0x2233   :  { %5839 = vrsqrt.f32 %v4840_v61  ;;  %vm4859_vm6 = vweird.f32 %v4840_v61 }
0x2234   :  { %v4846_v35 = vmul.f32 0.5, %v4845_v0 }
0x2236   :  { %v4847_v5 = vsub.f32 1.5, %v4846_v35 }
0x2238   :  { %v4848_v11 = vmul.f32 %v5838_v18, %v4847_v5 }
0x2239   :  { %v5840_v54 = vpop.eup %5839 }
0x223a   :  { %v4852_v37 = vsel %vm4851_vm4, %v5838_v18, %v4848_v11  ;;  %v4854_v23 = vmul.f32 %v5840_v54, %v4840_v61  ;;  %vm4860_vm5 = vweird.f32 %v5840_v54 }
0x223b   :  { %v4883_v60 = vmul.f32 %v4852_v37, %v4835_v56  ;;  %vm4861_vm14 = vmor %vm4859_vm6, %vm4860_vm5 }
0x223c   :  { %v4855_v19 = vmul.f32 %v5840_v54, %v4854_v23 }
0x223d   :  { %v4890_v21 = vmul.f32 %v8429_v2, %v4883_v60 }
0x223e   :  { %v4856_v55 = vmul.f32 0.5, %v4855_v19 }
0x223f   :  { %v4897_v31 = vadd.f32 %v8434_v38, %v4890_v21 }
0x2240   :  { %v4857_v58 = vsub.f32 1.5, %v4856_v55 }
0x2241   :  { %5567 = vmatmul.msk.f32.vlgmr.msra.gmra.mxu3 %vm579_vm3, %v4897_v31 }
0x2242   :  { %v4858_v22 = vmul.f32 %v5840_v54, %v4857_v58 }
0x2244   :  { %v4862_v8 = vsel %vm4861_vm14, %v5840_v54, %v4858_v22 }
0x2245   :  { %v4884_v33 = vmul.f32 %v4862_v8, %v4836_v12 }
0x2247   :  { %v4891_v47 = vmul.f32 %v8429_v2, %v4884_v33 }
0x2249   :  { %v4898_v63 = vadd.f32 %v8434_v38, %v4891_v47 }
0x224b   :  { %5568 = vmatmul.msk.f32.gmra.mxu3 %vm579_vm3, %v4898_v63 }
0x228a   :  { %v4692_v57 = vpop.f32.mrf.mxu0 }
0x228b   :  { %v4693_v10 = vadd.f32 %v8350_v53, %v4692_v57 }
0x228d   :  { %v4700_v13 = vmul.f32 %v4693_v10, %v4693_v10 }
0x228f   :  { %v4704_v36 = vmul.f32 %v4700_v13, %v4693_v10 }
0x2291   :  { %v4708_v29 = vmul.f32 0.044715, %v4704_v36 }
0x2292   :  { %v4695_v7 = vpop.f32.mrf.mxu0 }
0x2293   :  { %v4712_v46 = vadd.f32 %v4708_v29, %v4693_v10  ;;  %v4696_v3 = vadd.f32 %v8350_v53, %v4695_v7 }
0x2295   :  { %v4701_v34 = vmul.f32 %v4696_v3, %v4696_v3  ;;  %v4716_v26 = vmul.f32 0.7978846, %v4712_v46 }
0x2297   :  { %v4705_v45 = vmul.f32 %v4701_v34, %v4696_v3  ;;  %5841 = vtanh.f32 %v4716_v26 }
0x2299   :  { %v4709_v40 = vmul.f32 0.044715, %v4705_v45 }
0x229b   :  { %v4713_v48 = vadd.f32 %v4709_v40, %v4696_v3 }
0x229d   :  { %v5842_v49 = vpop.eup %5841  ;;  %v4717_v41 = vmul.f32 0.7978846, %v4713_v48 }
0x229e   :  { %v4724_v59 = vadd.f32 1.0, %v5842_v49 }
0x229f   :  { %5843 = vtanh.f32 %v4717_v41 }
0x22a0   :  { %v4728_v17 = vmul.f32 0.5, %v4724_v59 }
0x22a2   :  { %v4732_v51 = vmul.f32 %v4728_v17, %v4693_v10 }
0x22a4   :  { %4778 = vmatmul.f32.gmra.mxu2 %v4732_v51 }
0x22a5   :  { %v5844_v16 = vpop.eup %5843 }
0x22a6   :  { %v4725_v50 = vadd.f32 1.0, %v5844_v16 }
0x22a8   :  { %v4729_v15 = vmul.f32 0.5, %v4725_v50 }
0x22aa   :  { %v4733_v14 = vmul.f32 %v4729_v15, %v4696_v3 }
0x22ac   :  { %4781 = vmatmul.f32.gmra.mxu2 %v4733_v14 }
0x22c4   :  { %v4934_v62 = vpop.f32.mrf.mxu3 }
0x22c5   :  { %4946 = vst [vmem:[#allocation3] sm:$0xff] %v4934_v62 }
0x22ce   :  { %v4937_v53 = vpop.f32.mrf.mxu3 }
0x22cf   :  { %4947 = vst [vmem:[#allocation3 + $0x8] sm:$0xff] %v4937_v53 }
0x2327   :  { %v4779_v39 = vpop.f32.mrf.mxu2 }
0x2328   :  { %v4780_v30 = vadd.f32 %v8377_v52, %v4779_v39 }
0x232a   :  { %v4787_v27 = vadd.f32 %v4780_v30, %v8357_v9 }
0x232c   :  { %v4797_v32 = vsel %vm579_vm3, %v4787_v27, 0.0  ;;  %v4809_v20 = vmul.f32 %v4787_v27, %v4787_v27 }
0x232d   :  { %4798 = vadd.xlane.f32.xlu2 %v4797_v32 }
0x232e   :  { %v4817_v1 = vsel %vm579_vm3, %v4809_v20, 0.0 }
0x232f   :  { %v4782_v6 = vpop.f32.mrf.mxu2  ;;  %4818 = vadd.xlane.f32.xlu0 %v4817_v1 }
0x2330   :  { %v4783_v44 = vadd.f32 %v8377_v52, %v4782_v6 }
0x2332   :  { %v4788_v24 = vadd.f32 %v4783_v44, %v8367_v25 }
0x2334   :  { %v4800_v28 = vsel %vm579_vm3, %v4788_v24, 0.0  ;;  %v4810_v18 = vmul.f32 %v4788_v24, %v4788_v24 }
0x2335   :  { %4801 = vadd.xlane.f32.xlu1 %v4800_v28 }
0x2336   :  { %v4820_v4 = vsel %vm579_vm3, %v4810_v18, 0.0 }
0x2337   :  { %4821 = vadd.xlane.f32.xlu2 %v4820_v4 }
0x23a0   :  { %v4799_v9 = vpop.xlane.xlu2 %4798 }
0x23a1   :  { %v4805_v43 = vmul.f32 %v4799_v9, %v6598_v42 }
0x23a2   :  { %v4819_v61 = vpop.xlane.xlu0 %4818 }
0x23a3   :  { %v4829_v0 = vmul.f32 %v4805_v43, %v4805_v43  ;;  %v4825_v35 = vmul.f32 %v4819_v61, %v6598_v42  ;;  %v4837_v33 = vsub.f32 %v4787_v27, %v4805_v43 }
0x23a5   :  { %v4833_v5 = vsub.f32 %v4825_v35, %v4829_v0 }
0x23a7   :  { %v4841_v11 = vadd.f32 1e-05, %v4833_v5 }
0x23a8   :  { %v4802_v54 = vpop.xlane.xlu1 %4801 }
0x23a9   :  { %5845 = vrsqrt.f32 %v4841_v11  ;;  %v4806_v25 = vmul.f32 %v4802_v54, %v6598_v42  ;;  %vm4869_vm8 = vweird.f32 %v4841_v11 }
0x23aa   :  { %v4822_v52 = vpop.xlane.xlu2 %4821 }
0x23ab   :  { %v4830_v56 = vmul.f32 %v4806_v25, %v4806_v25  ;;  %v4826_v37 = vmul.f32 %v4822_v52, %v6598_v42  ;;  %v4838_v7 = vsub.f32 %v4788_v24, %v4806_v25 }
0x23ad   :  { %v4834_v23 = vsub.f32 %v4826_v37, %v4830_v56 }
0x23af   :  { %v5846_v60 = vpop.eup %5845  ;;  %v4842_v19 = vadd.f32 1e-05, %v4834_v23 }
0x23b0   :  { %v4864_v21 = vmul.f32 %v5846_v60, %v4841_v11  ;;  %vm4870_vm7 = vweird.f32 %v5846_v60 }
0x23b1   :  { %5847 = vrsqrt.f32 %v4842_v19  ;;  %vm4871_vm9 = vmor %vm4869_vm8, %vm4870_vm7  ;;  %vm4879_vm10 = vweird.f32 %v4842_v19 }
0x23b2   :  { %v4865_v55 = vmul.f32 %v5846_v60, %v4864_v21 }
0x23b4   :  { %v4866_v31 = vmul.f32 0.5, %v4865_v55 }
0x23b6   :  { %v4867_v58 = vsub.f32 1.5, %v4866_v31 }
0x23b7   :  { %v5848_v22 = vpop.eup %5847 }
0x23b8   :  { %v4868_v12 = vmul.f32 %v5846_v60, %v4867_v58  ;;  %v4874_v8 = vmul.f32 %v5848_v22, %v4842_v19  ;;  %vm4880_vm12 = vweird.f32 %v5848_v22 }
0x23b9   :  { %vm4881_vm11 = vmor %vm4879_vm10, %vm4880_vm12 }
0x23ba   :  { %v4872_v47 = vsel %vm4871_vm9, %v5846_v60, %v4868_v12  ;;  %v4875_v63 = vmul.f32 %v5848_v22, %v4874_v8 }
0x23bb   :  { %v4885_v57 = vmul.f32 %v4872_v47, %v4837_v33 }
0x23bc   :  { %v4876_v10 = vmul.f32 0.5, %v4875_v63 }
0x23bd   :  { %v4892_v42 = vmul.f32 %v8429_v2, %v4885_v57 }
0x23be   :  { %v4877_v13 = vsub.f32 1.5, %v4876_v10 }
0x23bf   :  { %v4899_v36 = vadd.f32 %v8434_v38, %v4892_v42 }
0x23c0   :  { %v4878_v29 = vmul.f32 %v5848_v22, %v4877_v13 }
0x23c1   :  { %5569 = vmatmul.msk.f32.gmra.mxu3 %vm579_vm3, %v4899_v36 }
0x23c2   :  { %v4882_v46 = vsel %vm4881_vm11, %v5848_v22, %v4878_v29 }
0x23c3   :  { %v4886_v3 = vmul.f32 %v4882_v46, %v4838_v7 }
0x23c5   :  { %v4893_v34 = vmul.f32 %v8429_v2, %v4886_v3 }
0x23c7   :  { %v4900_v26 = vadd.f32 %v8434_v38, %v4893_v34 }
0x23c9   :  { %5570 = vmatmul.msk.f32.gmra.mxu3 %vm579_vm3, %v4900_v26 }
0x2444   :  { %v4940_v45 = vpop.f32.mrf.mxu3 }
0x2445   :  { %4948 = vst [vmem:[#allocation3 + $0x10] sm:$0xff] %v4940_v45 }
0x244c   :  { %v4943_v40 = vpop.f32.mrf.mxu3 }
0x244d   :  { %4949 = vst [vmem:[#allocation3 + $0x18] sm:$0xff] %v4943_v40 }
0x244e   :  { %4962 = dma.vmem_to_hbm [thread:$0]  %s4955_s23, 512, %s4957_s2, [#allocation4], %s5886_s12, %s5886_s12, %s5887_s16  }
0x244f   :  { %5879 = dma.done.wait [#allocation4], 512  }
0x2450   :  { %5880 = vsyncadd [#allocation4], 4294966784 }
0x2451   :  { %4967 = vsyncpa [#allocation4], 1 }

</bundles_post_ra>
